<compile_context>
chip_gen: v7x
topology: tpu7x:2x2x1
jax: 0.10.0
libtpu: 0.0.40
codegen_flags: <defaults>
</compile_context>

<pallas_src>
import jax
import jax.numpy as jnp
from jax.experimental import pallas as pl
from jax.experimental.pallas import tpu as pltpu


# ----------------------------------------------------------------------------
# Pallas kernel: tiled  out = relu( (A @ W) + bias )
#   A: (tm, tk) bf16 im2col patches, W: (tk, tn) bf16 folded conv weight,
#   bias: (1, tn) f32 folded BatchNorm bias (eval mode).
# Grid = (M tiles, N tiles, K tiles); K innermost; f32 accumulator in VMEM.
# ----------------------------------------------------------------------------
def _conv_bn_relu_kernel(a_ref, w_ref, bias_ref, o_ref, acc_ref):
    k = pl.program_id(2)

    @pl.when(k == 0)
    def _():
        acc_ref[...] = jnp.zeros_like(acc_ref)

    acc_ref[...] += jnp.dot(
        a_ref[...], w_ref[...], preferred_element_type=jnp.float32
    )

    @pl.when(k == pl.num_programs(2) - 1)
    def _():
        y = acc_ref[...] + bias_ref[...]
        o_ref[...] = jnp.maximum(y, 0.0).astype(o_ref.dtype)


def _round_up(x, m):
    return ((x + m - 1) // m) * m


MAX_TK = 1536  # bf16 W tile 1536x512 double-buffered = 3 MB: fits v7x's 64 MiB VMEM.
MAX_TM = 512
MAX_TN = 512


def fused_matmul_bias_relu(a, w, bias):
    """a: (M, K) bf16, w: (Kp, Np) bf16 (K/N pre-padded, BN scale folded),
    bias: (1, Np) f32.  Returns (M, Np) bf16 of relu(a @ w + bias)."""
    M, K = a.shape
    Kp, Np = w.shape

    # Tile sizes (all static: derived from shapes / Python constants).
    tm = min(MAX_TM, _round_up(M, 8))
    Mp = _round_up(M, tm)
    tn = min(MAX_TN, Np)            # Np is a multiple of 128; tn divides Np.
    n_k = pl.cdiv(Kp, MAX_TK)
    tk = Kp // n_k                  # multiple of 128 by construction (init).

    # Minimal activation padding: M to the tm multiple, K to the weight's Kp.
    if (Mp, Kp) != (M, K):
        a = jnp.pad(a, ((0, Mp - M), (0, Kp - K)))

    out = pl.pallas_call(
        _conv_bn_relu_kernel,
        out_shape=jax.ShapeDtypeStruct((Mp, Np), jnp.bfloat16),
        grid_spec=pltpu.PrefetchScalarGridSpec(
            num_scalar_prefetch=0,
            grid=(Mp // tm, Np // tn, n_k),
            in_specs=[
                pl.BlockSpec((tm, tk), lambda i, j, k: (i, k)),
                pl.BlockSpec((tk, tn), lambda i, j, k: (k, j)),
                pl.BlockSpec((1, tn), lambda i, j, k: (0, j)),
            ],
            out_specs=pl.BlockSpec((tm, tn), lambda i, j, k: (i, j)),
            scratch_shapes=[pltpu.VMEM((tm, tn), jnp.float32)],
        ),
        compiler_params=pltpu.CompilerParams(
            dimension_semantics=("parallel", "parallel", "arbitrary"),
        ),
    )(a, w, bias)
    return out[:M]


# ----------------------------------------------------------------------------
# Plain-JAX glue: im2col for a dense 3D conv, kernel=3, pad=1, given stride.
# ----------------------------------------------------------------------------
def im2col_3d(x, stride):
    """x: (B, D, H, W, C) -> patches (B*Do*Ho*Wo, 27*C), output spatial dims."""
    B, D, H, W, C = x.shape
    xp = jnp.pad(x, ((0, 0), (1, 1), (1, 1), (1, 1), (0, 0)))
    Do = (D + 2 - 3) // stride + 1
    Ho = (H + 2 - 3) // stride + 1
    Wo = (W + 2 - 3) // stride + 1
    slabs = []
    for kd in range(3):
        for kh in range(3):
            for kw in range(3):
                sl = xp[
                    :,
                    kd : kd + stride * (Do - 1) + 1 : stride,
                    kh : kh + stride * (Ho - 1) + 1 : stride,
                    kw : kw + stride * (Wo - 1) + 1 : stride,
                    :,
                ]
                slabs.append(sl)
    p = jnp.stack(slabs, axis=-2)  # (B, Do, Ho, Wo, 27, C)
    return p.reshape(B * Do * Ho * Wo, 27 * C), (B, Do, Ho, Wo)


# ----------------------------------------------------------------------------
# Deterministic parameter construction (synthetic; mirrors module __init__).
#   conv_i: MinkowskiConvolution(c_in, c_out, k=3, dim=3) -> weight (27, c_in, c_out)
#   bn_i:   MinkowskiBatchNorm(c_out) (eval-mode running stats, folded)
# BN scale is folded into W; W is zero-padded along K (to tk*n_k) and N (to a
# 128-multiple) once here, so the kernel always sees aligned, lane-dense tiles.
# ----------------------------------------------------------------------------
CHANNELS = [3, 64, 128, 256, 512, 1024]
STRIDES = [1, 2, 2, 2, 2]
BN_EPS = 1e-5


def _pick_kp(K, max_tk=MAX_TK):
    """Kp = tk * n_k with tk a 128-multiple <= max_tk; minimal padding of K."""
    kp128 = _round_up(K, 128)
    n_k = -(-kp128 // max_tk)
    tk = _round_up(-(-kp128 // n_k), 128)
    return tk * n_k


def init_params(key):
    params = []
    for i in range(5):
        c_in, c_out = CHANNELS[i], CHANNELS[i + 1]
        key, kw, km = jax.random.split(key, 3)
        w = jax.random.normal(kw, (27, c_in, c_out), jnp.float32) * 0.05
        gamma = jnp.ones((c_out,), jnp.float32)
        beta = jnp.zeros((c_out,), jnp.float32)
        run_mean = jax.random.normal(km, (c_out,), jnp.float32) * 0.01
        run_var = jnp.ones((c_out,), jnp.float32)
        # Fold BN (eval mode): scale into the weight, bias applied post-matmul.
        inv_std = 1.0 / jnp.sqrt(run_var + BN_EPS)
        scale = gamma * inv_std
        bias = beta - run_mean * scale

        K = 27 * c_in
        w2 = w.reshape(K, c_out) * scale[None, :]
        Kp = _pick_kp(K)
        Np = _round_up(c_out, 128)           # lane-dense output channels
        w_p = jnp.pad(w2, ((0, Kp - K), (0, Np - c_out))).astype(jnp.bfloat16)
        bias_p = jnp.pad(bias, (0, Np - c_out)).reshape(1, Np).astype(jnp.float32)
        params.append((w_p, bias_p))
    return params


@jax.jit
def backbone_forward(x, params):
    """x: (B, D, H, W, C_in) -> list of 5 feature maps [x1..x5], NDHWC, bf16."""
    x = x.astype(jnp.bfloat16)
    feats = []
    for (w, bias), stride, c_out in zip(params, STRIDES, CHANNELS[1:]):
        patches, (B, Do, Ho, Wo) = im2col_3d(x, stride)
        y = fused_matmul_bias_relu(patches, w, bias)
        y = y[:, :c_out].reshape(B, Do, Ho, Wo, c_out)
        feats.append(y)
        x = y
    return feats


if __name__ == "__main__":
    key = jax.random.PRNGKey(0)
    key, kx, kp = jax.random.split(key, 3)
    # Small dense voxel grid: batch=2, 8^3 spatial, 3 input channels (NDHWC).
    x = jax.random.normal(kx, (2, 8, 8, 8, 3), jnp.float32)
    params = init_params(kp)

    outs = backbone_forward(x, params)
    for o in outs:
        jax.block_until_ready(o)

    expected = [
        (2, 8, 8, 8, 64),
        (2, 4, 4, 4, 128),
        (2, 2, 2, 2, 256),
        (2, 1, 1, 1, 512),
        (2, 1, 1, 1, 1024),
    ]
    assert [tuple(o.shape) for o in outs] == expected, [o.shape for o in outs]
    assert all(bool(jnp.all(o >= 0.0)) for o in outs)  # ReLU outputs
    print("KERNEL_OK")
</pallas_src>

<mosaic_0001>
module attributes {stable_mosaic.version = 11 : i64} {
  func.func @_conv_bn_relu_kernel(%arg0: i32, %arg1: i32, %arg2: i32, %arg3: memref<512x128xbf16, #tpu.memory_space<vmem>>, %arg4: memref<128x128xbf16, #tpu.memory_space<vmem>>, %arg5: memref<1x128xf32, #tpu.memory_space<vmem>>, %arg6: memref<512x128xbf16, #tpu.memory_space<vmem>>, %arg7: memref<512x128xf32, #tpu.memory_space<vmem>>) attributes {dimension_semantics = [#tpu.dimension_semantics<parallel>, #tpu.dimension_semantics<parallel>, #tpu.dimension_semantics<arbitrary>], iteration_bounds = array<i64: 2, 1, 1>, scalar_prefetch = 0 : i64, scratch_operands = 1 : i64, tpu.core_type = #tpu.core_type<tc>, window_params = [{transform_indices = @transform_0, window_bounds = array<i64: 512, 128>}, {transform_indices = @transform_1, window_bounds = array<i64: 128, 128>}, {transform_indices = @transform_2, window_bounds = array<i64: 1, 128>}, {transform_indices = @transform_3, window_bounds = array<i64: 512, 128>}]} {
    %c0_i32 = arith.constant 0 : i32
    %0 = arith.cmpi eq, %arg2, %c0_i32 : i32
    %1 = arith.extui %0 : i1 to i32
    %c0_i32_0 = arith.constant 0 : i32
    %2 = arith.cmpi ne, %1, %c0_i32_0 : i32
    scf.if %2 {
      %cst_10 = arith.constant 0.000000e+00 : f32
      %12 = vector.broadcast %cst_10 : f32 to vector<512x128xf32>
      %c0_11 = arith.constant 0 : index
      %c0_12 = arith.constant 0 : index
      %13 = vector.load %arg7[%c0_11, %c0_12] : memref<512x128xf32, #tpu.memory_space<vmem>>, vector<512x128xf32>
      tpu.vector_store %arg7[%c0_11, %c0_12], %12 {strides = array<i32>} : memref<512x128xf32, #tpu.memory_space<vmem>>, vector<512x128xf32>,
    } else {
    }
    %c0 = arith.constant 0 : index
    %c0_1 = arith.constant 0 : index
    %3 = vector.load %arg7[%c0, %c0_1] : memref<512x128xf32, #tpu.memory_space<vmem>>, vector<512x128xf32>
    %c0_2 = arith.constant 0 : index
    %c0_3 = arith.constant 0 : index
    %4 = vector.load %arg3[%c0_2, %c0_3] : memref<512x128xbf16, #tpu.memory_space<vmem>>, vector<512x128xbf16>
    %c0_4 = arith.constant 0 : index
    %c0_5 = arith.constant 0 : index
    %5 = vector.load %arg4[%c0_4, %c0_5] : memref<128x128xbf16, #tpu.memory_space<vmem>>, vector<128x128xbf16>
    %cst = arith.constant dense<0.000000e+00> : vector<512x128xf32>
    %6 = tpu.matmul %4, %5, %cst {dimension_numbers = #tpu.dot_dimension_numbers<[1], [0], [0], [1], [0, 0, 1, 1], [], []>} : vector<512x128xbf16>, vector<128x128xbf16>, vector<512x128xf32> -> vector<512x128xf32>
    %7 = arith.addf %3, %6 : vector<512x128xf32>
    %c0_6 = arith.constant 0 : index
    %c0_7 = arith.constant 0 : index
    %8 = vector.load %arg7[%c0_6, %c0_7] : memref<512x128xf32, #tpu.memory_space<vmem>>, vector<512x128xf32>
    tpu.vector_store %arg7[%c0_6, %c0_7], %7 {strides = array<i32>} : memref<512x128xf32, #tpu.memory_space<vmem>>, vector<512x128xf32>,
    %c0_i32_8 = arith.constant 0 : i32
    %9 = arith.cmpi eq, %arg2, %c0_i32_8 : i32
    %10 = arith.extui %9 : i1 to i32
    %c0_i32_9 = arith.constant 0 : i32
    %11 = arith.cmpi ne, %10, %c0_i32_9 : i32
    scf.if %11 {
      %c0_10 = arith.constant 0 : index
      %c0_11 = arith.constant 0 : index
      %12 = vector.load %arg7[%c0_10, %c0_11] : memref<512x128xf32, #tpu.memory_space<vmem>>, vector<512x128xf32>
      %c0_12 = arith.constant 0 : index
      %c0_13 = arith.constant 0 : index
      %13 = vector.load %arg5[%c0_12, %c0_13] : memref<1x128xf32, #tpu.memory_space<vmem>>, vector<1x128xf32>
      %14 = vector.broadcast %13 : vector<1x128xf32> to vector<512x128xf32>
      %15 = arith.addf %12, %14 : vector<512x128xf32>
      %cst_14 = arith.constant 0.000000e+00 : f32
      %16 = vector.broadcast %cst_14 : f32 to vector<512x128xf32>
      %17 = arith.maximumf %15, %16 : vector<512x128xf32>
      %18 = arith.truncf %17 : vector<512x128xf32> to vector<512x128xbf16>
      %c0_15 = arith.constant 0 : index
      %c0_16 = arith.constant 0 : index
      %19 = vector.load %arg6[%c0_15, %c0_16] : memref<512x128xbf16, #tpu.memory_space<vmem>>, vector<512x128xbf16>
      tpu.vector_store %arg6[%c0_15, %c0_16], %18 {strides = array<i32>} : memref<512x128xbf16, #tpu.memory_space<vmem>>, vector<512x128xbf16>,
    } else {
    }
    return
  }
  func.func @transform_0(%arg0: i32, %arg1: i32, %arg2: i32) -> (i32, i32) {
    %c0_i32 = arith.constant 0 : i32
    return %arg0, %arg2 : i32, i32
  }
  func.func @transform_1(%arg0: i32, %arg1: i32, %arg2: i32) -> (i32, i32) {
    %c0_i32 = arith.constant 0 : i32
    return %arg2, %arg1 : i32, i32
  }
  func.func @transform_2(%arg0: i32, %arg1: i32, %arg2: i32) -> (i32, i32) {
    %c0_i32 = arith.constant 0 : i32
    %c0_i32_0 = arith.constant 0 : i32
    return %c0_i32, %arg1 : i32, i32
  }
  func.func @transform_3(%arg0: i32, %arg1: i32, %arg2: i32) -> (i32, i32) {
    %c0_i32 = arith.constant 0 : i32
    return %arg0, %arg1 : i32, i32
  }
}

module attributes {stable_mosaic.version = 11 : i64} {
  func.func @_conv_bn_relu_kernel(%arg0: i32, %arg1: i32, %arg2: i32, %arg3: memref<128x896xbf16, #tpu.memory_space<vmem>>, %arg4: memref<896x128xbf16, #tpu.memory_space<vmem>>, %arg5: memref<1x128xf32, #tpu.memory_space<vmem>>, %arg6: memref<128x128xbf16, #tpu.memory_space<vmem>>, %arg7: memref<128x128xf32, #tpu.memory_space<vmem>>) attributes {dimension_semantics = [#tpu.dimension_semantics<parallel>, #tpu.dimension_semantics<parallel>, #tpu.dimension_semantics<arbitrary>], iteration_bounds = array<i64: 1, 1, 2>, scalar_prefetch = 0 : i64, scratch_operands = 1 : i64, tpu.core_type = #tpu.core_type<tc>, window_params = [{transform_indices = @transform_0, window_bounds = array<i64: 128, 896>}, {transform_indices = @transform_1, window_bounds = array<i64: 896, 128>}, {transform_indices = @transform_2, window_bounds = array<i64: 1, 128>}, {transform_indices = @transform_3, window_bounds = array<i64: 128, 128>}]} {
    %c0_i32 = arith.constant 0 : i32
    %0 = arith.cmpi eq, %arg2, %c0_i32 : i32
    %1 = arith.extui %0 : i1 to i32
    %c0_i32_0 = arith.constant 0 : i32
    %2 = arith.cmpi ne, %1, %c0_i32_0 : i32
    scf.if %2 {
      %cst_9 = arith.constant 0.000000e+00 : f32
      %12 = vector.broadcast %cst_9 : f32 to vector<128x128xf32>
      %c0_10 = arith.constant 0 : index
      %c0_11 = arith.constant 0 : index
      %13 = vector.load %arg7[%c0_10, %c0_11] : memref<128x128xf32, #tpu.memory_space<vmem>>, vector<128x128xf32>
      tpu.vector_store %arg7[%c0_10, %c0_11], %12 {strides = array<i32>} : memref<128x128xf32, #tpu.memory_space<vmem>>, vector<128x128xf32>,
    } else {
    }
    %c0 = arith.constant 0 : index
    %c0_1 = arith.constant 0 : index
    %3 = vector.load %arg7[%c0, %c0_1] : memref<128x128xf32, #tpu.memory_space<vmem>>, vector<128x128xf32>
    %c0_2 = arith.constant 0 : index
    %c0_3 = arith.constant 0 : index
    %4 = vector.load %arg3[%c0_2, %c0_3] : memref<128x896xbf16, #tpu.memory_space<vmem>>, vector<128x896xbf16>
    %c0_4 = arith.constant 0 : index
    %c0_5 = arith.constant 0 : index
    %5 = vector.load %arg4[%c0_4, %c0_5] : memref<896x128xbf16, #tpu.memory_space<vmem>>, vector<896x128xbf16>
    %cst = arith.constant dense<0.000000e+00> : vector<128x128xf32>
    %6 = tpu.matmul %4, %5, %cst {dimension_numbers = #tpu.dot_dimension_numbers<[1], [0], [0], [1], [0, 0, 1, 1], [], []>} : vector<128x896xbf16>, vector<896x128xbf16>, vector<128x128xf32> -> vector<128x128xf32>
    %7 = arith.addf %3, %6 : vector<128x128xf32>
    %c0_6 = arith.constant 0 : index
    %c0_7 = arith.constant 0 : index
    %8 = vector.load %arg7[%c0_6, %c0_7] : memref<128x128xf32, #tpu.memory_space<vmem>>, vector<128x128xf32>
    tpu.vector_store %arg7[%c0_6, %c0_7], %7 {strides = array<i32>} : memref<128x128xf32, #tpu.memory_space<vmem>>, vector<128x128xf32>,
    %c1_i32 = arith.constant 1 : i32
    %9 = arith.cmpi eq, %arg2, %c1_i32 : i32
    %10 = arith.extui %9 : i1 to i32
    %c0_i32_8 = arith.constant 0 : i32
    %11 = arith.cmpi ne, %10, %c0_i32_8 : i32
    scf.if %11 {
      %c0_9 = arith.constant 0 : index
      %c0_10 = arith.constant 0 : index
      %12 = vector.load %arg7[%c0_9, %c0_10] : memref<128x128xf32, #tpu.memory_space<vmem>>, vector<128x128xf32>
      %c0_11 = arith.constant 0 : index
      %c0_12 = arith.constant 0 : index
      %13 = vector.load %arg5[%c0_11, %c0_12] : memref<1x128xf32, #tpu.memory_space<vmem>>, vector<1x128xf32>
      %14 = vector.broadcast %13 : vector<1x128xf32> to vector<128x128xf32>
      %15 = arith.addf %12, %14 : vector<128x128xf32>
      %cst_13 = arith.constant 0.000000e+00 : f32
      %16 = vector.broadcast %cst_13 : f32 to vector<128x128xf32>
      %17 = arith.maximumf %15, %16 : vector<128x128xf32>
      %18 = arith.truncf %17 : vector<128x128xf32> to vector<128x128xbf16>
      %c0_14 = arith.constant 0 : index
      %c0_15 = arith.constant 0 : index
      %19 = vector.load %arg6[%c0_14, %c0_15] : memref<128x128xbf16, #tpu.memory_space<vmem>>, vector<128x128xbf16>
      tpu.vector_store %arg6[%c0_14, %c0_15], %18 {strides = array<i32>} : memref<128x128xbf16, #tpu.memory_space<vmem>>, vector<128x128xbf16>,
    } else {
    }
    return
  }
  func.func @transform_0(%arg0: i32, %arg1: i32, %arg2: i32) -> (i32, i32) {
    %c0_i32 = arith.constant 0 : i32
    return %arg0, %arg2 : i32, i32
  }
  func.func @transform_1(%arg0: i32, %arg1: i32, %arg2: i32) -> (i32, i32) {
    %c0_i32 = arith.constant 0 : i32
    return %arg2, %arg1 : i32, i32
  }
  func.func @transform_2(%arg0: i32, %arg1: i32, %arg2: i32) -> (i32, i32) {
    %c0_i32 = arith.constant 0 : i32
    %c0_i32_0 = arith.constant 0 : i32
    return %c0_i32, %arg1 : i32, i32
  }
  func.func @transform_3(%arg0: i32, %arg1: i32, %arg2: i32) -> (i32, i32) {
    %c0_i32 = arith.constant 0 : i32
    return %arg0, %arg1 : i32, i32
  }
}

module attributes {stable_mosaic.version = 11 : i64} {
  func.func @_conv_bn_relu_kernel(%arg0: i32, %arg1: i32, %arg2: i32, %arg3: memref<16x1152xbf16, #tpu.memory_space<vmem>>, %arg4: memref<1152x256xbf16, #tpu.memory_space<vmem>>, %arg5: memref<1x256xf32, #tpu.memory_space<vmem>>, %arg6: memref<16x256xbf16, #tpu.memory_space<vmem>>, %arg7: memref<16x256xf32, #tpu.memory_space<vmem>>) attributes {dimension_semantics = [#tpu.dimension_semantics<parallel>, #tpu.dimension_semantics<parallel>, #tpu.dimension_semantics<arbitrary>], iteration_bounds = array<i64: 1, 1, 3>, scalar_prefetch = 0 : i64, scratch_operands = 1 : i64, tpu.core_type = #tpu.core_type<tc>, window_params = [{transform_indices = @transform_0, window_bounds = array<i64: 16, 1152>}, {transform_indices = @transform_1, window_bounds = array<i64: 1152, 256>}, {transform_indices = @transform_2, window_bounds = array<i64: 1, 256>}, {transform_indices = @transform_3, window_bounds = array<i64: 16, 256>}]} {
    %c0_i32 = arith.constant 0 : i32
    %0 = arith.cmpi eq, %arg2, %c0_i32 : i32
    %1 = arith.extui %0 : i1 to i32
    %c0_i32_0 = arith.constant 0 : i32
    %2 = arith.cmpi ne, %1, %c0_i32_0 : i32
    scf.if %2 {
      %cst_9 = arith.constant 0.000000e+00 : f32
      %12 = vector.broadcast %cst_9 : f32 to vector<16x256xf32>
      %c0_10 = arith.constant 0 : index
      %c0_11 = arith.constant 0 : index
      %13 = vector.load %arg7[%c0_10, %c0_11] : memref<16x256xf32, #tpu.memory_space<vmem>>, vector<16x256xf32>
      tpu.vector_store %arg7[%c0_10, %c0_11], %12 {strides = array<i32>} : memref<16x256xf32, #tpu.memory_space<vmem>>, vector<16x256xf32>,
    } else {
    }
    %c0 = arith.constant 0 : index
    %c0_1 = arith.constant 0 : index
    %3 = vector.load %arg7[%c0, %c0_1] : memref<16x256xf32, #tpu.memory_space<vmem>>, vector<16x256xf32>
    %c0_2 = arith.constant 0 : index
    %c0_3 = arith.constant 0 : index
    %4 = vector.load %arg3[%c0_2, %c0_3] : memref<16x1152xbf16, #tpu.memory_space<vmem>>, vector<16x1152xbf16>
    %c0_4 = arith.constant 0 : index
    %c0_5 = arith.constant 0 : index
    %5 = vector.load %arg4[%c0_4, %c0_5] : memref<1152x256xbf16, #tpu.memory_space<vmem>>, vector<1152x256xbf16>
    %cst = arith.constant dense<0.000000e+00> : vector<16x256xf32>
    %6 = tpu.matmul %4, %5, %cst {dimension_numbers = #tpu.dot_dimension_numbers<[1], [0], [0], [1], [0, 0, 1, 1], [], []>} : vector<16x1152xbf16>, vector<1152x256xbf16>, vector<16x256xf32> -> vector<16x256xf32>
    %7 = arith.addf %3, %6 : vector<16x256xf32>
    %c0_6 = arith.constant 0 : index
    %c0_7 = arith.constant 0 : index
    %8 = vector.load %arg7[%c0_6, %c0_7] : memref<16x256xf32, #tpu.memory_space<vmem>>, vector<16x256xf32>
    tpu.vector_store %arg7[%c0_6, %c0_7], %7 {strides = array<i32>} : memref<16x256xf32, #tpu.memory_space<vmem>>, vector<16x256xf32>,
    %c2_i32 = arith.constant 2 : i32
    %9 = arith.cmpi eq, %arg2, %c2_i32 : i32
    %10 = arith.extui %9 : i1 to i32
    %c0_i32_8 = arith.constant 0 : i32
    %11 = arith.cmpi ne, %10, %c0_i32_8 : i32
    scf.if %11 {
      %c0_9 = arith.constant 0 : index
      %c0_10 = arith.constant 0 : index
      %12 = vector.load %arg7[%c0_9, %c0_10] : memref<16x256xf32, #tpu.memory_space<vmem>>, vector<16x256xf32>
      %c0_11 = arith.constant 0 : index
      %c0_12 = arith.constant 0 : index
      %13 = vector.load %arg5[%c0_11, %c0_12] : memref<1x256xf32, #tpu.memory_space<vmem>>, vector<1x256xf32>
      %14 = vector.broadcast %13 : vector<1x256xf32> to vector<16x256xf32>
      %15 = arith.addf %12, %14 : vector<16x256xf32>
      %cst_13 = arith.constant 0.000000e+00 : f32
      %16 = vector.broadcast %cst_13 : f32 to vector<16x256xf32>
      %17 = arith.maximumf %15, %16 : vector<16x256xf32>
      %18 = arith.truncf %17 : vector<16x256xf32> to vector<16x256xbf16>
      %c0_14 = arith.constant 0 : index
      %c0_15 = arith.constant 0 : index
      %19 = vector.load %arg6[%c0_14, %c0_15] : memref<16x256xbf16, #tpu.memory_space<vmem>>, vector<16x256xbf16>
      tpu.vector_store %arg6[%c0_14, %c0_15], %18 {strides = array<i32>} : memref<16x256xbf16, #tpu.memory_space<vmem>>, vector<16x256xbf16>,
    } else {
    }
    return
  }
  func.func @transform_0(%arg0: i32, %arg1: i32, %arg2: i32) -> (i32, i32) {
    %c0_i32 = arith.constant 0 : i32
    return %arg0, %arg2 : i32, i32
  }
  func.func @transform_1(%arg0: i32, %arg1: i32, %arg2: i32) -> (i32, i32) {
    %c0_i32 = arith.constant 0 : i32
    return %arg2, %arg1 : i32, i32
  }
  func.func @transform_2(%arg0: i32, %arg1: i32, %arg2: i32) -> (i32, i32) {
    %c0_i32 = arith.constant 0 : i32
    %c0_i32_0 = arith.constant 0 : i32
    return %c0_i32, %arg1 : i32, i32
  }
  func.func @transform_3(%arg0: i32, %arg1: i32, %arg2: i32) -> (i32, i32) {
    %c0_i32 = arith.constant 0 : i32
    return %arg0, %arg1 : i32, i32
  }
}

module attributes {stable_mosaic.version = 11 : i64} {
  func.func @_conv_bn_relu_kernel(%arg0: i32, %arg1: i32, %arg2: i32, %arg3: memref<8x1408xbf16, #tpu.memory_space<vmem>>, %arg4: memref<1408x512xbf16, #tpu.memory_space<vmem>>, %arg5: memref<1x512xf32, #tpu.memory_space<vmem>>, %arg6: memref<8x512xbf16, #tpu.memory_space<vmem>>, %arg7: memref<8x512xf32, #tpu.memory_space<vmem>>) attributes {dimension_semantics = [#tpu.dimension_semantics<parallel>, #tpu.dimension_semantics<parallel>, #tpu.dimension_semantics<arbitrary>], iteration_bounds = array<i64: 1, 1, 5>, scalar_prefetch = 0 : i64, scratch_operands = 1 : i64, tpu.core_type = #tpu.core_type<tc>, window_params = [{transform_indices = @transform_0, window_bounds = array<i64: 8, 1408>}, {transform_indices = @transform_1, window_bounds = array<i64: 1408, 512>}, {transform_indices = @transform_2, window_bounds = array<i64: 1, 512>}, {transform_indices = @transform_3, window_bounds = array<i64: 8, 512>}]} {
    %c0_i32 = arith.constant 0 : i32
    %0 = arith.cmpi eq, %arg2, %c0_i32 : i32
    %1 = arith.extui %0 : i1 to i32
    %c0_i32_0 = arith.constant 0 : i32
    %2 = arith.cmpi ne, %1, %c0_i32_0 : i32
    scf.if %2 {
      %cst_9 = arith.constant 0.000000e+00 : f32
      %12 = vector.broadcast %cst_9 : f32 to vector<8x512xf32>
      %c0_10 = arith.constant 0 : index
      %c0_11 = arith.constant 0 : index
      %13 = vector.load %arg7[%c0_10, %c0_11] : memref<8x512xf32, #tpu.memory_space<vmem>>, vector<8x512xf32>
      tpu.vector_store %arg7[%c0_10, %c0_11], %12 {strides = array<i32>} : memref<8x512xf32, #tpu.memory_space<vmem>>, vector<8x512xf32>,
    } else {
    }
    %c0 = arith.constant 0 : index
    %c0_1 = arith.constant 0 : index
    %3 = vector.load %arg7[%c0, %c0_1] : memref<8x512xf32, #tpu.memory_space<vmem>>, vector<8x512xf32>
    %c0_2 = arith.constant 0 : index
    %c0_3 = arith.constant 0 : index
    %4 = vector.load %arg3[%c0_2, %c0_3] : memref<8x1408xbf16, #tpu.memory_space<vmem>>, vector<8x1408xbf16>
    %c0_4 = arith.constant 0 : index
    %c0_5 = arith.constant 0 : index
    %5 = vector.load %arg4[%c0_4, %c0_5] : memref<1408x512xbf16, #tpu.memory_space<vmem>>, vector<1408x512xbf16>
    %cst = arith.constant dense<0.000000e+00> : vector<8x512xf32>
    %6 = tpu.matmul %4, %5, %cst {dimension_numbers = #tpu.dot_dimension_numbers<[1], [0], [0], [1], [0, 0, 1, 1], [], []>} : vector<8x1408xbf16>, vector<1408x512xbf16>, vector<8x512xf32> -> vector<8x512xf32>
    %7 = arith.addf %3, %6 : vector<8x512xf32>
    %c0_6 = arith.constant 0 : index
    %c0_7 = arith.constant 0 : index
    %8 = vector.load %arg7[%c0_6, %c0_7] : memref<8x512xf32, #tpu.memory_space<vmem>>, vector<8x512xf32>
    tpu.vector_store %arg7[%c0_6, %c0_7], %7 {strides = array<i32>} : memref<8x512xf32, #tpu.memory_space<vmem>>, vector<8x512xf32>,
    %c4_i32 = arith.constant 4 : i32
    %9 = arith.cmpi eq, %arg2, %c4_i32 : i32
    %10 = arith.extui %9 : i1 to i32
    %c0_i32_8 = arith.constant 0 : i32
    %11 = arith.cmpi ne, %10, %c0_i32_8 : i32
    scf.if %11 {
      %c0_9 = arith.constant 0 : index
      %c0_10 = arith.constant 0 : index
      %12 = vector.load %arg7[%c0_9, %c0_10] : memref<8x512xf32, #tpu.memory_space<vmem>>, vector<8x512xf32>
      %c0_11 = arith.constant 0 : index
      %c0_12 = arith.constant 0 : index
      %13 = vector.load %arg5[%c0_11, %c0_12] : memref<1x512xf32, #tpu.memory_space<vmem>>, vector<1x512xf32>
      %14 = vector.broadcast %13 : vector<1x512xf32> to vector<8x512xf32>
      %15 = arith.addf %12, %14 : vector<8x512xf32>
      %cst_13 = arith.constant 0.000000e+00 : f32
      %16 = vector.broadcast %cst_13 : f32 to vector<8x512xf32>
      %17 = arith.maximumf %15, %16 : vector<8x512xf32>
      %18 = arith.truncf %17 : vector<8x512xf32> to vector<8x512xbf16>
      %c0_14 = arith.constant 0 : index
      %c0_15 = arith.constant 0 : index
      %19 = vector.load %arg6[%c0_14, %c0_15] : memref<8x512xbf16, #tpu.memory_space<vmem>>, vector<8x512xbf16>
      tpu.vector_store %arg6[%c0_14, %c0_15], %18 {strides = array<i32>} : memref<8x512xbf16, #tpu.memory_space<vmem>>, vector<8x512xbf16>,
    } else {
    }
    return
  }
  func.func @transform_0(%arg0: i32, %arg1: i32, %arg2: i32) -> (i32, i32) {
    %c0_i32 = arith.constant 0 : i32
    return %arg0, %arg2 : i32, i32
  }
  func.func @transform_1(%arg0: i32, %arg1: i32, %arg2: i32) -> (i32, i32) {
    %c0_i32 = arith.constant 0 : i32
    return %arg2, %arg1 : i32, i32
  }
  func.func @transform_2(%arg0: i32, %arg1: i32, %arg2: i32) -> (i32, i32) {
    %c0_i32 = arith.constant 0 : i32
    %c0_i32_0 = arith.constant 0 : i32
    return %c0_i32, %arg1 : i32, i32
  }
  func.func @transform_3(%arg0: i32, %arg1: i32, %arg2: i32) -> (i32, i32) {
    %c0_i32 = arith.constant 0 : i32
    return %arg0, %arg1 : i32, i32
  }
}

module attributes {stable_mosaic.version = 11 : i64} {
  func.func @_conv_bn_relu_kernel(%arg0: i32, %arg1: i32, %arg2: i32, %arg3: memref<8x1536xbf16, #tpu.memory_space<vmem>>, %arg4: memref<1536x512xbf16, #tpu.memory_space<vmem>>, %arg5: memref<1x512xf32, #tpu.memory_space<vmem>>, %arg6: memref<8x512xbf16, #tpu.memory_space<vmem>>, %arg7: memref<8x512xf32, #tpu.memory_space<vmem>>) attributes {dimension_semantics = [#tpu.dimension_semantics<parallel>, #tpu.dimension_semantics<parallel>, #tpu.dimension_semantics<arbitrary>], iteration_bounds = array<i64: 1, 2, 9>, scalar_prefetch = 0 : i64, scratch_operands = 1 : i64, tpu.core_type = #tpu.core_type<tc>, window_params = [{transform_indices = @transform_0, window_bounds = array<i64: 8, 1536>}, {transform_indices = @transform_1, window_bounds = array<i64: 1536, 512>}, {transform_indices = @transform_2, window_bounds = array<i64: 1, 512>}, {transform_indices = @transform_3, window_bounds = array<i64: 8, 512>}]} {
    %c0_i32 = arith.constant 0 : i32
    %0 = arith.cmpi eq, %arg2, %c0_i32 : i32
    %1 = arith.extui %0 : i1 to i32
    %c0_i32_0 = arith.constant 0 : i32
    %2 = arith.cmpi ne, %1, %c0_i32_0 : i32
    scf.if %2 {
      %cst_9 = arith.constant 0.000000e+00 : f32
      %12 = vector.broadcast %cst_9 : f32 to vector<8x512xf32>
      %c0_10 = arith.constant 0 : index
      %c0_11 = arith.constant 0 : index
      %13 = vector.load %arg7[%c0_10, %c0_11] : memref<8x512xf32, #tpu.memory_space<vmem>>, vector<8x512xf32>
      tpu.vector_store %arg7[%c0_10, %c0_11], %12 {strides = array<i32>} : memref<8x512xf32, #tpu.memory_space<vmem>>, vector<8x512xf32>,
    } else {
    }
    %c0 = arith.constant 0 : index
    %c0_1 = arith.constant 0 : index
    %3 = vector.load %arg7[%c0, %c0_1] : memref<8x512xf32, #tpu.memory_space<vmem>>, vector<8x512xf32>
    %c0_2 = arith.constant 0 : index
    %c0_3 = arith.constant 0 : index
    %4 = vector.load %arg3[%c0_2, %c0_3] : memref<8x1536xbf16, #tpu.memory_space<vmem>>, vector<8x1536xbf16>
    %c0_4 = arith.constant 0 : index
    %c0_5 = arith.constant 0 : index
    %5 = vector.load %arg4[%c0_4, %c0_5] : memref<1536x512xbf16, #tpu.memory_space<vmem>>, vector<1536x512xbf16>
    %cst = arith.constant dense<0.000000e+00> : vector<8x512xf32>
    %6 = tpu.matmul %4, %5, %cst {dimension_numbers = #tpu.dot_dimension_numbers<[1], [0], [0], [1], [0, 0, 1, 1], [], []>} : vector<8x1536xbf16>, vector<1536x512xbf16>, vector<8x512xf32> -> vector<8x512xf32>
    %7 = arith.addf %3, %6 : vector<8x512xf32>
    %c0_6 = arith.constant 0 : index
    %c0_7 = arith.constant 0 : index
    %8 = vector.load %arg7[%c0_6, %c0_7] : memref<8x512xf32, #tpu.memory_space<vmem>>, vector<8x512xf32>
    tpu.vector_store %arg7[%c0_6, %c0_7], %7 {strides = array<i32>} : memref<8x512xf32, #tpu.memory_space<vmem>>, vector<8x512xf32>,
    %c8_i32 = arith.constant 8 : i32
    %9 = arith.cmpi eq, %arg2, %c8_i32 : i32
    %10 = arith.extui %9 : i1 to i32
    %c0_i32_8 = arith.constant 0 : i32
    %11 = arith.cmpi ne, %10, %c0_i32_8 : i32
    scf.if %11 {
      %c0_9 = arith.constant 0 : index
      %c0_10 = arith.constant 0 : index
      %12 = vector.load %arg7[%c0_9, %c0_10] : memref<8x512xf32, #tpu.memory_space<vmem>>, vector<8x512xf32>
      %c0_11 = arith.constant 0 : index
      %c0_12 = arith.constant 0 : index
      %13 = vector.load %arg5[%c0_11, %c0_12] : memref<1x512xf32, #tpu.memory_space<vmem>>, vector<1x512xf32>
      %14 = vector.broadcast %13 : vector<1x512xf32> to vector<8x512xf32>
      %15 = arith.addf %12, %14 : vector<8x512xf32>
      %cst_13 = arith.constant 0.000000e+00 : f32
      %16 = vector.broadcast %cst_13 : f32 to vector<8x512xf32>
      %17 = arith.maximumf %15, %16 : vector<8x512xf32>
      %18 = arith.truncf %17 : vector<8x512xf32> to vector<8x512xbf16>
      %c0_14 = arith.constant 0 : index
      %c0_15 = arith.constant 0 : index
      %19 = vector.load %arg6[%c0_14, %c0_15] : memref<8x512xbf16, #tpu.memory_space<vmem>>, vector<8x512xbf16>
      tpu.vector_store %arg6[%c0_14, %c0_15], %18 {strides = array<i32>} : memref<8x512xbf16, #tpu.memory_space<vmem>>, vector<8x512xbf16>,
    } else {
    }
    return
  }
  func.func @transform_0(%arg0: i32, %arg1: i32, %arg2: i32) -> (i32, i32) {
    %c0_i32 = arith.constant 0 : i32
    return %arg0, %arg2 : i32, i32
  }
  func.func @transform_1(%arg0: i32, %arg1: i32, %arg2: i32) -> (i32, i32) {
    %c0_i32 = arith.constant 0 : i32
    return %arg2, %arg1 : i32, i32
  }
  func.func @transform_2(%arg0: i32, %arg1: i32, %arg2: i32) -> (i32, i32) {
    %c0_i32 = arith.constant 0 : i32
    %c0_i32_0 = arith.constant 0 : i32
    return %c0_i32, %arg1 : i32, i32
  }
  func.func @transform_3(%arg0: i32, %arg1: i32, %arg2: i32) -> (i32, i32) {
    %c0_i32 = arith.constant 0 : i32
    return %arg0, %arg1 : i32, i32
  }
}

</mosaic_0001>

<bundles_post_ra>
// kernel: backbone_forward.5
= control target key start
LH: loop header
LB: loop body
LE: loop exit
PB: predicated region body
PF: predicated region fallthrough
CT: control target
= control target key end

     0   :  { %s2379_s12 = smov 0   ;;  %s2381_s13 = smov 0   ;;  %s2580_s0 = inlined_call_operand.vmem [shape: bf16[1024,128], index: 0, kind: input, shape index: {}]   ;;  %s2581_s1 = inlined_call_operand.vmem [shape: bf16[128,128], index: 1, kind: input, shape index: {}]   ;;  %s2582_s2 = inlined_call_operand.vmem [shape: f32[1,128], index: 2, kind: input, shape index: {}]   ;;  %s2583_s3 = inlined_call_operand.vmem [shape: bf16[1024,128], index: 3, kind: output, shape index: {}]  }
   0x1   :  { %s2383_s14 = smov 0  }
   0x2 LB: > { %s32_s15 = sadd.s32 1, %s2353_s13  ;;  %p1768_p0 = scmp.ge.s32.totalorder %s2357_s14, 1  ;;  %s2357_s14 = sphi %s2383_s14, %s13_s14   ;;  %s2353_s13 = sphi %s2381_s13, %s2585_s13   ;;  %s2349_s12 = sphi %s2379_s12, %s2584_s12  }
   0x3   : > { %p34_p1 = scmp.ge.s32.totalorder %s32_s15, 2  ;;  %p188_p2 = scmp.lt.s32.totalorder %s2357_s14, 3 }
   0x5   : > { %s2587_s15 = smov (%p34_p1, %s32_s15), 0  ;;  %p189_p3 = pnand %p1768_p0, %p188_p2 }
   0x6   : > { %v2295_v0 = vld [vmem:[%s2581_s1] sm:$0xff] (!%p189_p3)   ;;  %s1769_s18 = sshll.u32 (!%p189_p3), %s2349_s12, 6  ;;  %v2296_v1 = vld [vmem:[%s2581_s1 + $0x8] sm:$0xff] (!%p189_p3)   ;;  %v2297_v2 = vld [vmem:[%s2581_s1 + $0x10] sm:$0xff] (!%p189_p3)  }
   0x7   : > { %192 = sbr.rel (%p189_p3) target bundleno = 317 (0x13d), region = 32  ;;  %p230_p4 = scmp.lt.s32.totalorder (!%p189_p3), %s1769_s18, 127  ;;  %2175 = vmatprep.subr.bf16.mxu0 (!%p189_p3), %v2295_v0  ;;  %2255 = vmatprep.subr.bf16.mxu1 (!%p189_p3), %v2295_v0  ;;  %v2298_v3 = vld [vmem:[%s2581_s1 + $0x18] sm:$0xff] (!%p189_p3)   ;;  %v2299_v6 = vld [vmem:[%s2581_s1 + $0x20] sm:$0xff] (!%p189_p3)   ;;  %v2300_v7 = vld [vmem:[%s2581_s1 + $0x28] sm:$0xff] (!%p189_p3)  }
   0x8   : > { %2176 = vmatpush3.bf16.msra.mxu0 (!%p189_p3), %v2295_v0  ;;  %2263 = vmatpush3.bf16.msra.mxu1 (!%p189_p3), %v2295_v0  ;;  %v2301_v8 = vld [vmem:[%s2581_s1 + $0x30] sm:$0xff] (!%p189_p3)   ;;  %v2302_v9 = vld [vmem:[%s2581_s1 + $0x38] sm:$0xff] (!%p189_p3)   ;;  %v2466_v40 = vld [vmem:[%s2582_s2] ss:$0 sm:$0xff] (!%p189_p3) }
   0x9   : > { %2177 = vmatprep.subr.bf16.mxu0 (!%p189_p3), %v2296_v1  ;;  %2256 = vmatprep.subr.bf16.mxu1 (!%p189_p3), %v2296_v1 }
   0xc   : > { %2178 = vmatpush3.bf16.msra.mxu0 (!%p189_p3), %v2296_v1  ;;  %2264 = vmatpush3.bf16.msra.mxu1 (!%p189_p3), %v2296_v1 }
   0xd   : > { %2179 = vmatprep.subr.bf16.mxu0 (!%p189_p3), %v2297_v2  ;;  %2257 = vmatprep.subr.bf16.mxu1 (!%p189_p3), %v2297_v2 }
   0xe   : > { %s2589_s18 = smov (!%p230_p4, %s1769_s18), 127 }
   0xf   : > { %s1770_s23 = sshll.u32 %s2589_s18, 2 }
  0x10   : > { %s2414_s26 = scalar_lea.vmem %s2580_s0, %s1770_s23  ;;  %2180 = vmatpush3.bf16.msra.mxu0 %v2297_v2  ;;  %2265 = vmatpush3.bf16.msra.mxu1 %v2297_v2  ;;  %s2481_s17 = scalar_lea.vmem %s2583_s3, %s1770_s23 }
  0x11   : > { %v2303_v4 = vld [vmem:[%s2414_s26] sm:$0xff]   ;;  %2181 = vmatprep.subr.bf16.mxu0 %v2298_v3  ;;  %2258 = vmatprep.subr.bf16.mxu1 %v2298_v3  ;;  %v2305_v10 = vld [vmem:[%s2414_s26 + $0x8] sm:$0xff]   ;;  %v2307_v12 = vld [vmem:[%s2414_s26 + $0x10] sm:$0xff]  }
  0x12   : > { %v2304_v5 = vld [vmem:[%s2414_s26 + $0x80] sm:$0xff]   ;;  %2191 = vmatprep.mubr.bf16.mxu0 %v2303_v4  ;;  %v2306_v11 = vld [vmem:[%s2414_s26 + $0x88] sm:$0xff]   ;;  %v2308_v13 = vld [vmem:[%s2414_s26 + $0x90] sm:$0xff]  }
  0x13   : > { %2223 = vmatprep.mubr.bf16.mxu1 %v2304_v5  ;;  %v2309_v14 = vld [vmem:[%s2414_s26 + $0x18] sm:$0xff]   ;;  %v2311_v16 = vld [vmem:[%s2414_s26 + $0x20] sm:$0xff]   ;;  %v2313_v18 = vld [vmem:[%s2414_s26 + $0x28] sm:$0xff]  }
  0x14   : > { %2182 = vmatpush3.bf16.msra.mxu0 %v2298_v3  ;;  %2266 = vmatpush3.bf16.msra.mxu1 %v2298_v3  ;;  %v2310_v15 = vld [vmem:[%s2414_s26 + $0x98] sm:$0xff]   ;;  %v2312_v17 = vld [vmem:[%s2414_s26 + $0xa0] sm:$0xff]   ;;  %v2314_v19 = vld [vmem:[%s2414_s26 + $0xa8] sm:$0xff]  }
  0x15   : > { %2183 = vmatprep.subr.bf16.mxu0 %v2299_v6  ;;  %2259 = vmatprep.subr.bf16.mxu1 %v2299_v6  ;;  %v2315_v20 = vld [vmem:[%s2414_s26 + $0x30] sm:$0xff]   ;;  %v2317_v22 = vld [vmem:[%s2414_s26 + $0x38] sm:$0xff]   ;;  %v2319_v24 = vld [vmem:[%s2414_s26 + $0x40] sm:$0xff]  }
  0x16   : > { %v2316_v21 = vld [vmem:[%s2414_s26 + $0xb0] sm:$0xff]   ;;  %v2318_v23 = vld [vmem:[%s2414_s26 + $0xb8] sm:$0xff]   ;;  %v2320_v25 = vld [vmem:[%s2414_s26 + $0xc0] sm:$0xff]  }
  0x17   : > { %v2321_v26 = vld [vmem:[%s2414_s26 + $0x48] sm:$0xff]   ;;  %v2323_v28 = vld [vmem:[%s2414_s26 + $0x50] sm:$0xff]   ;;  %v2325_v30 = vld [vmem:[%s2414_s26 + $0x58] sm:$0xff]  }
  0x18   : > { %2184 = vmatpush3.bf16.msra.mxu0 %v2299_v6  ;;  %2267 = vmatpush3.bf16.msra.mxu1 %v2299_v6  ;;  %v2322_v27 = vld [vmem:[%s2414_s26 + $0xc8] sm:$0xff]   ;;  %v2324_v29 = vld [vmem:[%s2414_s26 + $0xd0] sm:$0xff]   ;;  %v2326_v31 = vld [vmem:[%s2414_s26 + $0xd8] sm:$0xff]  }
  0x19   : > { %2185 = vmatprep.subr.bf16.mxu0 %v2300_v7  ;;  %2260 = vmatprep.subr.bf16.mxu1 %v2300_v7  ;;  %v2327_v32 = vld [vmem:[%s2414_s26 + $0x60] sm:$0xff]   ;;  %v2329_v34 = vld [vmem:[%s2414_s26 + $0x68] sm:$0xff]   ;;  %v2331_v36 = vld [vmem:[%s2414_s26 + $0x70] sm:$0xff]  }
  0x1a   : > { %v2328_v33 = vld [vmem:[%s2414_s26 + $0xe0] sm:$0xff]   ;;  %v2330_v35 = vld [vmem:[%s2414_s26 + $0xe8] sm:$0xff]   ;;  %v2332_v37 = vld [vmem:[%s2414_s26 + $0xf0] sm:$0xff]  }
  0x1b   : > { %v2333_v38 = vld [vmem:[%s2414_s26 + $0x78] sm:$0xff]  }
  0x1c   : > { %2186 = vmatpush3.bf16.msra.mxu0 %v2300_v7  ;;  %2268 = vmatpush3.bf16.msra.mxu1 %v2300_v7  ;;  %v2334_v39 = vld [vmem:[%s2414_s26 + $0xf8] sm:$0xff]  }
  0x1d   : > { %2187 = vmatprep.subr.bf16.mxu0 %v2301_v8  ;;  %2261 = vmatprep.subr.bf16.mxu1 %v2301_v8 }
  0x20   : > { %2188 = vmatpush3.bf16.msra.mxu0 %v2301_v8  ;;  %2269 = vmatpush3.bf16.msra.mxu1 %v2301_v8 }
  0x21   : > { %2189 = vmatprep.subr.bf16.mxu0 %v2302_v9  ;;  %2262 = vmatprep.subr.bf16.mxu1 %v2302_v9 }
  0x24   : > { %2190 = vmatpush3.bf16.msra.mxu0 %v2302_v9  ;;  %2270 = vmatpush3.bf16.msra.mxu1 %v2302_v9 }
  0x27   : > { %2192 = vmatmul.mubr.bf16.vlgmr.msra.gmra.mrb[0].mxu0 %v2305_v10  ;;  %2224 = vmatmul.mubr.bf16.vlgmr.msra.gmra.mrb[0].mxu1 %v2306_v11 }
  0x28   : > { %2195 = vmatprep.mubr.bf16.mxu0 %v2307_v12  ;;  %2227 = vmatprep.mubr.bf16.mxu1 %v2308_v13 }
  0x2f   : > { %2196 = vmatmul.mubr.bf16.gmra.mrb[4].mxu0 %v2309_v14  ;;  %2228 = vmatmul.mubr.bf16.gmra.mrb[4].mxu1 %v2310_v15 }
  0x30   : > { %2199 = vmatprep.mubr.bf16.mxu0 %v2311_v16  ;;  %2231 = vmatprep.mubr.bf16.mxu1 %v2312_v17 }
  0x37   : > { %2200 = vmatmul.mubr.bf16.gmra.mrb[8].mxu0 %v2313_v18  ;;  %2232 = vmatmul.mubr.bf16.gmra.mrb[8].mxu1 %v2314_v19 }
  0x38   : > { %2203 = vmatprep.mubr.bf16.mxu0 %v2315_v20  ;;  %2235 = vmatprep.mubr.bf16.mxu1 %v2316_v21 }
  0x3f   : > { %2204 = vmatmul.mubr.bf16.gmra.mrb[12].mxu0 %v2317_v22  ;;  %2236 = vmatmul.mubr.bf16.gmra.mrb[12].mxu1 %v2318_v23 }
  0x40   : > { %2207 = vmatprep.mubr.bf16.mxu0 %v2319_v24  ;;  %2239 = vmatprep.mubr.bf16.mxu1 %v2320_v25 }
  0x47   : > { %2208 = vmatmul.mubr.bf16.gmra.mrb[16].mxu0 %v2321_v26  ;;  %2240 = vmatmul.mubr.bf16.gmra.mrb[16].mxu1 %v2322_v27 }
  0x48   : > { %2211 = vmatprep.mubr.bf16.mxu0 %v2323_v28  ;;  %2243 = vmatprep.mubr.bf16.mxu1 %v2324_v29 }
  0x4f   : > { %2212 = vmatmul.mubr.bf16.gmra.mrb[20].mxu0 %v2325_v30  ;;  %2244 = vmatmul.mubr.bf16.gmra.mrb[20].mxu1 %v2326_v31 }
  0x50   : > { %2215 = vmatprep.mubr.bf16.mxu0 %v2327_v32  ;;  %2247 = vmatprep.mubr.bf16.mxu1 %v2328_v33 }
  0x57   : > { %2216 = vmatmul.mubr.bf16.gmra.mrb[24].mxu0 %v2329_v34  ;;  %2248 = vmatmul.mubr.bf16.gmra.mrb[24].mxu1 %v2330_v35 }
  0x58   : > { %2219 = vmatprep.mubr.bf16.mxu0 %v2331_v36  ;;  %2251 = vmatprep.mubr.bf16.mxu1 %v2332_v37 }
  0x5f   : > { %2220 = vmatmul.mubr.bf16.gmra.mrb[28].mxu0 %v2333_v38  ;;  %2252 = vmatmul.mubr.bf16.gmra.mrb[28].mxu1 %v2334_v39 }
  0xfa   : > { %v2193_v41 = vpop.f32.mrb[0].mxu0  ;;  %v2225_v42 = vpop.f32.mrb[0].mxu1 }
  0xfb   : > { %v1205_v43 = vadd.f32 %v2193_v41, %v2466_v40  ;;  %v1237_v44 = vadd.f32 %v2225_v42, %v2466_v40  ;;  %v746_v45 = vpop.f32.mrb[1].mxu0  ;;  %v874_v46 = vpop.f32.mrb[1].mxu1 }
  0xfc   : > { %v1203_v47 = vadd.f32 %v2466_v40, %v746_v45  ;;  %v1235_v48 = vadd.f32 %v2466_v40, %v874_v46  ;;  %v2194_v49 = vpop.f32.mrb[2].mxu0  ;;  %v2226_v50 = vpop.f32.mrb[2].mxu1 }
  0xfd   : > { %v1206_v51 = vadd.f32 %v2194_v49, %v2466_v40  ;;  %v1238_v52 = vadd.f32 %v2226_v50, %v2466_v40  ;;  %v749_v53 = vpop.f32.mrb[3].mxu0  ;;  %v877_v54 = vpop.f32.mrb[3].mxu1  ;;  %v1269_v57 = vmax.f32 %v1205_v43, 0.0  ;;  %v1301_v58 = vmax.f32 %v1237_v44, 0.0 }
  0xfe   : > { %v1204_v55 = vadd.f32 %v2466_v40, %v749_v53  ;;  %v1236_v56 = vadd.f32 %v2466_v40, %v877_v54  ;;  %v1267_v61 = vmax.f32 %v1203_v47, 0.0  ;;  %v1299_v62 = vmax.f32 %v1235_v48, 0.0 }
  0xff   : > { %v1270_v59 = vmax.f32 %v1206_v51, 0.0  ;;  %v1302_v60 = vmax.f32 %v1238_v52, 0.0 }
 0x100   : > { %v1268_v63 = vmax.f32 %v1204_v55, 0.0  ;;  %v1300_v0 = vmax.f32 %v1236_v56, 0.0 }
 0x101   : > { %v1952_v1 = vpack.c.bf16 %v1270_v59, %v1269_v57  ;;  %v2032_v2 = vpack.c.bf16 %v1302_v60, %v1301_v58 }
 0x102   : > { %v1947_v3 = vpack.c.bf16 %v1268_v63, %v1267_v61  ;;  %v2027_v4 = vpack.c.bf16 %v1300_v0, %v1299_v62  ;;  %v2197_v5 = vpop.f32.mrb[4].mxu0  ;;  %v2229_v6 = vpop.f32.mrb[4].mxu1 }
 0x103   : > { %2104 = vst [vmem:[%s2481_s17 + $0x8] sm:$0xff] %v1952_v1   ;;  %2120 = vst [vmem:[%s2481_s17 + $0x88] sm:$0xff] %v2032_v2   ;;  %v1209_v7 = vadd.f32 %v2197_v5, %v2466_v40  ;;  %v1241_v8 = vadd.f32 %v2229_v6, %v2466_v40  ;;  %v762_v9 = vpop.f32.mrb[5].mxu0  ;;  %v890_v10 = vpop.f32.mrb[5].mxu1 }
 0x104   : > { %1948 = vst [vmem:[%s2481_s17] sm:$0xff] %v1947_v3   ;;  %2119 = vst [vmem:[%s2481_s17 + $0x80] sm:$0xff] %v2027_v4   ;;  %v1207_v11 = vadd.f32 %v2466_v40, %v762_v9  ;;  %v1239_v12 = vadd.f32 %v2466_v40, %v890_v10  ;;  %v2198_v13 = vpop.f32.mrb[6].mxu0  ;;  %v2230_v14 = vpop.f32.mrb[6].mxu1 }
 0x105   : > { %v1210_v15 = vadd.f32 %v2198_v13, %v2466_v40  ;;  %v1242_v16 = vadd.f32 %v2230_v14, %v2466_v40  ;;  %v765_v17 = vpop.f32.mrb[7].mxu0  ;;  %v893_v18 = vpop.f32.mrb[7].mxu1  ;;  %v1273_v21 = vmax.f32 %v1209_v7, 0.0  ;;  %v1305_v22 = vmax.f32 %v1241_v8, 0.0 }
 0x106   : > { %v1208_v19 = vadd.f32 %v2466_v40, %v765_v17  ;;  %v1240_v20 = vadd.f32 %v2466_v40, %v893_v18  ;;  %v1271_v25 = vmax.f32 %v1207_v11, 0.0  ;;  %v1303_v26 = vmax.f32 %v1239_v12, 0.0 }
 0x107   : > { %v1274_v23 = vmax.f32 %v1210_v15, 0.0  ;;  %v1306_v24 = vmax.f32 %v1242_v16, 0.0 }
 0x108   : > { %v1272_v27 = vmax.f32 %v1208_v19, 0.0  ;;  %v1304_v28 = vmax.f32 %v1240_v20, 0.0 }
 0x109   : > { %v1962_v29 = vpack.c.bf16 %v1274_v23, %v1273_v21  ;;  %v2042_v30 = vpack.c.bf16 %v1306_v24, %v1305_v22 }
 0x10a   : > { %v1957_v31 = vpack.c.bf16 %v1272_v27, %v1271_v25  ;;  %v2037_v32 = vpack.c.bf16 %v1304_v28, %v1303_v26  ;;  %v2201_v33 = vpop.f32.mrb[8].mxu0  ;;  %v2233_v34 = vpop.f32.mrb[8].mxu1 }
 0x10b   : > { %2106 = vst [vmem:[%s2481_s17 + $0x18] sm:$0xff] %v1962_v29   ;;  %2122 = vst [vmem:[%s2481_s17 + $0x98] sm:$0xff] %v2042_v30   ;;  %v1213_v35 = vadd.f32 %v2201_v33, %v2466_v40  ;;  %v1245_v36 = vadd.f32 %v2233_v34, %v2466_v40  ;;  %v778_v37 = vpop.f32.mrb[9].mxu0  ;;  %v906_v38 = vpop.f32.mrb[9].mxu1 }
 0x10c   : > { %2105 = vst [vmem:[%s2481_s17 + $0x10] sm:$0xff] %v1957_v31   ;;  %2121 = vst [vmem:[%s2481_s17 + $0x90] sm:$0xff] %v2037_v32   ;;  %v1211_v39 = vadd.f32 %v2466_v40, %v778_v37  ;;  %v1243_v41 = vadd.f32 %v2466_v40, %v906_v38  ;;  %v2202_v42 = vpop.f32.mrb[10].mxu0  ;;  %v2234_v43 = vpop.f32.mrb[10].mxu1 }
 0x10d   : > { %v1214_v44 = vadd.f32 %v2202_v42, %v2466_v40  ;;  %v1246_v45 = vadd.f32 %v2234_v43, %v2466_v40  ;;  %v781_v46 = vpop.f32.mrb[11].mxu0  ;;  %v909_v47 = vpop.f32.mrb[11].mxu1  ;;  %v1277_v50 = vmax.f32 %v1213_v35, 0.0  ;;  %v1309_v51 = vmax.f32 %v1245_v36, 0.0 }
 0x10e   : > { %v1212_v48 = vadd.f32 %v2466_v40, %v781_v46  ;;  %v1244_v49 = vadd.f32 %v2466_v40, %v909_v47  ;;  %v1275_v54 = vmax.f32 %v1211_v39, 0.0  ;;  %v1307_v55 = vmax.f32 %v1243_v41, 0.0 }
 0x10f   : > { %v1278_v52 = vmax.f32 %v1214_v44, 0.0  ;;  %v1310_v53 = vmax.f32 %v1246_v45, 0.0 }
 0x110   : > { %v1276_v56 = vmax.f32 %v1212_v48, 0.0  ;;  %v1308_v57 = vmax.f32 %v1244_v49, 0.0 }
 0x111   : > { %v1972_v58 = vpack.c.bf16 %v1278_v52, %v1277_v50  ;;  %v2052_v59 = vpack.c.bf16 %v1310_v53, %v1309_v51 }
 0x112   : > { %v1967_v60 = vpack.c.bf16 %v1276_v56, %v1275_v54  ;;  %v2047_v61 = vpack.c.bf16 %v1308_v57, %v1307_v55  ;;  %v2205_v62 = vpop.f32.mrb[12].mxu0  ;;  %v2237_v63 = vpop.f32.mrb[12].mxu1 }
 0x113   : > { %2108 = vst [vmem:[%s2481_s17 + $0x28] sm:$0xff] %v1972_v58   ;;  %2124 = vst [vmem:[%s2481_s17 + $0xa8] sm:$0xff] %v2052_v59   ;;  %v1217_v0 = vadd.f32 %v2205_v62, %v2466_v40  ;;  %v1249_v1 = vadd.f32 %v2237_v63, %v2466_v40  ;;  %v794_v2 = vpop.f32.mrb[13].mxu0  ;;  %v922_v3 = vpop.f32.mrb[13].mxu1 }
 0x114   : > { %2107 = vst [vmem:[%s2481_s17 + $0x20] sm:$0xff] %v1967_v60   ;;  %2123 = vst [vmem:[%s2481_s17 + $0xa0] sm:$0xff] %v2047_v61   ;;  %v1215_v4 = vadd.f32 %v2466_v40, %v794_v2  ;;  %v1247_v5 = vadd.f32 %v2466_v40, %v922_v3  ;;  %v2206_v6 = vpop.f32.mrb[14].mxu0  ;;  %v2238_v7 = vpop.f32.mrb[14].mxu1 }
 0x115   : > { %v1218_v8 = vadd.f32 %v2206_v6, %v2466_v40  ;;  %v1250_v9 = vadd.f32 %v2238_v7, %v2466_v40  ;;  %v797_v10 = vpop.f32.mrb[15].mxu0  ;;  %v925_v11 = vpop.f32.mrb[15].mxu1  ;;  %v1281_v14 = vmax.f32 %v1217_v0, 0.0  ;;  %v1313_v15 = vmax.f32 %v1249_v1, 0.0 }
 0x116   : > { %v1216_v12 = vadd.f32 %v2466_v40, %v797_v10  ;;  %v1248_v13 = vadd.f32 %v2466_v40, %v925_v11  ;;  %v1279_v18 = vmax.f32 %v1215_v4, 0.0  ;;  %v1311_v19 = vmax.f32 %v1247_v5, 0.0 }
 0x117   : > { %v1282_v16 = vmax.f32 %v1218_v8, 0.0  ;;  %v1314_v17 = vmax.f32 %v1250_v9, 0.0 }
 0x118   : > { %v1280_v20 = vmax.f32 %v1216_v12, 0.0  ;;  %v1312_v21 = vmax.f32 %v1248_v13, 0.0 }
 0x119   : > { %v1982_v22 = vpack.c.bf16 %v1282_v16, %v1281_v14  ;;  %v2062_v23 = vpack.c.bf16 %v1314_v17, %v1313_v15 }
 0x11a   : > { %v1977_v24 = vpack.c.bf16 %v1280_v20, %v1279_v18  ;;  %v2057_v25 = vpack.c.bf16 %v1312_v21, %v1311_v19  ;;  %v2209_v26 = vpop.f32.mrb[16].mxu0  ;;  %v2241_v27 = vpop.f32.mrb[16].mxu1 }
 0x11b   : > { %2110 = vst [vmem:[%s2481_s17 + $0x38] sm:$0xff] %v1982_v22   ;;  %2126 = vst [vmem:[%s2481_s17 + $0xb8] sm:$0xff] %v2062_v23   ;;  %v1221_v28 = vadd.f32 %v2209_v26, %v2466_v40  ;;  %v1253_v29 = vadd.f32 %v2241_v27, %v2466_v40  ;;  %v810_v30 = vpop.f32.mrb[17].mxu0  ;;  %v938_v31 = vpop.f32.mrb[17].mxu1 }
 0x11c   : > { %2109 = vst [vmem:[%s2481_s17 + $0x30] sm:$0xff] %v1977_v24   ;;  %2125 = vst [vmem:[%s2481_s17 + $0xb0] sm:$0xff] %v2057_v25   ;;  %v1219_v32 = vadd.f32 %v2466_v40, %v810_v30  ;;  %v1251_v33 = vadd.f32 %v2466_v40, %v938_v31  ;;  %v2210_v34 = vpop.f32.mrb[18].mxu0  ;;  %v2242_v35 = vpop.f32.mrb[18].mxu1 }
 0x11d   : > { %v1222_v36 = vadd.f32 %v2210_v34, %v2466_v40  ;;  %v1254_v37 = vadd.f32 %v2242_v35, %v2466_v40  ;;  %v813_v38 = vpop.f32.mrb[19].mxu0  ;;  %v941_v39 = vpop.f32.mrb[19].mxu1  ;;  %v1285_v43 = vmax.f32 %v1221_v28, 0.0  ;;  %v1317_v44 = vmax.f32 %v1253_v29, 0.0 }
 0x11e   : > { %v1220_v41 = vadd.f32 %v2466_v40, %v813_v38  ;;  %v1252_v42 = vadd.f32 %v2466_v40, %v941_v39  ;;  %v1283_v47 = vmax.f32 %v1219_v32, 0.0  ;;  %v1315_v48 = vmax.f32 %v1251_v33, 0.0 }
 0x11f   : > { %v1286_v45 = vmax.f32 %v1222_v36, 0.0  ;;  %v1318_v46 = vmax.f32 %v1254_v37, 0.0 }
 0x120   : > { %v1284_v49 = vmax.f32 %v1220_v41, 0.0  ;;  %v1316_v50 = vmax.f32 %v1252_v42, 0.0 }
 0x121   : > { %v1992_v51 = vpack.c.bf16 %v1286_v45, %v1285_v43  ;;  %v2072_v52 = vpack.c.bf16 %v1318_v46, %v1317_v44 }
 0x122   : > { %v1987_v53 = vpack.c.bf16 %v1284_v49, %v1283_v47  ;;  %v2067_v54 = vpack.c.bf16 %v1316_v50, %v1315_v48  ;;  %v2213_v55 = vpop.f32.mrb[20].mxu0  ;;  %v2245_v56 = vpop.f32.mrb[20].mxu1 }
 0x123   : > { %2112 = vst [vmem:[%s2481_s17 + $0x48] sm:$0xff] %v1992_v51   ;;  %2128 = vst [vmem:[%s2481_s17 + $0xc8] sm:$0xff] %v2072_v52   ;;  %v1225_v57 = vadd.f32 %v2213_v55, %v2466_v40  ;;  %v1257_v58 = vadd.f32 %v2245_v56, %v2466_v40  ;;  %v826_v59 = vpop.f32.mrb[21].mxu0  ;;  %v954_v60 = vpop.f32.mrb[21].mxu1 }
 0x124   : > { %2111 = vst [vmem:[%s2481_s17 + $0x40] sm:$0xff] %v1987_v53   ;;  %2127 = vst [vmem:[%s2481_s17 + $0xc0] sm:$0xff] %v2067_v54   ;;  %v1223_v61 = vadd.f32 %v2466_v40, %v826_v59  ;;  %v1255_v62 = vadd.f32 %v2466_v40, %v954_v60  ;;  %v2214_v63 = vpop.f32.mrb[22].mxu0  ;;  %v2246_v0 = vpop.f32.mrb[22].mxu1 }
 0x125   : > { %v1226_v1 = vadd.f32 %v2214_v63, %v2466_v40  ;;  %v1258_v2 = vadd.f32 %v2246_v0, %v2466_v40  ;;  %v829_v3 = vpop.f32.mrb[23].mxu0  ;;  %v957_v4 = vpop.f32.mrb[23].mxu1  ;;  %v1289_v7 = vmax.f32 %v1225_v57, 0.0  ;;  %v1321_v8 = vmax.f32 %v1257_v58, 0.0 }
 0x126   : > { %v1224_v5 = vadd.f32 %v2466_v40, %v829_v3  ;;  %v1256_v6 = vadd.f32 %v2466_v40, %v957_v4  ;;  %v1287_v11 = vmax.f32 %v1223_v61, 0.0  ;;  %v1319_v12 = vmax.f32 %v1255_v62, 0.0 }
 0x127   : > { %v1290_v9 = vmax.f32 %v1226_v1, 0.0  ;;  %v1322_v10 = vmax.f32 %v1258_v2, 0.0 }
 0x128   : > { %v1288_v13 = vmax.f32 %v1224_v5, 0.0  ;;  %v1320_v14 = vmax.f32 %v1256_v6, 0.0 }
 0x129   : > { %v2002_v15 = vpack.c.bf16 %v1290_v9, %v1289_v7  ;;  %v2082_v16 = vpack.c.bf16 %v1322_v10, %v1321_v8 }
 0x12a   : > { %v1997_v17 = vpack.c.bf16 %v1288_v13, %v1287_v11  ;;  %v2077_v18 = vpack.c.bf16 %v1320_v14, %v1319_v12  ;;  %v2217_v19 = vpop.f32.mrb[24].mxu0  ;;  %v2249_v20 = vpop.f32.mrb[24].mxu1 }
 0x12b   : > { %2114 = vst [vmem:[%s2481_s17 + $0x58] sm:$0xff] %v2002_v15   ;;  %2130 = vst [vmem:[%s2481_s17 + $0xd8] sm:$0xff] %v2082_v16   ;;  %v1229_v21 = vadd.f32 %v2217_v19, %v2466_v40  ;;  %v1261_v22 = vadd.f32 %v2249_v20, %v2466_v40  ;;  %v842_v23 = vpop.f32.mrb[25].mxu0  ;;  %v970_v24 = vpop.f32.mrb[25].mxu1 }
 0x12c   : > { %2113 = vst [vmem:[%s2481_s17 + $0x50] sm:$0xff] %v1997_v17   ;;  %2129 = vst [vmem:[%s2481_s17 + $0xd0] sm:$0xff] %v2077_v18   ;;  %v1227_v25 = vadd.f32 %v2466_v40, %v842_v23  ;;  %v1259_v26 = vadd.f32 %v2466_v40, %v970_v24  ;;  %v2218_v27 = vpop.f32.mrb[26].mxu0  ;;  %v2250_v28 = vpop.f32.mrb[26].mxu1 }
 0x12d   : > { %v1230_v29 = vadd.f32 %v2218_v27, %v2466_v40  ;;  %v1262_v30 = vadd.f32 %v2250_v28, %v2466_v40  ;;  %v845_v31 = vpop.f32.mrb[27].mxu0  ;;  %v973_v32 = vpop.f32.mrb[27].mxu1  ;;  %v1293_v35 = vmax.f32 %v1229_v21, 0.0  ;;  %v1325_v36 = vmax.f32 %v1261_v22, 0.0 }
 0x12e   : > { %v1228_v33 = vadd.f32 %v2466_v40, %v845_v31  ;;  %v1260_v34 = vadd.f32 %v2466_v40, %v973_v32  ;;  %v1291_v39 = vmax.f32 %v1227_v25, 0.0  ;;  %v1323_v41 = vmax.f32 %v1259_v26, 0.0 }
 0x12f   : > { %v1294_v37 = vmax.f32 %v1230_v29, 0.0  ;;  %v1326_v38 = vmax.f32 %v1262_v30, 0.0 }
 0x130   : > { %v1292_v42 = vmax.f32 %v1228_v33, 0.0  ;;  %v1324_v43 = vmax.f32 %v1260_v34, 0.0 }
 0x131   : > { %v2012_v44 = vpack.c.bf16 %v1294_v37, %v1293_v35  ;;  %v2092_v45 = vpack.c.bf16 %v1326_v38, %v1325_v36 }
 0x132   : > { %v2007_v46 = vpack.c.bf16 %v1292_v42, %v1291_v39  ;;  %v2087_v47 = vpack.c.bf16 %v1324_v43, %v1323_v41  ;;  %v2221_v48 = vpop.f32.mrb[28].mxu0  ;;  %v2253_v49 = vpop.f32.mrb[28].mxu1 }
 0x133   : > { %2116 = vst [vmem:[%s2481_s17 + $0x68] sm:$0xff] %v2012_v44   ;;  %2132 = vst [vmem:[%s2481_s17 + $0xe8] sm:$0xff] %v2092_v45   ;;  %v1233_v50 = vadd.f32 %v2221_v48, %v2466_v40  ;;  %v1265_v51 = vadd.f32 %v2253_v49, %v2466_v40  ;;  %v858_v52 = vpop.f32.mrb[29].mxu0  ;;  %v986_v53 = vpop.f32.mrb[29].mxu1 }
 0x134   : > { %2115 = vst [vmem:[%s2481_s17 + $0x60] sm:$0xff] %v2007_v46   ;;  %2131 = vst [vmem:[%s2481_s17 + $0xe0] sm:$0xff] %v2087_v47   ;;  %v1231_v54 = vadd.f32 %v2466_v40, %v858_v52  ;;  %v1263_v55 = vadd.f32 %v2466_v40, %v986_v53  ;;  %v2222_v56 = vpop.f32.mrb[30].mxu0  ;;  %v2254_v57 = vpop.f32.mrb[30].mxu1 }
 0x135   : > { %v1234_v58 = vadd.f32 %v2222_v56, %v2466_v40  ;;  %v1266_v59 = vadd.f32 %v2254_v57, %v2466_v40  ;;  %v861_v60 = vpop.f32.mrb[31].mxu0  ;;  %v989_v61 = vpop.f32.mrb[31].mxu1  ;;  %v1297_v0 = vmax.f32 %v1233_v50, 0.0  ;;  %v1329_v1 = vmax.f32 %v1265_v51, 0.0 }
 0x136   : > { %v1232_v62 = vadd.f32 %v2466_v40, %v861_v60  ;;  %v1264_v63 = vadd.f32 %v2466_v40, %v989_v61  ;;  %v1295_v4 = vmax.f32 %v1231_v54, 0.0  ;;  %v1327_v5 = vmax.f32 %v1263_v55, 0.0 }
 0x137   : > { %v1298_v2 = vmax.f32 %v1234_v58, 0.0  ;;  %v1330_v3 = vmax.f32 %v1266_v59, 0.0 }
 0x138   : > { %v1296_v6 = vmax.f32 %v1232_v62, 0.0  ;;  %v1328_v7 = vmax.f32 %v1264_v63, 0.0 }
 0x139   : > { %v2022_v8 = vpack.c.bf16 %v1298_v2, %v1297_v0  ;;  %v2102_v9 = vpack.c.bf16 %v1330_v3, %v1329_v1 }
 0x13a   : > { %v2017_v10 = vpack.c.bf16 %v1296_v6, %v1295_v4  ;;  %v2097_v11 = vpack.c.bf16 %v1328_v7, %v1327_v5 }
 0x13b   : > { %2118 = vst [vmem:[%s2481_s17 + $0x78] sm:$0xff] %v2022_v8   ;;  %2134 = vst [vmem:[%s2481_s17 + $0xf8] sm:$0xff] %v2102_v9  }
 0x13c   : > { %2117 = vst [vmem:[%s2481_s17 + $0x70] sm:$0xff] %v2017_v10   ;;  %2133 = vst [vmem:[%s2481_s17 + $0xf0] sm:$0xff] %v2097_v11  }
 0x13d PF: > { %s13_s14 = sadd.s32 1, %s2357_s14   ;;  %s2584_s12 = smov %s2353_s13 }
 0x13e   : > { %p10_p5 = scmp.ge.s32.totalorder %s13_s14, 4   ;;  %s2585_s13 = smov %s2587_s15 }
 0x140   :  { %12 = sbr.rel (!%p10_p5) target bundleno = 2 (0x2), region = 76 }

// kernel: backbone_forward.6
= control target key start
LH: loop header
LB: loop body
LE: loop exit
PB: predicated region body
PF: predicated region fallthrough
CT: control target
= control target key end

     0   :  { %s2637_s12 = smov 0   ;;  %s2639_s13 = smov 0   ;;  %s3036_s0 = inlined_call_operand.vmem [shape: bf16[128,1792], index: 0, kind: input, shape index: {}]   ;;  %s3037_s1 = inlined_call_operand.vmem [shape: bf16[1792,128], index: 1, kind: input, shape index: {}]   ;;  %s3038_s2 = inlined_call_operand.vmem [shape: f32[1,128], index: 2, kind: input, shape index: {}]   ;;  %s3039_s3 = inlined_call_operand.vmem [shape: bf16[128,128], index: 3, kind: output, shape index: {}]  }
   0x1   :  { %s2641_s14 = smov 0   ;;  %s2643_s15 = smov 0  }
   0x2   :  { %s2645_s16 = smov 0  }
   0x3 LB: > { %s25_s17 = sadd.s32 1, %s2610_s15  ;;  %p48_p1 = scmp.ne.s32.totalorder %s2602_s13, %s2598_s12  ;;  %s2614_s16 = sphi %s2645_s16, %s13_s16   ;;  %s2610_s15 = sphi %s2643_s15, %s3043_s15   ;;  %s2606_s14 = sphi %s2641_s14, %s3042_s14   ;;  %s2602_s13 = sphi %s2639_s13, %s3041_s13   ;;  %s2598_s12 = sphi %s2637_s12, %s3040_s12  }
   0x4   : > { %p26_p0 = scmp.ge.s32.totalorder %s25_s17, 2  ;;  %p49_p2 = scmp.eq.s32.totalorder %s2614_s16, 0 }
   0x5   : > { %s41_s19 = sadd.s32 1, %s2602_s13  ;;  %p1922_p5 = scmp.ge.s32.totalorder %s2614_s16, 2 }
   0x6   : > { %s3045_s17 = smov (%p26_p0, %s25_s17), 0  ;;  %p50_p3 = por %p49_p2, %p48_p1 }
   0x7   : > { %s37_s18 = ssub.s32 %s2610_s15, %s3045_s17  ;;  %162 = sbr.rel (%p1922_p5) target bundleno = 53 (0x35), region = 20 }
   0x8   : > { %p39_p4 = scmp.eq.s32.totalorder %s37_s18, 0 }
   0xa   : > { %s2672_s20 = scalar_select %p39_p4, %s2602_s13, %s41_s19  }
   0xe   : > { %165 = sbr.rel (!%p50_p3) target bundleno = 53 (0x35), region = 24  ;;  %s167_s21 = sand.u32 (%p50_p3), 1, %s2602_s13  }
   0xf   : > { %s2093_s22 = smul.u32 (%p50_p3), 28, %s2610_s15 }
  0x10   : > { %s2397_s23 = smul.u32 (%p50_p3), 448, %s167_s21 }
  0x11   : > { %s2680_s26 = scalar_lea.vmem (%p50_p3), %s3036_s0, %s2093_s22 }
  0x12   : > { %v190_v0 = vld [vmem:[%s2680_s26] sm:$0xff] (%p50_p3)  ;;  %v192_v1 = vld [vmem:[%s2680_s26 + $0x8] sm:$0xff] (%p50_p3)  ;;  %v194_v2 = vld [vmem:[%s2680_s26 + $0x10] sm:$0xff] (%p50_p3)  ;;  %s2685_s27 = scalar_lea.vmem (%p50_p3), [#allocation3], %s2397_s23 }
  0x13   : > { %191 = vst [vmem:[%s2685_s27] sm:$0xff] (%p50_p3), %v190_v0  ;;  %193 = vst [vmem:[%s2685_s27 + $0x8] sm:$0xff] (%p50_p3), %v192_v1  ;;  %v196_v3 = vld [vmem:[%s2680_s26 + $0x38] sm:$0xff] (%p50_p3)  ;;  %v198_v4 = vld [vmem:[%s2680_s26 + $0x40] sm:$0xff] (%p50_p3) }
  0x14   : > { %195 = vst [vmem:[%s2685_s27 + $0x10] sm:$0xff] (%p50_p3), %v194_v2  ;;  %v200_v5 = vld [vmem:[%s2680_s26 + $0x48] sm:$0xff] (%p50_p3)  ;;  %197 = vst [vmem:[%s2685_s27 + $0x1c] sm:$0xff] (%p50_p3), %v196_v3  ;;  %v202_v6 = vld [vmem:[%s2680_s26 + $0x70] sm:$0xff] (%p50_p3) }
  0x15   : > { %199 = vst [vmem:[%s2685_s27 + $0x24] sm:$0xff] %v198_v4  ;;  %201 = vst [vmem:[%s2685_s27 + $0x2c] sm:$0xff] %v200_v5  ;;  %v204_v7 = vld [vmem:[%s2680_s26 + $0x78] sm:$0xff]  ;;  %v206_v8 = vld [vmem:[%s2680_s26 + $0x80] sm:$0xff] }
  0x16   : > { %203 = vst [vmem:[%s2685_s27 + $0x38] sm:$0xff] %v202_v6  ;;  %205 = vst [vmem:[%s2685_s27 + $0x40] sm:$0xff] %v204_v7  ;;  %v208_v9 = vld [vmem:[%s2680_s26 + $0xa8] sm:$0xff]  ;;  %v210_v10 = vld [vmem:[%s2680_s26 + $0xb0] sm:$0xff] }
  0x17   : > { %207 = vst [vmem:[%s2685_s27 + $0x48] sm:$0xff] %v206_v8  ;;  %v212_v11 = vld [vmem:[%s2680_s26 + $0xb8] sm:$0xff]  ;;  %209 = vst [vmem:[%s2685_s27 + $0x54] sm:$0xff] %v208_v9  ;;  %v214_v12 = vld [vmem:[%s2680_s26 + $0xe0] sm:$0xff] }
  0x18   : > { %211 = vst [vmem:[%s2685_s27 + $0x5c] sm:$0xff] %v210_v10  ;;  %213 = vst [vmem:[%s2685_s27 + $0x64] sm:$0xff] %v212_v11  ;;  %v216_v13 = vld [vmem:[%s2680_s26 + $0xe8] sm:$0xff]  ;;  %v218_v14 = vld [vmem:[%s2680_s26 + $0xf0] sm:$0xff] }
  0x19   : > { %215 = vst [vmem:[%s2685_s27 + $0x70] sm:$0xff] %v214_v12  ;;  %217 = vst [vmem:[%s2685_s27 + $0x78] sm:$0xff] %v216_v13  ;;  %v220_v15 = vld [vmem:[%s2680_s26 + $0x118] sm:$0xff]  ;;  %v222_v16 = vld [vmem:[%s2680_s26 + $0x120] sm:$0xff] }
  0x1a   : > { %219 = vst [vmem:[%s2685_s27 + $0x80] sm:$0xff] %v218_v14  ;;  %v224_v17 = vld [vmem:[%s2680_s26 + $0x128] sm:$0xff]  ;;  %221 = vst [vmem:[%s2685_s27 + $0x8c] sm:$0xff] %v220_v15  ;;  %v226_v18 = vld [vmem:[%s2680_s26 + $0x150] sm:$0xff] }
  0x1b   : > { %223 = vst [vmem:[%s2685_s27 + $0x94] sm:$0xff] %v222_v16  ;;  %225 = vst [vmem:[%s2685_s27 + $0x9c] sm:$0xff] %v224_v17  ;;  %v228_v19 = vld [vmem:[%s2680_s26 + $0x158] sm:$0xff]  ;;  %v230_v20 = vld [vmem:[%s2680_s26 + $0x160] sm:$0xff] }
  0x1c   : > { %227 = vst [vmem:[%s2685_s27 + $0xa8] sm:$0xff] %v226_v18  ;;  %229 = vst [vmem:[%s2685_s27 + $0xb0] sm:$0xff] %v228_v19  ;;  %v232_v21 = vld [vmem:[%s2680_s26 + $0x188] sm:$0xff]  ;;  %v234_v22 = vld [vmem:[%s2680_s26 + $0x190] sm:$0xff] }
  0x1d   : > { %231 = vst [vmem:[%s2685_s27 + $0xb8] sm:$0xff] %v230_v20  ;;  %v236_v23 = vld [vmem:[%s2680_s26 + $0x198] sm:$0xff]  ;;  %233 = vst [vmem:[%s2685_s27 + $0xc4] sm:$0xff] %v232_v21  ;;  %v238_v24 = vld [vmem:[%s2680_s26 + $0x1c0] sm:$0xff] }
  0x1e   : > { %235 = vst [vmem:[%s2685_s27 + $0xcc] sm:$0xff] %v234_v22  ;;  %237 = vst [vmem:[%s2685_s27 + $0xd4] sm:$0xff] %v236_v23  ;;  %v240_v25 = vld [vmem:[%s2680_s26 + $0x1c8] sm:$0xff]  ;;  %v242_v26 = vld [vmem:[%s2680_s26 + $0x1d0] sm:$0xff] }
  0x1f   : > { %239 = vst [vmem:[%s2685_s27 + $0xe0] sm:$0xff] %v238_v24  ;;  %241 = vst [vmem:[%s2685_s27 + $0xe8] sm:$0xff] %v240_v25  ;;  %v244_v27 = vld [vmem:[%s2680_s26 + $0x1f8] sm:$0xff]  ;;  %v246_v28 = vld [vmem:[%s2680_s26 + $0x200] sm:$0xff] }
  0x20   : > { %243 = vst [vmem:[%s2685_s27 + $0xf0] sm:$0xff] %v242_v26  ;;  %v248_v29 = vld [vmem:[%s2680_s26 + $0x208] sm:$0xff]  ;;  %245 = vst [vmem:[%s2685_s27 + $0xfc] sm:$0xff] %v244_v27  ;;  %v250_v30 = vld [vmem:[%s2680_s26 + $0x230] sm:$0xff] }
  0x21   : > { %247 = vst [vmem:[%s2685_s27 + $0x104] sm:$0xff] %v246_v28  ;;  %249 = vst [vmem:[%s2685_s27 + $0x10c] sm:$0xff] %v248_v29  ;;  %v252_v31 = vld [vmem:[%s2680_s26 + $0x238] sm:$0xff]  ;;  %v254_v32 = vld [vmem:[%s2680_s26 + $0x240] sm:$0xff] }
  0x22   : > { %251 = vst [vmem:[%s2685_s27 + $0x118] sm:$0xff] %v250_v30  ;;  %253 = vst [vmem:[%s2685_s27 + $0x120] sm:$0xff] %v252_v31  ;;  %v256_v33 = vld [vmem:[%s2680_s26 + $0x268] sm:$0xff]  ;;  %v258_v34 = vld [vmem:[%s2680_s26 + $0x270] sm:$0xff] }
  0x23   : > { %255 = vst [vmem:[%s2685_s27 + $0x128] sm:$0xff] %v254_v32  ;;  %v260_v35 = vld [vmem:[%s2680_s26 + $0x278] sm:$0xff]  ;;  %257 = vst [vmem:[%s2685_s27 + $0x134] sm:$0xff] %v256_v33  ;;  %v262_v36 = vld [vmem:[%s2680_s26 + $0x2a0] sm:$0xff] }
  0x24   : > { %259 = vst [vmem:[%s2685_s27 + $0x13c] sm:$0xff] %v258_v34  ;;  %261 = vst [vmem:[%s2685_s27 + $0x144] sm:$0xff] %v260_v35  ;;  %v264_v37 = vld [vmem:[%s2680_s26 + $0x2a8] sm:$0xff]  ;;  %v266_v38 = vld [vmem:[%s2680_s26 + $0x2b0] sm:$0xff] }
  0x25   : > { %263 = vst [vmem:[%s2685_s27 + $0x150] sm:$0xff] %v262_v36  ;;  %265 = vst [vmem:[%s2685_s27 + $0x158] sm:$0xff] %v264_v37  ;;  %v268_v39 = vld [vmem:[%s2680_s26 + $0x2d8] sm:$0xff]  ;;  %v270_v40 = vld [vmem:[%s2680_s26 + $0x2e0] sm:$0xff] }
  0x26   : > { %267 = vst [vmem:[%s2685_s27 + $0x160] sm:$0xff] %v266_v38  ;;  %v272_v41 = vld [vmem:[%s2680_s26 + $0x2e8] sm:$0xff]  ;;  %269 = vst [vmem:[%s2685_s27 + $0x16c] sm:$0xff] %v268_v39  ;;  %v274_v42 = vld [vmem:[%s2680_s26 + $0x310] sm:$0xff] }
  0x27   : > { %271 = vst [vmem:[%s2685_s27 + $0x174] sm:$0xff] %v270_v40  ;;  %273 = vst [vmem:[%s2685_s27 + $0x17c] sm:$0xff] %v272_v41  ;;  %v276_v43 = vld [vmem:[%s2680_s26 + $0x318] sm:$0xff]  ;;  %v278_v44 = vld [vmem:[%s2680_s26 + $0x320] sm:$0xff] }
  0x28   : > { %275 = vst [vmem:[%s2685_s27 + $0x188] sm:$0xff] %v274_v42  ;;  %277 = vst [vmem:[%s2685_s27 + $0x190] sm:$0xff] %v276_v43  ;;  %v280_v45 = vld [vmem:[%s2680_s26 + $0x348] sm:$0xff]  ;;  %v282_v46 = vld [vmem:[%s2680_s26 + $0x350] sm:$0xff] }
  0x29   : > { %279 = vst [vmem:[%s2685_s27 + $0x198] sm:$0xff] %v278_v44  ;;  %v284_v47 = vld [vmem:[%s2680_s26 + $0x358] sm:$0xff]  ;;  %281 = vst [vmem:[%s2685_s27 + $0x1a4] sm:$0xff] %v280_v45  ;;  %v1926_v49 = vld [vmem:[%s2680_s26 + $0x50] sm:$0xf] }
  0x2a   : > { %283 = vst [vmem:[%s2685_s27 + $0x1ac] sm:$0xff] %v282_v46  ;;  %285 = vst [vmem:[%s2685_s27 + $0x1b4] sm:$0xff] %v284_v47  ;;  %v1924_v48 = vld [vmem:[%s2680_s26 + $0x18] sm:$0xf]  ;;  %v1928_v50 = vld [vmem:[%s2680_s26 + $0x88] sm:$0xf] }
  0x2b   : > { %1925 = vst [vmem:[%s2685_s27 + $0x18] sm:$0xf] %v1924_v48  ;;  %1927 = vst [vmem:[%s2685_s27 + $0x34] sm:$0xf] %v1926_v49  ;;  %v1930_v51 = vld [vmem:[%s2680_s26 + $0xc0] sm:$0xf] }
  0x2c   : > { %1929 = vst [vmem:[%s2685_s27 + $0x50] sm:$0xf] %v1928_v50  ;;  %v1932_v52 = vld [vmem:[%s2680_s26 + $0xf8] sm:$0xf]  ;;  %v1934_v53 = vld [vmem:[%s2680_s26 + $0x130] sm:$0xf] }
  0x2d   : > { %1931 = vst [vmem:[%s2685_s27 + $0x6c] sm:$0xf] %v1930_v51  ;;  %1933 = vst [vmem:[%s2685_s27 + $0x88] sm:$0xf] %v1932_v52  ;;  %v1936_v54 = vld [vmem:[%s2680_s26 + $0x168] sm:$0xf] }
  0x2e   : > { %1935 = vst [vmem:[%s2685_s27 + $0xa4] sm:$0xf] %v1934_v53  ;;  %v1938_v55 = vld [vmem:[%s2680_s26 + $0x1a0] sm:$0xf]  ;;  %v1940_v56 = vld [vmem:[%s2680_s26 + $0x1d8] sm:$0xf] }
  0x2f   : > { %1937 = vst [vmem:[%s2685_s27 + $0xc0] sm:$0xf] %v1936_v54  ;;  %1939 = vst [vmem:[%s2685_s27 + $0xdc] sm:$0xf] %v1938_v55  ;;  %v1942_v57 = vld [vmem:[%s2680_s26 + $0x210] sm:$0xf] }
  0x30   : > { %1941 = vst [vmem:[%s2685_s27 + $0xf8] sm:$0xf] %v1940_v56  ;;  %v1944_v58 = vld [vmem:[%s2680_s26 + $0x248] sm:$0xf]  ;;  %v1946_v59 = vld [vmem:[%s2680_s26 + $0x280] sm:$0xf] }
  0x31   : > { %1943 = vst [vmem:[%s2685_s27 + $0x114] sm:$0xf] %v1942_v57  ;;  %1945 = vst [vmem:[%s2685_s27 + $0x130] sm:$0xf] %v1944_v58  ;;  %v1948_v60 = vld [vmem:[%s2680_s26 + $0x2b8] sm:$0xf] }
  0x32   : > { %1947 = vst [vmem:[%s2685_s27 + $0x14c] sm:$0xf] %v1946_v59  ;;  %v1950_v61 = vld [vmem:[%s2680_s26 + $0x2f0] sm:$0xf]  ;;  %v1952_v62 = vld [vmem:[%s2680_s26 + $0x328] sm:$0xf] }
  0x33   : > { %1949 = vst [vmem:[%s2685_s27 + $0x168] sm:$0xf] %v1948_v60  ;;  %1951 = vst [vmem:[%s2685_s27 + $0x184] sm:$0xf] %v1950_v61  ;;  %v1954_v63 = vld [vmem:[%s2680_s26 + $0x360] sm:$0xf] }
  0x34   : > { %1953 = vst [vmem:[%s2685_s27 + $0x1a0] sm:$0xf] %v1952_v62  ;;  %1955 = vst [vmem:[%s2685_s27 + $0x1bc] sm:$0xf] %v1954_v63 }
  0x35 PF: > { %p1956_p6 = scmp.ge.s32.totalorder %s2614_s16, 1  ;;  %p341_p7 = scmp.lt.s32.totalorder %s2614_s16, 3 }
  0x37   : > { %p342_p8 = pnand %p1956_p6, %p341_p7 }
  0x38   : > { %s348_s28 = sand.u32 (!%p342_p8), 1, %s2598_s12   ;;  %s387_s29 = smul.u32 (!%p342_p8), 112, %s2606_s14 }
  0x39   : > { %345 = sbr.rel (%p342_p8) target bundleno = 466 (0x1d2), region = 54  ;;  %p1958_p10 = scmp.ne.s32.totalorder (!%p342_p8), %s2606_s14, 0 }
  0x3a   : > { %s2398_s30 = smul.u32 (!%p342_p8), 448, %s348_s28  ;;  %p388_p9 = scmp.lt.s32.totalorder (!%p342_p8), %s387_s29, 223 }
  0x3c   : > { %s2821_s8 = scalar_lea.vmem (!%p342_p8), [#allocation3], %s2398_s30 }
  0x40   : > { %s3047_s29 = smov (!%p388_p9, %s387_s29), 223  ;;  %412 = sbr.rel (%p1958_p10) target bundleno = 74 (0x4a), region = 62 }
  0x41   : > { %s1957_s4 = sshll.u32 %s3047_s29, 2  ;;  %v2616_v0 = vmov (!%p1958_p10), 0.0  }
  0x42   : > { %s2819_s7 = scalar_lea.vmem %s3037_s1, %s1957_s4  ;;  %413 = vst [vmem:[#allocation2] sm:$0xff] (!%p1958_p10), %v2616_v0  ;;  %414 = vst [vmem:[#allocation2 + $0x8] sm:$0xff] (!%p1958_p10), %v2616_v0 }
  0x43   : > { %415 = vst [vmem:[#allocation2 + $0x10] sm:$0xff] (!%p1958_p10), %v2616_v0  ;;  %416 = vst [vmem:[#allocation2 + $0x18] sm:$0xff] (!%p1958_p10), %v2616_v0 }
  0x44   : > { %417 = vst [vmem:[#allocation2 + $0x20] sm:$0xff] (!%p1958_p10), %v2616_v0  ;;  %418 = vst [vmem:[#allocation2 + $0x28] sm:$0xff] (!%p1958_p10), %v2616_v0 }
  0x45   : > { %419 = vst [vmem:[#allocation2 + $0x30] sm:$0xff] (!%p1958_p10), %v2616_v0  ;;  %420 = vst [vmem:[#allocation2 + $0x38] sm:$0xff] (!%p1958_p10), %v2616_v0 }
  0x46   : > { %421 = vst [vmem:[#allocation2 + $0x40] sm:$0xff] (!%p1958_p10), %v2616_v0  ;;  %422 = vst [vmem:[#allocation2 + $0x48] sm:$0xff] (!%p1958_p10), %v2616_v0 }
  0x47   : > { %423 = vst [vmem:[#allocation2 + $0x50] sm:$0xff] %v2616_v0  ;;  %424 = vst [vmem:[#allocation2 + $0x58] sm:$0xff] %v2616_v0 }
  0x48   : > { %425 = vst [vmem:[#allocation2 + $0x60] sm:$0xff] %v2616_v0  ;;  %426 = vst [vmem:[#allocation2 + $0x68] sm:$0xff] %v2616_v0 }
  0x49   : > { %427 = vst [vmem:[#allocation2 + $0x70] sm:$0xff] %v2616_v0  ;;  %428 = vst [vmem:[#allocation2 + $0x78] sm:$0xff] %v2616_v0 }
  0x4a PF: > { %v2440_v1 = vld [vmem:[%s2819_s7 + $0x40] sm:$0xff]   ;;  %v2444_v5 = vld [vmem:[%s2819_s7 + $0x48] sm:$0xff]   ;;  %v2448_v9 = vld [vmem:[%s2819_s7 + $0x50] sm:$0xff]   ;;  %p2071_p11 = scmp.ne.s32.totalorder %s2606_s14, 1 }
  0x4b   : > { %v2441_v2 = vld [vmem:[%s2819_s7 + $0xc0] sm:$0xff]   ;;  %2157 = vmatprep.subr.bf16.mxu0 %v2440_v1  ;;  %v2445_v6 = vld [vmem:[%s2819_s7 + $0xc8] sm:$0xff]   ;;  %v2449_v10 = vld [vmem:[%s2819_s7 + $0xd0] sm:$0xff]  }
  0x4c   : > { %v2442_v3 = vld [vmem:[%s2819_s7] sm:$0xff]   ;;  %2221 = vmatprep.subr.bf16.mxu1 %v2441_v2  ;;  %v2446_v7 = vld [vmem:[%s2819_s7 + $0x8] sm:$0xff]   ;;  %v2450_v11 = vld [vmem:[%s2819_s7 + $0x10] sm:$0xff]  }
  0x4d   : > { %v2443_v4 = vld [vmem:[%s2819_s7 + $0x80] sm:$0xff]   ;;  %2158 = vmatpush3.bf16.msra.mxu0 %v2442_v3  ;;  %v2447_v8 = vld [vmem:[%s2819_s7 + $0x88] sm:$0xff]   ;;  %v2451_v12 = vld [vmem:[%s2819_s7 + $0x90] sm:$0xff]  }
  0x4e   : > { %2222 = vmatpush3.bf16.msra.mxu1 %v2443_v4  ;;  %2159 = vmatprep.subr.bf16.mxu0 %v2444_v5  ;;  %v2452_v13 = vld [vmem:[%s2819_s7 + $0x58] sm:$0xff]   ;;  %v2456_v17 = vld [vmem:[%s2819_s7 + $0x60] sm:$0xff]   ;;  %v2460_v21 = vld [vmem:[%s2819_s7 + $0x68] sm:$0xff]  }
  0x4f   : > { %2223 = vmatprep.subr.bf16.mxu1 %v2445_v6  ;;  %v2453_v14 = vld [vmem:[%s2819_s7 + $0xd8] sm:$0xff]   ;;  %v2457_v18 = vld [vmem:[%s2819_s7 + $0xe0] sm:$0xff]   ;;  %v2461_v22 = vld [vmem:[%s2819_s7 + $0xe8] sm:$0xff]  }
  0x50   : > { %v2454_v15 = vld [vmem:[%s2819_s7 + $0x18] sm:$0xff]   ;;  %v2458_v19 = vld [vmem:[%s2819_s7 + $0x20] sm:$0xff]   ;;  %v2462_v23 = vld [vmem:[%s2819_s7 + $0x28] sm:$0xff]  }
  0x51   : > { %2160 = vmatpush3.bf16.msra.mxu0 %v2446_v7  ;;  %v2455_v16 = vld [vmem:[%s2819_s7 + $0x98] sm:$0xff]   ;;  %v2459_v20 = vld [vmem:[%s2819_s7 + $0xa0] sm:$0xff]   ;;  %v2463_v24 = vld [vmem:[%s2819_s7 + $0xa8] sm:$0xff]  }
  0x52   : > { %2224 = vmatpush3.bf16.msra.mxu1 %v2447_v8  ;;  %2161 = vmatprep.subr.bf16.mxu0 %v2448_v9  ;;  %v2464_v25 = vld [vmem:[%s2819_s7 + $0x70] sm:$0xff]   ;;  %v2468_v29 = vld [vmem:[%s2819_s7 + $0x78] sm:$0xff]   ;;  %v2474_v34 = vld [vmem:[%s2821_s8 + $0x4] ss:$28 sps:$4 sm:$0xff]  }
  0x53   : > { %2225 = vmatprep.subr.bf16.mxu1 %v2449_v10  ;;  %v2465_v26 = vld [vmem:[%s2819_s7 + $0xf0] sm:$0xff]   ;;  %v2469_v30 = vld [vmem:[%s2819_s7 + $0xf8] sm:$0xff]   ;;  %v2475_v35 = vld [vmem:[%s2821_s8 + $0x8] ss:$28 sps:$4 sm:$0xff]   ;;  %1277 = vmatprep.mubr.bf16.mxu0 %v2474_v34 }
  0x54   : > { %v2466_v27 = vld [vmem:[%s2819_s7 + $0x30] sm:$0xff]   ;;  %v2470_v31 = vld [vmem:[%s2819_s7 + $0x38] sm:$0xff]   ;;  %v2477_v36 = vld [vmem:[%s2821_s8 + $0xc] ss:$28 sps:$4 sm:$0xff]  }
  0x55   : > { %2162 = vmatpush3.bf16.msra.mxu0 %v2450_v11  ;;  %v2467_v28 = vld [vmem:[%s2819_s7 + $0xb0] sm:$0xff]   ;;  %v2471_v32 = vld [vmem:[%s2819_s7 + $0xb8] sm:$0xff]   ;;  %v2478_v37 = vld [vmem:[%s2819_s7 + $0x140] sm:$0xff]   ;;  %1374 = vmatprep.mubr.bf16.mxu1 %v2477_v36 }
  0x56   : > { %2226 = vmatpush3.bf16.msra.mxu1 %v2451_v12  ;;  %2163 = vmatprep.subr.bf16.mxu0 %v2452_v13  ;;  %v2472_v33 = vld [vmem:[%s2821_s8] ss:$28 sps:$4 sm:$0xff]   ;;  %v2484_v41 = vld [vmem:[%s2821_s8 + $0x38] ss:$28 sps:$4 sm:$0xff]   ;;  %v2486_v43 = vld [vmem:[%s2819_s7 + $0x148] sm:$0xff]  }
  0x57   : > { %2227 = vmatprep.subr.bf16.mxu1 %v2453_v14  ;;  %v2479_v38 = vld [vmem:[%s2819_s7 + $0x100] sm:$0xff]   ;;  %v2480_v39 = vld [vmem:[%s2821_s8 + $0x3c] ss:$28 sps:$4 sm:$0xff]   ;;  %v2487_v44 = vld [vmem:[%s2819_s7 + $0x108] sm:$0xff]  }
  0x58   : > { %v2482_v40 = vld [vmem:[%s2821_s8 + $0x44] ss:$28 sps:$4 sm:$0xff]   ;;  %v2488_v45 = vld [vmem:[%s2821_s8 + $0x74] ss:$28 sps:$4 sm:$0xff]   ;;  %v2490_v46 = vld [vmem:[%s2821_s8 + $0x7c] ss:$28 sps:$4 sm:$0xff]  }
  0x59   : > { %2164 = vmatpush3.bf16.msra.mxu0 %v2454_v15  ;;  %v2485_v42 = vld [vmem:[%s2821_s8 + $0x40] ss:$28 sps:$4 sm:$0xff]   ;;  %v2494_v47 = vld [vmem:[%s2819_s7 + $0x150] sm:$0xff]   ;;  %v2496_v51 = vld [vmem:[%s2821_s8 + $0xac] ss:$28 sps:$4 sm:$0xff]  }
  0x5a   : > { %2228 = vmatpush3.bf16.msra.mxu1 %v2455_v16  ;;  %2165 = vmatprep.subr.bf16.mxu0 %v2456_v17  ;;  %v2495_v48 = vld [vmem:[%s2819_s7 + $0x110] sm:$0xff]   ;;  %v2502_v53 = vld [vmem:[%s2819_s7 + $0x158] sm:$0xff]   ;;  %v2500_v55 = vld [vmem:[%s2821_s8 + $0xa8] ss:$28 sps:$4 sm:$0xff]  }
  0x5b   : > { %2229 = vmatprep.subr.bf16.mxu1 %v2457_v18  ;;  %v2492_v49 = vld [vmem:[%s2821_s8 + $0x70] ss:$28 sps:$4 sm:$0xff]   ;;  %v2493_v50 = vld [vmem:[%s2821_s8 + $0x78] ss:$28 sps:$4 sm:$0xff]   ;;  %v2510_v56 = vld [vmem:[%s2819_s7 + $0x160] sm:$0xff]  }
  0x5c   : > { %v2498_v52 = vld [vmem:[%s2821_s8 + $0xb4] ss:$28 sps:$4 sm:$0xff]   ;;  %v2503_v54 = vld [vmem:[%s2819_s7 + $0x118] sm:$0xff]   ;;  %v2511_v58 = vld [vmem:[%s2819_s7 + $0x120] sm:$0xff]  }
  0x5d   : > { %2166 = vmatpush3.bf16.msra.mxu0 %v2458_v19  ;;  %v2501_v57 = vld [vmem:[%s2821_s8 + $0xb0] ss:$28 sps:$4 sm:$0xff]   ;;  %v2512_v59 = vld [vmem:[%s2819_s7 + $0x180] sm:$0xff]   ;;  %v2513_v4 = vld [vmem:[%s2821_s8 + $0x11c] ss:$28 sps:$4 sm:$0xff]  }
  0x5e   : > { %2230 = vmatpush3.bf16.msra.mxu1 %v2459_v20  ;;  %2167 = vmatprep.subr.bf16.mxu0 %v2460_v21  ;;  %v2504_v60 = vld [vmem:[%s2821_s8 + $0xe4] ss:$28 sps:$4 sm:$0xff]   ;;  %v2506_v61 = vld [vmem:[%s2821_s8 + $0xec] ss:$28 sps:$4 sm:$0xff]   ;;  %v2522_v1 = vld [vmem:[%s2819_s7 + $0x190] sm:$0xff]  }
  0x5f   : > { %2231 = vmatprep.subr.bf16.mxu1 %v2461_v22  ;;  %v2519_v62 = vld [vmem:[%s2819_s7 + $0x168] sm:$0xff]   ;;  %v2508_v2 = vld [vmem:[%s2821_s8 + $0xe0] ss:$28 sps:$4 sm:$0xff]   ;;  %v2529_v6 = vld [vmem:[%s2819_s7 + $0x170] sm:$0xff]  }
  0x60   : > { %v2520_v63 = vld [vmem:[%s2819_s7 + $0x188] sm:$0xff]   ;;  %v2515_v5 = vld [vmem:[%s2821_s8 + $0x124] ss:$28 sps:$4 sm:$0xff]   ;;  %v2530_v7 = vld [vmem:[%s2819_s7 + $0x198] sm:$0xff]  }
  0x61   : > { %2168 = vmatpush3.bf16.msra.mxu0 %v2462_v23  ;;  %v2521_v0 = vld [vmem:[%s2819_s7 + $0x128] sm:$0xff]   ;;  %v2531_v8 = vld [vmem:[%s2819_s7 + $0x130] sm:$0xff]   ;;  %v2532_v9 = vld [vmem:[%s2819_s7 + $0x1a0] sm:$0xff]  }
  0x62   : > { %2232 = vmatpush3.bf16.msra.mxu1 %v2463_v24  ;;  %2169 = vmatprep.subr.bf16.mxu0 %v2464_v25  ;;  %v2509_v3 = vld [vmem:[%s2821_s8 + $0xe8] ss:$28 sps:$4 sm:$0xff]   ;;  %v2517_v10 = vld [vmem:[%s2821_s8 + $0x118] ss:$28 sps:$4 sm:$0xff]   ;;  %v2518_v11 = vld [vmem:[%s2821_s8 + $0x120] ss:$28 sps:$4 sm:$0xff]  }
  0x63   : > { %2233 = vmatprep.subr.bf16.mxu1 %v2465_v26  ;;  %v2523_v12 = vld [vmem:[%s2821_s8 + $0x154] ss:$28 sps:$4 sm:$0xff]   ;;  %v2525_v13 = vld [vmem:[%s2821_s8 + $0x15c] ss:$28 sps:$4 sm:$0xff]   ;;  %v2540_v15 = vld [vmem:[%s2819_s7 + $0x1a8] sm:$0xff]  }
  0x64   : > { %v2539_v14 = vld [vmem:[%s2819_s7 + $0x178] sm:$0xff]   ;;  %v2542_v17 = vld [vmem:[%s2819_s7 + $0x1b0] sm:$0xff]   ;;  %v2533_v20 = vld [vmem:[%s2821_s8 + $0x18c] ss:$28 sps:$4 sm:$0xff]  }
  0x65   : > { %2170 = vmatpush3.bf16.msra.mxu0 %v2466_v27  ;;  %v2541_v16 = vld [vmem:[%s2819_s7 + $0x138] sm:$0xff]   ;;  %v2527_v18 = vld [vmem:[%s2821_s8 + $0x150] ss:$28 sps:$4 sm:$0xff]   ;;  %v2537_v23 = vld [vmem:[%s2821_s8 + $0x188] ss:$28 sps:$4 sm:$0xff]  }
  0x66   : > { %2234 = vmatpush3.bf16.msra.mxu1 %v2467_v28  ;;  %2171 = vmatprep.subr.bf16.mxu0 %v2468_v29  ;;  %v2528_v19 = vld [vmem:[%s2821_s8 + $0x158] ss:$28 sps:$4 sm:$0xff]   ;;  %v2538_v24 = vld [vmem:[%s2821_s8 + $0x190] ss:$28 sps:$4 sm:$0xff]  }
  0x67   : > { %2235 = vmatprep.subr.bf16.mxu1 %v2469_v30  ;;  %v2535_v21 = vld [vmem:[%s2821_s8 + $0x194] ss:$28 sps:$4 sm:$0xff]   ;;  %v2546_v22 = vld [vmem:[%s2819_s7 + $0x1b8] sm:$0xff]   ;;  %v2549_v29 = vld [vmem:[%s2821_s8 + $0x4c] ss:$28 sps:$4 sm:$0xff]  }
  0x68   : > { %v2545_v25 = vld [vmem:[%s2821_s8 + $0x14] ss:$28 sps:$4 sm:$0xff]   ;;  %v2555_v30 = vld [vmem:[%s2821_s8 + $0x88] ss:$28 sps:$4 sm:$0xff]   ;;  %v2557_v36 = vld [vmem:[%s2821_s8 + $0xbc] ss:$28 sps:$4 sm:$0xff]  }
  0x69   : > { %2172 = vmatpush3.bf16.msra.mxu0 %v2470_v31  ;;  %v2547_v26 = vld [vmem:[%s2821_s8 + $0x18] ss:$28 sps:$4 sm:$0xff]   ;;  %v2543_v27 = vld [vmem:[%s2821_s8 + $0x10] ss:$28 sps:$4 sm:$0xff]   ;;  %v2551_v31 = vld [vmem:[%s2821_s8 + $0x48] ss:$28 sps:$4 sm:$0xff]  }
  0x6a   : > { %2236 = vmatpush3.bf16.msra.mxu1 %v2471_v32  ;;  %2285 = vmatprep.subr.bf16.mxu0 %v2478_v37  ;;  %v2548_v28 = vld [vmem:[%s2821_s8 + $0x50] ss:$28 sps:$4 sm:$0xff]   ;;  %v2552_v32 = vld [vmem:[%s2821_s8 + $0x84] ss:$28 sps:$4 sm:$0xff]   ;;  %v2563_v34 = vld [vmem:[%s2821_s8 + $0xf8] ss:$28 sps:$4 sm:$0xff]  }
  0x6b   : > { %2365 = vmatprep.subr.bf16.mxu1 %v2512_v59  ;;  %v2564_v37 = vld [vmem:[%s2821_s8 + $0x130] ss:$28 sps:$4 sm:$0xff]  }
  0x6c   : > { %1278 = vmatmul.mubr.bf16.vlgmr.msra.gmra.mrb[0].mxu0 %v2472_v33  ;;  %v2556_v33 = vld [vmem:[%s2821_s8 + $0xc0] ss:$28 sps:$4 sm:$0xff]  }
  0x6d   : > { %1375 = vmatmul.mubr.bf16.vlgmr.msra.gmra.mrb[0].mxu1 %v2475_v35  ;;  %2286 = vmatpush3.bf16.msra.mxu0 %v2479_v38  ;;  %v2554_v35 = vld [vmem:[%s2821_s8 + $0x80] ss:$28 sps:$4 sm:$0xff]   ;;  %v2571_v38 = vld [vmem:[%s2821_s8 + $0x168] ss:$28 sps:$4 sm:$0xff]  }
  0x6e   : > { %1285 = vmatprep.mubr.bf16.mxu0 %v2480_v39  ;;  %1382 = vmatprep.mubr.bf16.mxu1 %v2482_v40  ;;  %v2559_v39 = vld [vmem:[%s2821_s8 + $0xb8] ss:$28 sps:$4 sm:$0xff]  }
  0x6f   : > { %2287 = vmatprep.subr.bf16.mxu0 %v2486_v43  ;;  %2366 = vmatpush3.bf16.msra.mxu1 %v2512_v59  ;;  %v2560_v40 = vld [vmem:[%s2821_s8 + $0xf4] ss:$28 sps:$4 sm:$0xff]   ;;  %v2565_v43 = vld [vmem:[%s2821_s8 + $0x12c] ss:$28 sps:$4 sm:$0xff]  }
  0x70   : > { %2367 = vmatprep.subr.bf16.mxu1 %v2520_v63 }
  0x71   : > { %2288 = vmatpush3.bf16.msra.mxu0 %v2487_v44  ;;  %v2567_v44 = vld [vmem:[%s2821_s8 + $0x128] ss:$28 sps:$4 sm:$0xff]  }
  0x72   : > { %2289 = vmatprep.subr.bf16.mxu0 %v2494_v47  ;;  %v2573_v47 = vld [vmem:[%s2821_s8 + $0x19c] ss:$28 sps:$4 sm:$0xff]  }
  0x73   : > { %2368 = vmatpush3.bf16.msra.mxu1 %v2520_v63 }
  0x74   : > { %1286 = vmatmul.mubr.bf16.gmra.mrb[4].mxu0 %v2484_v41  ;;  %2369 = vmatprep.subr.bf16.mxu1 %v2522_v1  ;;  %v2572_v41 = vld [vmem:[%s2821_s8 + $0x1a0] ss:$28 sps:$4 sm:$0xff]  }
  0x75   : > { %1383 = vmatmul.mubr.bf16.gmra.mrb[4].mxu1 %v2485_v42  ;;  %1293 = vmatprep.mubr.bf16.mxu0 %v2488_v45  ;;  %v2562_v42 = vld [vmem:[%s2821_s8 + $0xf0] ss:$28 sps:$4 sm:$0xff]   ;;  %v2568_v45 = vld [vmem:[%s2821_s8 + $0x164] ss:$28 sps:$4 sm:$0xff]  }
  0x76   : > { %1390 = vmatprep.mubr.bf16.mxu1 %v2490_v46  ;;  %2290 = vmatpush3.bf16.msra.mxu0 %v2495_v48  ;;  %v2570_v46 = vld [vmem:[%s2821_s8 + $0x160] ss:$28 sps:$4 sm:$0xff]   ;;  %v2575_v48 = vld [vmem:[%s2821_s8 + $0x198] ss:$28 sps:$4 sm:$0xff]  }
  0x77   : > { %2291 = vmatprep.subr.bf16.mxu0 %v2502_v53  ;;  %2370 = vmatpush3.bf16.msra.mxu1 %v2522_v1 }
  0x78   : > { %2371 = vmatprep.subr.bf16.mxu1 %v2530_v7 }
  0x7a   : > { %2292 = vmatpush3.bf16.msra.mxu0 %v2503_v54 }
  0x7b   : > { %2293 = vmatprep.subr.bf16.mxu0 %v2510_v56  ;;  %2372 = vmatpush3.bf16.msra.mxu1 %v2530_v7 }
  0x7c   : > { %1294 = vmatmul.mubr.bf16.gmra.mrb[8].mxu0 %v2492_v49  ;;  %2373 = vmatprep.subr.bf16.mxu1 %v2532_v9 }
  0x7d   : > { %1391 = vmatmul.mubr.bf16.gmra.mrb[8].mxu1 %v2493_v50  ;;  %1301 = vmatprep.mubr.bf16.mxu0 %v2496_v51 }
  0x7e   : > { %1398 = vmatprep.mubr.bf16.mxu1 %v2498_v52  ;;  %2294 = vmatpush3.bf16.msra.mxu0 %v2511_v58 }
  0x7f   : > { %2295 = vmatprep.subr.bf16.mxu0 %v2519_v62  ;;  %2374 = vmatpush3.bf16.msra.mxu1 %v2532_v9 }
  0x80   : > { %2375 = vmatprep.subr.bf16.mxu1 %v2540_v15 }
  0x82   : > { %2296 = vmatpush3.bf16.msra.mxu0 %v2521_v0 }
  0x83   : > { %2297 = vmatprep.subr.bf16.mxu0 %v2529_v6  ;;  %2376 = vmatpush3.bf16.msra.mxu1 %v2540_v15 }
  0x84   : > { %1302 = vmatmul.mubr.bf16.gmra.mrb[12].mxu0 %v2500_v55  ;;  %2377 = vmatprep.subr.bf16.mxu1 %v2542_v17 }
  0x85   : > { %1399 = vmatmul.mubr.bf16.gmra.mrb[12].mxu1 %v2501_v57  ;;  %1309 = vmatprep.mubr.bf16.mxu0 %v2504_v60 }
  0x86   : > { %1406 = vmatprep.mubr.bf16.mxu1 %v2506_v61  ;;  %2298 = vmatpush3.bf16.msra.mxu0 %v2531_v8 }
  0x87   : > { %2299 = vmatprep.subr.bf16.mxu0 %v2539_v14  ;;  %2378 = vmatpush3.bf16.msra.mxu1 %v2542_v17 }
  0x88   : > { %2379 = vmatprep.subr.bf16.mxu1 %v2546_v22 }
  0x8a   : > { %2300 = vmatpush3.bf16.msra.mxu0 %v2541_v16 }
  0x8b   : > { %2380 = vmatpush3.bf16.msra.mxu1 %v2546_v22 }
  0x8c   : > { %1310 = vmatmul.mubr.bf16.gmra.mrb[16].mxu0 %v2508_v2 }
  0x8d   : > { %1407 = vmatmul.mubr.bf16.gmra.mrb[16].mxu1 %v2509_v3  ;;  %1317 = vmatprep.mubr.bf16.mxu0 %v2513_v4 }
  0x8e   : > { %1414 = vmatprep.mubr.bf16.mxu1 %v2515_v5 }
  0x94   : > { %1318 = vmatmul.mubr.bf16.gmra.mrb[20].mxu0 %v2517_v10 }
  0x95   : > { %1415 = vmatmul.mubr.bf16.gmra.mrb[20].mxu1 %v2518_v11  ;;  %1325 = vmatprep.mubr.bf16.mxu0 %v2523_v12 }
  0x96   : > { %1422 = vmatprep.mubr.bf16.mxu1 %v2525_v13 }
  0x9c   : > { %1326 = vmatmul.mubr.bf16.gmra.mrb[24].mxu0 %v2527_v18 }
  0x9d   : > { %1423 = vmatmul.mubr.bf16.gmra.mrb[24].mxu1 %v2528_v19  ;;  %1333 = vmatprep.mubr.bf16.mxu0 %v2533_v20 }
  0x9e   : > { %1430 = vmatprep.mubr.bf16.mxu1 %v2535_v21 }
  0xa4   : > { %1334 = vmatmul.mubr.bf16.gmra.mrb[28].mxu0 %v2537_v23 }
  0xa5   : > { %1431 = vmatmul.mubr.bf16.gmra.mrb[28].mxu1 %v2538_v24  ;;  %1471 = vmatprep.mubr.bf16.mxu0 %v2545_v25 }
  0xa6   : > { %2381 = vmatprep.mubr.bf16.mxu1 %v2547_v26 }
  0xac   : > { %1472 = vmatmul.mubr.bf16.vlgmr.msra.gmra.mrb[32].mxu0 %v2543_v27 }
  0xad   : > { %2382 = vmatmul.mubr.bf16.vlgmr.msra.gmra.mrb[32].mxu1 %v2548_v28  ;;  %1479 = vmatprep.mubr.bf16.mxu0 %v2549_v29 }
  0xae   : > { %2385 = vmatprep.mubr.bf16.mxu1 %v2555_v30 }
  0xb4   : > { %1480 = vmatmul.mubr.bf16.gmra.mrb[36].mxu0 %v2551_v31 }
  0xb5   : > { %1487 = vmatprep.mubr.bf16.mxu0 %v2552_v32  ;;  %2386 = vmatmul.mubr.bf16.gmra.mrb[36].mxu1 %v2556_v33 }
  0xb6   : > { %2389 = vmatprep.mubr.bf16.mxu1 %v2563_v34 }
  0xbc   : > { %1488 = vmatmul.mubr.bf16.gmra.mrb[40].mxu0 %v2554_v35 }
  0xbd   : > { %1495 = vmatprep.mubr.bf16.mxu0 %v2557_v36  ;;  %2390 = vmatmul.mubr.bf16.gmra.mrb[40].mxu1 %v2564_v37 }
  0xbe   : > { %2393 = vmatprep.mubr.bf16.mxu1 %v2571_v38 }
  0xc4   : > { %1496 = vmatmul.mubr.bf16.gmra.mrb[44].mxu0 %v2559_v39 }
  0xc5   : > { %1503 = vmatprep.mubr.bf16.mxu0 %v2560_v40  ;;  %2394 = vmatmul.mubr.bf16.gmra.mrb[44].mxu1 %v2572_v41 }
  0xcc   : > { %1504 = vmatmul.mubr.bf16.gmra.mrb[48].mxu0 %v2562_v42 }
  0xcd   : > { %1511 = vmatprep.mubr.bf16.mxu0 %v2565_v43 }
  0xd4   : > { %1512 = vmatmul.mubr.bf16.gmra.mrb[52].mxu0 %v2567_v44 }
  0xd5   : > { %1519 = vmatprep.mubr.bf16.mxu0 %v2568_v45 }
  0xdc   : > { %1520 = vmatmul.mubr.bf16.gmra.mrb[56].mxu0 %v2570_v46 }
  0xdd   : > { %1527 = vmatprep.mubr.bf16.mxu0 %v2573_v47 }
  0xe4   : > { %1528 = vmatmul.mubr.bf16.gmra.mrb[60].mxu0 %v2575_v48 }
 0x13f   : > { %v2173_v49 = vpop.f32.mrb[0].mxu0 }
 0x140   : > { %v2237_v50 = vpop.f32.mrb[0].mxu1  ;;  %v2174_v51 = vpop.f32.mrb[1].mxu0 }
 0x141   : > { %v2175_v52 = vadd.f32 %v2174_v51, %v2173_v49  ;;  %v2238_v53 = vpop.f32.mrb[1].mxu1  ;;  %v2176_v54 = vpop.f32.mrb[2].mxu0 }
 0x142   : > { %v2239_v55 = vadd.f32 %v2238_v53, %v2237_v50  ;;  %v2240_v56 = vpop.f32.mrb[2].mxu1  ;;  %v2177_v57 = vpop.f32.mrb[3].mxu0 }
 0x143   : > { %v2178_v58 = vadd.f32 %v2177_v57, %v2176_v54  ;;  %v2241_v59 = vpop.f32.mrb[3].mxu1 }
 0x144   : > { %v2936_v60 = vadd.f32 %v2239_v55, %v2175_v52  ;;  %v2242_v61 = vadd.f32 %v2241_v59, %v2240_v56 }
 0x146   : > { %v2938_v62 = vadd.f32 %v2242_v61, %v2178_v58 }
 0x147   : > { %v2179_v63 = vpop.f32.mrb[4].mxu0 }
 0x148   : > { %v2243_v0 = vpop.f32.mrb[4].mxu1  ;;  %v2180_v1 = vpop.f32.mrb[5].mxu0 }
 0x149   : > { %v2181_v2 = vadd.f32 %v2180_v1, %v2179_v63  ;;  %v2244_v3 = vpop.f32.mrb[5].mxu1  ;;  %v2182_v4 = vpop.f32.mrb[6].mxu0 }
 0x14a   : > { %v2245_v5 = vadd.f32 %v2244_v3, %v2243_v0  ;;  %v2246_v6 = vpop.f32.mrb[6].mxu1  ;;  %v2183_v7 = vpop.f32.mrb[7].mxu0 }
 0x14b   : > { %v2184_v8 = vadd.f32 %v2183_v7, %v2182_v4  ;;  %v2247_v9 = vpop.f32.mrb[7].mxu1 }
 0x14c   : > { %v2940_v10 = vadd.f32 %v2245_v5, %v2181_v2  ;;  %v2248_v11 = vadd.f32 %v2247_v9, %v2246_v6 }
 0x14e   : > { %v2942_v12 = vadd.f32 %v2248_v11, %v2184_v8 }
 0x14f   : > { %v2185_v13 = vpop.f32.mrb[8].mxu0 }
 0x150   : > { %v2249_v14 = vpop.f32.mrb[8].mxu1  ;;  %v2186_v15 = vpop.f32.mrb[9].mxu0 }
 0x151   : > { %v2187_v16 = vadd.f32 %v2186_v15, %v2185_v13  ;;  %v2250_v17 = vpop.f32.mrb[9].mxu1  ;;  %v2188_v18 = vpop.f32.mrb[10].mxu0 }
 0x152   : > { %v2251_v19 = vadd.f32 %v2250_v17, %v2249_v14  ;;  %v2252_v20 = vpop.f32.mrb[10].mxu1  ;;  %v2189_v21 = vpop.f32.mrb[11].mxu0 }
 0x153   : > { %v2190_v22 = vadd.f32 %v2189_v21, %v2188_v18  ;;  %v2253_v23 = vpop.f32.mrb[11].mxu1 }
 0x154   : > { %v2944_v24 = vadd.f32 %v2251_v19, %v2187_v16  ;;  %v2254_v25 = vadd.f32 %v2253_v23, %v2252_v20 }
 0x156   : > { %v2946_v26 = vadd.f32 %v2254_v25, %v2190_v22 }
 0x157   : > { %v2191_v27 = vpop.f32.mrb[12].mxu0 }
 0x158   : > { %v2255_v28 = vpop.f32.mrb[12].mxu1  ;;  %v2192_v29 = vpop.f32.mrb[13].mxu0 }
 0x159   : > { %v2193_v30 = vadd.f32 %v2192_v29, %v2191_v27  ;;  %v2256_v31 = vpop.f32.mrb[13].mxu1  ;;  %v2194_v32 = vpop.f32.mrb[14].mxu0 }
 0x15a   : > { %v2257_v33 = vadd.f32 %v2256_v31, %v2255_v28  ;;  %v2258_v34 = vpop.f32.mrb[14].mxu1  ;;  %v2195_v35 = vpop.f32.mrb[15].mxu0 }
 0x15b   : > { %v2196_v36 = vadd.f32 %v2195_v35, %v2194_v32  ;;  %v2259_v37 = vpop.f32.mrb[15].mxu1 }
 0x15c   : > { %v2948_v38 = vadd.f32 %v2257_v33, %v2193_v30  ;;  %v2260_v39 = vadd.f32 %v2259_v37, %v2258_v34 }
 0x15e   : > { %v2950_v40 = vadd.f32 %v2260_v39, %v2196_v36 }
 0x15f   : > { %v2197_v41 = vpop.f32.mrb[16].mxu0 }
 0x160   : > { %v2261_v42 = vpop.f32.mrb[16].mxu1  ;;  %v2198_v43 = vpop.f32.mrb[17].mxu0 }
 0x161   : > { %v2199_v44 = vadd.f32 %v2198_v43, %v2197_v41  ;;  %v2262_v45 = vpop.f32.mrb[17].mxu1  ;;  %v2200_v46 = vpop.f32.mrb[18].mxu0 }
 0x162   : > { %v2263_v47 = vadd.f32 %v2262_v45, %v2261_v42  ;;  %v2264_v48 = vpop.f32.mrb[18].mxu1  ;;  %v2201_v49 = vpop.f32.mrb[19].mxu0 }
 0x163   : > { %v2202_v50 = vadd.f32 %v2201_v49, %v2200_v46  ;;  %v2265_v51 = vpop.f32.mrb[19].mxu1 }
 0x164   : > { %v2952_v52 = vadd.f32 %v2263_v47, %v2199_v44  ;;  %v2266_v53 = vadd.f32 %v2265_v51, %v2264_v48 }
 0x166   : > { %v2954_v54 = vadd.f32 %v2266_v53, %v2202_v50  ;;  %v429_v53 = vld [vmem:[#allocation2] sm:$0xff] }
 0x167   : > { %v2203_v55 = vpop.f32.mrb[20].mxu0 }
 0x168   : > { %v2267_v56 = vpop.f32.mrb[20].mxu1  ;;  %v2204_v57 = vpop.f32.mrb[21].mxu0 }
 0x169   : > { %v2205_v58 = vadd.f32 %v2204_v57, %v2203_v55  ;;  %v2268_v59 = vpop.f32.mrb[21].mxu1  ;;  %v2206_v61 = vpop.f32.mrb[22].mxu0  ;;  %v430_v57 = vld [vmem:[#allocation2 + $0x8] sm:$0xff] }
 0x16a   : > { %v2269_v63 = vadd.f32 %v2268_v59, %v2267_v56  ;;  %v2270_v0 = vpop.f32.mrb[22].mxu1  ;;  %v2207_v1 = vpop.f32.mrb[23].mxu0 }
 0x16b   : > { %v2208_v2 = vadd.f32 %v2207_v1, %v2206_v61  ;;  %v2271_v3 = vpop.f32.mrb[23].mxu1 }
 0x16c   : > { %v2956_v4 = vadd.f32 %v2269_v63, %v2205_v58  ;;  %v2272_v5 = vadd.f32 %v2271_v3, %v2270_v0 }
 0x16e   : > { %v2958_v6 = vadd.f32 %v2272_v5, %v2208_v2 }
 0x16f   : > { %v2209_v7 = vpop.f32.mrb[24].mxu0 }
 0x170   : > { %v2273_v8 = vpop.f32.mrb[24].mxu1  ;;  %v2210_v9 = vpop.f32.mrb[25].mxu0 }
 0x171   : > { %v2211_v11 = vadd.f32 %v2210_v9, %v2209_v7  ;;  %v2274_v13 = vpop.f32.mrb[25].mxu1  ;;  %v2212_v14 = vpop.f32.mrb[26].mxu0 }
 0x172   : > { %v2275_v15 = vadd.f32 %v2274_v13, %v2273_v8  ;;  %v2276_v16 = vpop.f32.mrb[26].mxu1  ;;  %v2213_v17 = vpop.f32.mrb[27].mxu0  ;;  %v431_v13 = vld [vmem:[#allocation2 + $0x10] sm:$0xff] }
 0x173   : > { %v2214_v18 = vadd.f32 %v2213_v17, %v2212_v14  ;;  %v2277_v19 = vpop.f32.mrb[27].mxu1 }
 0x174   : > { %v2960_v20 = vadd.f32 %v2275_v15, %v2211_v11  ;;  %v2278_v21 = vadd.f32 %v2277_v19, %v2276_v16  ;;  %v432_v15 = vld [vmem:[#allocation2 + $0x18] sm:$0xff] }
 0x176   : > { %v2962_v22 = vadd.f32 %v2278_v21, %v2214_v18 }
 0x177   : > { %v2215_v23 = vpop.f32.mrb[28].mxu0 }
 0x178   : > { %v2279_v25 = vpop.f32.mrb[28].mxu1  ;;  %v2216_v27 = vpop.f32.mrb[29].mxu0 }
 0x179   : > { %v2217_v28 = vadd.f32 %v2216_v27, %v2215_v23  ;;  %v2280_v29 = vpop.f32.mrb[29].mxu1  ;;  %v2218_v30 = vpop.f32.mrb[30].mxu0 }
 0x17a   : > { %v2281_v31 = vadd.f32 %v2280_v29, %v2279_v25  ;;  %v2282_v32 = vpop.f32.mrb[30].mxu1  ;;  %v2219_v33 = vpop.f32.mrb[31].mxu0 }
 0x17b   : > { %v2220_v34 = vadd.f32 %v2219_v33, %v2218_v30  ;;  %v2283_v35 = vpop.f32.mrb[31].mxu1 }
 0x17c   : > { %v2964_v36 = vadd.f32 %v2281_v31, %v2217_v28  ;;  %v2284_v37 = vadd.f32 %v2283_v35, %v2282_v32  ;;  %v434_v35 = vld [vmem:[#allocation2 + $0x28] sm:$0xff] }
 0x17e   : > { %v2966_v39 = vadd.f32 %v2284_v37, %v2220_v34 }
 0x17f   : > { %v2301_v41 = vpop.f32.mrb[32].mxu0 }
 0x180   : > { %v2302_v42 = vpop.f32.mrb[33].mxu0  ;;  %v2383_v43 = vpop.f32.mrb[32].mxu1 }
 0x181   : > { %v2303_v44 = vadd.f32 %v2302_v42, %v2301_v41  ;;  %v2304_v45 = vpop.f32.mrb[34].mxu0  ;;  %v1570_v46 = vpop.f32.mrb[33].mxu1 }
 0x182   : > { %v2305_v47 = vpop.f32.mrb[35].mxu0  ;;  %v2384_v48 = vpop.f32.mrb[34].mxu1 }
 0x183   : > { %v2306_v49 = vadd.f32 %v2305_v47, %v2304_v45  ;;  %v1474_v50 = vadd.f32 %v2303_v44, %v2936_v60  ;;  %v1573_v51 = vpop.f32.mrb[35].mxu1 }
 0x185   : > { %v1571_v55 = vadd.f32 %v1570_v46, %v1474_v50  ;;  %v1477_v56 = vadd.f32 %v2306_v49, %v2938_v62 }
 0x187   : > { %v1633_v58 = vadd.f32 %v1571_v55, %v429_v53  ;;  %v1574_v59 = vadd.f32 %v1573_v51, %v1477_v56  ;;  %v2307_v61 = vpop.f32.mrb[36].mxu0  ;;  %v435_v53 = vld [vmem:[#allocation2 + $0x30] sm:$0xff] }
 0x188   : > { %v2308_v63 = vpop.f32.mrb[37].mxu0  ;;  %v2387_v0 = vpop.f32.mrb[36].mxu1 }
 0x189   : > { %1649 = vst [vmem:[#allocation2] sm:$0xff] %v1633_v58  ;;  %v1634_v1 = vadd.f32 %v1574_v59, %v430_v57  ;;  %v2309_v2 = vadd.f32 %v2308_v63, %v2307_v61  ;;  %v2310_v3 = vpop.f32.mrb[38].mxu0  ;;  %v1586_v5 = vpop.f32.mrb[37].mxu1  ;;  %v436_v57 = vld [vmem:[#allocation2 + $0x38] sm:$0xff] }
 0x18a   : > { %v2311_v7 = vpop.f32.mrb[39].mxu0  ;;  %v2388_v8 = vpop.f32.mrb[38].mxu1 }
 0x18b   : > { %1650 = vst [vmem:[#allocation2 + $0x8] sm:$0xff] %v1634_v1  ;;  %v1482_v60 = vadd.f32 %v2309_v2, %v2940_v10  ;;  %v2312_v9 = vadd.f32 %v2311_v7, %v2310_v3  ;;  %v1589_v11 = vpop.f32.mrb[39].mxu1 }
 0x18d   : > { %v1579_v62 = vadd.f32 %v2383_v43, %v1482_v60  ;;  %v1485_v14 = vadd.f32 %v2312_v9, %v2942_v12  ;;  %v433_v12 = vld [vmem:[#allocation2 + $0x20] sm:$0xff] }
 0x18e   : > { %v437_v60 = vld [vmem:[#allocation2 + $0x40] sm:$0xff] }
 0x18f   : > { %v1635_v16 = vadd.f32 %v1579_v62, %v431_v13  ;;  %v1582_v17 = vadd.f32 %v2384_v48, %v1485_v14  ;;  %v2313_v18 = vpop.f32.mrb[40].mxu0 }
 0x190   : > { %v2314_v19 = vpop.f32.mrb[41].mxu0  ;;  %v2972_v21 = vpop.f32.mrb[40].mxu1 }
 0x191   : > { %1651 = vst [vmem:[#allocation2 + $0x10] sm:$0xff] %v1635_v16  ;;  %v1636_v23 = vadd.f32 %v1582_v17, %v432_v15  ;;  %v2315_v25 = vadd.f32 %v2314_v19, %v2313_v18  ;;  %v2316_v27 = vpop.f32.mrb[42].mxu0  ;;  %v1602_v28 = vpop.f32.mrb[41].mxu1 }
 0x192   : > { %v2317_v29 = vpop.f32.mrb[43].mxu0  ;;  %v2392_v10 = vpop.f32.mrb[42].mxu1 }
 0x193   : > { %1652 = vst [vmem:[#allocation2 + $0x18] sm:$0xff] %v1636_v23  ;;  %v2318_v30 = vadd.f32 %v2317_v29, %v2316_v27  ;;  %v1490_v31 = vadd.f32 %v2315_v25, %v2944_v24  ;;  %v1605_v32 = vpop.f32.mrb[43].mxu1  ;;  %v439_v23 = vld [vmem:[#allocation2 + $0x50] sm:$0xff] }
 0x195   : > { %v1587_v33 = vadd.f32 %v1586_v5, %v1490_v31  ;;  %v1493_v34 = vadd.f32 %v2318_v30, %v2946_v26 }
 0x197   : > { %v1637_v37 = vadd.f32 %v1587_v33, %v433_v12  ;;  %v1590_v41 = vadd.f32 %v1589_v11, %v1493_v34  ;;  %v2319_v42 = vpop.f32.mrb[44].mxu0  ;;  %v438_v11 = vld [vmem:[#allocation2 + $0x48] sm:$0xff] }
 0x198   : > { %v2320_v43 = vpop.f32.mrb[45].mxu0  ;;  %v2976_v44 = vpop.f32.mrb[44].mxu1 }
 0x199   : > { %1653 = vst [vmem:[#allocation2 + $0x20] sm:$0xff] %v1637_v37  ;;  %v1638_v45 = vadd.f32 %v1590_v41, %v434_v35  ;;  %v2321_v46 = vadd.f32 %v2320_v43, %v2319_v42  ;;  %v2322_v47 = vpop.f32.mrb[46].mxu0  ;;  %v1618_v48 = vpop.f32.mrb[45].mxu1  ;;  %v441_v35 = vld [vmem:[#allocation2 + $0x60] sm:$0xff]  ;;  %v442_v41 = vld [vmem:[#allocation2 + $0x68] sm:$0xff] }
 0x19a   : > { %v2323_v49 = vpop.f32.mrb[47].mxu0  ;;  %v2978_v50 = vpop.f32.mrb[46].mxu1 }
 0x19b   : > { %1654 = vst [vmem:[#allocation2 + $0x28] sm:$0xff] %v1638_v45  ;;  %v1498_v24 = vadd.f32 %v2321_v46, %v2948_v38  ;;  %v2324_v51 = vadd.f32 %v2323_v49, %v2322_v47  ;;  %v1621_v26 = vpop.f32.mrb[47].mxu1 }
 0x19d   : > { %v1595_v55 = vadd.f32 %v2387_v0, %v1498_v24  ;;  %v1501_v56 = vadd.f32 %v2324_v51, %v2950_v40 }
 0x19f   : > { %v1639_v58 = vadd.f32 %v1595_v55, %v435_v53  ;;  %v1598_v59 = vadd.f32 %v2388_v8, %v1501_v56  ;;  %v2325_v61 = vpop.f32.mrb[48].mxu0  ;;  %v443_v53 = vld [vmem:[#allocation2 + $0x70] sm:$0xff] }
 0x1a0   : > { %v2326_v63 = vpop.f32.mrb[49].mxu0 }
 0x1a1   : > { %1655 = vst [vmem:[#allocation2 + $0x30] sm:$0xff] %v1639_v58  ;;  %v1640_v1 = vadd.f32 %v1598_v59, %v436_v57  ;;  %v2327_v2 = vadd.f32 %v2326_v63, %v2325_v61  ;;  %v2328_v3 = vpop.f32.mrb[50].mxu0  ;;  %v1669_v57 = vld [vmem:[#allocation2] sm:$0xff] (!%p2071_p11)  ;;  %v1670_v58 = vld [vmem:[#allocation2 + $0x8] sm:$0xff] (!%p2071_p11)  ;;  %v1671_v61 = vld [vmem:[#allocation2 + $0x10] sm:$0xff] (!%p2071_p11) }
 0x1a2   : > { %v2329_v5 = vpop.f32.mrb[51].mxu0  ;;  %v1673_v63 = vld [vmem:[#allocation2 + $0x20] sm:$0xff] (!%p2071_p11) }
 0x1a3   : > { %1656 = vst [vmem:[#allocation2 + $0x38] sm:$0xff] %v1640_v1  ;;  %v2330_v7 = vadd.f32 %v2329_v5, %v2328_v3  ;;  %v1506_v38 = vadd.f32 %v2327_v2, %v2952_v52 }
 0x1a5   : > { %v1603_v9 = vadd.f32 %v1602_v28, %v1506_v38  ;;  %v1509_v0 = vadd.f32 %v2330_v7, %v2954_v54  ;;  %v440_v54 = vld [vmem:[#allocation2 + $0x58] sm:$0xff] }
 0x1a7   : > { %v1641_v40 = vadd.f32 %v1603_v9, %v437_v60  ;;  %v1606_v13 = vadd.f32 %v1605_v32, %v1509_v0  ;;  %v2331_v62 = vpop.f32.mrb[52].mxu0 }
 0x1a8   : > { %v2332_v8 = vpop.f32.mrb[53].mxu0  ;;  %v1675_v5 = vld [vmem:[#allocation2 + $0x30] sm:$0xff] (!%p2071_p11) }
 0x1a9   : > { %1657 = vst [vmem:[#allocation2 + $0x40] sm:$0xff] %v1641_v40  ;;  %v1642_v14 = vadd.f32 %v1606_v13, %v438_v11  ;;  %v2333_v15 = vadd.f32 %v2332_v8, %v2331_v62  ;;  %v2334_v16 = vpop.f32.mrb[54].mxu0 }
 0x1aa   : > { %v2335_v17 = vpop.f32.mrb[55].mxu0  ;;  %v1676_v7 = vld [vmem:[#allocation2 + $0x38] sm:$0xff] (!%p2071_p11) }
 0x1ab   : > { %1658 = vst [vmem:[#allocation2 + $0x48] sm:$0xff] %v1642_v14  ;;  %v1514_v18 = vadd.f32 %v2333_v15, %v2956_v4  ;;  %v2336_v19 = vadd.f32 %v2335_v17, %v2334_v16 }
 0x1ad   : > { %v1611_v52 = vadd.f32 %v2972_v21, %v1514_v18  ;;  %v1517_v25 = vadd.f32 %v2336_v19, %v2958_v6 }
 0x1af   : > { %v1643_v27 = vadd.f32 %v1611_v52, %v439_v23  ;;  %v1614_v28 = vadd.f32 %v2392_v10, %v1517_v25  ;;  %v2337_v29 = vpop.f32.mrb[56].mxu0 }
 0x1b0   : > { %v2338_v30 = vpop.f32.mrb[57].mxu0  ;;  %v1677_v11 = vld [vmem:[#allocation2 + $0x40] sm:$0xff] (!%p2071_p11) }
 0x1b1   : > { %1659 = vst [vmem:[#allocation2 + $0x50] sm:$0xff] %v1643_v27  ;;  %v1644_v31 = vadd.f32 %v1614_v28, %v440_v54  ;;  %v2339_v32 = vadd.f32 %v2338_v30, %v2337_v29  ;;  %v2340_v12 = vpop.f32.mrb[58].mxu0 }
 0x1b2   : > { %v2341_v33 = vpop.f32.mrb[59].mxu0  ;;  %v1678_v40 = vld [vmem:[#allocation2 + $0x48] sm:$0xff] (!%p2071_p11) }
 0x1b3   : > { %1660 = vst [vmem:[#allocation2 + $0x58] sm:$0xff] %v1644_v31  ;;  %v2342_v34 = vadd.f32 %v2341_v33, %v2340_v12  ;;  %v1522_v4 = vadd.f32 %v2339_v32, %v2960_v20 }
 0x1b5   : > { %v1619_v37 = vadd.f32 %v1618_v48, %v1522_v4  ;;  %v1525_v21 = vadd.f32 %v2342_v34, %v2962_v22  ;;  %v444_v22 = vld [vmem:[#allocation2 + $0x78] sm:$0xff] }
 0x1b7   : > { %v1645_v6 = vadd.f32 %v1619_v37, %v441_v35  ;;  %v1622_v42 = vadd.f32 %v1621_v26, %v1525_v21  ;;  %v2343_v43 = vpop.f32.mrb[60].mxu0 }
 0x1b8   : > { %v2344_v10 = vpop.f32.mrb[61].mxu0  ;;  %v1679_v13 = vld [vmem:[#allocation2 + $0x50] sm:$0xff] (!%p2071_p11) }
 0x1b9   : > { %1661 = vst [vmem:[#allocation2 + $0x60] sm:$0xff] %v1645_v6  ;;  %v1646_v45 = vadd.f32 %v1622_v42, %v442_v41  ;;  %v2345_v46 = vadd.f32 %v2344_v10, %v2343_v43  ;;  %v2346_v47 = vpop.f32.mrb[62].mxu0 }
 0x1ba   : > { %v2347_v49 = vpop.f32.mrb[63].mxu0  ;;  %v1680_v16 = vld [vmem:[#allocation2 + $0x58] sm:$0xff] (!%p2071_p11) }
 0x1bb   : > { %1662 = vst [vmem:[#allocation2 + $0x68] sm:$0xff] %v1646_v45  ;;  %v1530_v24 = vadd.f32 %v2345_v46, %v2964_v36  ;;  %v2348_v51 = vadd.f32 %v2347_v49, %v2346_v47  ;;  %v2072_v36 = vld [vmem:[%s3038_s2] ss:$0 sm:$0xff] (!%p2071_p11) }
 0x1bc   : > { %v1692_v59 = vadd.f32 (!%p2071_p11), %v2072_v36, %v1669_v57  ;;  %v1694_v1 = vadd.f32 (!%p2071_p11), %v2072_v36, %v1671_v61  ;;  %v1696_v3 = vadd.f32 (!%p2071_p11), %v2072_v36, %v1673_v63  ;;  %v1698_v0 = vadd.f32 (!%p2071_p11), %v2072_v36, %v1675_v5 }
 0x1bd   : > { %v1627_v20 = vadd.f32 %v2976_v44, %v1530_v24  ;;  %v1533_v48 = vadd.f32 %v2348_v51, %v2966_v39  ;;  %1668 = sbr.rel (%p2071_p11) target bundleno = 466 (0x1d2), region = 66  ;;  %v1693_v44 = vadd.f32 (!%p2071_p11), %v2072_v36, %v1670_v58  ;;  %v1672_v39 = vld [vmem:[#allocation2 + $0x18] sm:$0xff] (!%p2071_p11)  ;;  %v1699_v15 = vadd.f32 (!%p2071_p11), %v2072_v36, %v1676_v7 }
 0x1be   : > { %v1695_v2 = vadd.f32 (!%p2071_p11), %v2072_v36, %v1672_v39  ;;  %v1708_v38 = vmax.f32 (!%p2071_p11), %v1692_v59, 0.0  ;;  %v1710_v62 = vmax.f32 (!%p2071_p11), %v1694_v1, 0.0  ;;  %v1712_v14 = vmax.f32 (!%p2071_p11), %v1696_v3, 0.0 }
 0x1bf   : > { %v1647_v55 = vadd.f32 %v1627_v20, %v443_v53  ;;  %v1630_v26 = vadd.f32 %v2978_v50, %v1533_v48  ;;  %v1674_v50 = vld [vmem:[#allocation2 + $0x28] sm:$0xff] (!%p2071_p11)  ;;  %v1709_v60 = vmax.f32 (!%p2071_p11), %v1693_v44, 0.0  ;;  %v1714_v23 = vmax.f32 (!%p2071_p11), %v1698_v0, 0.0 }
 0x1c0   : > { %v1697_v9 = vadd.f32 (!%p2071_p11), %v2072_v36, %v1674_v50  ;;  %v1711_v8 = vmax.f32 (!%p2071_p11), %v1695_v2, 0.0  ;;  %v1681_v17 = vld [vmem:[#allocation2 + $0x60] sm:$0xff] (!%p2071_p11)  ;;  %v1700_v52 = vadd.f32 (!%p2071_p11), %v2072_v36, %v1677_v11  ;;  %v1715_v27 = vmax.f32 (!%p2071_p11), %v1699_v15, 0.0 }
 0x1c1   : > { %1663 = vst [vmem:[#allocation2 + $0x70] sm:$0xff] %v1647_v55  ;;  %v1648_v56 = vadd.f32 %v1630_v26, %v444_v22  ;;  %v2113_v18 = vpack.c.bf16 (!%p2071_p11), %v1709_v60, %v1708_v38  ;;  %v1701_v28 = vadd.f32 (!%p2071_p11), %v2072_v36, %v1678_v40  ;;  %v1702_v29 = vadd.f32 (!%p2071_p11), %v2072_v36, %v1679_v13 }
 0x1c2   : > { %v1713_v19 = vmax.f32 (!%p2071_p11), %v1697_v9, 0.0  ;;  %v1682_v25 = vld [vmem:[#allocation2 + $0x68] sm:$0xff] (!%p2071_p11)  ;;  %v2118_v54 = vpack.c.bf16 (!%p2071_p11), %v1711_v8, %v1710_v62  ;;  %v1716_v12 = vmax.f32 (!%p2071_p11), %v1700_v52, 0.0  ;;  %v1703_v33 = vadd.f32 (!%p2071_p11), %v2072_v36, %v1680_v16 }
 0x1c3   : > { %1664 = vst [vmem:[#allocation2 + $0x78] sm:$0xff] %v1648_v56  ;;  %2114 = vst [vmem:[%s3039_s3] sm:$0xff] (!%p2071_p11), %v2113_v18   ;;  %v1704_v34 = vadd.f32 (!%p2071_p11), %v2072_v36, %v1681_v17  ;;  %v2128_v4 = vpack.c.bf16 (!%p2071_p11), %v1715_v27, %v1714_v23  ;;  %v1717_v35 = vmax.f32 (!%p2071_p11), %v1701_v28, 0.0  ;;  %v1718_v37 = vmax.f32 (!%p2071_p11), %v1702_v29, 0.0 }
 0x1c4   : > { %v2123_v32 = vpack.c.bf16 %v1713_v19, %v1712_v14  ;;  %2150 = vst [vmem:[%s3039_s3 + $0x8] sm:$0xff] %v2118_v54   ;;  %v1705_v21 = vadd.f32 %v2072_v36, %v1682_v25  ;;  %v1719_v41 = vmax.f32 %v1703_v33, 0.0 }
 0x1c5   : > { %v1720_v6 = vmax.f32 %v1704_v34, 0.0  ;;  %2152 = vst [vmem:[%s3039_s3 + $0x18] sm:$0xff] %v2128_v4   ;;  %v2133_v10 = vpack.c.bf16 %v1717_v35, %v1716_v12 }
 0x1c6   : > { %2151 = vst [vmem:[%s3039_s3 + $0x10] sm:$0xff] %v2123_v32   ;;  %v1721_v45 = vmax.f32 %v1705_v21, 0.0  ;;  %v2138_v46 = vpack.c.bf16 %v1719_v41, %v1718_v37 }
 0x1c7   : > { %2153 = vst [vmem:[%s3039_s3 + $0x20] sm:$0xff] %v2133_v10  }
 0x1c8   : > { %v1683_v30 = vld [vmem:[#allocation2 + $0x70] sm:$0xff]  ;;  %v2143_v24 = vpack.c.bf16 %v1721_v45, %v1720_v6  ;;  %2154 = vst [vmem:[%s3039_s3 + $0x28] sm:$0xff] %v2138_v46  }
 0x1c9   : > { %v1706_v42 = vadd.f32 %v2072_v36, %v1683_v30 }
 0x1ca   : > { %v1684_v31 = vld [vmem:[#allocation2 + $0x78] sm:$0xff]  ;;  %2155 = vst [vmem:[%s3039_s3 + $0x30] sm:$0xff] %v2143_v24  }
 0x1cb   : > { %v1707_v43 = vadd.f32 %v2072_v36, %v1684_v31  ;;  %v1722_v47 = vmax.f32 %v1706_v42, 0.0 }
 0x1cd   : > { %v1723_v49 = vmax.f32 %v1707_v43, 0.0 }
 0x1cf   : > { %v2148_v51 = vpack.c.bf16 %v1723_v49, %v1722_v47 }
 0x1d1   : > { %2156 = vst [vmem:[%s3039_s3 + $0x38] sm:$0xff] %v2148_v51  }
 0x1d2 PF: > { %s13_s16 = sadd.s32 1, %s2614_s16   ;;  %s3040_s12 = smov %s2602_s13 }
 0x1d3   : > { %p10_p12 = scmp.ge.s32.totalorder %s13_s16, 4   ;;  %s3041_s13 = smov %s2672_s20 }
 0x1d4   : > { %s3042_s14 = smov %s2610_s15  ;;  %s3043_s15 = smov %s3045_s17 }
 0x1d5   :  { %12 = sbr.rel (!%p10_p12) target bundleno = 3 (0x3), region = 113 }

// kernel: backbone_forward.7
= control target key start
LH: loop header
LB: loop body
LE: loop exit
PB: predicated region body
PF: predicated region fallthrough
CT: control target
= control target key end

     0   :  { %s2171_s12 = smov 0   ;;  %s2173_s13 = smov 0   ;;  %s2404_s0 = inlined_call_operand.vmem [shape: bf16[16,3456], index: 0, kind: input, shape index: {}]   ;;  %s2405_s1 = inlined_call_operand.vmem [shape: bf16[3456,256], index: 1, kind: input, shape index: {}]   ;;  %s2406_s2 = inlined_call_operand.vmem [shape: f32[1,256], index: 2, kind: input, shape index: {}]   ;;  %s2407_s3 = inlined_call_operand.vmem [shape: bf16[16,256], index: 3, kind: output, shape index: {}]  }
   0x1   :  { %s2175_s14 = smov 0   ;;  %s2177_s15 = smov 0  }
   0x2   :  { %s2179_s16 = smov 0  }
   0x3 LB: > { %s25_s17 = sadd.s32 1, %s2143_s15  ;;  %p48_p1 = scmp.ne.s32.totalorder %s2135_s13, %s2131_s12  ;;  %s2147_s16 = sphi %s2179_s16, %s13_s16   ;;  %s2143_s15 = sphi %s2177_s15, %s2411_s15   ;;  %s2139_s14 = sphi %s2175_s14, %s2410_s14   ;;  %s2135_s13 = sphi %s2173_s13, %s2409_s13   ;;  %s2131_s12 = sphi %s2171_s12, %s2408_s12  }
   0x4   : > { %p26_p0 = scmp.ge.s32.totalorder %s25_s17, 3  ;;  %p49_p2 = scmp.eq.s32.totalorder %s2147_s16, 0 }
   0x5   : > { %s41_s19 = sadd.s32 1, %s2135_s13  ;;  %p1646_p5 = scmp.ge.s32.totalorder %s2147_s16, 3 }
   0x6   : > { %s2413_s17 = smov (%p26_p0, %s25_s17), 0  ;;  %p50_p3 = por %p49_p2, %p48_p1 }
   0x7   : > { %s37_s18 = ssub.s32 %s2143_s15, %s2413_s17  ;;  %164 = sbr.rel (%p1646_p5) target bundleno = 24 (0x18), region = 20 }
   0x8   : > { %p39_p4 = scmp.eq.s32.totalorder %s37_s18, 0 }
   0xa   : > { %s2206_s20 = scalar_select %p39_p4, %s2135_s13, %s41_s19  }
   0xe   : > { %167 = sbr.rel (!%p50_p3) target bundleno = 24 (0x18), region = 24  ;;  %s169_s21 = sand.u32 (%p50_p3), 1, %s2135_s13  }
   0xf   : > { %s1816_s22 = smul.u32 (%p50_p3), 36, %s2143_s15 }
  0x10   : > { %s1836_s23 = smul.u32 (%p50_p3), 72, %s169_s21 }
  0x11   : > { %s177_s26 = scalar_lea.vmem (%p50_p3), %s2404_s0, %s1816_s22 }
  0x12   : > { %v192_v0 = vld [vmem:[%s177_s26] sm:$0xff] (%p50_p3)  ;;  %v194_v1 = vld [vmem:[%s177_s26 + $0x8] sm:$0xff] (%p50_p3)  ;;  %v196_v2 = vld [vmem:[%s177_s26 + $0x10] sm:$0xff] (%p50_p3)  ;;  %s171_s27 = scalar_lea.vmem (%p50_p3), [#allocation3], %s1836_s23 }
  0x13   : > { %193 = vst [vmem:[%s171_s27] sm:$0xff] (%p50_p3), %v192_v0  ;;  %195 = vst [vmem:[%s171_s27 + $0x8] sm:$0xff] (%p50_p3), %v194_v1  ;;  %v198_v3 = vld [vmem:[%s177_s26 + $0x18] sm:$0xff] (%p50_p3)  ;;  %v200_v4 = vld [vmem:[%s177_s26 + $0x6c] sm:$0xff] (%p50_p3) }
  0x14   : > { %197 = vst [vmem:[%s171_s27 + $0x10] sm:$0xff] (%p50_p3), %v196_v2  ;;  %v202_v5 = vld [vmem:[%s177_s26 + $0x74] sm:$0xff] (%p50_p3)  ;;  %199 = vst [vmem:[%s171_s27 + $0x18] sm:$0xff] (%p50_p3), %v198_v3  ;;  %v204_v6 = vld [vmem:[%s177_s26 + $0x7c] sm:$0xff] (%p50_p3) }
  0x15   : > { %201 = vst [vmem:[%s171_s27 + $0x24] sm:$0xff] %v200_v4  ;;  %203 = vst [vmem:[%s171_s27 + $0x2c] sm:$0xff] %v202_v5  ;;  %v206_v7 = vld [vmem:[%s177_s26 + $0x84] sm:$0xff]  ;;  %v1648_v8 = vld [vmem:[%s177_s26 + $0x20] sm:$0xf] }
  0x16   : > { %205 = vst [vmem:[%s171_s27 + $0x34] sm:$0xff] %v204_v6  ;;  %207 = vst [vmem:[%s171_s27 + $0x3c] sm:$0xff] %v206_v7  ;;  %v1650_v9 = vld [vmem:[%s177_s26 + $0x8c] sm:$0xf] }
  0x17   : > { %1649 = vst [vmem:[%s171_s27 + $0x20] sm:$0xf] %v1648_v8  ;;  %1651 = vst [vmem:[%s171_s27 + $0x44] sm:$0xf] %v1650_v9 }
  0x18 PF: > { %p1652_p6 = scmp.ge.s32.totalorder %s2147_s16, 1  ;;  %p238_p7 = scmp.lt.s32.totalorder %s2147_s16, 4 }
  0x1a   : > { %p239_p8 = pnand %p1652_p6, %p238_p7 }
  0x1b   : > { %s245_s28 = sand.u32 (!%p239_p8), 1, %s2131_s12   ;;  %s289_s29 = smul.u32 (!%p239_p8), 144, %s2139_s14 }
  0x1c   : > { %242 = sbr.rel (%p239_p8) target bundleno = 438 (0x1b6), region = 54  ;;  %p1655_p10 = scmp.ne.s32.totalorder (!%p239_p8), %s2139_s14, 0 }
  0x1d   : > { %s1837_s30 = smul.u32 (!%p239_p8), 72, %s245_s28  ;;  %p291_p9 = scmp.lt.s32.totalorder (!%p239_p8), %s289_s29, 431 }
  0x1f   : > { %s2223_s8 = scalar_lea.vmem (!%p239_p8), [#allocation3], %s1837_s30 }
  0x23   : > { %s2415_s29 = smov (!%p291_p9, %s289_s29), 431  ;;  %322 = sbr.rel (%p1655_p10) target bundleno = 42 (0x2a), region = 62 }
  0x24   : > { %s1817_s4 = sshll.u32 %s2415_s29, 3  ;;  %v2149_v10 = vmov (!%p1655_p10), 0.0  }
  0x25   : > { %s2221_s7 = scalar_lea.vmem %s2405_s1, %s1817_s4  ;;  %323 = vst [vmem:[#allocation2] sm:$0xff] (!%p1655_p10), %v2149_v10  ;;  %324 = vst [vmem:[#allocation2 + $0x8] sm:$0xff] (!%p1655_p10), %v2149_v10 }
  0x26   : > { %325 = vst [vmem:[#allocation2 + $0x10] sm:$0xff] (!%p1655_p10), %v2149_v10  ;;  %326 = vst [vmem:[#allocation2 + $0x18] sm:$0xff] (!%p1655_p10), %v2149_v10 }
  0x2a PF: > { %v1880_v11 = vld [vmem:[%s2221_s7 + $0x4] ss:$8 sps:$4 sm:$0xff]   ;;  %v1884_v13 = vld [vmem:[%s2221_s7] ss:$8 sps:$4 sm:$0xff]   ;;  %v1886_v15 = vld [vmem:[%s2221_s7 + $0x14] ss:$8 sps:$4 sm:$0xff]  }
  0x2b   : > { %v1882_v12 = vld [vmem:[%s2221_s7 + $0x204] ss:$8 sps:$4 sm:$0xff]   ;;  %1251 = vmatprep.subr.bf16.mxu1 %v1880_v11  ;;  %v1885_v14 = vld [vmem:[%s2221_s7 + $0x200] ss:$8 sps:$4 sm:$0xff]   ;;  %v1888_v16 = vld [vmem:[%s2221_s7 + $0x214] ss:$8 sps:$4 sm:$0xff]  }
  0x2c   : > { %1337 = vmatprep.subr.bf16.mxu0 %v1882_v12  ;;  %1252 = vmatpush1.bf16.msra.mxu1 %v1884_v13  ;;  %v1890_v17 = vld [vmem:[%s2221_s7 + $0x10] ss:$8 sps:$4 sm:$0xff]   ;;  %v1892_v19 = vld [vmem:[%s2221_s7 + $0x24] ss:$8 sps:$4 sm:$0xff]   ;;  %v1896_v21 = vld [vmem:[%s2221_s7 + $0x20] ss:$8 sps:$4 sm:$0xff]  }
  0x2d   : > { %1338 = vmatpush1.bf16.msra.mxu0 %v1885_v14  ;;  %1253 = vmatprep.subr.bf16.mxu1 %v1886_v15  ;;  %v1891_v18 = vld [vmem:[%s2221_s7 + $0x210] ss:$8 sps:$4 sm:$0xff]   ;;  %v1894_v20 = vld [vmem:[%s2221_s7 + $0x224] ss:$8 sps:$4 sm:$0xff]   ;;  %v1897_v22 = vld [vmem:[%s2221_s7 + $0x220] ss:$8 sps:$4 sm:$0xff]  }
  0x2e   : > { %1339 = vmatprep.subr.bf16.mxu0 %v1888_v16  ;;  %v1898_v23 = vld [vmem:[%s2221_s7 + $0x34] ss:$8 sps:$4 sm:$0xff]   ;;  %v1902_v25 = vld [vmem:[%s2221_s7 + $0x30] ss:$8 sps:$4 sm:$0xff]   ;;  %v1904_v27 = vld [vmem:[%s2221_s7 + $0x44] ss:$8 sps:$4 sm:$0xff]  }
  0x2f   : > { %v1900_v24 = vld [vmem:[%s2221_s7 + $0x234] ss:$8 sps:$4 sm:$0xff]   ;;  %v1903_v26 = vld [vmem:[%s2221_s7 + $0x230] ss:$8 sps:$4 sm:$0xff]   ;;  %v1906_v28 = vld [vmem:[%s2221_s7 + $0x244] ss:$8 sps:$4 sm:$0xff]  }
  0x30   : > { %1254 = vmatpush1.bf16.msra.mxu1 %v1890_v17  ;;  %v1908_v29 = vld [vmem:[%s2221_s7 + $0x40] ss:$8 sps:$4 sm:$0xff]   ;;  %v1910_v31 = vld [vmem:[%s2221_s7 + $0x54] ss:$8 sps:$4 sm:$0xff]   ;;  %v1914_v33 = vld [vmem:[%s2221_s7 + $0x50] ss:$8 sps:$4 sm:$0xff]  }
  0x31   : > { %1340 = vmatpush1.bf16.msra.mxu0 %v1891_v18  ;;  %1255 = vmatprep.subr.bf16.mxu1 %v1892_v19  ;;  %v1909_v30 = vld [vmem:[%s2221_s7 + $0x240] ss:$8 sps:$4 sm:$0xff]   ;;  %v1912_v32 = vld [vmem:[%s2221_s7 + $0x254] ss:$8 sps:$4 sm:$0xff]   ;;  %v1915_v34 = vld [vmem:[%s2221_s7 + $0x250] ss:$8 sps:$4 sm:$0xff]  }
  0x32   : > { %1341 = vmatprep.subr.bf16.mxu0 %v1894_v20  ;;  %v1916_v35 = vld [vmem:[%s2221_s7 + $0x64] ss:$8 sps:$4 sm:$0xff]   ;;  %v1920_v37 = vld [vmem:[%s2221_s7 + $0x60] ss:$8 sps:$4 sm:$0xff]   ;;  %v1922_v39 = vld [vmem:[%s2221_s7 + $0x74] ss:$8 sps:$4 sm:$0xff]  }
  0x33   : > { %v1918_v36 = vld [vmem:[%s2221_s7 + $0x264] ss:$8 sps:$4 sm:$0xff]   ;;  %v1921_v38 = vld [vmem:[%s2221_s7 + $0x260] ss:$8 sps:$4 sm:$0xff]   ;;  %v1924_v40 = vld [vmem:[%s2221_s7 + $0x274] ss:$8 sps:$4 sm:$0xff]  }
  0x34   : > { %1256 = vmatpush1.bf16.msra.mxu1 %v1896_v21  ;;  %v1926_v41 = vld [vmem:[%s2221_s7 + $0x70] ss:$8 sps:$4 sm:$0xff]   ;;  %v1928_v43 = vld [vmem:[%s2221_s7 + $0x84] ss:$8 sps:$4 sm:$0xff]   ;;  %v1932_v45 = vld [vmem:[%s2221_s7 + $0x80] ss:$8 sps:$4 sm:$0xff]  }
  0x35   : > { %1342 = vmatpush1.bf16.msra.mxu0 %v1897_v22  ;;  %1257 = vmatprep.subr.bf16.mxu1 %v1898_v23  ;;  %v1927_v42 = vld [vmem:[%s2221_s7 + $0x270] ss:$8 sps:$4 sm:$0xff]   ;;  %v1930_v44 = vld [vmem:[%s2221_s7 + $0x284] ss:$8 sps:$4 sm:$0xff]   ;;  %v1933_v46 = vld [vmem:[%s2221_s7 + $0x280] ss:$8 sps:$4 sm:$0xff]  }
  0x36   : > { %1343 = vmatprep.subr.bf16.mxu0 %v1900_v24  ;;  %v1934_v47 = vld [vmem:[%s2221_s7 + $0x94] ss:$8 sps:$4 sm:$0xff]   ;;  %v1938_v49 = vld [vmem:[%s2221_s7 + $0x90] ss:$8 sps:$4 sm:$0xff]   ;;  %v1940_v51 = vld [vmem:[%s2221_s7 + $0xa4] ss:$8 sps:$4 sm:$0xff]  }
  0x37   : > { %v1936_v48 = vld [vmem:[%s2221_s7 + $0x294] ss:$8 sps:$4 sm:$0xff]   ;;  %v1939_v50 = vld [vmem:[%s2221_s7 + $0x290] ss:$8 sps:$4 sm:$0xff]   ;;  %v1942_v52 = vld [vmem:[%s2221_s7 + $0x2a4] ss:$8 sps:$4 sm:$0xff]  }
  0x38   : > { %1258 = vmatpush1.bf16.msra.mxu1 %v1902_v25  ;;  %v1944_v53 = vld [vmem:[%s2221_s7 + $0xa0] ss:$8 sps:$4 sm:$0xff]   ;;  %v1946_v55 = vld [vmem:[%s2221_s7 + $0xb4] ss:$8 sps:$4 sm:$0xff]   ;;  %v1950_v57 = vld [vmem:[%s2221_s7 + $0xb0] ss:$8 sps:$4 sm:$0xff]  }
  0x39   : > { %1344 = vmatpush1.bf16.msra.mxu0 %v1903_v26  ;;  %1259 = vmatprep.subr.bf16.mxu1 %v1904_v27  ;;  %v1945_v54 = vld [vmem:[%s2221_s7 + $0x2a0] ss:$8 sps:$4 sm:$0xff]   ;;  %v1948_v56 = vld [vmem:[%s2221_s7 + $0x2b4] ss:$8 sps:$4 sm:$0xff]   ;;  %v1951_v58 = vld [vmem:[%s2221_s7 + $0x2b0] ss:$8 sps:$4 sm:$0xff]  }
  0x3a   : > { %1345 = vmatprep.subr.bf16.mxu0 %v1906_v28  ;;  %v1978_v59 = vld [vmem:[%s2223_s8 + $0x4] ss:$36 sps:$4 sm:$0xff]   ;;  %v1984_v62 = vld [vmem:[%s2223_s8 + $0x14] ss:$36 sps:$4 sm:$0xff]   ;;  %p1809_p11 = scmp.ne.s32.totalorder %s2139_s14, 2 }
  0x3b   : > { %v1952_v60 = vld [vmem:[%s2221_s7 + $0xc4] ss:$8 sps:$4 sm:$0xff]   ;;  %1283 = vmatprep.mubr.bf16.mxu1 %v1978_v59  ;;  %v1956_v63 = vld [vmem:[%s2221_s7 + $0xc0] ss:$8 sps:$4 sm:$0xff]   ;;  %v1958_v1 = vld [vmem:[%s2221_s7 + $0xd4] ss:$8 sps:$4 sm:$0xff]   ;;  %1369 = vmatprep.mubr.bf16.mxu0 %v1984_v62 }
  0x3c   : > { %1260 = vmatpush1.bf16.msra.mxu1 %v1908_v29  ;;  %v1954_v61 = vld [vmem:[%s2221_s7 + $0x2c4] ss:$8 sps:$4 sm:$0xff]   ;;  %v1957_v0 = vld [vmem:[%s2221_s7 + $0x2c0] ss:$8 sps:$4 sm:$0xff]   ;;  %v1960_v2 = vld [vmem:[%s2221_s7 + $0x2d4] ss:$8 sps:$4 sm:$0xff]  }
  0x3d   : > { %1346 = vmatpush1.bf16.msra.mxu0 %v1909_v30  ;;  %1261 = vmatprep.subr.bf16.mxu1 %v1910_v31  ;;  %v1962_v3 = vld [vmem:[%s2221_s7 + $0xd0] ss:$8 sps:$4 sm:$0xff]   ;;  %v1964_v5 = vld [vmem:[%s2221_s7 + $0xe4] ss:$8 sps:$4 sm:$0xff]   ;;  %v1968_v7 = vld [vmem:[%s2221_s7 + $0xe0] ss:$8 sps:$4 sm:$0xff]  }
  0x3e   : > { %1347 = vmatprep.subr.bf16.mxu0 %v1912_v32  ;;  %v1963_v4 = vld [vmem:[%s2221_s7 + $0x2d0] ss:$8 sps:$4 sm:$0xff]   ;;  %v1966_v6 = vld [vmem:[%s2221_s7 + $0x2e4] ss:$8 sps:$4 sm:$0xff]   ;;  %v1969_v8 = vld [vmem:[%s2221_s7 + $0x2e0] ss:$8 sps:$4 sm:$0xff]  }
  0x3f   : > { %v1970_v9 = vld [vmem:[%s2221_s7 + $0xf4] ss:$8 sps:$4 sm:$0xff]   ;;  %v1974_v11 = vld [vmem:[%s2221_s7 + $0xf0] ss:$8 sps:$4 sm:$0xff]   ;;  %v1981_v13 = vld [vmem:[%s2221_s7 + $0x104] ss:$8 sps:$4 sm:$0xff]  }
  0x40   : > { %1262 = vmatpush1.bf16.msra.mxu1 %v1914_v33  ;;  %v1972_v10 = vld [vmem:[%s2221_s7 + $0x2f4] ss:$8 sps:$4 sm:$0xff]   ;;  %v1975_v12 = vld [vmem:[%s2221_s7 + $0x2f0] ss:$8 sps:$4 sm:$0xff]   ;;  %v1987_v14 = vld [vmem:[%s2221_s7 + $0x304] ss:$8 sps:$4 sm:$0xff]  }
  0x41   : > { %1348 = vmatpush1.bf16.msra.mxu0 %v1915_v34  ;;  %1263 = vmatprep.subr.bf16.mxu1 %v1916_v35  ;;  %v1976_v15 = vld [vmem:[%s2223_s8] ss:$36 sps:$4 sm:$0xff]   ;;  %v1982_v17 = vld [vmem:[%s2223_s8 + $0x10] ss:$36 sps:$4 sm:$0xff]  }
  0x42   : > { %1349 = vmatprep.subr.bf16.mxu0 %v1918_v36  ;;  %v1979_v16 = vld [vmem:[%s2221_s7 + $0x100] ss:$8 sps:$4 sm:$0xff]   ;;  %v1990_v19 = vld [vmem:[%s2221_s7 + $0x114] ss:$8 sps:$4 sm:$0xff]   ;;  %v1988_v21 = vld [vmem:[%s2221_s7 + $0x110] ss:$8 sps:$4 sm:$0xff]  }
  0x43   : > { %v1985_v18 = vld [vmem:[%s2221_s7 + $0x300] ss:$8 sps:$4 sm:$0xff]   ;;  %v1993_v20 = vld [vmem:[%s2221_s7 + $0x314] ss:$8 sps:$4 sm:$0xff]   ;;  %v1991_v22 = vld [vmem:[%s2221_s7 + $0x310] ss:$8 sps:$4 sm:$0xff]  }
  0x44   : > { %1264 = vmatpush1.bf16.msra.mxu1 %v1920_v37  ;;  %v1996_v23 = vld [vmem:[%s2221_s7 + $0x124] ss:$8 sps:$4 sm:$0xff]   ;;  %v1994_v25 = vld [vmem:[%s2221_s7 + $0x120] ss:$8 sps:$4 sm:$0xff]   ;;  %v2002_v27 = vld [vmem:[%s2221_s7 + $0x134] ss:$8 sps:$4 sm:$0xff]  }
  0x45   : > { %1350 = vmatpush1.bf16.msra.mxu0 %v1921_v38  ;;  %1265 = vmatprep.subr.bf16.mxu1 %v1922_v39  ;;  %v1999_v24 = vld [vmem:[%s2221_s7 + $0x324] ss:$8 sps:$4 sm:$0xff]   ;;  %v1997_v26 = vld [vmem:[%s2221_s7 + $0x320] ss:$8 sps:$4 sm:$0xff]   ;;  %v2005_v28 = vld [vmem:[%s2221_s7 + $0x334] ss:$8 sps:$4 sm:$0xff]  }
  0x46   : > { %1351 = vmatprep.subr.bf16.mxu0 %v1924_v40  ;;  %v2000_v29 = vld [vmem:[%s2221_s7 + $0x130] ss:$8 sps:$4 sm:$0xff]   ;;  %v2008_v31 = vld [vmem:[%s2221_s7 + $0x144] ss:$8 sps:$4 sm:$0xff]   ;;  %v2006_v33 = vld [vmem:[%s2221_s7 + $0x140] ss:$8 sps:$4 sm:$0xff]  }
  0x47   : > { %v2003_v30 = vld [vmem:[%s2221_s7 + $0x330] ss:$8 sps:$4 sm:$0xff]   ;;  %v2011_v32 = vld [vmem:[%s2221_s7 + $0x344] ss:$8 sps:$4 sm:$0xff]   ;;  %v2009_v34 = vld [vmem:[%s2221_s7 + $0x340] ss:$8 sps:$4 sm:$0xff]  }
  0x48   : > { %1266 = vmatpush1.bf16.msra.mxu1 %v1926_v41  ;;  %v2014_v35 = vld [vmem:[%s2221_s7 + $0x154] ss:$8 sps:$4 sm:$0xff]   ;;  %v2012_v37 = vld [vmem:[%s2221_s7 + $0x150] ss:$8 sps:$4 sm:$0xff]   ;;  %v2020_v39 = vld [vmem:[%s2221_s7 + $0x164] ss:$8 sps:$4 sm:$0xff]  }
  0x49   : > { %1352 = vmatpush1.bf16.msra.mxu0 %v1927_v42  ;;  %1267 = vmatprep.subr.bf16.mxu1 %v1928_v43  ;;  %v2017_v36 = vld [vmem:[%s2221_s7 + $0x354] ss:$8 sps:$4 sm:$0xff]   ;;  %v2015_v38 = vld [vmem:[%s2221_s7 + $0x350] ss:$8 sps:$4 sm:$0xff]   ;;  %v2023_v40 = vld [vmem:[%s2221_s7 + $0x364] ss:$8 sps:$4 sm:$0xff]  }
  0x4a   : > { %1353 = vmatprep.subr.bf16.mxu0 %v1930_v44  ;;  %v2018_v41 = vld [vmem:[%s2221_s7 + $0x160] ss:$8 sps:$4 sm:$0xff]   ;;  %v2026_v43 = vld [vmem:[%s2221_s7 + $0x174] ss:$8 sps:$4 sm:$0xff]  }
  0x4b   : > { %v2021_v42 = vld [vmem:[%s2221_s7 + $0x360] ss:$8 sps:$4 sm:$0xff]   ;;  %v2029_v44 = vld [vmem:[%s2221_s7 + $0x374] ss:$8 sps:$4 sm:$0xff]  }
  0x4c   : > { %1268 = vmatpush1.bf16.msra.mxu1 %v1932_v45  ;;  %v2080_v45 = vld [vmem:[%s2223_s8 + $0xc] ss:$36 sps:$4 sm:$0xff]   ;;  %v2042_v59 = vld [vmem:[%s2221_s7 + $0x1a0] ss:$8 sps:$4 sm:$0xff]  }
  0x4d   : > { %1354 = vmatpush1.bf16.msra.mxu0 %v1933_v46  ;;  %1269 = vmatprep.subr.bf16.mxu1 %v1934_v47  ;;  %v2083_v46 = vld [vmem:[%s2223_s8 + $0x1c] ss:$36 sps:$4 sm:$0xff]   ;;  %v2024_v47 = vld [vmem:[%s2221_s7 + $0x170] ss:$8 sps:$4 sm:$0xff]  }
  0x4e   : > { %1355 = vmatprep.subr.bf16.mxu0 %v1936_v48  ;;  %v2027_v48 = vld [vmem:[%s2221_s7 + $0x370] ss:$8 sps:$4 sm:$0xff]   ;;  %v2053_v62 = vld [vmem:[%s2221_s7 + $0x3b4] ss:$8 sps:$4 sm:$0xff]  }
  0x50   : > { %1270 = vmatpush1.bf16.msra.mxu1 %v1938_v49  ;;  %v2032_v49 = vld [vmem:[%s2221_s7 + $0x184] ss:$8 sps:$4 sm:$0xff]  }
  0x51   : > { %1356 = vmatpush1.bf16.msra.mxu0 %v1939_v50  ;;  %1271 = vmatprep.subr.bf16.mxu1 %v1940_v51  ;;  %v2035_v50 = vld [vmem:[%s2221_s7 + $0x384] ss:$8 sps:$4 sm:$0xff]   ;;  %v2030_v51 = vld [vmem:[%s2221_s7 + $0x180] ss:$8 sps:$4 sm:$0xff]  }
  0x52   : > { %1357 = vmatprep.subr.bf16.mxu0 %v1942_v52  ;;  %v2033_v52 = vld [vmem:[%s2221_s7 + $0x380] ss:$8 sps:$4 sm:$0xff]  }
  0x54   : > { %1272 = vmatpush1.bf16.msra.mxu1 %v1944_v53  ;;  %v2038_v53 = vld [vmem:[%s2221_s7 + $0x194] ss:$8 sps:$4 sm:$0xff]  }
  0x55   : > { %1358 = vmatpush1.bf16.msra.mxu0 %v1945_v54  ;;  %1273 = vmatprep.subr.bf16.mxu1 %v1946_v55  ;;  %v2041_v54 = vld [vmem:[%s2221_s7 + $0x394] ss:$8 sps:$4 sm:$0xff]   ;;  %v2036_v55 = vld [vmem:[%s2221_s7 + $0x190] ss:$8 sps:$4 sm:$0xff]  }
  0x56   : > { %1359 = vmatprep.subr.bf16.mxu0 %v1948_v56  ;;  %v2039_v56 = vld [vmem:[%s2221_s7 + $0x390] ss:$8 sps:$4 sm:$0xff]  }
  0x58   : > { %1274 = vmatpush1.bf16.msra.mxu1 %v1950_v57  ;;  %v2044_v57 = vld [vmem:[%s2221_s7 + $0x1a4] ss:$8 sps:$4 sm:$0xff]  }
  0x59   : > { %1360 = vmatpush1.bf16.msra.mxu0 %v1951_v58  ;;  %1275 = vmatprep.subr.bf16.mxu1 %v1952_v60  ;;  %v2047_v58 = vld [vmem:[%s2221_s7 + $0x3a4] ss:$8 sps:$4 sm:$0xff]   ;;  %v2045_v60 = vld [vmem:[%s2221_s7 + $0x3a0] ss:$8 sps:$4 sm:$0xff]  }
  0x5a   : > { %1361 = vmatprep.subr.bf16.mxu0 %v1954_v61  ;;  %v2050_v61 = vld [vmem:[%s2221_s7 + $0x1b4] ss:$8 sps:$4 sm:$0xff]  }
  0x5c   : > { %1276 = vmatpush1.bf16.msra.mxu1 %v1956_v63  ;;  %v2048_v63 = vld [vmem:[%s2221_s7 + $0x1b0] ss:$8 sps:$4 sm:$0xff]  }
  0x5d   : > { %1362 = vmatpush1.bf16.msra.mxu0 %v1957_v0  ;;  %1277 = vmatprep.subr.bf16.mxu1 %v1958_v1  ;;  %v2051_v0 = vld [vmem:[%s2221_s7 + $0x3b0] ss:$8 sps:$4 sm:$0xff]   ;;  %v2056_v1 = vld [vmem:[%s2221_s7 + $0x1c4] ss:$8 sps:$4 sm:$0xff]  }
  0x5e   : > { %1363 = vmatprep.subr.bf16.mxu0 %v1960_v2  ;;  %v2059_v2 = vld [vmem:[%s2221_s7 + $0x3c4] ss:$8 sps:$4 sm:$0xff]  }
  0x60   : > { %1278 = vmatpush1.bf16.msra.mxu1 %v1962_v3  ;;  %v2054_v3 = vld [vmem:[%s2221_s7 + $0x1c0] ss:$8 sps:$4 sm:$0xff]  }
  0x61   : > { %1364 = vmatpush1.bf16.msra.mxu0 %v1963_v4  ;;  %1279 = vmatprep.subr.bf16.mxu1 %v1964_v5  ;;  %v2057_v4 = vld [vmem:[%s2221_s7 + $0x3c0] ss:$8 sps:$4 sm:$0xff]   ;;  %v2062_v5 = vld [vmem:[%s2221_s7 + $0x1d4] ss:$8 sps:$4 sm:$0xff]  }
  0x62   : > { %1365 = vmatprep.subr.bf16.mxu0 %v1966_v6  ;;  %v2065_v6 = vld [vmem:[%s2221_s7 + $0x3d4] ss:$8 sps:$4 sm:$0xff]  }
  0x64   : > { %1280 = vmatpush1.bf16.msra.mxu1 %v1968_v7  ;;  %v2060_v7 = vld [vmem:[%s2221_s7 + $0x1d0] ss:$8 sps:$4 sm:$0xff]  }
  0x65   : > { %1366 = vmatpush1.bf16.msra.mxu0 %v1969_v8  ;;  %1281 = vmatprep.subr.bf16.mxu1 %v1970_v9  ;;  %v2063_v8 = vld [vmem:[%s2221_s7 + $0x3d0] ss:$8 sps:$4 sm:$0xff]   ;;  %v2068_v9 = vld [vmem:[%s2221_s7 + $0x1e4] ss:$8 sps:$4 sm:$0xff]  }
  0x66   : > { %1367 = vmatprep.subr.bf16.mxu0 %v1972_v10  ;;  %v2071_v10 = vld [vmem:[%s2221_s7 + $0x3e4] ss:$8 sps:$4 sm:$0xff]  }
  0x68   : > { %1282 = vmatpush1.bf16.msra.mxu1 %v1974_v11  ;;  %v2066_v11 = vld [vmem:[%s2221_s7 + $0x1e0] ss:$8 sps:$4 sm:$0xff]  }
  0x69   : > { %1368 = vmatpush1.bf16.msra.mxu0 %v1975_v12  ;;  %1294 = vmatprep.subr.bf16.mxu1 %v1981_v13  ;;  %v2069_v12 = vld [vmem:[%s2221_s7 + $0x3e0] ss:$8 sps:$4 sm:$0xff]   ;;  %v2074_v13 = vld [vmem:[%s2221_s7 + $0x1f4] ss:$8 sps:$4 sm:$0xff]  }
  0x6a   : > { %1380 = vmatprep.subr.bf16.mxu0 %v1987_v14  ;;  %v2077_v14 = vld [vmem:[%s2221_s7 + $0x3f4] ss:$8 sps:$4 sm:$0xff]  }
  0x6b   : > { %1284 = vmatmul.mubr.bf16.vlgmr.msra.gmra.mrb[0].mxu1 %v1976_v15  ;;  %v2072_v15 = vld [vmem:[%s2221_s7 + $0x1f0] ss:$8 sps:$4 sm:$0xff]  }
  0x6c   : > { %1370 = vmatmul.mubr.bf16.vlgmr.msra.gmra.mrb[0].mxu0 %v1982_v17  ;;  %1295 = vmatpush1.bf16.msra.mxu1 %v1979_v16  ;;  %v2075_v16 = vld [vmem:[%s2221_s7 + $0x3f0] ss:$8 sps:$4 sm:$0xff]   ;;  %v2086_v17 = vld [vmem:[%s2221_s7 + $0x404] ss:$8 sps:$4 sm:$0xff]  }
  0x6d   : > { %1381 = vmatpush1.bf16.msra.mxu0 %v1985_v18  ;;  %1296 = vmatprep.subr.bf16.mxu1 %v1990_v19  ;;  %v2078_v18 = vld [vmem:[%s2223_s8 + $0x8] ss:$36 sps:$4 sm:$0xff]   ;;  %v2081_v19 = vld [vmem:[%s2223_s8 + $0x18] ss:$36 sps:$4 sm:$0xff]  }
  0x6e   : > { %1382 = vmatprep.subr.bf16.mxu0 %v1993_v20  ;;  %1326 = vmatprep.mubr.bf16.mxu1 %v2080_v45  ;;  %v2084_v20 = vld [vmem:[%s2221_s7 + $0x400] ss:$8 sps:$4 sm:$0xff]  }
  0x6f   : > { %1412 = vmatprep.mubr.bf16.mxu0 %v2083_v46 }
  0x70   : > { %1297 = vmatpush1.bf16.msra.mxu1 %v1988_v21  ;;  %v2089_v21 = vld [vmem:[%s2221_s7 + $0x414] ss:$8 sps:$4 sm:$0xff]  }
  0x71   : > { %1383 = vmatpush1.bf16.msra.mxu0 %v1991_v22  ;;  %1298 = vmatprep.subr.bf16.mxu1 %v1996_v23  ;;  %v2087_v22 = vld [vmem:[%s2221_s7 + $0x410] ss:$8 sps:$4 sm:$0xff]   ;;  %v2150_v23 = vmov 0  }
  0x72   : > { %1384 = vmatprep.subr.bf16.mxu0 %v1999_v24  ;;  %v2092_v24 = vld [vmem:[%s2221_s7 + $0x424] ss:$8 sps:$4 sm:$0xff]  }
  0x74   : > { %1299 = vmatpush1.bf16.msra.mxu1 %v1994_v25  ;;  %v2090_v25 = vld [vmem:[%s2221_s7 + $0x420] ss:$8 sps:$4 sm:$0xff]  }
  0x75   : > { %1385 = vmatpush1.bf16.msra.mxu0 %v1997_v26  ;;  %1300 = vmatprep.subr.bf16.mxu1 %v2002_v27  ;;  %v2095_v26 = vld [vmem:[%s2221_s7 + $0x434] ss:$8 sps:$4 sm:$0xff]   ;;  %v2093_v27 = vld [vmem:[%s2221_s7 + $0x430] ss:$8 sps:$4 sm:$0xff]  }
  0x76   : > { %1386 = vmatprep.subr.bf16.mxu0 %v2005_v28  ;;  %v2098_v28 = vld [vmem:[%s2221_s7 + $0x444] ss:$8 sps:$4 sm:$0xff]  }
  0x78   : > { %1301 = vmatpush1.bf16.msra.mxu1 %v2000_v29  ;;  %v2096_v29 = vld [vmem:[%s2221_s7 + $0x440] ss:$8 sps:$4 sm:$0xff]  }
  0x79   : > { %1387 = vmatpush1.bf16.msra.mxu0 %v2003_v30  ;;  %1302 = vmatprep.subr.bf16.mxu1 %v2008_v31  ;;  %v2101_v30 = vld [vmem:[%s2221_s7 + $0x454] ss:$8 sps:$4 sm:$0xff]   ;;  %v2099_v31 = vld [vmem:[%s2221_s7 + $0x450] ss:$8 sps:$4 sm:$0xff]  }
  0x7a   : > { %1388 = vmatprep.subr.bf16.mxu0 %v2011_v32  ;;  %v2104_v32 = vld [vmem:[%s2221_s7 + $0x464] ss:$8 sps:$4 sm:$0xff]  }
  0x7c   : > { %1303 = vmatpush1.bf16.msra.mxu1 %v2006_v33  ;;  %v2102_v33 = vld [vmem:[%s2221_s7 + $0x460] ss:$8 sps:$4 sm:$0xff]  }
  0x7d   : > { %1389 = vmatpush1.bf16.msra.mxu0 %v2009_v34  ;;  %1304 = vmatprep.subr.bf16.mxu1 %v2014_v35  ;;  %v2107_v34 = vld [vmem:[%s2221_s7 + $0x474] ss:$8 sps:$4 sm:$0xff]   ;;  %v2105_v35 = vld [vmem:[%s2221_s7 + $0x470] ss:$8 sps:$4 sm:$0xff]  }
  0x7e   : > { %1390 = vmatprep.subr.bf16.mxu0 %v2017_v36  ;;  %v2108_v36 = vld [vmem:[%s2223_s8 + $0x20] ss:$36 sps:$4 sm:$0xff]  }
  0x80   : > { %1305 = vmatpush1.bf16.msra.mxu1 %v2012_v37 }
  0x81   : > { %1391 = vmatpush1.bf16.msra.mxu0 %v2015_v38  ;;  %1306 = vmatprep.subr.bf16.mxu1 %v2020_v39 }
  0x82   : > { %1392 = vmatprep.subr.bf16.mxu0 %v2023_v40 }
  0x84   : > { %1307 = vmatpush1.bf16.msra.mxu1 %v2018_v41  ;;  %v327_v41 = vld [vmem:[#allocation2] sm:$0xff] }
  0x85   : > { %1393 = vmatpush1.bf16.msra.mxu0 %v2021_v42  ;;  %1308 = vmatprep.subr.bf16.mxu1 %v2026_v43 }
  0x86   : > { %1394 = vmatprep.subr.bf16.mxu0 %v2029_v44  ;;  %v328_v44 = vld [vmem:[#allocation2 + $0x8] sm:$0xff] }
  0x88   : > { %1309 = vmatpush1.bf16.msra.mxu1 %v2024_v47  ;;  %v329_v47 = vld [vmem:[#allocation2 + $0x10] sm:$0xff] }
  0x89   : > { %1395 = vmatpush1.bf16.msra.mxu0 %v2027_v48  ;;  %1310 = vmatprep.subr.bf16.mxu1 %v2032_v49 }
  0x8a   : > { %1396 = vmatprep.subr.bf16.mxu0 %v2035_v50 }
  0x8c   : > { %1311 = vmatpush1.bf16.msra.mxu1 %v2030_v51  ;;  %v330_v51 = vld [vmem:[#allocation2 + $0x18] sm:$0xff] }
  0x8d   : > { %1397 = vmatpush1.bf16.msra.mxu0 %v2033_v52  ;;  %1312 = vmatprep.subr.bf16.mxu1 %v2038_v53 }
  0x8e   : > { %1398 = vmatprep.subr.bf16.mxu0 %v2041_v54 }
  0x90   : > { %1313 = vmatpush1.bf16.msra.mxu1 %v2036_v55 }
  0x91   : > { %1399 = vmatpush1.bf16.msra.mxu0 %v2039_v56  ;;  %1314 = vmatprep.subr.bf16.mxu1 %v2044_v57  ;;  %v1484_v57 = vlaneseq (!%p1809_p11) }
  0x92   : > { %1400 = vmatprep.subr.bf16.mxu0 %v2047_v58 }
  0x93   : > { %v1485_v58 = vshrl.u32 (!%p1809_p11), %v1484_v57, 7 }
  0x94   : > { %1315 = vmatpush1.bf16.msra.mxu1 %v2042_v59  ;;  %v1482_v59 = vld [vmem:[%s2406_s2] sm:$0x3] (!%p1809_p11) }
  0x95   : > { %1401 = vmatpush1.bf16.msra.mxu0 %v2045_v60  ;;  %1316 = vmatprep.subr.bf16.mxu1 %v2050_v61  ;;  %v1486_v61 = vsub.s32 (!%p1809_p11), 0, %v1485_v58 }
  0x96   : > { %1402 = vmatprep.subr.bf16.mxu0 %v2053_v62  ;;  %v1490_v62 = vsub.s32 (!%p1809_p11), 1, %v1485_v58 }
  0x98   : > { %1317 = vmatpush1.bf16.msra.mxu1 %v2048_v63 }
  0x99   : > { %1403 = vmatpush1.bf16.msra.mxu0 %v2051_v0  ;;  %1318 = vmatprep.subr.bf16.mxu1 %v2056_v1 }
  0x9a   : > { %1404 = vmatprep.subr.bf16.mxu0 %v2059_v2  ;;  %v1487_v2 = vrot.slane (!%p1809_p11), %v1482_v59, %v1486_v61 }
  0x9c   : > { %1319 = vmatpush1.bf16.msra.mxu1 %v2054_v3  ;;  %v1491_v3 = vrot.slane (!%p1809_p11), %v1482_v59, %v1490_v62 }
  0x9d   : > { %1405 = vmatpush1.bf16.msra.mxu0 %v2057_v4  ;;  %1320 = vmatprep.subr.bf16.mxu1 %v2062_v5 }
  0x9e   : > { %1406 = vmatprep.subr.bf16.mxu0 %v2065_v6 }
  0xa0   : > { %1321 = vmatpush1.bf16.msra.mxu1 %v2060_v7 }
  0xa1   : > { %1407 = vmatpush1.bf16.msra.mxu0 %v2063_v8  ;;  %1322 = vmatprep.subr.bf16.mxu1 %v2068_v9 }
  0xa2   : > { %1408 = vmatprep.subr.bf16.mxu0 %v2071_v10 }
  0xa4   : > { %1323 = vmatpush1.bf16.msra.mxu1 %v2066_v11 }
  0xa5   : > { %1409 = vmatpush1.bf16.msra.mxu0 %v2069_v12  ;;  %1324 = vmatprep.subr.bf16.mxu1 %v2074_v13 }
  0xa6   : > { %1410 = vmatprep.subr.bf16.mxu0 %v2077_v14 }
  0xa8   : > { %1325 = vmatpush1.bf16.msra.mxu1 %v2072_v15 }
  0xa9   : > { %1411 = vmatpush1.bf16.msra.mxu0 %v2075_v16 }
  0xaa   : > { %1423 = vmatprep.subr.bf16.mxu0 %v2086_v17 }
  0xab   : > { %1327 = vmatmul.mubr.bf16.vlgmr.msra.gmra.mrb[0].mxu1 %v2078_v18 }
  0xac   : > { %1413 = vmatmul.mubr.bf16.vlgmr.msra.gmra.mrb[0].mxu0 %v2081_v19 }
  0xad   : > { %1424 = vmatpush1.bf16.msra.mxu0 %v2084_v20  ;;  %1455 = vmatprep.mubr.bf16.mxu0 %v2150_v23 }
  0xae   : > { %1425 = vmatprep.subr.bf16.mxu0 %v2089_v21 }
  0xb1   : > { %1426 = vmatpush1.bf16.msra.mxu0 %v2087_v22 }
  0xb2   : > { %1427 = vmatprep.subr.bf16.mxu0 %v2092_v24 }
  0xb5   : > { %1428 = vmatpush1.bf16.msra.mxu0 %v2090_v25 }
  0xb6   : > { %1429 = vmatprep.subr.bf16.mxu0 %v2095_v26 }
  0xb9   : > { %1430 = vmatpush1.bf16.msra.mxu0 %v2093_v27 }
  0xba   : > { %1431 = vmatprep.subr.bf16.mxu0 %v2098_v28 }
  0xbd   : > { %1432 = vmatpush1.bf16.msra.mxu0 %v2096_v29 }
  0xbe   : > { %1433 = vmatprep.subr.bf16.mxu0 %v2101_v30 }
  0xc1   : > { %1434 = vmatpush1.bf16.msra.mxu0 %v2099_v31 }
  0xc2   : > { %1435 = vmatprep.subr.bf16.mxu0 %v2104_v32 }
  0xc5   : > { %1436 = vmatpush1.bf16.msra.mxu0 %v2102_v33 }
  0xc6   : > { %1437 = vmatprep.subr.bf16.mxu0 %v2107_v34 }
  0xc9   : > { %1438 = vmatpush1.bf16.msra.mxu0 %v2105_v35 }
  0xcc   : > { %1456 = vmatmul.mubr.bf16.vlgmr.msra.gmra.mrb[0].mxu0 %v2108_v36 }
 0x17e   : > { %v1328_v37 = vpop.f32.mrb[0].mxu1 }
 0x17f   : > { %v1330_v38 = vpop.f32.mrb[1].mxu1 }
 0x180   : > { %v1332_v39 = vpop.f32.mrb[2].mxu1 }
 0x181   : > { %v1334_v40 = vpop.f32.mrb[3].mxu1 }
 0x19f   : > { %v1457_v42 = vpop.f32.mrb[0].mxu0 }
 0x1a0   : > { %v1820_v43 = vadd.f32 %v1457_v42, %v1328_v37  ;;  %v1459_v45 = vpop.f32.mrb[1].mxu0 }
 0x1a1   : > { %v1821_v46 = vadd.f32 %v1459_v45, %v1330_v38  ;;  %v1461_v48 = vpop.f32.mrb[2].mxu0  ;;  %1477 = sbr.rel (%p1809_p11) target bundleno = 438 (0x1b6), region = 66 }
 0x1a2   : > { %v1466_v49 = vadd.f32 %v1820_v43, %v327_v41  ;;  %v1822_v50 = vadd.f32 %v1461_v48, %v1332_v39  ;;  %v1463_v52 = vpop.f32.mrb[3].mxu0 }
 0x1a3   : > { %v1467_v53 = vadd.f32 %v1821_v46, %v328_v44  ;;  %v1823_v54 = vadd.f32 %v1463_v52, %v1334_v40 }
 0x1a4   : > { %1470 = vst [vmem:[#allocation2] sm:$0xff] %v1466_v49  ;;  %v1468_v55 = vadd.f32 %v1822_v50, %v329_v47 }
 0x1a5   : > { %1471 = vst [vmem:[#allocation2 + $0x8] sm:$0xff] %v1467_v53  ;;  %v1469_v56 = vadd.f32 %v1823_v54, %v330_v51 }
 0x1a6   : > { %1472 = vst [vmem:[#allocation2 + $0x10] sm:$0xff] %v1468_v55 }
 0x1a7   : > { %1473 = vst [vmem:[#allocation2 + $0x18] sm:$0xff] %v1469_v56 }
 0x1ab   : > { %v1478_v60 = vld [vmem:[#allocation2] sm:$0xff] }
 0x1ac   : > { %v1479_v63 = vld [vmem:[#allocation2 + $0x8] sm:$0xff]  ;;  %v1494_v4 = vadd.f32 %v1487_v2, %v1478_v60 }
 0x1ad   : > { %v1480_v0 = vld [vmem:[#allocation2 + $0x10] sm:$0xff]  ;;  %v1495_v5 = vadd.f32 %v1491_v3, %v1479_v63 }
 0x1ae   : > { %v1481_v1 = vld [vmem:[#allocation2 + $0x18] sm:$0xff]  ;;  %v1496_v6 = vadd.f32 %v1487_v2, %v1480_v0  ;;  %v1498_v8 = vmax.f32 %v1494_v4, 0.0 }
 0x1af   : > { %v1497_v7 = vadd.f32 %v1491_v3, %v1481_v1  ;;  %v1499_v9 = vmax.f32 %v1495_v5, 0.0 }
 0x1b0   : > { %v1500_v10 = vmax.f32 %v1496_v6, 0.0 }
 0x1b1   : > { %v1501_v11 = vmax.f32 %v1497_v7, 0.0  ;;  %v1818_v12 = vpack.c.bf16 %v1499_v9, %v1498_v8 }
 0x1b3   : > { %v1819_v13 = vpack.c.bf16 %v1501_v11, %v1500_v10  ;;  %1514 = vst [vmem:[%s2407_s3] sm:$0xff] %v1818_v12 }
 0x1b5   : > { %1515 = vst [vmem:[%s2407_s3 + $0x8] sm:$0xff] %v1819_v13 }
 0x1b6 PF: > { %s13_s16 = sadd.s32 1, %s2147_s16   ;;  %s2408_s12 = smov %s2135_s13 }
 0x1b7   : > { %p10_p12 = scmp.ge.s32.totalorder %s13_s16, 5   ;;  %s2409_s13 = smov %s2206_s20 }
 0x1b8   : > { %s2410_s14 = smov %s2143_s15  ;;  %s2411_s15 = smov %s2413_s17 }
 0x1b9   :  { %12 = sbr.rel (!%p10_p12) target bundleno = 3 (0x3), region = 113 }

// kernel: backbone_forward.8
= control target key start
LH: loop header
LB: loop body
LE: loop exit
PB: predicated region body
PF: predicated region fallthrough
CT: control target
= control target key end

     0   :  { %8 = vsyncpa [#allocation4], 0  ;;  %s4783_s0 = inlined_call_operand.vmem [shape: bf16[8,7040], index: 0, kind: input, shape index: {}]   ;;  %s4784_s1 = inlined_call_operand.hbm [shape: bf16[7040,512], index: 1, kind: input, shape index: {}]   ;;  %s4785_s2 = inlined_call_operand.vmem [shape: f32[1,512], index: 2, kind: input, shape index: {}]   ;;  %s4786_s3 = inlined_call_operand.vmem [shape: bf16[8,512], index: 3, kind: output, shape index: {}]  }
   0x1   :  { %10 = vsyncpa [#allocation4 + $0x1], 0  ;;  %s4226_s12 = smov 0   ;;  %s4228_s13 = smov 0  }
   0x2   :  { %s4230_s14 = smov 0   ;;  %s4232_s15 = smov 0  }
   0x3   :  { %s4234_s16 = smov 0   ;;  %s4236_s17 = smov 0  }
   0x4 LB: > { %s3134_s18 = sadd.s32 4294967295, %s4199_s17   ;;  %s28_s19 = sadd.s32 1, %s4195_s16  ;;  %s4199_s17 = sphi %s4236_s17, %s16_s17   ;;  %s4195_s16 = sphi %s4234_s16, %s4793_s16   ;;  %s4191_s15 = sphi %s4232_s15, %s4792_s15   ;;  %s4187_s14 = sphi %s4230_s14, %s4791_s14   ;;  %s4183_s13 = sphi %s4228_s13, %s4790_s13   ;;  %s4179_s12 = sphi %s4226_s12, %s4789_s12  }
   0x5   : > { %p29_p0 = scmp.ge.s32.totalorder %s28_s19, 5  ;;  %s72_s20 = sadd.s32 1, %s4187_s14 }
   0x6   : > { %p79_p1 = scmp.ne.s32.totalorder %s4187_s14, %s4183_s13  ;;  %p80_p2 = scmp.eq.s32.totalorder %s4199_s17, 0 }
   0x7   : > { %s4795_s19 = smov (%p29_p0, %s28_s19), 0  ;;  %p85_p4 = scmp.ne.s32.totalorder %s4183_s13, %s4179_s12 }
   0x8   : > { %p81_p3 = por %p80_p2, %p79_p1  ;;  %s67_s21 = ssub.s32 %s4195_s16, %s4795_s19 }
   0x9   : > { %p86_p5 = scmp.eq.s32.totalorder %s3134_s18, 0  ;;  %p70_p6 = scmp.eq.s32.totalorder %s67_s21, 0 }
   0xa   : > { %p3526_p8 = scmp.lt.s32.totalorder %s4199_s17, 5  ;;  %s184_s24 = sand.u32 1, %s4187_s14  }
   0xb   : > { %p4265_p7 = por %p86_p5, %p85_p4  ;;  %s3517_s25 = smul.u32 45056, %s4195_s16 }
   0xc   : > { %s4271_s23 = scalar_select %p70_p6, %s4187_s14, %s72_s20  }
   0xd   : > { %s3518_s26 = smul.u32 2816, %s184_s24  ;;  %s4278_s29 = scalar_lea.hbm %s4784_s1, %s3517_s25 }
   0xe   : > { %p4280_p9 = pnand %p3526_p8, %p81_p3  ;;  %s4286_s6 = scalar_lea.sflag [#allocation4], %s184_s24 }
   0xf   : > { %s188_s4 = scalar_lea.vmem [#allocation3], %s3518_s26  ;;  %s4119_s7 = scalar_lea.hbm %s4278_s29, 45056 }
  0x10   : > { %s198_s5 = sshll.u32 %s188_s4, 4  ;;  %p4120_p10 = scmp.ne.s32.totalorder %s4278_s29, %s4119_s7  ;;  %s4284_s5 = int_to_ptr.vmem [resolvable:$true] %s198_s5 }
  0x11   : > { %p4121_p11 = pneg %p4280_p9  ;;  %s4124_s10 = scalar_lea.hbm %s4784_s1, 225280 }
  0x12   : > { %p4125_p0 = scmp.lt.u32.totalorder %s4278_s29, %s4784_s1  ;;  %p4126_p1 = scmp.lt.u32.totalorder %s4124_s10, %s4119_s7 }
  0x13   : > { %p4122_p12 = pnand %p4121_p11, %p4120_p10  ;;  %p4128_p3 = scmp.lt.u32.totalorder %s4119_s7, %s4278_s29 }
  0x14   : > { %p4127_p2 = por %p4126_p1, %p4125_p0 }
  0x15   : > { %p4123_p13 = pneg %p4122_p12 }
  0x16   : > { %p4129_p4 = por %p4128_p3, %p4127_p2 }
  0x18   : > { %p4130_p5 = pnand %p4129_p4, %p4123_p13 }
  0x1a   : > { %4133 = shalt.err (!%p4130_p5)
}
  0x1b   : > { %s4134_s18 = scalar_lea.vmem %s4284_s5, 45056  ;;  %s4201_s20 = smov [#allocation3]  }
  0x1c   : > { %p4135_p6 = scmp.ne.s32.totalorder %s4284_s5, %s4134_s18  ;;  %s4139_s21 = sshll.u32 %s4201_s20, 4  ;;  %s4140_s21 = int_to_ptr.vmem [resolvable:$false] %s4139_s21 }
  0x1d   : > { %s4141_s24 = scalar_lea.vmem %s4140_s21, 90112  ;;  %p4142_p12 = scmp.lt.s32.totalorder %s4284_s5, %s4140_s21 }
  0x1e   : > { %p4137_p8 = pnand %p4135_p6, %p4121_p11  ;;  %p4143_p0 = scmp.lt.s32.totalorder %s4141_s24, %s4134_s18 }
  0x20   : > { %p4138_p10 = pneg %p4137_p8  ;;  %p4144_p1 = por %p4143_p0, %p4142_p12 }
  0x22   : > { %p4145_p2 = pnand %p4144_p1, %p4138_p10 }
  0x24   : > { %4148 = shalt.err (!%p4145_p2)
}
  0x25   : > { %s4202_s25 = smov 256   ;;  %s4203_s26 = smov 16  }
  0x26   : > { %3525 = dma.hbm_to_vmem [thread:$0]  (!%p4280_p9), %s4278_s29, 45056, %s4284_s5, %s4286_s6, %s4202_s25, %s4202_s25, %s4203_s26  }
  0x27   : > { %p3140_p11 = scmp.ge.s32.totalorder %s4199_s17, 1  ;;  %p206_p13 = scmp.lt.s32.totalorder %s4199_s17, 6 }
  0x29   : > { %p207_p3 = pnand %p3140_p11, %p206_p13 }
  0x2a   : > { %s212_s27 = sand.u32 (!%p207_p3), 1, %s4183_s13  }
  0x2b   : > { %210 = sbr.rel (%p207_p3) target bundleno = 648 (0x288), region = 32  ;;  %s213_s4 = scalar_lea.sflag (!%p207_p3), [#allocation4], %s212_s27 }
  0x2c   : > { %s3519_s28 = smul.u32 (!%p207_p3), 2816, %s212_s27 }
  0x2e   : > { %s4317_s7 = scalar_lea.vmem (!%p207_p3), [#allocation3], %s3519_s28 }
  0x32   : > { %4174 = dma.done.wait (%p4265_p7), %s213_s4, 45056  }
  0x33   : > { %4176 = vsyncadd (%p4265_p7), %s213_s4, 4294922240  ;;  %s256_s8 = smul.u32 11, %s4191_s15  ;;  %p3142_p9 = scmp.ne.s32.totalorder %s4191_s15, 0 }
  0x34   : > { %v4204_v0 = vmov (!%p3142_p9), 0.0  }
  0x35   : > { %p259_p4 = scmp.lt.s32.totalorder %s256_s8, 54  ;;  %287 = sbr.rel (%p3142_p9) target bundleno = 60 (0x3c), region = 40  ;;  %288 = vst [vmem:[#allocation2] sm:$0xff] (!%p3142_p9), %v4204_v0  ;;  %289 = vst [vmem:[#allocation2 + $0x8] sm:$0xff] (!%p3142_p9), %v4204_v0 }
  0x36   : > { %290 = vst [vmem:[#allocation2 + $0x10] sm:$0xff] (!%p3142_p9), %v4204_v0  ;;  %291 = vst [vmem:[#allocation2 + $0x18] sm:$0xff] (!%p3142_p9), %v4204_v0 }
  0x37   : > { %s4797_s8 = smov (!%p259_p4, %s256_s8), 54 }
  0x38   : > { %s3141_s29 = sshll.u32 %s4797_s8, 2 }
  0x39   : > { %s4327_s6 = scalar_lea.vmem %s4783_s0, %s3141_s29 }
  0x3c PF: > { %v3579_v1 = vld [vmem:[%s4317_s7 + $0x4] ss:$16 sps:$4 sm:$0xff]   ;;  %v3583_v3 = vld [vmem:[%s4317_s7] ss:$16 sps:$4 sm:$0xff]   ;;  %v297_v49 = vld [vmem:[%s4327_s6 + $0x8] sm:$0xff]  ;;  %p3506_p7 = scmp.ne.s32.totalorder %s4191_s15, 4 }
  0x3d   : > { %v3581_v2 = vld [vmem:[%s4317_s7 + $0x204] ss:$16 sps:$4 sm:$0xff]   ;;  %2453 = vmatprep.subr.bf16.mxu0 %v3579_v1  ;;  %v3584_v4 = vld [vmem:[%s4317_s7 + $0x200] ss:$16 sps:$4 sm:$0xff]   ;;  %v4382_v52 = vcombine.high %v297_v49, %v297_v49 }
  0x3e   : > { %2494 = vmatprep.subr.bf16.mxu1 %v3581_v2  ;;  %v3585_v5 = vld [vmem:[%s4317_s7 + $0x24] ss:$16 sps:$4 sm:$0xff]   ;;  %2454 = vmatpush1.bf16.msra.mxu0 %v3583_v3  ;;  %v3589_v7 = vld [vmem:[%s4317_s7 + $0x20] ss:$16 sps:$4 sm:$0xff]  }
  0x3f   : > { %2495 = vmatpush1.bf16.msra.mxu1 %v3584_v4  ;;  %v3587_v6 = vld [vmem:[%s4317_s7 + $0x224] ss:$16 sps:$4 sm:$0xff]   ;;  %2455 = vmatprep.subr.bf16.mxu0 %v3585_v5  ;;  %v3590_v8 = vld [vmem:[%s4317_s7 + $0x220] ss:$16 sps:$4 sm:$0xff]  }
  0x40   : > { %2496 = vmatprep.subr.bf16.mxu1 %v3587_v6  ;;  %v3591_v9 = vld [vmem:[%s4317_s7 + $0x44] ss:$16 sps:$4 sm:$0xff]   ;;  %v3595_v11 = vld [vmem:[%s4317_s7 + $0x40] ss:$16 sps:$4 sm:$0xff]   ;;  %2526 = vmatprep.mubr.bf16.mxu1 %v4382_v52 }
  0x41   : > { %v3593_v10 = vld [vmem:[%s4317_s7 + $0x244] ss:$16 sps:$4 sm:$0xff]   ;;  %v3596_v12 = vld [vmem:[%s4317_s7 + $0x240] ss:$16 sps:$4 sm:$0xff]  }
  0x42   : > { %2456 = vmatpush1.bf16.msra.mxu0 %v3589_v7  ;;  %v3597_v13 = vld [vmem:[%s4317_s7 + $0x64] ss:$16 sps:$4 sm:$0xff]   ;;  %v3601_v15 = vld [vmem:[%s4317_s7 + $0x60] ss:$16 sps:$4 sm:$0xff]  }
  0x43   : > { %2497 = vmatpush1.bf16.msra.mxu1 %v3590_v8  ;;  %2457 = vmatprep.subr.bf16.mxu0 %v3591_v9  ;;  %v3599_v14 = vld [vmem:[%s4317_s7 + $0x264] ss:$16 sps:$4 sm:$0xff]   ;;  %v3602_v16 = vld [vmem:[%s4317_s7 + $0x260] ss:$16 sps:$4 sm:$0xff]   ;;  %v4406_v8 = vcombine.low %v297_v49, %v297_v49 }
  0x44   : > { %2498 = vmatprep.subr.bf16.mxu1 %v3593_v10  ;;  %v3603_v17 = vld [vmem:[%s4317_s7 + $0x84] ss:$16 sps:$4 sm:$0xff]   ;;  %v3607_v19 = vld [vmem:[%s4317_s7 + $0x80] ss:$16 sps:$4 sm:$0xff]  }
  0x45   : > { %v3605_v18 = vld [vmem:[%s4317_s7 + $0x284] ss:$16 sps:$4 sm:$0xff]   ;;  %v3608_v20 = vld [vmem:[%s4317_s7 + $0x280] ss:$16 sps:$4 sm:$0xff]  }
  0x46   : > { %2458 = vmatpush1.bf16.msra.mxu0 %v3595_v11  ;;  %v3609_v21 = vld [vmem:[%s4317_s7 + $0xa4] ss:$16 sps:$4 sm:$0xff]   ;;  %v3613_v23 = vld [vmem:[%s4317_s7 + $0xa0] ss:$16 sps:$4 sm:$0xff]  }
  0x47   : > { %2499 = vmatpush1.bf16.msra.mxu1 %v3596_v12  ;;  %2459 = vmatprep.subr.bf16.mxu0 %v3597_v13  ;;  %v3611_v22 = vld [vmem:[%s4317_s7 + $0x2a4] ss:$16 sps:$4 sm:$0xff]   ;;  %v3614_v24 = vld [vmem:[%s4317_s7 + $0x2a0] ss:$16 sps:$4 sm:$0xff]  }
  0x48   : > { %2500 = vmatprep.subr.bf16.mxu1 %v3599_v14  ;;  %v3615_v25 = vld [vmem:[%s4317_s7 + $0xc4] ss:$16 sps:$4 sm:$0xff]   ;;  %v3619_v27 = vld [vmem:[%s4317_s7 + $0xc0] ss:$16 sps:$4 sm:$0xff]  }
  0x49   : > { %v3617_v26 = vld [vmem:[%s4317_s7 + $0x2c4] ss:$16 sps:$4 sm:$0xff]   ;;  %v3620_v28 = vld [vmem:[%s4317_s7 + $0x2c0] ss:$16 sps:$4 sm:$0xff]  }
  0x4a   : > { %2460 = vmatpush1.bf16.msra.mxu0 %v3601_v15  ;;  %v3621_v29 = vld [vmem:[%s4317_s7 + $0xe4] ss:$16 sps:$4 sm:$0xff]   ;;  %v3625_v31 = vld [vmem:[%s4317_s7 + $0xe0] ss:$16 sps:$4 sm:$0xff]  }
  0x4b   : > { %2501 = vmatpush1.bf16.msra.mxu1 %v3602_v16  ;;  %2461 = vmatprep.subr.bf16.mxu0 %v3603_v17  ;;  %v3623_v30 = vld [vmem:[%s4317_s7 + $0x2e4] ss:$16 sps:$4 sm:$0xff]   ;;  %v3626_v32 = vld [vmem:[%s4317_s7 + $0x2e0] ss:$16 sps:$4 sm:$0xff]  }
  0x4c   : > { %2502 = vmatprep.subr.bf16.mxu1 %v3605_v18  ;;  %v3627_v33 = vld [vmem:[%s4317_s7 + $0x104] ss:$16 sps:$4 sm:$0xff]   ;;  %v3631_v35 = vld [vmem:[%s4317_s7 + $0x100] ss:$16 sps:$4 sm:$0xff]  }
  0x4d   : > { %v3629_v34 = vld [vmem:[%s4317_s7 + $0x304] ss:$16 sps:$4 sm:$0xff]   ;;  %v3632_v36 = vld [vmem:[%s4317_s7 + $0x300] ss:$16 sps:$4 sm:$0xff]  }
  0x4e   : > { %2462 = vmatpush1.bf16.msra.mxu0 %v3607_v19  ;;  %v3633_v37 = vld [vmem:[%s4317_s7 + $0x124] ss:$16 sps:$4 sm:$0xff]   ;;  %v3637_v39 = vld [vmem:[%s4317_s7 + $0x120] ss:$16 sps:$4 sm:$0xff]  }
  0x4f   : > { %2503 = vmatpush1.bf16.msra.mxu1 %v3608_v20  ;;  %2463 = vmatprep.subr.bf16.mxu0 %v3609_v21  ;;  %v3635_v38 = vld [vmem:[%s4317_s7 + $0x324] ss:$16 sps:$4 sm:$0xff]   ;;  %v3638_v40 = vld [vmem:[%s4317_s7 + $0x320] ss:$16 sps:$4 sm:$0xff]  }
  0x50   : > { %2504 = vmatprep.subr.bf16.mxu1 %v3611_v22  ;;  %v3639_v41 = vld [vmem:[%s4317_s7 + $0x144] ss:$16 sps:$4 sm:$0xff]   ;;  %v3643_v43 = vld [vmem:[%s4317_s7 + $0x140] ss:$16 sps:$4 sm:$0xff]  }
  0x51   : > { %v3641_v42 = vld [vmem:[%s4317_s7 + $0x344] ss:$16 sps:$4 sm:$0xff]   ;;  %v3644_v44 = vld [vmem:[%s4317_s7 + $0x340] ss:$16 sps:$4 sm:$0xff]  }
  0x52   : > { %2464 = vmatpush1.bf16.msra.mxu0 %v3613_v23  ;;  %v3645_v45 = vld [vmem:[%s4317_s7 + $0x164] ss:$16 sps:$4 sm:$0xff]   ;;  %v3649_v50 = vld [vmem:[%s4317_s7 + $0x160] ss:$16 sps:$4 sm:$0xff]  }
  0x53   : > { %2505 = vmatpush1.bf16.msra.mxu1 %v3614_v24  ;;  %2465 = vmatprep.subr.bf16.mxu0 %v3615_v25  ;;  %v3647_v46 = vld [vmem:[%s4317_s7 + $0x364] ss:$16 sps:$4 sm:$0xff]   ;;  %v3650_v51 = vld [vmem:[%s4317_s7 + $0x360] ss:$16 sps:$4 sm:$0xff]  }
  0x54   : > { %2506 = vmatprep.subr.bf16.mxu1 %v3617_v26  ;;  %v296_v47 = vld [vmem:[%s4327_s6] sm:$0xff] }
  0x55   : > { %v4377_v48 = vcombine.high %v296_v47, %v296_v47  ;;  %v3651_v53 = vld [vmem:[%s4317_s7 + $0x184] ss:$16 sps:$4 sm:$0xff]   ;;  %v3655_v55 = vld [vmem:[%s4317_s7 + $0x180] ss:$16 sps:$4 sm:$0xff]   ;;  %v4404_v7 = vcombine.low %v296_v47, %v296_v47 }
  0x56   : > { %2466 = vmatpush1.bf16.msra.mxu0 %v3619_v27  ;;  %v3653_v54 = vld [vmem:[%s4317_s7 + $0x384] ss:$16 sps:$4 sm:$0xff]   ;;  %v3656_v56 = vld [vmem:[%s4317_s7 + $0x380] ss:$16 sps:$4 sm:$0xff]  }
  0x57   : > { %2507 = vmatpush1.bf16.msra.mxu1 %v3620_v28  ;;  %2467 = vmatprep.subr.bf16.mxu0 %v3621_v29  ;;  %v3657_v57 = vld [vmem:[%s4317_s7 + $0x1a4] ss:$16 sps:$4 sm:$0xff]   ;;  %v3661_v59 = vld [vmem:[%s4317_s7 + $0x1a0] ss:$16 sps:$4 sm:$0xff]  }
  0x58   : > { %2508 = vmatprep.subr.bf16.mxu1 %v3623_v30  ;;  %2485 = vmatprep.mubr.bf16.mxu0 %v4377_v48  ;;  %v3659_v58 = vld [vmem:[%s4317_s7 + $0x3a4] ss:$16 sps:$4 sm:$0xff]   ;;  %v3662_v60 = vld [vmem:[%s4317_s7 + $0x3a0] ss:$16 sps:$4 sm:$0xff]  }
  0x59   : > { %v3663_v61 = vld [vmem:[%s4317_s7 + $0x1c4] ss:$16 sps:$4 sm:$0xff]   ;;  %v3667_v63 = vld [vmem:[%s4317_s7 + $0x1c0] ss:$16 sps:$4 sm:$0xff]  }
  0x5a   : > { %2468 = vmatpush1.bf16.msra.mxu0 %v3625_v31  ;;  %v3665_v62 = vld [vmem:[%s4317_s7 + $0x3c4] ss:$16 sps:$4 sm:$0xff]   ;;  %v3668_v0 = vld [vmem:[%s4317_s7 + $0x3c0] ss:$16 sps:$4 sm:$0xff]  }
  0x5b   : > { %2509 = vmatpush1.bf16.msra.mxu1 %v3626_v32  ;;  %2469 = vmatprep.subr.bf16.mxu0 %v3627_v33  ;;  %v3669_v1 = vld [vmem:[%s4317_s7 + $0x1e4] ss:$16 sps:$4 sm:$0xff]   ;;  %v3673_v3 = vld [vmem:[%s4317_s7 + $0x1e0] ss:$16 sps:$4 sm:$0xff]  }
  0x5c   : > { %2510 = vmatprep.subr.bf16.mxu1 %v3629_v34  ;;  %v3671_v2 = vld [vmem:[%s4317_s7 + $0x3e4] ss:$16 sps:$4 sm:$0xff]   ;;  %v3674_v4 = vld [vmem:[%s4317_s7 + $0x3e0] ss:$16 sps:$4 sm:$0xff]   ;;  %v4438_v34 = vld [vmem:[%s4327_s6 + $0x18] sm:$0xff] }
  0x5d   : > { %v3681_v5 = vld [vmem:[%s4317_s7 + $0x404] ss:$16 sps:$4 sm:$0xff]   ;;  %v3679_v9 = vld [vmem:[%s4317_s7 + $0x400] ss:$16 sps:$4 sm:$0xff]  }
  0x5e   : > { %2470 = vmatpush1.bf16.msra.mxu0 %v3631_v35  ;;  %v3684_v6 = vld [vmem:[%s4317_s7 + $0x604] ss:$16 sps:$4 sm:$0xff]   ;;  %v3682_v10 = vld [vmem:[%s4317_s7 + $0x600] ss:$16 sps:$4 sm:$0xff]  }
  0x5f   : > { %2511 = vmatpush1.bf16.msra.mxu1 %v3632_v36  ;;  %2471 = vmatprep.subr.bf16.mxu0 %v3633_v37  ;;  %v3687_v11 = vld [vmem:[%s4317_s7 + $0x424] ss:$16 sps:$4 sm:$0xff]   ;;  %v3685_v13 = vld [vmem:[%s4317_s7 + $0x420] ss:$16 sps:$4 sm:$0xff]  }
  0x60   : > { %2512 = vmatprep.subr.bf16.mxu1 %v3635_v38  ;;  %v3690_v12 = vld [vmem:[%s4317_s7 + $0x624] ss:$16 sps:$4 sm:$0xff]   ;;  %v3688_v14 = vld [vmem:[%s4317_s7 + $0x620] ss:$16 sps:$4 sm:$0xff]   ;;  %v4448_v38 = vcombine.high %v4438_v34, %v4438_v34 }
  0x61   : > { %v3693_v15 = vld [vmem:[%s4317_s7 + $0x444] ss:$16 sps:$4 sm:$0xff]   ;;  %v3691_v17 = vld [vmem:[%s4317_s7 + $0x440] ss:$16 sps:$4 sm:$0xff]  }
  0x62   : > { %2472 = vmatpush1.bf16.msra.mxu0 %v3637_v39  ;;  %v3696_v16 = vld [vmem:[%s4317_s7 + $0x644] ss:$16 sps:$4 sm:$0xff]   ;;  %v3694_v18 = vld [vmem:[%s4317_s7 + $0x640] ss:$16 sps:$4 sm:$0xff]  }
  0x63   : > { %2513 = vmatpush1.bf16.msra.mxu1 %v3638_v40  ;;  %2473 = vmatprep.subr.bf16.mxu0 %v3639_v41  ;;  %v3699_v19 = vld [vmem:[%s4317_s7 + $0x464] ss:$16 sps:$4 sm:$0xff]   ;;  %v3697_v21 = vld [vmem:[%s4317_s7 + $0x460] ss:$16 sps:$4 sm:$0xff]  }
  0x64   : > { %2514 = vmatprep.subr.bf16.mxu1 %v3641_v42  ;;  %v3702_v20 = vld [vmem:[%s4317_s7 + $0x664] ss:$16 sps:$4 sm:$0xff]   ;;  %v3700_v22 = vld [vmem:[%s4317_s7 + $0x660] ss:$16 sps:$4 sm:$0xff]  }
  0x65   : > { %v3705_v23 = vld [vmem:[%s4317_s7 + $0x484] ss:$16 sps:$4 sm:$0xff]   ;;  %v3703_v25 = vld [vmem:[%s4317_s7 + $0x480] ss:$16 sps:$4 sm:$0xff]  }
  0x66   : > { %2474 = vmatpush1.bf16.msra.mxu0 %v3643_v43  ;;  %v3708_v24 = vld [vmem:[%s4317_s7 + $0x684] ss:$16 sps:$4 sm:$0xff]   ;;  %v3706_v26 = vld [vmem:[%s4317_s7 + $0x680] ss:$16 sps:$4 sm:$0xff]  }
  0x67   : > { %2515 = vmatpush1.bf16.msra.mxu1 %v3644_v44  ;;  %2475 = vmatprep.subr.bf16.mxu0 %v3645_v45  ;;  %v3711_v27 = vld [vmem:[%s4317_s7 + $0x4a4] ss:$16 sps:$4 sm:$0xff]   ;;  %v3709_v29 = vld [vmem:[%s4317_s7 + $0x4a0] ss:$16 sps:$4 sm:$0xff]  }
  0x68   : > { %2516 = vmatprep.subr.bf16.mxu1 %v3647_v46  ;;  %v3714_v28 = vld [vmem:[%s4317_s7 + $0x6a4] ss:$16 sps:$4 sm:$0xff]   ;;  %v3712_v30 = vld [vmem:[%s4317_s7 + $0x6a0] ss:$16 sps:$4 sm:$0xff]  }
  0x69   : > { %v3717_v31 = vld [vmem:[%s4317_s7 + $0x4c4] ss:$16 sps:$4 sm:$0xff]   ;;  %v3715_v35 = vld [vmem:[%s4317_s7 + $0x4c0] ss:$16 sps:$4 sm:$0xff]  }
  0x6a   : > { %2476 = vmatpush1.bf16.msra.mxu0 %v3649_v50  ;;  %v3720_v32 = vld [vmem:[%s4317_s7 + $0x6c4] ss:$16 sps:$4 sm:$0xff]   ;;  %v3718_v36 = vld [vmem:[%s4317_s7 + $0x6c0] ss:$16 sps:$4 sm:$0xff]  }
  0x6b   : > { %2517 = vmatpush1.bf16.msra.mxu1 %v3650_v51  ;;  %2477 = vmatprep.subr.bf16.mxu0 %v3651_v53  ;;  %v4435_v33 = vld [vmem:[%s4327_s6 + $0x10] sm:$0xff] }
  0x6c   : > { %2518 = vmatprep.subr.bf16.mxu1 %v3653_v54  ;;  %v4444_v37 = vcombine.high %v4435_v33, %v4435_v33  ;;  %v3723_v39 = vld [vmem:[%s4317_s7 + $0x4e4] ss:$16 sps:$4 sm:$0xff]   ;;  %v3721_v41 = vld [vmem:[%s4317_s7 + $0x4e0] ss:$16 sps:$4 sm:$0xff]  }
  0x6d   : > { %v3726_v40 = vld [vmem:[%s4317_s7 + $0x6e4] ss:$16 sps:$4 sm:$0xff]   ;;  %v3724_v42 = vld [vmem:[%s4317_s7 + $0x6e0] ss:$16 sps:$4 sm:$0xff]  }
  0x6e   : > { %2478 = vmatpush1.bf16.msra.mxu0 %v3655_v55  ;;  %v3729_v43 = vld [vmem:[%s4317_s7 + $0x504] ss:$16 sps:$4 sm:$0xff]   ;;  %v3727_v45 = vld [vmem:[%s4317_s7 + $0x500] ss:$16 sps:$4 sm:$0xff]  }
  0x6f   : > { %2519 = vmatpush1.bf16.msra.mxu1 %v3656_v56  ;;  %2479 = vmatprep.subr.bf16.mxu0 %v3657_v57  ;;  %v3732_v44 = vld [vmem:[%s4317_s7 + $0x704] ss:$16 sps:$4 sm:$0xff]   ;;  %v3730_v46 = vld [vmem:[%s4317_s7 + $0x700] ss:$16 sps:$4 sm:$0xff]  }
  0x70   : > { %2520 = vmatprep.subr.bf16.mxu1 %v3659_v58  ;;  %v3735_v47 = vld [vmem:[%s4317_s7 + $0x524] ss:$16 sps:$4 sm:$0xff]   ;;  %v3733_v50 = vld [vmem:[%s4317_s7 + $0x520] ss:$16 sps:$4 sm:$0xff]  }
  0x71   : > { %v3738_v49 = vld [vmem:[%s4317_s7 + $0x724] ss:$16 sps:$4 sm:$0xff]   ;;  %v3736_v51 = vld [vmem:[%s4317_s7 + $0x720] ss:$16 sps:$4 sm:$0xff]  }
  0x72   : > { %2480 = vmatpush1.bf16.msra.mxu0 %v3661_v59  ;;  %v3741_v53 = vld [vmem:[%s4317_s7 + $0x544] ss:$16 sps:$4 sm:$0xff]   ;;  %v3739_v55 = vld [vmem:[%s4317_s7 + $0x540] ss:$16 sps:$4 sm:$0xff]  }
  0x73   : > { %2521 = vmatpush1.bf16.msra.mxu1 %v3662_v60  ;;  %2481 = vmatprep.subr.bf16.mxu0 %v3663_v61  ;;  %v3744_v54 = vld [vmem:[%s4317_s7 + $0x744] ss:$16 sps:$4 sm:$0xff]   ;;  %v3742_v56 = vld [vmem:[%s4317_s7 + $0x740] ss:$16 sps:$4 sm:$0xff]  }
  0x74   : > { %2522 = vmatprep.subr.bf16.mxu1 %v3665_v62  ;;  %v3747_v57 = vld [vmem:[%s4317_s7 + $0x564] ss:$16 sps:$4 sm:$0xff]   ;;  %v3745_v59 = vld [vmem:[%s4317_s7 + $0x560] ss:$16 sps:$4 sm:$0xff]  }
  0x75   : > { %v3750_v58 = vld [vmem:[%s4317_s7 + $0x764] ss:$16 sps:$4 sm:$0xff]   ;;  %v3748_v60 = vld [vmem:[%s4317_s7 + $0x760] ss:$16 sps:$4 sm:$0xff]  }
  0x76   : > { %2482 = vmatpush1.bf16.msra.mxu0 %v3667_v63  ;;  %v3753_v61 = vld [vmem:[%s4317_s7 + $0x584] ss:$16 sps:$4 sm:$0xff]   ;;  %v3751_v63 = vld [vmem:[%s4317_s7 + $0x580] ss:$16 sps:$4 sm:$0xff]  }
  0x77   : > { %2523 = vmatpush1.bf16.msra.mxu1 %v3668_v0  ;;  %2483 = vmatprep.subr.bf16.mxu0 %v3669_v1  ;;  %v3756_v62 = vld [vmem:[%s4317_s7 + $0x784] ss:$16 sps:$4 sm:$0xff]   ;;  %v3754_v0 = vld [vmem:[%s4317_s7 + $0x780] ss:$16 sps:$4 sm:$0xff]  }
  0x78   : > { %2524 = vmatprep.subr.bf16.mxu1 %v3671_v2  ;;  %v3759_v1 = vld [vmem:[%s4317_s7 + $0x5a4] ss:$16 sps:$4 sm:$0xff]  }
  0x79   : > { %v3762_v2 = vld [vmem:[%s4317_s7 + $0x7a4] ss:$16 sps:$4 sm:$0xff]  }
  0x7a   : > { %2484 = vmatpush1.bf16.msra.mxu0 %v3673_v3  ;;  %v3757_v3 = vld [vmem:[%s4317_s7 + $0x5a0] ss:$16 sps:$4 sm:$0xff]  }
  0x7b   : > { %2525 = vmatpush1.bf16.msra.mxu1 %v3674_v4  ;;  %2535 = vmatprep.subr.bf16.mxu0 %v3681_v5  ;;  %v3760_v4 = vld [vmem:[%s4317_s7 + $0x7a0] ss:$16 sps:$4 sm:$0xff]   ;;  %v3765_v5 = vld [vmem:[%s4317_s7 + $0x5c4] ss:$16 sps:$4 sm:$0xff]  }
  0x7c   : > { %2576 = vmatprep.subr.bf16.mxu1 %v3684_v6  ;;  %v3768_v6 = vld [vmem:[%s4317_s7 + $0x7c4] ss:$16 sps:$4 sm:$0xff]  }
  0x7d   : > { %2486 = vmatmul.mubr.bf16.vlgmr.msra.gmra.mrb[0].mxu0 %v4404_v7 }
  0x7e   : > { %2527 = vmatmul.mubr.bf16.vlgmr.msra.gmra.mrb[0].mxu1 %v4406_v8  ;;  %2536 = vmatpush1.bf16.msra.mxu0 %v3679_v9  ;;  %v3763_v9 = vld [vmem:[%s4317_s7 + $0x5c0] ss:$16 sps:$4 sm:$0xff]  }
  0x7f   : > { %2577 = vmatpush1.bf16.msra.mxu1 %v3682_v10  ;;  %2537 = vmatprep.subr.bf16.mxu0 %v3687_v11  ;;  %v3766_v10 = vld [vmem:[%s4317_s7 + $0x7c0] ss:$16 sps:$4 sm:$0xff]   ;;  %v3771_v11 = vld [vmem:[%s4317_s7 + $0x5e4] ss:$16 sps:$4 sm:$0xff]  }
  0x80   : > { %2578 = vmatprep.subr.bf16.mxu1 %v3690_v12  ;;  %2567 = vmatprep.mubr.bf16.mxu0 %v4444_v37  ;;  %v3774_v12 = vld [vmem:[%s4317_s7 + $0x7e4] ss:$16 sps:$4 sm:$0xff]  }
  0x81   : > { %2608 = vmatprep.mubr.bf16.mxu1 %v4448_v38 }
  0x82   : > { %2538 = vmatpush1.bf16.msra.mxu0 %v3685_v13  ;;  %v3769_v13 = vld [vmem:[%s4317_s7 + $0x5e0] ss:$16 sps:$4 sm:$0xff]  }
  0x83   : > { %2579 = vmatpush1.bf16.msra.mxu1 %v3688_v14  ;;  %2539 = vmatprep.subr.bf16.mxu0 %v3693_v15  ;;  %v3772_v14 = vld [vmem:[%s4317_s7 + $0x7e0] ss:$16 sps:$4 sm:$0xff]   ;;  %v3781_v15 = vld [vmem:[%s4317_s7 + $0x804] ss:$16 sps:$4 sm:$0xff]  }
  0x84   : > { %2580 = vmatprep.subr.bf16.mxu1 %v3696_v16  ;;  %v3784_v16 = vld [vmem:[%s4317_s7 + $0xa04] ss:$16 sps:$4 sm:$0xff]  }
  0x86   : > { %2540 = vmatpush1.bf16.msra.mxu0 %v3691_v17  ;;  %v4492_v17 = vcombine.low %v4435_v33, %v4435_v33  ;;  %v3802_v33 = vld [vmem:[%s4317_s7 + $0xa64] ss:$16 sps:$4 sm:$0xff]  }
  0x87   : > { %2581 = vmatpush1.bf16.msra.mxu1 %v3694_v18  ;;  %2541 = vmatprep.subr.bf16.mxu0 %v3699_v19  ;;  %v4496_v18 = vcombine.low %v4438_v34, %v4438_v34  ;;  %v3779_v19 = vld [vmem:[%s4317_s7 + $0x800] ss:$16 sps:$4 sm:$0xff]  }
  0x88   : > { %2582 = vmatprep.subr.bf16.mxu1 %v3702_v20  ;;  %v3782_v20 = vld [vmem:[%s4317_s7 + $0xa00] ss:$16 sps:$4 sm:$0xff]  }
  0x89   : > { %v3797_v34 = vld [vmem:[%s4317_s7 + $0x860] ss:$16 sps:$4 sm:$0xff]  }
  0x8a   : > { %2542 = vmatpush1.bf16.msra.mxu0 %v3697_v21  ;;  %v3787_v21 = vld [vmem:[%s4317_s7 + $0x824] ss:$16 sps:$4 sm:$0xff]  }
  0x8b   : > { %2583 = vmatpush1.bf16.msra.mxu1 %v3700_v22  ;;  %2543 = vmatprep.subr.bf16.mxu0 %v3705_v23  ;;  %v3790_v22 = vld [vmem:[%s4317_s7 + $0xa24] ss:$16 sps:$4 sm:$0xff]  }
  0x8c   : > { %2584 = vmatprep.subr.bf16.mxu1 %v3708_v24  ;;  %v4503_v23 = vld [vmem:[%s4327_s6 + $0x20] sm:$0xff] }
  0x8d   : > { %v3785_v24 = vld [vmem:[%s4317_s7 + $0x820] ss:$16 sps:$4 sm:$0xff]  }
  0x8e   : > { %2544 = vmatpush1.bf16.msra.mxu0 %v3703_v25  ;;  %v4510_v25 = vcombine.high %v4503_v23, %v4503_v23 }
  0x8f   : > { %2585 = vmatpush1.bf16.msra.mxu1 %v3706_v26  ;;  %2545 = vmatprep.subr.bf16.mxu0 %v3711_v27  ;;  %v3788_v26 = vld [vmem:[%s4317_s7 + $0xa20] ss:$16 sps:$4 sm:$0xff]   ;;  %v3793_v27 = vld [vmem:[%s4317_s7 + $0x844] ss:$16 sps:$4 sm:$0xff]  }
  0x90   : > { %2586 = vmatprep.subr.bf16.mxu1 %v3714_v28  ;;  %v3796_v28 = vld [vmem:[%s4317_s7 + $0xa44] ss:$16 sps:$4 sm:$0xff]  }
  0x92   : > { %2546 = vmatpush1.bf16.msra.mxu0 %v3709_v29  ;;  %v4205_v29 = vmov 0  }
  0x93   : > { %2587 = vmatpush1.bf16.msra.mxu1 %v3712_v30  ;;  %2547 = vmatprep.subr.bf16.mxu0 %v3717_v31  ;;  %v3791_v30 = vld [vmem:[%s4317_s7 + $0x840] ss:$16 sps:$4 sm:$0xff]  }
  0x94   : > { %2588 = vmatprep.subr.bf16.mxu1 %v3720_v32  ;;  %v3794_v31 = vld [vmem:[%s4317_s7 + $0xa40] ss:$16 sps:$4 sm:$0xff]   ;;  %v3799_v32 = vld [vmem:[%s4317_s7 + $0x864] ss:$16 sps:$4 sm:$0xff]  }
  0x96   : > { %2548 = vmatpush1.bf16.msra.mxu0 %v3715_v35  ;;  %v3800_v35 = vld [vmem:[%s4317_s7 + $0xa60] ss:$16 sps:$4 sm:$0xff]  }
  0x97   : > { %2589 = vmatpush1.bf16.msra.mxu1 %v3718_v36  ;;  %2549 = vmatprep.subr.bf16.mxu0 %v3723_v39  ;;  %v3805_v36 = vld [vmem:[%s4317_s7 + $0x884] ss:$16 sps:$4 sm:$0xff]  }
  0x98   : > { %2590 = vmatprep.subr.bf16.mxu1 %v3726_v40  ;;  %v3808_v39 = vld [vmem:[%s4317_s7 + $0xa84] ss:$16 sps:$4 sm:$0xff]   ;;  %v3803_v40 = vld [vmem:[%s4317_s7 + $0x880] ss:$16 sps:$4 sm:$0xff]  }
  0x9a   : > { %2550 = vmatpush1.bf16.msra.mxu0 %v3721_v41  ;;  %v3806_v41 = vld [vmem:[%s4317_s7 + $0xa80] ss:$16 sps:$4 sm:$0xff]  }
  0x9b   : > { %2591 = vmatpush1.bf16.msra.mxu1 %v3724_v42  ;;  %2551 = vmatprep.subr.bf16.mxu0 %v3729_v43  ;;  %v3811_v42 = vld [vmem:[%s4317_s7 + $0x8a4] ss:$16 sps:$4 sm:$0xff]  }
  0x9c   : > { %2592 = vmatprep.subr.bf16.mxu1 %v3732_v44  ;;  %v3814_v43 = vld [vmem:[%s4317_s7 + $0xaa4] ss:$16 sps:$4 sm:$0xff]   ;;  %v3809_v44 = vld [vmem:[%s4317_s7 + $0x8a0] ss:$16 sps:$4 sm:$0xff]  }
  0x9e   : > { %2552 = vmatpush1.bf16.msra.mxu0 %v3727_v45  ;;  %v3812_v45 = vld [vmem:[%s4317_s7 + $0xaa0] ss:$16 sps:$4 sm:$0xff]  }
  0x9f   : > { %2593 = vmatpush1.bf16.msra.mxu1 %v3730_v46  ;;  %2553 = vmatprep.subr.bf16.mxu0 %v3735_v47  ;;  %v3817_v46 = vld [vmem:[%s4317_s7 + $0x8c4] ss:$16 sps:$4 sm:$0xff]  }
  0xa0   : > { %2594 = vmatprep.subr.bf16.mxu1 %v3738_v49  ;;  %v3820_v47 = vld [vmem:[%s4317_s7 + $0xac4] ss:$16 sps:$4 sm:$0xff]   ;;  %v3815_v49 = vld [vmem:[%s4317_s7 + $0x8c0] ss:$16 sps:$4 sm:$0xff]  }
  0xa2   : > { %2554 = vmatpush1.bf16.msra.mxu0 %v3733_v50  ;;  %v3818_v50 = vld [vmem:[%s4317_s7 + $0xac0] ss:$16 sps:$4 sm:$0xff]  }
  0xa3   : > { %2595 = vmatpush1.bf16.msra.mxu1 %v3736_v51  ;;  %2555 = vmatprep.subr.bf16.mxu0 %v3741_v53  ;;  %v3823_v51 = vld [vmem:[%s4317_s7 + $0x8e4] ss:$16 sps:$4 sm:$0xff]  }
  0xa4   : > { %2596 = vmatprep.subr.bf16.mxu1 %v3744_v54  ;;  %v3826_v53 = vld [vmem:[%s4317_s7 + $0xae4] ss:$16 sps:$4 sm:$0xff]   ;;  %v3821_v54 = vld [vmem:[%s4317_s7 + $0x8e0] ss:$16 sps:$4 sm:$0xff]  }
  0xa6   : > { %2556 = vmatpush1.bf16.msra.mxu0 %v3739_v55  ;;  %v3824_v55 = vld [vmem:[%s4317_s7 + $0xae0] ss:$16 sps:$4 sm:$0xff]  }
  0xa7   : > { %2597 = vmatpush1.bf16.msra.mxu1 %v3742_v56  ;;  %2557 = vmatprep.subr.bf16.mxu0 %v3747_v57  ;;  %v3829_v56 = vld [vmem:[%s4317_s7 + $0x904] ss:$16 sps:$4 sm:$0xff]   ;;  %v3833_v57 = vld [vmem:[%s4317_s7 + $0xc] ss:$16 sps:$4 sm:$0xff]  }
  0xa8   : > { %2598 = vmatprep.subr.bf16.mxu1 %v3750_v58  ;;  %v3827_v58 = vld [vmem:[%s4317_s7 + $0x900] ss:$16 sps:$4 sm:$0xff]  }
  0xaa   : > { %2558 = vmatpush1.bf16.msra.mxu0 %v3745_v59  ;;  %v3830_v59 = vld [vmem:[%s4327_s6 + $0x28] ss:$0 sps:$4 sm:$0xff]  }
  0xab   : > { %2599 = vmatpush1.bf16.msra.mxu1 %v3748_v60  ;;  %2559 = vmatprep.subr.bf16.mxu0 %v3753_v61  ;;  %v3831_v60 = vld [vmem:[%s4317_s7 + $0x8] ss:$16 sps:$4 sm:$0xff]   ;;  %v3836_v61 = vld [vmem:[%s4317_s7 + $0x924] ss:$16 sps:$4 sm:$0xff]  }
  0xac   : > { %2600 = vmatprep.subr.bf16.mxu1 %v3756_v62  ;;  %v3839_v62 = vld [vmem:[%s4317_s7 + $0x2c] ss:$16 sps:$4 sm:$0xff]  }
  0xae   : > { %2560 = vmatpush1.bf16.msra.mxu0 %v3751_v63  ;;  %v3834_v63 = vld [vmem:[%s4317_s7 + $0x920] ss:$16 sps:$4 sm:$0xff]  }
  0xaf   : > { %2601 = vmatpush1.bf16.msra.mxu1 %v3754_v0  ;;  %2561 = vmatprep.subr.bf16.mxu0 %v3759_v1  ;;  %v3837_v0 = vld [vmem:[%s4317_s7 + $0x28] ss:$16 sps:$4 sm:$0xff]   ;;  %v3842_v1 = vld [vmem:[%s4317_s7 + $0x944] ss:$16 sps:$4 sm:$0xff]  }
  0xb0   : > { %2602 = vmatprep.subr.bf16.mxu1 %v3762_v2  ;;  %v3845_v2 = vld [vmem:[%s4317_s7 + $0x4c] ss:$16 sps:$4 sm:$0xff]  }
  0xb2   : > { %2562 = vmatpush1.bf16.msra.mxu0 %v3757_v3  ;;  %v3840_v3 = vld [vmem:[%s4317_s7 + $0x940] ss:$16 sps:$4 sm:$0xff]  }
  0xb3   : > { %2603 = vmatpush1.bf16.msra.mxu1 %v3760_v4  ;;  %2563 = vmatprep.subr.bf16.mxu0 %v3765_v5  ;;  %v3843_v4 = vld [vmem:[%s4317_s7 + $0x48] ss:$16 sps:$4 sm:$0xff]   ;;  %v3848_v5 = vld [vmem:[%s4317_s7 + $0x964] ss:$16 sps:$4 sm:$0xff]  }
  0xb4   : > { %2604 = vmatprep.subr.bf16.mxu1 %v3768_v6  ;;  %v3851_v6 = vld [vmem:[%s4317_s7 + $0x6c] ss:$16 sps:$4 sm:$0xff]  }
  0xb6   : > { %2564 = vmatpush1.bf16.msra.mxu0 %v3763_v9  ;;  %v3846_v9 = vld [vmem:[%s4317_s7 + $0x960] ss:$16 sps:$4 sm:$0xff]  }
  0xb7   : > { %2605 = vmatpush1.bf16.msra.mxu1 %v3766_v10  ;;  %2565 = vmatprep.subr.bf16.mxu0 %v3771_v11  ;;  %v3849_v10 = vld [vmem:[%s4317_s7 + $0x68] ss:$16 sps:$4 sm:$0xff]   ;;  %v3857_v11 = vld [vmem:[%s4317_s7 + $0x8c] ss:$16 sps:$4 sm:$0xff]  }
  0xb8   : > { %2606 = vmatprep.subr.bf16.mxu1 %v3774_v12  ;;  %v3852_v12 = vld [vmem:[%s4317_s7 + $0x980] ss:$16 sps:$4 sm:$0xff]  }
  0xba   : > { %2566 = vmatpush1.bf16.msra.mxu0 %v3769_v13  ;;  %v3855_v13 = vld [vmem:[%s4317_s7 + $0x88] ss:$16 sps:$4 sm:$0xff]  }
  0xbb   : > { %2607 = vmatpush1.bf16.msra.mxu1 %v3772_v14  ;;  %2617 = vmatprep.subr.bf16.mxu0 %v3781_v15  ;;  %v3860_v14 = vld [vmem:[%s4317_s7 + $0x9a4] ss:$16 sps:$4 sm:$0xff]   ;;  %v3863_v15 = vld [vmem:[%s4317_s7 + $0xac] ss:$16 sps:$4 sm:$0xff]  }
  0xbc   : > { %2658 = vmatprep.subr.bf16.mxu1 %v3784_v16  ;;  %v3858_v16 = vld [vmem:[%s4317_s7 + $0x9a0] ss:$16 sps:$4 sm:$0xff]  }
  0xbd   : > { %2568 = vmatmul.mubr.bf16.vlgmr.msra.gmra.mrb[4].mxu0 %v4492_v17 }
  0xbe   : > { %2609 = vmatmul.mubr.bf16.vlgmr.msra.gmra.mrb[4].mxu1 %v4496_v18  ;;  %2618 = vmatpush1.bf16.msra.mxu0 %v3779_v19  ;;  %v3861_v19 = vld [vmem:[%s4317_s7 + $0xa8] ss:$16 sps:$4 sm:$0xff]  }
  0xbf   : > { %2659 = vmatpush1.bf16.msra.mxu1 %v3782_v20  ;;  %2619 = vmatprep.subr.bf16.mxu0 %v3787_v21  ;;  %v3866_v20 = vld [vmem:[%s4317_s7 + $0x9c4] ss:$16 sps:$4 sm:$0xff]   ;;  %v3869_v21 = vld [vmem:[%s4317_s7 + $0xcc] ss:$16 sps:$4 sm:$0xff]  }
  0xc0   : > { %2660 = vmatprep.subr.bf16.mxu1 %v3790_v22  ;;  %2690 = vmatprep.mubr.bf16.mxu1 %v4205_v29  ;;  %v3864_v22 = vld [vmem:[%s4317_s7 + $0x9c0] ss:$16 sps:$4 sm:$0xff]  }
  0xc1   : > { %2649 = vmatprep.mubr.bf16.mxu0 %v4510_v25 }
  0xc2   : > { %2620 = vmatpush1.bf16.msra.mxu0 %v3785_v24  ;;  %v3867_v24 = vld [vmem:[%s4317_s7 + $0xc8] ss:$16 sps:$4 sm:$0xff]  }
  0xc3   : > { %2661 = vmatpush1.bf16.msra.mxu1 %v3788_v26  ;;  %2621 = vmatprep.subr.bf16.mxu0 %v3793_v27  ;;  %v3872_v26 = vld [vmem:[%s4317_s7 + $0x9e4] ss:$16 sps:$4 sm:$0xff]   ;;  %v3875_v27 = vld [vmem:[%s4317_s7 + $0xec] ss:$16 sps:$4 sm:$0xff]  }
  0xc4   : > { %2662 = vmatprep.subr.bf16.mxu1 %v3796_v28  ;;  %v3870_v28 = vld [vmem:[%s4317_s7 + $0x9e0] ss:$16 sps:$4 sm:$0xff]  }
  0xc6   : > { %2622 = vmatpush1.bf16.msra.mxu0 %v3791_v30  ;;  %v3873_v30 = vld [vmem:[%s4317_s7 + $0xe8] ss:$16 sps:$4 sm:$0xff]  }
  0xc7   : > { %2663 = vmatpush1.bf16.msra.mxu1 %v3794_v31  ;;  %2623 = vmatprep.subr.bf16.mxu0 %v3799_v32  ;;  %v3880_v31 = vld [vmem:[%s4317_s7 + $0x10c] ss:$16 sps:$4 sm:$0xff]  }
  0xc8   : > { %2664 = vmatprep.subr.bf16.mxu1 %v3802_v33  ;;  %v3883_v32 = vld [vmem:[%s4317_s7 + $0x20c] ss:$16 sps:$4 sm:$0xff]   ;;  %v4577_v33 = vcombine.low %v4503_v23, %v4503_v23  ;;  %v3887_v23 = vld [vmem:[%s4317_s7 + $0x228] ss:$16 sps:$4 sm:$0xff]  }
  0xca   : > { %2624 = vmatpush1.bf16.msra.mxu0 %v3797_v34  ;;  %v3878_v34 = vld [vmem:[%s4317_s7 + $0x108] ss:$16 sps:$4 sm:$0xff]  }
  0xcb   : > { %2665 = vmatpush1.bf16.msra.mxu1 %v3800_v35  ;;  %2625 = vmatprep.subr.bf16.mxu0 %v3805_v36  ;;  %v3881_v35 = vld [vmem:[%s4317_s7 + $0x208] ss:$16 sps:$4 sm:$0xff]   ;;  %v3886_v36 = vld [vmem:[%s4317_s7 + $0x12c] ss:$16 sps:$4 sm:$0xff]  }
  0xcc   : > { %2666 = vmatprep.subr.bf16.mxu1 %v3808_v39  ;;  %v3889_v39 = vld [vmem:[%s4317_s7 + $0x22c] ss:$16 sps:$4 sm:$0xff]  }
  0xce   : > { %2626 = vmatpush1.bf16.msra.mxu0 %v3803_v40  ;;  %v3884_v40 = vld [vmem:[%s4317_s7 + $0x128] ss:$16 sps:$4 sm:$0xff]  }
  0xcf   : > { %2667 = vmatpush1.bf16.msra.mxu1 %v3806_v41  ;;  %2627 = vmatprep.subr.bf16.mxu0 %v3811_v42  ;;  %v3892_v41 = vld [vmem:[%s4317_s7 + $0x14c] ss:$16 sps:$4 sm:$0xff]  }
  0xd0   : > { %2668 = vmatprep.subr.bf16.mxu1 %v3814_v43  ;;  %v3895_v42 = vld [vmem:[%s4317_s7 + $0x24c] ss:$16 sps:$4 sm:$0xff]   ;;  %v3890_v43 = vld [vmem:[%s4317_s7 + $0x148] ss:$16 sps:$4 sm:$0xff]  }
  0xd2   : > { %2628 = vmatpush1.bf16.msra.mxu0 %v3809_v44  ;;  %v3893_v44 = vld [vmem:[%s4317_s7 + $0x248] ss:$16 sps:$4 sm:$0xff]  }
  0xd3   : > { %2669 = vmatpush1.bf16.msra.mxu1 %v3812_v45  ;;  %2629 = vmatprep.subr.bf16.mxu0 %v3817_v46  ;;  %v3898_v45 = vld [vmem:[%s4317_s7 + $0x16c] ss:$16 sps:$4 sm:$0xff]  }
  0xd4   : > { %2670 = vmatprep.subr.bf16.mxu1 %v3820_v47  ;;  %v3901_v46 = vld [vmem:[%s4317_s7 + $0x26c] ss:$16 sps:$4 sm:$0xff]   ;;  %v3896_v47 = vld [vmem:[%s4317_s7 + $0x168] ss:$16 sps:$4 sm:$0xff]  }
  0xd6   : > { %2630 = vmatpush1.bf16.msra.mxu0 %v3815_v49  ;;  %v3899_v49 = vld [vmem:[%s4317_s7 + $0x268] ss:$16 sps:$4 sm:$0xff]  }
  0xd7   : > { %2671 = vmatpush1.bf16.msra.mxu1 %v3818_v50  ;;  %2631 = vmatprep.subr.bf16.mxu0 %v3823_v51  ;;  %v3907_v50 = vld [vmem:[%s4317_s7 + $0x28c] ss:$16 sps:$4 sm:$0xff]   ;;  %v3902_v51 = vld [vmem:[%s4317_s7 + $0x188] ss:$16 sps:$4 sm:$0xff]  }
  0xd8   : > { %2672 = vmatprep.subr.bf16.mxu1 %v3826_v53  ;;  %v3905_v53 = vld [vmem:[%s4317_s7 + $0x288] ss:$16 sps:$4 sm:$0xff]  }
  0xda   : > { %2632 = vmatpush1.bf16.msra.mxu0 %v3821_v54  ;;  %v3910_v54 = vld [vmem:[%s4317_s7 + $0x1ac] ss:$16 sps:$4 sm:$0xff]  }
  0xdb   : > { %2673 = vmatpush1.bf16.msra.mxu1 %v3824_v55  ;;  %2633 = vmatprep.subr.bf16.mxu0 %v3829_v56  ;;  %v3913_v55 = vld [vmem:[%s4317_s7 + $0x2ac] ss:$16 sps:$4 sm:$0xff]   ;;  %v3908_v56 = vld [vmem:[%s4317_s7 + $0x1a8] ss:$16 sps:$4 sm:$0xff]  }
  0xdc   : > { %2699 = vmatprep.subr.bf16.mxu1 %v3833_v57  ;;  %v3911_v57 = vld [vmem:[%s4317_s7 + $0x2a8] ss:$16 sps:$4 sm:$0xff]  }
  0xde   : > { %2691 = vmatmul.mubr.bf16.vlgmr.msra.gmra.mrb[8].mxu1 %v3830_v59  ;;  %2634 = vmatpush1.bf16.msra.mxu0 %v3827_v58  ;;  %v3916_v58 = vld [vmem:[%s4317_s7 + $0x1cc] ss:$16 sps:$4 sm:$0xff]  }
  0xdf   : > { %2700 = vmatpush1.bf16.msra.mxu1 %v3831_v60  ;;  %2635 = vmatprep.subr.bf16.mxu0 %v3836_v61  ;;  %v3919_v59 = vld [vmem:[%s4317_s7 + $0x2cc] ss:$16 sps:$4 sm:$0xff]   ;;  %v3914_v60 = vld [vmem:[%s4317_s7 + $0x1c8] ss:$16 sps:$4 sm:$0xff]  }
  0xe0   : > { %2701 = vmatprep.subr.bf16.mxu1 %v3839_v62  ;;  %2731 = vmatprep.mubr.bf16.mxu1 %v4377_v48  ;;  %v3854_v48 = vld [vmem:[%s4317_s7 + $0x984] ss:$16 sps:$4 sm:$0xff]   ;;  %v3917_v61 = vld [vmem:[%s4317_s7 + $0x2c8] ss:$16 sps:$4 sm:$0xff]   ;;  %v3922_v62 = vld [vmem:[%s4317_s7 + $0x1ec] ss:$16 sps:$4 sm:$0xff]  }
  0xe2   : > { %2636 = vmatpush1.bf16.msra.mxu0 %v3834_v63  ;;  %v3925_v63 = vld [vmem:[%s4317_s7 + $0x2ec] ss:$16 sps:$4 sm:$0xff]  }
  0xe3   : > { %2702 = vmatpush1.bf16.msra.mxu1 %v3837_v0  ;;  %2637 = vmatprep.subr.bf16.mxu0 %v3842_v1  ;;  %v3920_v0 = vld [vmem:[%s4317_s7 + $0x1e8] ss:$16 sps:$4 sm:$0xff]  }
  0xe4   : > { %2703 = vmatprep.subr.bf16.mxu1 %v3845_v2  ;;  %v3923_v1 = vld [vmem:[%s4317_s7 + $0x2e8] ss:$16 sps:$4 sm:$0xff]   ;;  %v3928_v2 = vld [vmem:[%s4317_s7 + $0x30c] ss:$16 sps:$4 sm:$0xff]  }
  0xe6   : > { %2638 = vmatpush1.bf16.msra.mxu0 %v3840_v3  ;;  %v3931_v3 = vld [vmem:[%s4317_s7 + $0x40c] ss:$16 sps:$4 sm:$0xff]  }
  0xe7   : > { %2704 = vmatpush1.bf16.msra.mxu1 %v3843_v4  ;;  %2639 = vmatprep.subr.bf16.mxu0 %v3848_v5  ;;  %v3926_v4 = vld [vmem:[%s4317_s7 + $0x308] ss:$16 sps:$4 sm:$0xff]  }
  0xe8   : > { %2705 = vmatprep.subr.bf16.mxu1 %v3851_v6  ;;  %v3929_v5 = vld [vmem:[%s4317_s7 + $0x408] ss:$16 sps:$4 sm:$0xff]   ;;  %v3934_v6 = vld [vmem:[%s4317_s7 + $0x32c] ss:$16 sps:$4 sm:$0xff]  }
  0xea   : > { %2640 = vmatpush1.bf16.msra.mxu0 %v3846_v9  ;;  %v3937_v9 = vld [vmem:[%s4317_s7 + $0x42c] ss:$16 sps:$4 sm:$0xff]  }
  0xeb   : > { %2706 = vmatpush1.bf16.msra.mxu1 %v3849_v10  ;;  %2641 = vmatprep.subr.bf16.mxu0 %v3854_v48  ;;  %v3932_v10 = vld [vmem:[%s4317_s7 + $0x328] ss:$16 sps:$4 sm:$0xff]  }
  0xec   : > { %2707 = vmatprep.subr.bf16.mxu1 %v3857_v11  ;;  %v3935_v48 = vld [vmem:[%s4317_s7 + $0x428] ss:$16 sps:$4 sm:$0xff]   ;;  %v3940_v11 = vld [vmem:[%s4317_s7 + $0x34c] ss:$16 sps:$4 sm:$0xff]  }
  0xee   : > { %2642 = vmatpush1.bf16.msra.mxu0 %v3852_v12  ;;  %v3943_v12 = vld [vmem:[%s4317_s7 + $0x44c] ss:$16 sps:$4 sm:$0xff]  }
  0xef   : > { %2708 = vmatpush1.bf16.msra.mxu1 %v3855_v13  ;;  %2643 = vmatprep.subr.bf16.mxu0 %v3860_v14  ;;  %v3938_v13 = vld [vmem:[%s4317_s7 + $0x348] ss:$16 sps:$4 sm:$0xff]   ;;  %v3946_v14 = vld [vmem:[%s4317_s7 + $0x36c] ss:$16 sps:$4 sm:$0xff]  }
  0xf0   : > { %2709 = vmatprep.subr.bf16.mxu1 %v3863_v15  ;;  %v3949_v15 = vld [vmem:[%s4317_s7 + $0x46c] ss:$16 sps:$4 sm:$0xff]  }
  0xf2   : > { %2644 = vmatpush1.bf16.msra.mxu0 %v3858_v16  ;;  %v3944_v16 = vld [vmem:[%s4317_s7 + $0x368] ss:$16 sps:$4 sm:$0xff]  }
  0xf3   : > { %2710 = vmatpush1.bf16.msra.mxu1 %v3861_v19  ;;  %2645 = vmatprep.subr.bf16.mxu0 %v3866_v20  ;;  %v3947_v19 = vld [vmem:[%s4317_s7 + $0x468] ss:$16 sps:$4 sm:$0xff]   ;;  %v3955_v20 = vld [vmem:[%s4317_s7 + $0x48c] ss:$16 sps:$4 sm:$0xff]  }
  0xf4   : > { %2711 = vmatprep.subr.bf16.mxu1 %v3869_v21  ;;  %v3950_v21 = vld [vmem:[%s4317_s7 + $0x388] ss:$16 sps:$4 sm:$0xff]  }
  0xf6   : > { %2646 = vmatpush1.bf16.msra.mxu0 %v3864_v22  ;;  %v3953_v22 = vld [vmem:[%s4317_s7 + $0x488] ss:$16 sps:$4 sm:$0xff]  }
  0xf7   : > { %2712 = vmatpush1.bf16.msra.mxu1 %v3867_v24  ;;  %2647 = vmatprep.subr.bf16.mxu0 %v3872_v26  ;;  %v3958_v24 = vld [vmem:[%s4317_s7 + $0x3ac] ss:$16 sps:$4 sm:$0xff]  }
  0xf8   : > { %2713 = vmatprep.subr.bf16.mxu1 %v3875_v27  ;;  %v3961_v26 = vld [vmem:[%s4317_s7 + $0x4ac] ss:$16 sps:$4 sm:$0xff]   ;;  %v3956_v27 = vld [vmem:[%s4317_s7 + $0x3a8] ss:$16 sps:$4 sm:$0xff]  }
  0xfa   : > { %2648 = vmatpush1.bf16.msra.mxu0 %v3870_v28  ;;  %v3959_v28 = vld [vmem:[%s4317_s7 + $0x4a8] ss:$16 sps:$4 sm:$0xff]  }
  0xfb   : > { %2714 = vmatpush1.bf16.msra.mxu1 %v3873_v30  ;;  %2740 = vmatprep.subr.bf16.mxu0 %v3883_v32  ;;  %v3964_v30 = vld [vmem:[%s4317_s7 + $0x3cc] ss:$16 sps:$4 sm:$0xff]   ;;  %v3962_v32 = vld [vmem:[%s4317_s7 + $0x3c8] ss:$16 sps:$4 sm:$0xff]  }
  0xfc   : > { %2715 = vmatprep.subr.bf16.mxu1 %v3880_v31  ;;  %v3967_v31 = vld [vmem:[%s4317_s7 + $0x4cc] ss:$16 sps:$4 sm:$0xff]  }
  0xfd   : > { %2650 = vmatmul.mubr.bf16.vlgmr.msra.gmra.mrb[8].mxu0 %v4577_v33 }
  0xfe   : > { %2741 = vmatpush1.bf16.msra.mxu0 %v3881_v35  ;;  %2772 = vmatprep.mubr.bf16.mxu0 %v4382_v52  ;;  %v3904_v52 = vld [vmem:[%s4317_s7 + $0x18c] ss:$16 sps:$4 sm:$0xff]  }
  0xff   : > { %2716 = vmatpush1.bf16.msra.mxu1 %v3878_v34  ;;  %2742 = vmatprep.subr.bf16.mxu0 %v3889_v39  ;;  %v3965_v34 = vld [vmem:[%s4317_s7 + $0x4c8] ss:$16 sps:$4 sm:$0xff]   ;;  %v3970_v35 = vld [vmem:[%s4317_s7 + $0x3ec] ss:$16 sps:$4 sm:$0xff]  }
 0x100   : > { %2717 = vmatprep.subr.bf16.mxu1 %v3886_v36  ;;  %v3973_v36 = vld [vmem:[%s4317_s7 + $0x4ec] ss:$16 sps:$4 sm:$0xff]   ;;  %v3968_v39 = vld [vmem:[%s4317_s7 + $0x3e8] ss:$16 sps:$4 sm:$0xff]  }
 0x102   : > { %2743 = vmatpush1.bf16.msra.mxu0 %v3887_v23  ;;  %v3976_v23 = vld [vmem:[%s4317_s7 + $0x50c] ss:$16 sps:$4 sm:$0xff]  }
 0x103   : > { %2718 = vmatpush1.bf16.msra.mxu1 %v3884_v40  ;;  %2744 = vmatprep.subr.bf16.mxu0 %v3895_v42  ;;  %v3971_v40 = vld [vmem:[%s4317_s7 + $0x4e8] ss:$16 sps:$4 sm:$0xff]  }
 0x104   : > { %2719 = vmatprep.subr.bf16.mxu1 %v3892_v41  ;;  %v3979_v41 = vld [vmem:[%s4317_s7 + $0x60c] ss:$16 sps:$4 sm:$0xff]   ;;  %v3974_v42 = vld [vmem:[%s4317_s7 + $0x508] ss:$16 sps:$4 sm:$0xff]  }
 0x106   : > { %2745 = vmatpush1.bf16.msra.mxu0 %v3893_v44  ;;  %v3982_v44 = vld [vmem:[%s4317_s7 + $0x52c] ss:$16 sps:$4 sm:$0xff]  }
 0x107   : > { %2720 = vmatpush1.bf16.msra.mxu1 %v3890_v43  ;;  %2746 = vmatprep.subr.bf16.mxu0 %v3901_v46  ;;  %v3977_v43 = vld [vmem:[%s4317_s7 + $0x608] ss:$16 sps:$4 sm:$0xff]  }
 0x108   : > { %2721 = vmatprep.subr.bf16.mxu1 %v3898_v45  ;;  %v3985_v45 = vld [vmem:[%s4317_s7 + $0x62c] ss:$16 sps:$4 sm:$0xff]   ;;  %v3980_v46 = vld [vmem:[%s4317_s7 + $0x528] ss:$16 sps:$4 sm:$0xff]  }
 0x10a   : > { %2747 = vmatpush1.bf16.msra.mxu0 %v3899_v49  ;;  %v3988_v49 = vld [vmem:[%s4317_s7 + $0x54c] ss:$16 sps:$4 sm:$0xff]  }
 0x10b   : > { %2722 = vmatpush1.bf16.msra.mxu1 %v3896_v47  ;;  %2748 = vmatprep.subr.bf16.mxu0 %v3907_v50  ;;  %v3983_v47 = vld [vmem:[%s4317_s7 + $0x628] ss:$16 sps:$4 sm:$0xff]  }
 0x10c   : > { %2723 = vmatprep.subr.bf16.mxu1 %v3904_v52  ;;  %v3991_v52 = vld [vmem:[%s4317_s7 + $0x64c] ss:$16 sps:$4 sm:$0xff]   ;;  %v3986_v50 = vld [vmem:[%s4317_s7 + $0x548] ss:$16 sps:$4 sm:$0xff]  }
 0x10e   : > { %2749 = vmatpush1.bf16.msra.mxu0 %v3905_v53  ;;  %v3997_v53 = vld [vmem:[%s4317_s7 + $0x66c] ss:$16 sps:$4 sm:$0xff]  }
 0x10f   : > { %2724 = vmatpush1.bf16.msra.mxu1 %v3902_v51  ;;  %2750 = vmatprep.subr.bf16.mxu0 %v3913_v55  ;;  %v3994_v51 = vld [vmem:[%s4317_s7 + $0x56c] ss:$16 sps:$4 sm:$0xff]   ;;  %v3995_v55 = vld [vmem:[%s4317_s7 + $0x668] ss:$16 sps:$4 sm:$0xff]  }
 0x110   : > { %2725 = vmatprep.subr.bf16.mxu1 %v3910_v54  ;;  %v3992_v54 = vld [vmem:[%s4317_s7 + $0x568] ss:$16 sps:$4 sm:$0xff]  }
 0x112   : > { %2751 = vmatpush1.bf16.msra.mxu0 %v3911_v57  ;;  %v3998_v57 = vld [vmem:[%s4317_s7 + $0x588] ss:$16 sps:$4 sm:$0xff]  }
 0x113   : > { %2726 = vmatpush1.bf16.msra.mxu1 %v3908_v56  ;;  %2752 = vmatprep.subr.bf16.mxu0 %v3919_v59  ;;  %v4003_v56 = vld [vmem:[%s4317_s7 + $0x68c] ss:$16 sps:$4 sm:$0xff]  }
 0x114   : > { %2727 = vmatprep.subr.bf16.mxu1 %v3916_v58  ;;  %v4001_v58 = vld [vmem:[%s4317_s7 + $0x688] ss:$16 sps:$4 sm:$0xff]   ;;  %v4006_v59 = vld [vmem:[%s4317_s7 + $0x5ac] ss:$16 sps:$4 sm:$0xff]  }
 0x116   : > { %2753 = vmatpush1.bf16.msra.mxu0 %v3917_v61  ;;  %v4004_v61 = vld [vmem:[%s4317_s7 + $0x5a8] ss:$16 sps:$4 sm:$0xff]  }
 0x117   : > { %2728 = vmatpush1.bf16.msra.mxu1 %v3914_v60  ;;  %2754 = vmatprep.subr.bf16.mxu0 %v3925_v63  ;;  %v4009_v60 = vld [vmem:[%s4317_s7 + $0x6ac] ss:$16 sps:$4 sm:$0xff]  }
 0x118   : > { %2729 = vmatprep.subr.bf16.mxu1 %v3922_v62  ;;  %v4007_v62 = vld [vmem:[%s4317_s7 + $0x6a8] ss:$16 sps:$4 sm:$0xff]   ;;  %v4012_v63 = vld [vmem:[%s4317_s7 + $0x5cc] ss:$16 sps:$4 sm:$0xff]  }
 0x11a   : > { %2755 = vmatpush1.bf16.msra.mxu0 %v3923_v1 }
 0x11b   : > { %2730 = vmatpush1.bf16.msra.mxu1 %v3920_v0  ;;  %2756 = vmatprep.subr.bf16.mxu0 %v3928_v2  ;;  %v4015_v0 = vld [vmem:[%s4317_s7 + $0x6cc] ss:$16 sps:$4 sm:$0xff]  }
 0x11c   : > { %2781 = vmatprep.subr.bf16.mxu1 %v3931_v3 }
 0x11e   : > { %2732 = vmatmul.mubr.bf16.vlgmr.msra.gmra.mrb[12].mxu1 %v4404_v7  ;;  %2757 = vmatpush1.bf16.msra.mxu0 %v3926_v4  ;;  %v3941_v7 = vld [vmem:[%s4317_s7 + $0x448] ss:$16 sps:$4 sm:$0xff]  }
 0x11f   : > { %2782 = vmatpush1.bf16.msra.mxu1 %v3929_v5  ;;  %2758 = vmatprep.subr.bf16.mxu0 %v3934_v6 }
 0x120   : > { %2783 = vmatprep.subr.bf16.mxu1 %v3937_v9  ;;  %2813 = vmatprep.mubr.bf16.mxu1 %v4444_v37  ;;  %v3952_v37 = vld [vmem:[%s4317_s7 + $0x38c] ss:$16 sps:$4 sm:$0xff]  }
 0x122   : > { %2759 = vmatpush1.bf16.msra.mxu0 %v3932_v10 }
 0x123   : > { %2784 = vmatpush1.bf16.msra.mxu1 %v3935_v48  ;;  %2760 = vmatprep.subr.bf16.mxu0 %v3940_v11  ;;  %v4010_v48 = vld [vmem:[%s4317_s7 + $0x5c8] ss:$16 sps:$4 sm:$0xff]  }
 0x124   : > { %2785 = vmatprep.subr.bf16.mxu1 %v3943_v12  ;;  %v4013_v11 = vld [vmem:[%s4317_s7 + $0x6c8] ss:$16 sps:$4 sm:$0xff]  }
 0x126   : > { %2761 = vmatpush1.bf16.msra.mxu0 %v3938_v13 }
 0x127   : > { %2786 = vmatpush1.bf16.msra.mxu1 %v3941_v7  ;;  %2762 = vmatprep.subr.bf16.mxu0 %v3946_v14  ;;  %v4018_v7 = vld [vmem:[%s4317_s7 + $0x5ec] ss:$16 sps:$4 sm:$0xff]  }
 0x128   : > { %2787 = vmatprep.subr.bf16.mxu1 %v3949_v15  ;;  %v4021_v14 = vld [vmem:[%s4317_s7 + $0x6ec] ss:$16 sps:$4 sm:$0xff]   ;;  %v4016_v15 = vld [vmem:[%s4317_s7 + $0x5e8] ss:$16 sps:$4 sm:$0xff]  }
 0x12a   : > { %2763 = vmatpush1.bf16.msra.mxu0 %v3944_v16  ;;  %v4019_v16 = vld [vmem:[%s4317_s7 + $0x6e8] ss:$16 sps:$4 sm:$0xff]  }
 0x12b   : > { %2788 = vmatpush1.bf16.msra.mxu1 %v3947_v19  ;;  %2764 = vmatprep.subr.bf16.mxu0 %v3952_v37  ;;  %v4024_v19 = vld [vmem:[%s4317_s7 + $0x70c] ss:$16 sps:$4 sm:$0xff]  }
 0x12c   : > { %2789 = vmatprep.subr.bf16.mxu1 %v3955_v20  ;;  %v4027_v37 = vld [vmem:[%s4317_s7 + $0x80c] ss:$16 sps:$4 sm:$0xff]   ;;  %v4022_v20 = vld [vmem:[%s4317_s7 + $0x708] ss:$16 sps:$4 sm:$0xff]  }
 0x12e   : > { %2765 = vmatpush1.bf16.msra.mxu0 %v3950_v21  ;;  %v4025_v21 = vld [vmem:[%s4317_s7 + $0x808] ss:$16 sps:$4 sm:$0xff]  }
 0x12f   : > { %2790 = vmatpush1.bf16.msra.mxu1 %v3953_v22  ;;  %2766 = vmatprep.subr.bf16.mxu0 %v3958_v24  ;;  %v4030_v22 = vld [vmem:[%s4317_s7 + $0x72c] ss:$16 sps:$4 sm:$0xff]  }
 0x130   : > { %2791 = vmatprep.subr.bf16.mxu1 %v3961_v26  ;;  %v4033_v24 = vld [vmem:[%s4317_s7 + $0x82c] ss:$16 sps:$4 sm:$0xff]   ;;  %v4028_v26 = vld [vmem:[%s4317_s7 + $0x728] ss:$16 sps:$4 sm:$0xff]  }
 0x132   : > { %2767 = vmatpush1.bf16.msra.mxu0 %v3956_v27  ;;  %v4031_v27 = vld [vmem:[%s4317_s7 + $0x828] ss:$16 sps:$4 sm:$0xff]  }
 0x133   : > { %2792 = vmatpush1.bf16.msra.mxu1 %v3959_v28  ;;  %2768 = vmatprep.subr.bf16.mxu0 %v3964_v30  ;;  %v4036_v28 = vld [vmem:[%s4317_s7 + $0x74c] ss:$16 sps:$4 sm:$0xff]  }
 0x134   : > { %2793 = vmatprep.subr.bf16.mxu1 %v3967_v31  ;;  %v4039_v30 = vld [vmem:[%s4317_s7 + $0x84c] ss:$16 sps:$4 sm:$0xff]   ;;  %v4034_v31 = vld [vmem:[%s4317_s7 + $0x748] ss:$16 sps:$4 sm:$0xff]  }
 0x136   : > { %2769 = vmatpush1.bf16.msra.mxu0 %v3962_v32  ;;  %v4042_v32 = vld [vmem:[%s4317_s7 + $0x76c] ss:$16 sps:$4 sm:$0xff]  }
 0x137   : > { %2794 = vmatpush1.bf16.msra.mxu1 %v3965_v34  ;;  %2770 = vmatprep.subr.bf16.mxu0 %v3970_v35  ;;  %v4045_v34 = vld [vmem:[%s4317_s7 + $0x86c] ss:$16 sps:$4 sm:$0xff]   ;;  %v4040_v35 = vld [vmem:[%s4317_s7 + $0x768] ss:$16 sps:$4 sm:$0xff]  }
 0x138   : > { %2795 = vmatprep.subr.bf16.mxu1 %v3973_v36  ;;  %v4043_v36 = vld [vmem:[%s4317_s7 + $0x868] ss:$16 sps:$4 sm:$0xff]  }
 0x13a   : > { %2771 = vmatpush1.bf16.msra.mxu0 %v3968_v39  ;;  %v4051_v39 = vld [vmem:[%s4317_s7 + $0x88c] ss:$16 sps:$4 sm:$0xff]  }
 0x13b   : > { %2796 = vmatpush1.bf16.msra.mxu1 %v3971_v40  ;;  %2822 = vmatprep.subr.bf16.mxu0 %v3979_v41  ;;  %v4046_v40 = vld [vmem:[%s4317_s7 + $0x788] ss:$16 sps:$4 sm:$0xff]   ;;  %v4054_v41 = vld [vmem:[%s4317_s7 + $0x7ac] ss:$16 sps:$4 sm:$0xff]  }
 0x13c   : > { %2797 = vmatprep.subr.bf16.mxu1 %v3976_v23  ;;  %v4049_v23 = vld [vmem:[%s4317_s7 + $0x888] ss:$16 sps:$4 sm:$0xff]  }
 0x13d   : > { %2773 = vmatmul.mubr.bf16.vlgmr.msra.gmra.mrb[12].mxu0 %v4406_v8  ;;  %v3989_v8 = vld [vmem:[%s4317_s7 + $0x648] ss:$16 sps:$4 sm:$0xff]  }
 0x13e   : > { %2823 = vmatpush1.bf16.msra.mxu0 %v3977_v43  ;;  %2854 = vmatprep.mubr.bf16.mxu0 %v4448_v38  ;;  %v4000_v38 = vld [vmem:[%s4317_s7 + $0x58c] ss:$16 sps:$4 sm:$0xff]   ;;  %v4052_v43 = vld [vmem:[%s4317_s7 + $0x7a8] ss:$16 sps:$4 sm:$0xff]  }
 0x13f   : > { %2798 = vmatpush1.bf16.msra.mxu1 %v3974_v42  ;;  %2824 = vmatprep.subr.bf16.mxu0 %v3985_v45  ;;  %v4057_v42 = vld [vmem:[%s4317_s7 + $0x8ac] ss:$16 sps:$4 sm:$0xff]  }
 0x140   : > { %2799 = vmatprep.subr.bf16.mxu1 %v3982_v44  ;;  %v4055_v44 = vld [vmem:[%s4317_s7 + $0x8a8] ss:$16 sps:$4 sm:$0xff]   ;;  %v4060_v45 = vld [vmem:[%s4317_s7 + $0x7cc] ss:$16 sps:$4 sm:$0xff]  }
 0x142   : > { %2825 = vmatpush1.bf16.msra.mxu0 %v3983_v47  ;;  %v4058_v47 = vld [vmem:[%s4317_s7 + $0x7c8] ss:$16 sps:$4 sm:$0xff]  }
 0x143   : > { %2800 = vmatpush1.bf16.msra.mxu1 %v3980_v46  ;;  %2826 = vmatprep.subr.bf16.mxu0 %v3991_v52  ;;  %v4063_v46 = vld [vmem:[%s4317_s7 + $0x8cc] ss:$16 sps:$4 sm:$0xff]  }
 0x144   : > { %2801 = vmatprep.subr.bf16.mxu1 %v3988_v49  ;;  %v4061_v49 = vld [vmem:[%s4317_s7 + $0x8c8] ss:$16 sps:$4 sm:$0xff]   ;;  %v4066_v52 = vld [vmem:[%s4317_s7 + $0x7ec] ss:$16 sps:$4 sm:$0xff]  }
 0x146   : > { %2827 = vmatpush1.bf16.msra.mxu0 %v3989_v8  ;;  %v4064_v8 = vld [vmem:[%s4317_s7 + $0x7e8] ss:$16 sps:$4 sm:$0xff]  }
 0x147   : > { %2802 = vmatpush1.bf16.msra.mxu1 %v3986_v50  ;;  %2828 = vmatprep.subr.bf16.mxu0 %v3997_v53  ;;  %v4069_v50 = vld [vmem:[%s4317_s7 + $0x8ec] ss:$16 sps:$4 sm:$0xff]  }
 0x148   : > { %2803 = vmatprep.subr.bf16.mxu1 %v3994_v51  ;;  %v4067_v51 = vld [vmem:[%s4317_s7 + $0x8e8] ss:$16 sps:$4 sm:$0xff]   ;;  %v4072_v53 = vld [vmem:[%s4317_s7 + $0x90c] ss:$16 sps:$4 sm:$0xff]  }
 0x14a   : > { %2829 = vmatpush1.bf16.msra.mxu0 %v3995_v55  ;;  %v4070_v55 = vld [vmem:[%s4317_s7 + $0x908] ss:$16 sps:$4 sm:$0xff]  }
 0x14b   : > { %2804 = vmatpush1.bf16.msra.mxu1 %v3992_v54  ;;  %2830 = vmatprep.subr.bf16.mxu0 %v4003_v56  ;;  %v4075_v54 = vld [vmem:[%s4317_s7 + $0xa0c] ss:$16 sps:$4 sm:$0xff]  }
 0x14c   : > { %2805 = vmatprep.subr.bf16.mxu1 %v4000_v38  ;;  %v4073_v38 = vld [vmem:[%s4317_s7 + $0xa08] ss:$16 sps:$4 sm:$0xff]   ;;  %v4078_v56 = vld [vmem:[%s4317_s7 + $0x92c] ss:$16 sps:$4 sm:$0xff]  }
 0x14e   : > { %2831 = vmatpush1.bf16.msra.mxu0 %v4001_v58  ;;  %v4076_v58 = vld [vmem:[%s4317_s7 + $0x928] ss:$16 sps:$4 sm:$0xff]  }
 0x14f   : > { %2806 = vmatpush1.bf16.msra.mxu1 %v3998_v57  ;;  %2832 = vmatprep.subr.bf16.mxu0 %v4009_v60  ;;  %v4081_v57 = vld [vmem:[%s4317_s7 + $0xa2c] ss:$16 sps:$4 sm:$0xff]  }
 0x150   : > { %2807 = vmatprep.subr.bf16.mxu1 %v4006_v59  ;;  %v2487_v1 = vpop.f32.mrb[0].mxu0  ;;  %v4079_v59 = vld [vmem:[%s4317_s7 + $0xa28] ss:$16 sps:$4 sm:$0xff]   ;;  %v4084_v60 = vld [vmem:[%s4317_s7 + $0x94c] ss:$16 sps:$4 sm:$0xff]  }
 0x151   : > { %v2528_v2 = vpop.f32.mrb[0].mxu1  ;;  %v2489_v4 = vpop.f32.mrb[1].mxu0 }
 0x152   : > { %v4673_v3 = vadd.f32 %v2528_v2, %v2487_v1  ;;  %v2530_v5 = vpop.f32.mrb[1].mxu1  ;;  %v2491_v9 = vpop.f32.mrb[2].mxu0  ;;  %2833 = vmatpush1.bf16.msra.mxu0 %v4007_v62  ;;  %v4082_v62 = vld [vmem:[%s4317_s7 + $0x948] ss:$16 sps:$4 sm:$0xff]  }
 0x153   : > { %v4675_v6 = vadd.f32 %v2530_v5, %v2489_v4  ;;  %v2532_v10 = vpop.f32.mrb[2].mxu1  ;;  %2808 = vmatpush1.bf16.msra.mxu1 %v4004_v61  ;;  %v2492_v12 = vpop.f32.mrb[3].mxu0  ;;  %2834 = vmatprep.subr.bf16.mxu0 %v4015_v0  ;;  %v4087_v61 = vld [vmem:[%s4317_s7 + $0xa4c] ss:$16 sps:$4 sm:$0xff]   ;;  %v4088_v1 = vld [vmem:[%s4317_s7 + $0x968] ss:$16 sps:$4 sm:$0xff]  }
 0x154   : > { %v2533_v13 = vpop.f32.mrb[3].mxu1  ;;  %2809 = vmatprep.subr.bf16.mxu1 %v4012_v63  ;;  %v4090_v63 = vld [vmem:[%s4317_s7 + $0x96c] ss:$16 sps:$4 sm:$0xff]   ;;  %v4091_v2 = vld [vmem:[%s4317_s7 + $0xa68] ss:$16 sps:$4 sm:$0xff]  }
 0x155   : > { %v4093_v0 = vld [vmem:[%s4317_s7 + $0xa6c] ss:$16 sps:$4 sm:$0xff]   ;;  %v4094_v5 = vld [vmem:[%s4317_s7 + $0x988] ss:$16 sps:$4 sm:$0xff]  }
 0x156   : > { %2835 = vmatpush1.bf16.msra.mxu0 %v4013_v11  ;;  %v4099_v4 = vld [vmem:[%s4317_s7 + $0xa8c] ss:$16 sps:$4 sm:$0xff]   ;;  %v4097_v9 = vld [vmem:[%s4317_s7 + $0xa88] ss:$16 sps:$4 sm:$0xff]  }
 0x157   : > { %2810 = vmatpush1.bf16.msra.mxu1 %v4010_v48  ;;  %2836 = vmatprep.subr.bf16.mxu0 %v4021_v14  ;;  %v4102_v10 = vld [vmem:[%s4317_s7 + $0x9ac] ss:$16 sps:$4 sm:$0xff]   ;;  %v4100_v11 = vld [vmem:[%s4317_s7 + $0x9a8] ss:$16 sps:$4 sm:$0xff]  }
 0x158   : > { %2811 = vmatprep.subr.bf16.mxu1 %v4018_v7  ;;  %v4105_v48 = vld [vmem:[%s4317_s7 + $0xaac] ss:$16 sps:$4 sm:$0xff]   ;;  %v4103_v12 = vld [vmem:[%s4317_s7 + $0xaa8] ss:$16 sps:$4 sm:$0xff]  }
 0x159   : > { %v4108_v13 = vld [vmem:[%s4317_s7 + $0x9cc] ss:$16 sps:$4 sm:$0xff]  }
 0x15a   : > { %2837 = vmatpush1.bf16.msra.mxu0 %v4019_v16  ;;  %v4111_v7 = vld [vmem:[%s4317_s7 + $0xacc] ss:$16 sps:$4 sm:$0xff]  }
 0x15b   : > { %2812 = vmatpush1.bf16.msra.mxu1 %v4016_v15  ;;  %2838 = vmatprep.subr.bf16.mxu0 %v4024_v19 }
 0x15c   : > { %2863 = vmatprep.subr.bf16.mxu1 %v4027_v37 }
 0x15e   : > { %2814 = vmatmul.mubr.bf16.vlgmr.msra.gmra.mrb[16].mxu1 %v4492_v17  ;;  %2839 = vmatpush1.bf16.msra.mxu0 %v4022_v20  ;;  %v4037_v17 = vld [vmem:[%s4317_s7 + $0x848] ss:$16 sps:$4 sm:$0xff]  }
 0x15f   : > { %2864 = vmatpush1.bf16.msra.mxu1 %v4025_v21  ;;  %2840 = vmatprep.subr.bf16.mxu0 %v4030_v22 }
 0x160   : > { %2865 = vmatprep.subr.bf16.mxu1 %v4033_v24  ;;  %2895 = vmatprep.mubr.bf16.mxu1 %v4510_v25  ;;  %v4048_v25 = vld [vmem:[%s4317_s7 + $0x78c] ss:$16 sps:$4 sm:$0xff]   ;;  %v4106_v24 = vld [vmem:[%s4317_s7 + $0x9c8] ss:$16 sps:$4 sm:$0xff]  }
 0x162   : > { %2841 = vmatpush1.bf16.msra.mxu0 %v4028_v26  ;;  %v4109_v26 = vld [vmem:[%s4317_s7 + $0xac8] ss:$16 sps:$4 sm:$0xff]  }
 0x163   : > { %2866 = vmatpush1.bf16.msra.mxu1 %v4031_v27  ;;  %2842 = vmatprep.subr.bf16.mxu0 %v4036_v28 }
 0x164   : > { %2867 = vmatprep.subr.bf16.mxu1 %v4039_v30 }
 0x166   : > { %2843 = vmatpush1.bf16.msra.mxu0 %v4034_v31  ;;  %v4117_v31 = vld [vmem:[%s4317_s7 + $0xaec] ss:$16 sps:$4 sm:$0xff]  }
 0x167   : > { %2868 = vmatpush1.bf16.msra.mxu1 %v4037_v17  ;;  %2844 = vmatprep.subr.bf16.mxu0 %v4042_v32  ;;  %v4115_v32 = vld [vmem:[%s4317_s7 + $0xae8] ss:$16 sps:$4 sm:$0xff]  }
 0x168   : > { %2869 = vmatprep.subr.bf16.mxu1 %v4045_v34  ;;  %v4118_v34 = vld [vmem:[%s4327_s6 + $0x28] ss:$0 sps:$4 sm:$0xff]  }
 0x16a   : > { %2845 = vmatpush1.bf16.msra.mxu0 %v4040_v35 }
 0x16b   : > { %2870 = vmatpush1.bf16.msra.mxu1 %v4043_v36  ;;  %2846 = vmatprep.subr.bf16.mxu0 %v4048_v25 }
 0x16c   : > { %2871 = vmatprep.subr.bf16.mxu1 %v4051_v39 }
 0x16e   : > { %2847 = vmatpush1.bf16.msra.mxu0 %v4046_v40 }
 0x16f   : > { %2872 = vmatpush1.bf16.msra.mxu1 %v4049_v23  ;;  %2848 = vmatprep.subr.bf16.mxu0 %v4054_v41 }
 0x170   : > { %2873 = vmatprep.subr.bf16.mxu1 %v4057_v42  ;;  %v292_v42 = vld [vmem:[#allocation2] sm:$0xff] }
 0x172   : > { %2849 = vmatpush1.bf16.msra.mxu0 %v4052_v43 }
 0x173   : > { %2874 = vmatpush1.bf16.msra.mxu1 %v4055_v44  ;;  %2850 = vmatprep.subr.bf16.mxu0 %v4060_v45 }
 0x174   : > { %2875 = vmatprep.subr.bf16.mxu1 %v4063_v46  ;;  %v293_v46 = vld [vmem:[#allocation2 + $0x8] sm:$0xff] }
 0x176   : > { %2851 = vmatpush1.bf16.msra.mxu0 %v4058_v47 }
 0x177   : > { %2876 = vmatpush1.bf16.msra.mxu1 %v4061_v49  ;;  %2852 = vmatprep.subr.bf16.mxu0 %v4066_v52 }
 0x178   : > { %2877 = vmatprep.subr.bf16.mxu1 %v4069_v50 }
 0x17a   : > { %2853 = vmatpush1.bf16.msra.mxu0 %v4064_v8 }
 0x17b   : > { %2878 = vmatpush1.bf16.msra.mxu1 %v4067_v51  ;;  %2904 = vmatprep.subr.bf16.mxu0 %v4075_v54 }
 0x17c   : > { %2879 = vmatprep.subr.bf16.mxu1 %v4072_v53 }
 0x17d   : > { %2855 = vmatmul.mubr.bf16.vlgmr.msra.gmra.mrb[16].mxu0 %v4496_v18  ;;  %v4085_v18 = vld [vmem:[%s4317_s7 + $0xa48] ss:$16 sps:$4 sm:$0xff]  }
 0x17e   : > { %2905 = vmatpush1.bf16.msra.mxu0 %v4073_v38  ;;  %2936 = vmatprep.mubr.bf16.mxu0 %v4205_v29  ;;  %v4096_v29 = vld [vmem:[%s4317_s7 + $0x98c] ss:$16 sps:$4 sm:$0xff]  }
 0x17f   : > { %2880 = vmatpush1.bf16.msra.mxu1 %v4070_v55  ;;  %2906 = vmatprep.subr.bf16.mxu0 %v4081_v57 }
 0x180   : > { %2881 = vmatprep.subr.bf16.mxu1 %v4078_v56 }
 0x182   : > { %2907 = vmatpush1.bf16.msra.mxu0 %v4079_v59 }
 0x183   : > { %2882 = vmatpush1.bf16.msra.mxu1 %v4076_v58  ;;  %2908 = vmatprep.subr.bf16.mxu0 %v4087_v61 }
 0x184   : > { %2883 = vmatprep.subr.bf16.mxu1 %v4084_v60 }
 0x186   : > { %2909 = vmatpush1.bf16.msra.mxu0 %v4085_v18 }
 0x187   : > { %2884 = vmatpush1.bf16.msra.mxu1 %v4082_v62  ;;  %2910 = vmatprep.subr.bf16.mxu0 %v4093_v0 }
 0x188   : > { %2885 = vmatprep.subr.bf16.mxu1 %v4090_v63 }
 0x18a   : > { %2911 = vmatpush1.bf16.msra.mxu0 %v4091_v2 }
 0x18b   : > { %2886 = vmatpush1.bf16.msra.mxu1 %v4088_v1  ;;  %2912 = vmatprep.subr.bf16.mxu0 %v4099_v4 }
 0x18c   : > { %2887 = vmatprep.subr.bf16.mxu1 %v4096_v29 }
 0x18e   : > { %2913 = vmatpush1.bf16.msra.mxu0 %v4097_v9 }
 0x18f   : > { %2888 = vmatpush1.bf16.msra.mxu1 %v4094_v5  ;;  %2914 = vmatprep.subr.bf16.mxu0 %v4105_v48 }
 0x190   : > { %2889 = vmatprep.subr.bf16.mxu1 %v4102_v10  ;;  %v2569_v14 = vpop.f32.mrb[4].mxu0 }
 0x191   : > { %v2610_v15 = vpop.f32.mrb[4].mxu1  ;;  %v2570_v16 = vadd.f32 %v2569_v14, %v4673_v3  ;;  %v2571_v19 = vpop.f32.mrb[5].mxu0  ;;  %v4114_v3 = vld [vmem:[%s4317_s7 + $0x9ec] ss:$16 sps:$4 sm:$0xff]  }
 0x192   : > { %v2612_v37 = vpop.f32.mrb[5].mxu1  ;;  %v2572_v20 = vadd.f32 %v2571_v19, %v4675_v6  ;;  %v2573_v21 = vpop.f32.mrb[6].mxu0  ;;  %2915 = vmatpush1.bf16.msra.mxu0 %v4103_v12  ;;  %v4112_v6 = vld [vmem:[%s4317_s7 + $0x9e8] ss:$16 sps:$4 sm:$0xff]  }
 0x193   : > { %v2614_v22 = vpop.f32.mrb[6].mxu1  ;;  %2890 = vmatpush1.bf16.msra.mxu1 %v4100_v11  ;;  %v2611_v27 = vadd.f32 %v2610_v15, %v2570_v16  ;;  %v2574_v28 = vpop.f32.mrb[7].mxu0  ;;  %2916 = vmatprep.subr.bf16.mxu0 %v4111_v7  ;;  %v295_v19 = vld [vmem:[#allocation2 + $0x18] sm:$0xff] }
 0x194   : > { %v2615_v30 = vpop.f32.mrb[7].mxu1  ;;  %2891 = vmatprep.subr.bf16.mxu1 %v4108_v13  ;;  %v2613_v17 = vadd.f32 %v2612_v37, %v2572_v20  ;;  %v294_v13 = vld [vmem:[#allocation2 + $0x10] sm:$0xff]  ;;  %v2961_v28 = vld [vmem:[%s4785_s2] sm:$0xf] (!%p3506_p7) }
 0x196   : > { %2917 = vmatpush1.bf16.msra.mxu0 %v4109_v26  ;;  %v2963_v26 = vlaneseq (!%p3506_p7) }
 0x197   : > { %2892 = vmatpush1.bf16.msra.mxu1 %v4106_v24  ;;  %2918 = vmatprep.subr.bf16.mxu0 %v4117_v31 }
 0x198   : > { %2893 = vmatprep.subr.bf16.mxu1 %v4114_v3 }
 0x19a   : > { %2919 = vmatpush1.bf16.msra.mxu0 %v4115_v32 }
 0x19b   : > { %2894 = vmatpush1.bf16.msra.mxu1 %v4112_v6 }
 0x19d   : > { %2937 = vmatmul.mubr.bf16.vlgmr.msra.gmra.mrb[20].mxu0 %v4118_v34 }
 0x19e   : > { %2896 = vmatmul.mubr.bf16.vlgmr.msra.gmra.mrb[20].mxu1 %v4577_v33 }
 0x1b1   : > { %v2692_v35 = vpop.f32.mrb[8].mxu1 }
 0x1b2   : > { %v2694_v36 = vpop.f32.mrb[9].mxu1 }
 0x1b3   : > { %v2696_v25 = vpop.f32.mrb[10].mxu1 }
 0x1b4   : > { %v2697_v39 = vpop.f32.mrb[11].mxu1 }
 0x1d0   : > { %v2651_v40 = vpop.f32.mrb[8].mxu0 }
 0x1d1   : > { %v2652_v23 = vadd.f32 %v2651_v40, %v2611_v27  ;;  %v2653_v41 = vpop.f32.mrb[9].mxu0  ;;  %v2964_v27 = vshrl.u32 (!%p3506_p7), %v2963_v26, 7 }
 0x1d2   : > { %v2654_v43 = vadd.f32 %v2653_v41, %v2613_v17  ;;  %v2655_v44 = vpop.f32.mrb[10].mxu0 }
 0x1d3   : > { %v2693_v45 = vadd.f32 %v2692_v35, %v2652_v23  ;;  %v2656_v47 = vpop.f32.mrb[11].mxu0  ;;  %v2965_v3 = vsub.s32 (!%p3506_p7), 0, %v2964_v27  ;;  %v2969_v31 = vsub.s32 (!%p3506_p7), 1, %v2964_v27  ;;  %v2973_v17 = vsub.s32 (!%p3506_p7), 2, %v2964_v27 }
 0x1d4   : > { %v2695_v49 = vadd.f32 %v2694_v36, %v2654_v43  ;;  %v2977_v6 = vsub.s32 (!%p3506_p7), 3, %v2964_v27 }
 0x1d5   : > { %v2945_v52 = vadd.f32 %v2693_v45, %v292_v42  ;;  %v2966_v36 = vrot.slane (!%p3506_p7), %v2961_v28, %v2965_v3  ;;  %v2970_v25 = vrot.slane (!%p3506_p7), %v2961_v28, %v2969_v31  ;;  %v2974_v39 = vrot.slane (!%p3506_p7), %v2961_v28, %v2973_v17 }
 0x1d6   : > { %v2946_v50 = vadd.f32 %v2695_v49, %v293_v46  ;;  %v2978_v40 = vrot.slane (!%p3506_p7), %v2961_v28, %v2977_v6 }
 0x1d7   : > { %2949 = vst [vmem:[#allocation2] sm:$0xff] %v2945_v52 }
 0x1d8   : > { %2950 = vst [vmem:[#allocation2 + $0x8] sm:$0xff] %v2946_v50 }
 0x1de   : > { %v2957_v30 = vld [vmem:[#allocation2] sm:$0xff] (!%p3506_p7) }
 0x1df   : > { %v2958_v32 = vld [vmem:[#allocation2 + $0x8] sm:$0xff] (!%p3506_p7)  ;;  %v2983_v23 = vadd.f32 (!%p3506_p7), %v2966_v36, %v2957_v30 }
 0x1e0   : > { %v2984_v41 = vadd.f32 (!%p3506_p7), %v2970_v25, %v2958_v32 }
 0x1e1   : > { %v2987_v44 = vmax.f32 (!%p3506_p7), %v2983_v23, 0.0 }
 0x1e2   : > { %v2988_v45 = vmax.f32 (!%p3506_p7), %v2984_v41, 0.0 }
 0x1e4   : > { %v3515_v49 = vpack.c.bf16 (!%p3506_p7), %v2988_v45, %v2987_v44 }
 0x1e6   : > { %3007 = vst [vmem:[%s4786_s3] sm:$0xff] (!%p3506_p7), %v3515_v49 }
 0x1f1   : > { %v2733_v33 = vpop.f32.mrb[12].mxu1 }
 0x1f2   : > { %v2735_v8 = vpop.f32.mrb[13].mxu1 }
 0x1f3   : > { %v2737_v51 = vpop.f32.mrb[14].mxu1 }
 0x1f4   : > { %v2738_v53 = vpop.f32.mrb[15].mxu1 }
 0x210   : > { %v2774_v54 = vpop.f32.mrb[12].mxu0 }
 0x211   : > { %v2775_v55 = vadd.f32 %v2774_v54, %v2733_v33  ;;  %v2776_v38 = vpop.f32.mrb[13].mxu0 }
 0x212   : > { %v2777_v56 = vadd.f32 %v2776_v38, %v2735_v8  ;;  %v2778_v57 = vpop.f32.mrb[14].mxu0 }
 0x213   : > { %v2779_v58 = vpop.f32.mrb[15].mxu0 }
 0x231   : > { %v2815_v59 = vpop.f32.mrb[16].mxu1 }
 0x232   : > { %v2816_v60 = vadd.f32 %v2815_v59, %v2775_v55  ;;  %v2817_v61 = vpop.f32.mrb[17].mxu1 }
 0x233   : > { %v2818_v62 = vadd.f32 %v2817_v61, %v2777_v56  ;;  %v2819_v18 = vpop.f32.mrb[18].mxu1 }
 0x234   : > { %v2820_v63 = vpop.f32.mrb[19].mxu1 }
 0x250   : > { %v2856_v0 = vpop.f32.mrb[16].mxu0 }
 0x251   : > { %v2857_v1 = vadd.f32 %v2856_v0, %v2816_v60  ;;  %v2858_v2 = vpop.f32.mrb[17].mxu0 }
 0x252   : > { %v2859_v29 = vadd.f32 %v2858_v2, %v2818_v62  ;;  %v2860_v4 = vpop.f32.mrb[18].mxu0 }
 0x253   : > { %v2861_v5 = vpop.f32.mrb[19].mxu0 }
 0x270   : > { %v2938_v10 = vpop.f32.mrb[20].mxu0 }
 0x271   : > { %v2897_v9 = vpop.f32.mrb[20].mxu1  ;;  %v2940_v12 = vpop.f32.mrb[21].mxu0 }
 0x272   : > { %v2898_v48 = vadd.f32 %v2897_v9, %v2857_v1  ;;  %v2899_v11 = vpop.f32.mrb[21].mxu1  ;;  %v2942_v15 = vpop.f32.mrb[22].mxu0 }
 0x273   : > { %v2900_v7 = vadd.f32 %v2899_v11, %v2859_v29  ;;  %v2901_v14 = vpop.f32.mrb[22].mxu1  ;;  %v2943_v20 = vpop.f32.mrb[23].mxu0  ;;  %2956 = sbr.rel (%p3506_p7) target bundleno = 648 (0x288), region = 44 }
 0x274   : > { %v2939_v16 = vadd.f32 %v2938_v10, %v2898_v48  ;;  %v2902_v37 = vpop.f32.mrb[23].mxu1 }
 0x275   : > { %v2941_v21 = vadd.f32 %v2940_v12, %v2900_v7 }
 0x276   : > { %v2947_v22 = vadd.f32 %v2939_v16, %v294_v13 }
 0x277   : > { %v2948_v24 = vadd.f32 %v2941_v21, %v295_v19 }
 0x278   : > { %2951 = vst [vmem:[#allocation2 + $0x10] sm:$0xff] %v2947_v22 }
 0x279   : > { %2952 = vst [vmem:[#allocation2 + $0x18] sm:$0xff] %v2948_v24 }
 0x27f   : > { %v2959_v34 = vld [vmem:[#allocation2 + $0x10] sm:$0xff] }
 0x280   : > { %v2960_v35 = vld [vmem:[#allocation2 + $0x18] sm:$0xff]  ;;  %v2985_v42 = vadd.f32 %v2974_v39, %v2959_v34 }
 0x281   : > { %v2986_v43 = vadd.f32 %v2978_v40, %v2960_v35 }
 0x282   : > { %v2989_v46 = vmax.f32 %v2985_v42, 0.0 }
 0x283   : > { %v2990_v47 = vmax.f32 %v2986_v43, 0.0 }
 0x285   : > { %v3516_v52 = vpack.c.bf16 %v2990_v47, %v2989_v46 }
 0x287   : > { %3008 = vst [vmem:[%s4786_s3 + $0x8] sm:$0xff] %v3516_v52 }
 0x288 PF: > { %s16_s17 = sadd.s32 1, %s4199_s17   ;;  %s4789_s12 = smov %s4183_s13 }
 0x289   : > { %p13_p5 = scmp.ge.s32.totalorder %s16_s17, 7   ;;  %s4790_s13 = smov %s4187_s14 }
 0x28a   : > { %s4791_s14 = smov %s4271_s23  ;;  %s4792_s15 = smov %s4195_s16 }
 0x28b   : > { %s4793_s16 = smov %s4795_s19  ;;  %15 = sbr.rel (!%p13_p5) target bundleno = 4 (0x4), region = 86 }
 0x292   :  { %3039 = vsyncpa [#allocation4], 1 }
 0x293   :  { %3041 = vsyncpa [#allocation4 + $0x1], 1 }

// kernel: backbone_forward.9
= control target key start
LH: loop header
LB: loop body
LE: loop exit
PB: predicated region body
PF: predicated region fallthrough
CT: control target
= control target key end

     0   :  { %s5233_s12 = smov 0   ;;  %s5235_s13 = smov 0   ;;  %s6593_s0 = inlined_call_operand.vmem [shape: bf16[8,13824], index: 0, kind: input, shape index: {}]   ;;  %s6594_s1 = inlined_call_operand.vmem [shape: bf16[13824,1024], index: 1, kind: input, shape index: {}]   ;;  %s6595_s2 = inlined_call_operand.vmem [shape: f32[1,1024], index: 2, kind: input, shape index: {}]   ;;  %s6596_s3 = inlined_call_operand.vmem [shape: bf16[8,1024], index: 3, kind: output, shape index: {}]  }
   0x1   :  { %s5237_s14 = smov 0   ;;  %s5239_s15 = smov 0  }
   0x2   :  { %s5241_s16 = smov 0   ;;  %s5243_s17 = smov 0  }
   0x3   :  { %s5245_s18 = smov 0  }
   0x4 LB: > { %s25_s19 = sadd.s32 1, %s5202_s16  ;;  %s28_s20 = sadd.s32 1, %s5206_s17  ;;  %s5210_s18 = sphi %s5245_s18, %s13_s18   ;;  %s5206_s17 = sphi %s5243_s17, %s6602_s17   ;;  %s5202_s16 = sphi %s5241_s16, %s6601_s16   ;;  %s5198_s15 = sphi %s5239_s15, %s6600_s15   ;;  %s5194_s14 = sphi %s5237_s14, %s6599_s14   ;;  %s5190_s13 = sphi %s5235_s13, %s6598_s13   ;;  %s5186_s12 = sphi %s5233_s12, %s6597_s12  }
   0x5   : > { %p26_p0 = scmp.ge.s32.totalorder %s25_s19, 9  ;;  %p76_p1 = scmp.ne.s32.totalorder %s5190_s13, %s5186_s12 }
   0x6   : > { %p77_p2 = scmp.eq.s32.totalorder %s5210_s18, 0  ;;  %s69_s24 = sadd.s32 1, %s5190_s13 }
   0x7   : > { %s6604_s19 = smov (%p26_p0, %s25_s19), 0  ;;  %s6606_s20 = smov (!%p26_p0, %s28_s20), %s5206_s17 }
   0x8   : > { %p78_p3 = por %p77_p2, %p76_p1  ;;  %p30_p4 = scmp.ge.s32.totalorder %s6606_s20, 2 }
   0x9   : > { %s64_s21 = ssub.s32 %s5202_s16, %s6604_s19  ;;  %p4095_p6 = scmp.ge.s32.totalorder %s5210_s18, 18 }
   0xa   : > { %s6608_s20 = smov (%p30_p4, %s6606_s20), 0 }
   0xb   : > { %s65_s22 = ssub.s32 %s5206_s17, %s6608_s20  ;;  %156 = sbr.rel (%p4095_p6) target bundleno = 218 (0xda), region = 16 }
   0xc   : > { %s66_s23 = sor.u32 %s65_s22, %s64_s21 }
   0xd   : > { %p67_p5 = scmp.eq.s32.totalorder %s66_s23, 0 }
   0xf   : > { %s5284_s25 = scalar_select %p67_p5, %s5190_s13, %s69_s24  }
  0x12   : > { %172 = sbr.rel (!%p78_p3) target bundleno = 218 (0xda), region = 24  ;;  %s174_s26 = sand.u32 (%p78_p3), 1, %s5190_s13  }
  0x13   : > { %s4509_s27 = smul.u32 (%p78_p3), 3072, %s174_s26  ;;  %s4096_s28 = sshll.u32 (%p78_p3), %s5206_s17, 2 }
  0x14   : > { %s4506_s29 = smul.u32 (%p78_p3), 1536, %s5202_s16 }
  0x15   : > { %s5298_s8 = scalar_lea.vmem (%p78_p3), [#allocation3], %s4509_s27 }
  0x16   : > { %s180_s30 = sadd.s32 (%p78_p3), %s4506_s29, %s4096_s28 }
  0x17   : > { %s4098_s4 = sshll.u32 (%p78_p3), %s180_s30, 2 }
  0x18   : > { %s5293_s7 = scalar_lea.vmem (%p78_p3), %s6594_s1, %s4098_s4 }
  0x19   : > { %v195_v0 = vld [vmem:[%s5293_s7] sm:$0xff]  ;;  %v197_v1 = vld [vmem:[%s5293_s7 + $0x8] sm:$0xff] }
  0x1a   : > { %v199_v2 = vld [vmem:[%s5293_s7 + $0x20] sm:$0xff]  ;;  %196 = vst [vmem:[%s5298_s8] sm:$0xff] %v195_v0  ;;  %198 = vst [vmem:[%s5298_s8 + $0x8] sm:$0xff] %v197_v1  ;;  %v201_v3 = vld [vmem:[%s5293_s7 + $0x28] sm:$0xff] }
  0x1b   : > { %200 = vst [vmem:[%s5298_s8 + $0x10] sm:$0xff] %v199_v2  ;;  %v203_v4 = vld [vmem:[%s5293_s7 + $0x40] sm:$0xff]  ;;  %v205_v5 = vld [vmem:[%s5293_s7 + $0x48] sm:$0xff]  ;;  %202 = vst [vmem:[%s5298_s8 + $0x18] sm:$0xff] %v201_v3 }
  0x1c   : > { %204 = vst [vmem:[%s5298_s8 + $0x20] sm:$0xff] %v203_v4  ;;  %206 = vst [vmem:[%s5298_s8 + $0x28] sm:$0xff] %v205_v5  ;;  %v207_v6 = vld [vmem:[%s5293_s7 + $0x60] sm:$0xff]  ;;  %v209_v7 = vld [vmem:[%s5293_s7 + $0x68] sm:$0xff] }
  0x1d   : > { %v211_v8 = vld [vmem:[%s5293_s7 + $0x80] sm:$0xff]  ;;  %208 = vst [vmem:[%s5298_s8 + $0x30] sm:$0xff] %v207_v6  ;;  %210 = vst [vmem:[%s5298_s8 + $0x38] sm:$0xff] %v209_v7  ;;  %v213_v9 = vld [vmem:[%s5293_s7 + $0x88] sm:$0xff] }
  0x1e   : > { %212 = vst [vmem:[%s5298_s8 + $0x40] sm:$0xff] %v211_v8  ;;  %v215_v10 = vld [vmem:[%s5293_s7 + $0xa0] sm:$0xff]  ;;  %v217_v11 = vld [vmem:[%s5293_s7 + $0xa8] sm:$0xff]  ;;  %214 = vst [vmem:[%s5298_s8 + $0x48] sm:$0xff] %v213_v9 }
  0x1f   : > { %216 = vst [vmem:[%s5298_s8 + $0x50] sm:$0xff] %v215_v10  ;;  %218 = vst [vmem:[%s5298_s8 + $0x58] sm:$0xff] %v217_v11  ;;  %v219_v12 = vld [vmem:[%s5293_s7 + $0xc0] sm:$0xff]  ;;  %v221_v13 = vld [vmem:[%s5293_s7 + $0xc8] sm:$0xff] }
  0x20   : > { %v223_v14 = vld [vmem:[%s5293_s7 + $0xe0] sm:$0xff]  ;;  %220 = vst [vmem:[%s5298_s8 + $0x60] sm:$0xff] %v219_v12  ;;  %222 = vst [vmem:[%s5298_s8 + $0x68] sm:$0xff] %v221_v13  ;;  %v225_v15 = vld [vmem:[%s5293_s7 + $0xe8] sm:$0xff] }
  0x21   : > { %224 = vst [vmem:[%s5298_s8 + $0x70] sm:$0xff] %v223_v14  ;;  %v227_v16 = vld [vmem:[%s5293_s7 + $0x100] sm:$0xff]  ;;  %v229_v17 = vld [vmem:[%s5293_s7 + $0x108] sm:$0xff]  ;;  %226 = vst [vmem:[%s5298_s8 + $0x78] sm:$0xff] %v225_v15 }
  0x22   : > { %228 = vst [vmem:[%s5298_s8 + $0x80] sm:$0xff] %v227_v16  ;;  %230 = vst [vmem:[%s5298_s8 + $0x88] sm:$0xff] %v229_v17  ;;  %v231_v18 = vld [vmem:[%s5293_s7 + $0x120] sm:$0xff]  ;;  %v233_v19 = vld [vmem:[%s5293_s7 + $0x128] sm:$0xff] }
  0x23   : > { %v235_v20 = vld [vmem:[%s5293_s7 + $0x140] sm:$0xff]  ;;  %232 = vst [vmem:[%s5298_s8 + $0x90] sm:$0xff] %v231_v18  ;;  %234 = vst [vmem:[%s5298_s8 + $0x98] sm:$0xff] %v233_v19  ;;  %v237_v21 = vld [vmem:[%s5293_s7 + $0x148] sm:$0xff] }
  0x24   : > { %236 = vst [vmem:[%s5298_s8 + $0xa0] sm:$0xff] %v235_v20  ;;  %v239_v22 = vld [vmem:[%s5293_s7 + $0x160] sm:$0xff]  ;;  %v241_v23 = vld [vmem:[%s5293_s7 + $0x168] sm:$0xff]  ;;  %238 = vst [vmem:[%s5298_s8 + $0xa8] sm:$0xff] %v237_v21 }
  0x25   : > { %240 = vst [vmem:[%s5298_s8 + $0xb0] sm:$0xff] %v239_v22  ;;  %242 = vst [vmem:[%s5298_s8 + $0xb8] sm:$0xff] %v241_v23  ;;  %v243_v24 = vld [vmem:[%s5293_s7 + $0x180] sm:$0xff]  ;;  %v245_v25 = vld [vmem:[%s5293_s7 + $0x188] sm:$0xff] }
  0x26   : > { %v247_v26 = vld [vmem:[%s5293_s7 + $0x1a0] sm:$0xff]  ;;  %244 = vst [vmem:[%s5298_s8 + $0xc0] sm:$0xff] %v243_v24  ;;  %246 = vst [vmem:[%s5298_s8 + $0xc8] sm:$0xff] %v245_v25  ;;  %v249_v27 = vld [vmem:[%s5293_s7 + $0x1a8] sm:$0xff] }
  0x27   : > { %248 = vst [vmem:[%s5298_s8 + $0xd0] sm:$0xff] %v247_v26  ;;  %v251_v28 = vld [vmem:[%s5293_s7 + $0x1c0] sm:$0xff]  ;;  %v253_v29 = vld [vmem:[%s5293_s7 + $0x1c8] sm:$0xff]  ;;  %250 = vst [vmem:[%s5298_s8 + $0xd8] sm:$0xff] %v249_v27 }
  0x28   : > { %252 = vst [vmem:[%s5298_s8 + $0xe0] sm:$0xff] %v251_v28  ;;  %254 = vst [vmem:[%s5298_s8 + $0xe8] sm:$0xff] %v253_v29  ;;  %v255_v30 = vld [vmem:[%s5293_s7 + $0x1e0] sm:$0xff]  ;;  %v257_v31 = vld [vmem:[%s5293_s7 + $0x1e8] sm:$0xff] }
  0x29   : > { %v259_v32 = vld [vmem:[%s5293_s7 + $0x200] sm:$0xff]  ;;  %256 = vst [vmem:[%s5298_s8 + $0xf0] sm:$0xff] %v255_v30  ;;  %258 = vst [vmem:[%s5298_s8 + $0xf8] sm:$0xff] %v257_v31  ;;  %v261_v33 = vld [vmem:[%s5293_s7 + $0x208] sm:$0xff] }
  0x2a   : > { %260 = vst [vmem:[%s5298_s8 + $0x100] sm:$0xff] %v259_v32  ;;  %v263_v34 = vld [vmem:[%s5293_s7 + $0x220] sm:$0xff]  ;;  %v265_v35 = vld [vmem:[%s5293_s7 + $0x228] sm:$0xff]  ;;  %262 = vst [vmem:[%s5298_s8 + $0x108] sm:$0xff] %v261_v33 }
  0x2b   : > { %264 = vst [vmem:[%s5298_s8 + $0x110] sm:$0xff] %v263_v34  ;;  %266 = vst [vmem:[%s5298_s8 + $0x118] sm:$0xff] %v265_v35  ;;  %v267_v36 = vld [vmem:[%s5293_s7 + $0x240] sm:$0xff]  ;;  %v269_v37 = vld [vmem:[%s5293_s7 + $0x248] sm:$0xff] }
  0x2c   : > { %v271_v38 = vld [vmem:[%s5293_s7 + $0x260] sm:$0xff]  ;;  %268 = vst [vmem:[%s5298_s8 + $0x120] sm:$0xff] %v267_v36  ;;  %270 = vst [vmem:[%s5298_s8 + $0x128] sm:$0xff] %v269_v37  ;;  %v273_v39 = vld [vmem:[%s5293_s7 + $0x268] sm:$0xff] }
  0x2d   : > { %272 = vst [vmem:[%s5298_s8 + $0x130] sm:$0xff] %v271_v38  ;;  %v275_v40 = vld [vmem:[%s5293_s7 + $0x280] sm:$0xff]  ;;  %v277_v41 = vld [vmem:[%s5293_s7 + $0x288] sm:$0xff]  ;;  %274 = vst [vmem:[%s5298_s8 + $0x138] sm:$0xff] %v273_v39 }
  0x2e   : > { %276 = vst [vmem:[%s5298_s8 + $0x140] sm:$0xff] %v275_v40  ;;  %278 = vst [vmem:[%s5298_s8 + $0x148] sm:$0xff] %v277_v41  ;;  %v279_v42 = vld [vmem:[%s5293_s7 + $0x2a0] sm:$0xff]  ;;  %v281_v43 = vld [vmem:[%s5293_s7 + $0x2a8] sm:$0xff] }
  0x2f   : > { %v283_v44 = vld [vmem:[%s5293_s7 + $0x2c0] sm:$0xff]  ;;  %280 = vst [vmem:[%s5298_s8 + $0x150] sm:$0xff] %v279_v42  ;;  %282 = vst [vmem:[%s5298_s8 + $0x158] sm:$0xff] %v281_v43  ;;  %v285_v45 = vld [vmem:[%s5293_s7 + $0x2c8] sm:$0xff] }
  0x30   : > { %284 = vst [vmem:[%s5298_s8 + $0x160] sm:$0xff] %v283_v44  ;;  %v287_v46 = vld [vmem:[%s5293_s7 + $0x2e0] sm:$0xff]  ;;  %v289_v47 = vld [vmem:[%s5293_s7 + $0x2e8] sm:$0xff]  ;;  %286 = vst [vmem:[%s5298_s8 + $0x168] sm:$0xff] %v285_v45 }
  0x31   : > { %288 = vst [vmem:[%s5298_s8 + $0x170] sm:$0xff] %v287_v46  ;;  %290 = vst [vmem:[%s5298_s8 + $0x178] sm:$0xff] %v289_v47  ;;  %v291_v48 = vld [vmem:[%s5293_s7 + $0x300] sm:$0xff]  ;;  %v293_v49 = vld [vmem:[%s5293_s7 + $0x308] sm:$0xff] }
  0x32   : > { %v295_v50 = vld [vmem:[%s5293_s7 + $0x320] sm:$0xff]  ;;  %292 = vst [vmem:[%s5298_s8 + $0x180] sm:$0xff] %v291_v48  ;;  %294 = vst [vmem:[%s5298_s8 + $0x188] sm:$0xff] %v293_v49  ;;  %v297_v51 = vld [vmem:[%s5293_s7 + $0x328] sm:$0xff] }
  0x33   : > { %296 = vst [vmem:[%s5298_s8 + $0x190] sm:$0xff] %v295_v50  ;;  %v299_v52 = vld [vmem:[%s5293_s7 + $0x340] sm:$0xff]  ;;  %v301_v53 = vld [vmem:[%s5293_s7 + $0x348] sm:$0xff]  ;;  %298 = vst [vmem:[%s5298_s8 + $0x198] sm:$0xff] %v297_v51 }
  0x34   : > { %300 = vst [vmem:[%s5298_s8 + $0x1a0] sm:$0xff] %v299_v52  ;;  %302 = vst [vmem:[%s5298_s8 + $0x1a8] sm:$0xff] %v301_v53  ;;  %v303_v54 = vld [vmem:[%s5293_s7 + $0x360] sm:$0xff]  ;;  %v305_v55 = vld [vmem:[%s5293_s7 + $0x368] sm:$0xff] }
  0x35   : > { %v307_v56 = vld [vmem:[%s5293_s7 + $0x380] sm:$0xff]  ;;  %304 = vst [vmem:[%s5298_s8 + $0x1b0] sm:$0xff] %v303_v54  ;;  %306 = vst [vmem:[%s5298_s8 + $0x1b8] sm:$0xff] %v305_v55  ;;  %v309_v57 = vld [vmem:[%s5293_s7 + $0x388] sm:$0xff] }
  0x36   : > { %308 = vst [vmem:[%s5298_s8 + $0x1c0] sm:$0xff] %v307_v56  ;;  %v311_v58 = vld [vmem:[%s5293_s7 + $0x3a0] sm:$0xff]  ;;  %v313_v59 = vld [vmem:[%s5293_s7 + $0x3a8] sm:$0xff]  ;;  %310 = vst [vmem:[%s5298_s8 + $0x1c8] sm:$0xff] %v309_v57 }
  0x37   : > { %312 = vst [vmem:[%s5298_s8 + $0x1d0] sm:$0xff] %v311_v58  ;;  %314 = vst [vmem:[%s5298_s8 + $0x1d8] sm:$0xff] %v313_v59  ;;  %v315_v60 = vld [vmem:[%s5293_s7 + $0x3c0] sm:$0xff]  ;;  %v317_v61 = vld [vmem:[%s5293_s7 + $0x3c8] sm:$0xff] }
  0x38   : > { %v319_v62 = vld [vmem:[%s5293_s7 + $0x3e0] sm:$0xff]  ;;  %316 = vst [vmem:[%s5298_s8 + $0x1e0] sm:$0xff] %v315_v60  ;;  %318 = vst [vmem:[%s5298_s8 + $0x1e8] sm:$0xff] %v317_v61  ;;  %v321_v63 = vld [vmem:[%s5293_s7 + $0x3e8] sm:$0xff] }
  0x39   : > { %320 = vst [vmem:[%s5298_s8 + $0x1f0] sm:$0xff] %v319_v62  ;;  %v323_v0 = vld [vmem:[%s5293_s7 + $0x400] sm:$0xff]  ;;  %v325_v1 = vld [vmem:[%s5293_s7 + $0x408] sm:$0xff]  ;;  %322 = vst [vmem:[%s5298_s8 + $0x1f8] sm:$0xff] %v321_v63 }
  0x3a   : > { %324 = vst [vmem:[%s5298_s8 + $0x200] sm:$0xff] %v323_v0  ;;  %326 = vst [vmem:[%s5298_s8 + $0x208] sm:$0xff] %v325_v1  ;;  %v327_v2 = vld [vmem:[%s5293_s7 + $0x420] sm:$0xff]  ;;  %v329_v3 = vld [vmem:[%s5293_s7 + $0x428] sm:$0xff] }
  0x3b   : > { %v331_v4 = vld [vmem:[%s5293_s7 + $0x440] sm:$0xff]  ;;  %328 = vst [vmem:[%s5298_s8 + $0x210] sm:$0xff] %v327_v2  ;;  %330 = vst [vmem:[%s5298_s8 + $0x218] sm:$0xff] %v329_v3  ;;  %v333_v5 = vld [vmem:[%s5293_s7 + $0x448] sm:$0xff] }
  0x3c   : > { %332 = vst [vmem:[%s5298_s8 + $0x220] sm:$0xff] %v331_v4  ;;  %v335_v6 = vld [vmem:[%s5293_s7 + $0x460] sm:$0xff]  ;;  %v337_v7 = vld [vmem:[%s5293_s7 + $0x468] sm:$0xff]  ;;  %334 = vst [vmem:[%s5298_s8 + $0x228] sm:$0xff] %v333_v5 }
  0x3d   : > { %336 = vst [vmem:[%s5298_s8 + $0x230] sm:$0xff] %v335_v6  ;;  %338 = vst [vmem:[%s5298_s8 + $0x238] sm:$0xff] %v337_v7  ;;  %v339_v8 = vld [vmem:[%s5293_s7 + $0x480] sm:$0xff]  ;;  %v341_v9 = vld [vmem:[%s5293_s7 + $0x488] sm:$0xff] }
  0x3e   : > { %v343_v10 = vld [vmem:[%s5293_s7 + $0x4a0] sm:$0xff]  ;;  %340 = vst [vmem:[%s5298_s8 + $0x240] sm:$0xff] %v339_v8  ;;  %342 = vst [vmem:[%s5298_s8 + $0x248] sm:$0xff] %v341_v9  ;;  %v345_v11 = vld [vmem:[%s5293_s7 + $0x4a8] sm:$0xff] }
  0x3f   : > { %344 = vst [vmem:[%s5298_s8 + $0x250] sm:$0xff] %v343_v10  ;;  %v347_v12 = vld [vmem:[%s5293_s7 + $0x4c0] sm:$0xff]  ;;  %v349_v13 = vld [vmem:[%s5293_s7 + $0x4c8] sm:$0xff]  ;;  %346 = vst [vmem:[%s5298_s8 + $0x258] sm:$0xff] %v345_v11 }
  0x40   : > { %348 = vst [vmem:[%s5298_s8 + $0x260] sm:$0xff] %v347_v12  ;;  %350 = vst [vmem:[%s5298_s8 + $0x268] sm:$0xff] %v349_v13  ;;  %v351_v14 = vld [vmem:[%s5293_s7 + $0x4e0] sm:$0xff]  ;;  %v353_v15 = vld [vmem:[%s5293_s7 + $0x4e8] sm:$0xff] }
  0x41   : > { %v355_v16 = vld [vmem:[%s5293_s7 + $0x500] sm:$0xff]  ;;  %352 = vst [vmem:[%s5298_s8 + $0x270] sm:$0xff] %v351_v14  ;;  %354 = vst [vmem:[%s5298_s8 + $0x278] sm:$0xff] %v353_v15  ;;  %v357_v17 = vld [vmem:[%s5293_s7 + $0x508] sm:$0xff] }
  0x42   : > { %356 = vst [vmem:[%s5298_s8 + $0x280] sm:$0xff] %v355_v16  ;;  %v359_v18 = vld [vmem:[%s5293_s7 + $0x520] sm:$0xff]  ;;  %v361_v19 = vld [vmem:[%s5293_s7 + $0x528] sm:$0xff]  ;;  %358 = vst [vmem:[%s5298_s8 + $0x288] sm:$0xff] %v357_v17 }
  0x43   : > { %360 = vst [vmem:[%s5298_s8 + $0x290] sm:$0xff] %v359_v18  ;;  %362 = vst [vmem:[%s5298_s8 + $0x298] sm:$0xff] %v361_v19  ;;  %v363_v20 = vld [vmem:[%s5293_s7 + $0x540] sm:$0xff]  ;;  %v365_v21 = vld [vmem:[%s5293_s7 + $0x548] sm:$0xff] }
  0x44   : > { %v367_v22 = vld [vmem:[%s5293_s7 + $0x560] sm:$0xff]  ;;  %364 = vst [vmem:[%s5298_s8 + $0x2a0] sm:$0xff] %v363_v20  ;;  %366 = vst [vmem:[%s5298_s8 + $0x2a8] sm:$0xff] %v365_v21  ;;  %v369_v23 = vld [vmem:[%s5293_s7 + $0x568] sm:$0xff] }
  0x45   : > { %368 = vst [vmem:[%s5298_s8 + $0x2b0] sm:$0xff] %v367_v22  ;;  %v371_v24 = vld [vmem:[%s5293_s7 + $0x580] sm:$0xff]  ;;  %v373_v25 = vld [vmem:[%s5293_s7 + $0x588] sm:$0xff]  ;;  %370 = vst [vmem:[%s5298_s8 + $0x2b8] sm:$0xff] %v369_v23 }
  0x46   : > { %372 = vst [vmem:[%s5298_s8 + $0x2c0] sm:$0xff] %v371_v24  ;;  %374 = vst [vmem:[%s5298_s8 + $0x2c8] sm:$0xff] %v373_v25  ;;  %v375_v26 = vld [vmem:[%s5293_s7 + $0x5a0] sm:$0xff]  ;;  %v377_v27 = vld [vmem:[%s5293_s7 + $0x5a8] sm:$0xff] }
  0x47   : > { %v379_v28 = vld [vmem:[%s5293_s7 + $0x5c0] sm:$0xff]  ;;  %376 = vst [vmem:[%s5298_s8 + $0x2d0] sm:$0xff] %v375_v26  ;;  %378 = vst [vmem:[%s5298_s8 + $0x2d8] sm:$0xff] %v377_v27  ;;  %v381_v29 = vld [vmem:[%s5293_s7 + $0x5c8] sm:$0xff] }
  0x48   : > { %380 = vst [vmem:[%s5298_s8 + $0x2e0] sm:$0xff] %v379_v28  ;;  %v383_v30 = vld [vmem:[%s5293_s7 + $0x5e0] sm:$0xff]  ;;  %v385_v31 = vld [vmem:[%s5293_s7 + $0x5e8] sm:$0xff]  ;;  %382 = vst [vmem:[%s5298_s8 + $0x2e8] sm:$0xff] %v381_v29 }
  0x49   : > { %384 = vst [vmem:[%s5298_s8 + $0x2f0] sm:$0xff] %v383_v30  ;;  %386 = vst [vmem:[%s5298_s8 + $0x2f8] sm:$0xff] %v385_v31  ;;  %v387_v32 = vld [vmem:[%s5293_s7 + $0x600] sm:$0xff]  ;;  %v389_v33 = vld [vmem:[%s5293_s7 + $0x608] sm:$0xff] }
  0x4a   : > { %v391_v34 = vld [vmem:[%s5293_s7 + $0x620] sm:$0xff]  ;;  %388 = vst [vmem:[%s5298_s8 + $0x300] sm:$0xff] %v387_v32  ;;  %390 = vst [vmem:[%s5298_s8 + $0x308] sm:$0xff] %v389_v33  ;;  %v393_v35 = vld [vmem:[%s5293_s7 + $0x628] sm:$0xff] }
  0x4b   : > { %392 = vst [vmem:[%s5298_s8 + $0x310] sm:$0xff] %v391_v34  ;;  %v395_v36 = vld [vmem:[%s5293_s7 + $0x640] sm:$0xff]  ;;  %v397_v37 = vld [vmem:[%s5293_s7 + $0x648] sm:$0xff]  ;;  %394 = vst [vmem:[%s5298_s8 + $0x318] sm:$0xff] %v393_v35 }
  0x4c   : > { %396 = vst [vmem:[%s5298_s8 + $0x320] sm:$0xff] %v395_v36  ;;  %398 = vst [vmem:[%s5298_s8 + $0x328] sm:$0xff] %v397_v37  ;;  %v399_v38 = vld [vmem:[%s5293_s7 + $0x660] sm:$0xff]  ;;  %v401_v39 = vld [vmem:[%s5293_s7 + $0x668] sm:$0xff] }
  0x4d   : > { %v403_v40 = vld [vmem:[%s5293_s7 + $0x680] sm:$0xff]  ;;  %400 = vst [vmem:[%s5298_s8 + $0x330] sm:$0xff] %v399_v38  ;;  %402 = vst [vmem:[%s5298_s8 + $0x338] sm:$0xff] %v401_v39  ;;  %v405_v41 = vld [vmem:[%s5293_s7 + $0x688] sm:$0xff] }
  0x4e   : > { %404 = vst [vmem:[%s5298_s8 + $0x340] sm:$0xff] %v403_v40  ;;  %v407_v42 = vld [vmem:[%s5293_s7 + $0x6a0] sm:$0xff]  ;;  %v409_v43 = vld [vmem:[%s5293_s7 + $0x6a8] sm:$0xff]  ;;  %406 = vst [vmem:[%s5298_s8 + $0x348] sm:$0xff] %v405_v41 }
  0x4f   : > { %408 = vst [vmem:[%s5298_s8 + $0x350] sm:$0xff] %v407_v42  ;;  %410 = vst [vmem:[%s5298_s8 + $0x358] sm:$0xff] %v409_v43  ;;  %v411_v44 = vld [vmem:[%s5293_s7 + $0x6c0] sm:$0xff]  ;;  %v413_v45 = vld [vmem:[%s5293_s7 + $0x6c8] sm:$0xff] }
  0x50   : > { %v415_v46 = vld [vmem:[%s5293_s7 + $0x6e0] sm:$0xff]  ;;  %412 = vst [vmem:[%s5298_s8 + $0x360] sm:$0xff] %v411_v44  ;;  %414 = vst [vmem:[%s5298_s8 + $0x368] sm:$0xff] %v413_v45  ;;  %v417_v47 = vld [vmem:[%s5293_s7 + $0x6e8] sm:$0xff] }
  0x51   : > { %416 = vst [vmem:[%s5298_s8 + $0x370] sm:$0xff] %v415_v46  ;;  %v419_v48 = vld [vmem:[%s5293_s7 + $0x700] sm:$0xff]  ;;  %v421_v49 = vld [vmem:[%s5293_s7 + $0x708] sm:$0xff]  ;;  %418 = vst [vmem:[%s5298_s8 + $0x378] sm:$0xff] %v417_v47 }
  0x52   : > { %420 = vst [vmem:[%s5298_s8 + $0x380] sm:$0xff] %v419_v48  ;;  %422 = vst [vmem:[%s5298_s8 + $0x388] sm:$0xff] %v421_v49  ;;  %v423_v50 = vld [vmem:[%s5293_s7 + $0x720] sm:$0xff]  ;;  %v425_v51 = vld [vmem:[%s5293_s7 + $0x728] sm:$0xff] }
  0x53   : > { %v427_v52 = vld [vmem:[%s5293_s7 + $0x740] sm:$0xff]  ;;  %424 = vst [vmem:[%s5298_s8 + $0x390] sm:$0xff] %v423_v50  ;;  %426 = vst [vmem:[%s5298_s8 + $0x398] sm:$0xff] %v425_v51  ;;  %v429_v53 = vld [vmem:[%s5293_s7 + $0x748] sm:$0xff] }
  0x54   : > { %428 = vst [vmem:[%s5298_s8 + $0x3a0] sm:$0xff] %v427_v52  ;;  %v431_v54 = vld [vmem:[%s5293_s7 + $0x760] sm:$0xff]  ;;  %v433_v55 = vld [vmem:[%s5293_s7 + $0x768] sm:$0xff]  ;;  %430 = vst [vmem:[%s5298_s8 + $0x3a8] sm:$0xff] %v429_v53 }
  0x55   : > { %432 = vst [vmem:[%s5298_s8 + $0x3b0] sm:$0xff] %v431_v54  ;;  %434 = vst [vmem:[%s5298_s8 + $0x3b8] sm:$0xff] %v433_v55  ;;  %v435_v56 = vld [vmem:[%s5293_s7 + $0x780] sm:$0xff]  ;;  %v437_v57 = vld [vmem:[%s5293_s7 + $0x788] sm:$0xff] }
  0x56   : > { %v439_v58 = vld [vmem:[%s5293_s7 + $0x7a0] sm:$0xff]  ;;  %436 = vst [vmem:[%s5298_s8 + $0x3c0] sm:$0xff] %v435_v56  ;;  %438 = vst [vmem:[%s5298_s8 + $0x3c8] sm:$0xff] %v437_v57  ;;  %v441_v59 = vld [vmem:[%s5293_s7 + $0x7a8] sm:$0xff] }
  0x57   : > { %440 = vst [vmem:[%s5298_s8 + $0x3d0] sm:$0xff] %v439_v58  ;;  %v443_v60 = vld [vmem:[%s5293_s7 + $0x7c0] sm:$0xff]  ;;  %v445_v61 = vld [vmem:[%s5293_s7 + $0x7c8] sm:$0xff]  ;;  %442 = vst [vmem:[%s5298_s8 + $0x3d8] sm:$0xff] %v441_v59 }
  0x58   : > { %444 = vst [vmem:[%s5298_s8 + $0x3e0] sm:$0xff] %v443_v60  ;;  %446 = vst [vmem:[%s5298_s8 + $0x3e8] sm:$0xff] %v445_v61  ;;  %v447_v62 = vld [vmem:[%s5293_s7 + $0x7e0] sm:$0xff]  ;;  %v449_v63 = vld [vmem:[%s5293_s7 + $0x7e8] sm:$0xff] }
  0x59   : > { %v451_v0 = vld [vmem:[%s5293_s7 + $0x800] sm:$0xff]  ;;  %448 = vst [vmem:[%s5298_s8 + $0x3f0] sm:$0xff] %v447_v62  ;;  %450 = vst [vmem:[%s5298_s8 + $0x3f8] sm:$0xff] %v449_v63  ;;  %v453_v1 = vld [vmem:[%s5293_s7 + $0x808] sm:$0xff] }
  0x5a   : > { %452 = vst [vmem:[%s5298_s8 + $0x400] sm:$0xff] %v451_v0  ;;  %v455_v2 = vld [vmem:[%s5293_s7 + $0x820] sm:$0xff]  ;;  %v457_v3 = vld [vmem:[%s5293_s7 + $0x828] sm:$0xff]  ;;  %454 = vst [vmem:[%s5298_s8 + $0x408] sm:$0xff] %v453_v1 }
  0x5b   : > { %456 = vst [vmem:[%s5298_s8 + $0x410] sm:$0xff] %v455_v2  ;;  %458 = vst [vmem:[%s5298_s8 + $0x418] sm:$0xff] %v457_v3  ;;  %v459_v4 = vld [vmem:[%s5293_s7 + $0x840] sm:$0xff]  ;;  %v461_v5 = vld [vmem:[%s5293_s7 + $0x848] sm:$0xff] }
  0x5c   : > { %v463_v6 = vld [vmem:[%s5293_s7 + $0x860] sm:$0xff]  ;;  %460 = vst [vmem:[%s5298_s8 + $0x420] sm:$0xff] %v459_v4  ;;  %462 = vst [vmem:[%s5298_s8 + $0x428] sm:$0xff] %v461_v5  ;;  %v465_v7 = vld [vmem:[%s5293_s7 + $0x868] sm:$0xff] }
  0x5d   : > { %464 = vst [vmem:[%s5298_s8 + $0x430] sm:$0xff] %v463_v6  ;;  %v467_v8 = vld [vmem:[%s5293_s7 + $0x880] sm:$0xff]  ;;  %v469_v9 = vld [vmem:[%s5293_s7 + $0x888] sm:$0xff]  ;;  %466 = vst [vmem:[%s5298_s8 + $0x438] sm:$0xff] %v465_v7 }
  0x5e   : > { %468 = vst [vmem:[%s5298_s8 + $0x440] sm:$0xff] %v467_v8  ;;  %470 = vst [vmem:[%s5298_s8 + $0x448] sm:$0xff] %v469_v9  ;;  %v471_v10 = vld [vmem:[%s5293_s7 + $0x8a0] sm:$0xff]  ;;  %v473_v11 = vld [vmem:[%s5293_s7 + $0x8a8] sm:$0xff] }
  0x5f   : > { %v475_v12 = vld [vmem:[%s5293_s7 + $0x8c0] sm:$0xff]  ;;  %472 = vst [vmem:[%s5298_s8 + $0x450] sm:$0xff] %v471_v10  ;;  %474 = vst [vmem:[%s5298_s8 + $0x458] sm:$0xff] %v473_v11  ;;  %v477_v13 = vld [vmem:[%s5293_s7 + $0x8c8] sm:$0xff] }
  0x60   : > { %476 = vst [vmem:[%s5298_s8 + $0x460] sm:$0xff] %v475_v12  ;;  %v479_v14 = vld [vmem:[%s5293_s7 + $0x8e0] sm:$0xff]  ;;  %v481_v15 = vld [vmem:[%s5293_s7 + $0x8e8] sm:$0xff]  ;;  %478 = vst [vmem:[%s5298_s8 + $0x468] sm:$0xff] %v477_v13 }
  0x61   : > { %480 = vst [vmem:[%s5298_s8 + $0x470] sm:$0xff] %v479_v14  ;;  %482 = vst [vmem:[%s5298_s8 + $0x478] sm:$0xff] %v481_v15  ;;  %v483_v16 = vld [vmem:[%s5293_s7 + $0x900] sm:$0xff]  ;;  %v485_v17 = vld [vmem:[%s5293_s7 + $0x908] sm:$0xff] }
  0x62   : > { %v487_v18 = vld [vmem:[%s5293_s7 + $0x920] sm:$0xff]  ;;  %484 = vst [vmem:[%s5298_s8 + $0x480] sm:$0xff] %v483_v16  ;;  %486 = vst [vmem:[%s5298_s8 + $0x488] sm:$0xff] %v485_v17  ;;  %v489_v19 = vld [vmem:[%s5293_s7 + $0x928] sm:$0xff] }
  0x63   : > { %488 = vst [vmem:[%s5298_s8 + $0x490] sm:$0xff] %v487_v18  ;;  %v491_v20 = vld [vmem:[%s5293_s7 + $0x940] sm:$0xff]  ;;  %v493_v21 = vld [vmem:[%s5293_s7 + $0x948] sm:$0xff]  ;;  %490 = vst [vmem:[%s5298_s8 + $0x498] sm:$0xff] %v489_v19 }
  0x64   : > { %492 = vst [vmem:[%s5298_s8 + $0x4a0] sm:$0xff] %v491_v20  ;;  %494 = vst [vmem:[%s5298_s8 + $0x4a8] sm:$0xff] %v493_v21  ;;  %v495_v22 = vld [vmem:[%s5293_s7 + $0x960] sm:$0xff]  ;;  %v497_v23 = vld [vmem:[%s5293_s7 + $0x968] sm:$0xff] }
  0x65   : > { %v499_v24 = vld [vmem:[%s5293_s7 + $0x980] sm:$0xff]  ;;  %496 = vst [vmem:[%s5298_s8 + $0x4b0] sm:$0xff] %v495_v22  ;;  %498 = vst [vmem:[%s5298_s8 + $0x4b8] sm:$0xff] %v497_v23  ;;  %v501_v25 = vld [vmem:[%s5293_s7 + $0x988] sm:$0xff] }
  0x66   : > { %500 = vst [vmem:[%s5298_s8 + $0x4c0] sm:$0xff] %v499_v24  ;;  %v503_v26 = vld [vmem:[%s5293_s7 + $0x9a0] sm:$0xff]  ;;  %v505_v27 = vld [vmem:[%s5293_s7 + $0x9a8] sm:$0xff]  ;;  %502 = vst [vmem:[%s5298_s8 + $0x4c8] sm:$0xff] %v501_v25 }
  0x67   : > { %504 = vst [vmem:[%s5298_s8 + $0x4d0] sm:$0xff] %v503_v26  ;;  %506 = vst [vmem:[%s5298_s8 + $0x4d8] sm:$0xff] %v505_v27  ;;  %v507_v28 = vld [vmem:[%s5293_s7 + $0x9c0] sm:$0xff]  ;;  %v509_v29 = vld [vmem:[%s5293_s7 + $0x9c8] sm:$0xff] }
  0x68   : > { %v511_v30 = vld [vmem:[%s5293_s7 + $0x9e0] sm:$0xff]  ;;  %508 = vst [vmem:[%s5298_s8 + $0x4e0] sm:$0xff] %v507_v28  ;;  %510 = vst [vmem:[%s5298_s8 + $0x4e8] sm:$0xff] %v509_v29  ;;  %v513_v31 = vld [vmem:[%s5293_s7 + $0x9e8] sm:$0xff] }
  0x69   : > { %512 = vst [vmem:[%s5298_s8 + $0x4f0] sm:$0xff] %v511_v30  ;;  %v515_v32 = vld [vmem:[%s5293_s7 + $0xa00] sm:$0xff]  ;;  %v517_v33 = vld [vmem:[%s5293_s7 + $0xa08] sm:$0xff]  ;;  %514 = vst [vmem:[%s5298_s8 + $0x4f8] sm:$0xff] %v513_v31 }
  0x6a   : > { %516 = vst [vmem:[%s5298_s8 + $0x500] sm:$0xff] %v515_v32  ;;  %518 = vst [vmem:[%s5298_s8 + $0x508] sm:$0xff] %v517_v33  ;;  %v519_v34 = vld [vmem:[%s5293_s7 + $0xa20] sm:$0xff]  ;;  %v521_v35 = vld [vmem:[%s5293_s7 + $0xa28] sm:$0xff] }
  0x6b   : > { %v523_v36 = vld [vmem:[%s5293_s7 + $0xa40] sm:$0xff]  ;;  %520 = vst [vmem:[%s5298_s8 + $0x510] sm:$0xff] %v519_v34  ;;  %522 = vst [vmem:[%s5298_s8 + $0x518] sm:$0xff] %v521_v35  ;;  %v525_v37 = vld [vmem:[%s5293_s7 + $0xa48] sm:$0xff] }
  0x6c   : > { %524 = vst [vmem:[%s5298_s8 + $0x520] sm:$0xff] %v523_v36  ;;  %v527_v38 = vld [vmem:[%s5293_s7 + $0xa60] sm:$0xff]  ;;  %v529_v39 = vld [vmem:[%s5293_s7 + $0xa68] sm:$0xff]  ;;  %526 = vst [vmem:[%s5298_s8 + $0x528] sm:$0xff] %v525_v37 }
  0x6d   : > { %528 = vst [vmem:[%s5298_s8 + $0x530] sm:$0xff] %v527_v38  ;;  %530 = vst [vmem:[%s5298_s8 + $0x538] sm:$0xff] %v529_v39  ;;  %v531_v40 = vld [vmem:[%s5293_s7 + $0xa80] sm:$0xff]  ;;  %v533_v41 = vld [vmem:[%s5293_s7 + $0xa88] sm:$0xff] }
  0x6e   : > { %v535_v42 = vld [vmem:[%s5293_s7 + $0xaa0] sm:$0xff]  ;;  %532 = vst [vmem:[%s5298_s8 + $0x540] sm:$0xff] %v531_v40  ;;  %534 = vst [vmem:[%s5298_s8 + $0x548] sm:$0xff] %v533_v41  ;;  %v537_v43 = vld [vmem:[%s5293_s7 + $0xaa8] sm:$0xff] }
  0x6f   : > { %536 = vst [vmem:[%s5298_s8 + $0x550] sm:$0xff] %v535_v42  ;;  %v539_v44 = vld [vmem:[%s5293_s7 + $0xac0] sm:$0xff]  ;;  %v541_v45 = vld [vmem:[%s5293_s7 + $0xac8] sm:$0xff]  ;;  %538 = vst [vmem:[%s5298_s8 + $0x558] sm:$0xff] %v537_v43 }
  0x70   : > { %540 = vst [vmem:[%s5298_s8 + $0x560] sm:$0xff] %v539_v44  ;;  %542 = vst [vmem:[%s5298_s8 + $0x568] sm:$0xff] %v541_v45  ;;  %v543_v46 = vld [vmem:[%s5293_s7 + $0xae0] sm:$0xff]  ;;  %v545_v47 = vld [vmem:[%s5293_s7 + $0xae8] sm:$0xff] }
  0x71   : > { %v547_v48 = vld [vmem:[%s5293_s7 + $0xb00] sm:$0xff]  ;;  %544 = vst [vmem:[%s5298_s8 + $0x570] sm:$0xff] %v543_v46  ;;  %546 = vst [vmem:[%s5298_s8 + $0x578] sm:$0xff] %v545_v47  ;;  %v549_v49 = vld [vmem:[%s5293_s7 + $0xb08] sm:$0xff] }
  0x72   : > { %548 = vst [vmem:[%s5298_s8 + $0x580] sm:$0xff] %v547_v48  ;;  %v551_v50 = vld [vmem:[%s5293_s7 + $0xb20] sm:$0xff]  ;;  %v553_v51 = vld [vmem:[%s5293_s7 + $0xb28] sm:$0xff]  ;;  %550 = vst [vmem:[%s5298_s8 + $0x588] sm:$0xff] %v549_v49 }
  0x73   : > { %552 = vst [vmem:[%s5298_s8 + $0x590] sm:$0xff] %v551_v50  ;;  %554 = vst [vmem:[%s5298_s8 + $0x598] sm:$0xff] %v553_v51  ;;  %v555_v52 = vld [vmem:[%s5293_s7 + $0xb40] sm:$0xff]  ;;  %v557_v53 = vld [vmem:[%s5293_s7 + $0xb48] sm:$0xff] }
  0x74   : > { %v559_v54 = vld [vmem:[%s5293_s7 + $0xb60] sm:$0xff]  ;;  %556 = vst [vmem:[%s5298_s8 + $0x5a0] sm:$0xff] %v555_v52  ;;  %558 = vst [vmem:[%s5298_s8 + $0x5a8] sm:$0xff] %v557_v53  ;;  %v561_v55 = vld [vmem:[%s5293_s7 + $0xb68] sm:$0xff] }
  0x75   : > { %560 = vst [vmem:[%s5298_s8 + $0x5b0] sm:$0xff] %v559_v54  ;;  %v563_v56 = vld [vmem:[%s5293_s7 + $0xb80] sm:$0xff]  ;;  %v565_v57 = vld [vmem:[%s5293_s7 + $0xb88] sm:$0xff]  ;;  %562 = vst [vmem:[%s5298_s8 + $0x5b8] sm:$0xff] %v561_v55 }
  0x76   : > { %564 = vst [vmem:[%s5298_s8 + $0x5c0] sm:$0xff] %v563_v56  ;;  %566 = vst [vmem:[%s5298_s8 + $0x5c8] sm:$0xff] %v565_v57  ;;  %v567_v58 = vld [vmem:[%s5293_s7 + $0xba0] sm:$0xff]  ;;  %v569_v59 = vld [vmem:[%s5293_s7 + $0xba8] sm:$0xff] }
  0x77   : > { %v571_v60 = vld [vmem:[%s5293_s7 + $0xbc0] sm:$0xff]  ;;  %568 = vst [vmem:[%s5298_s8 + $0x5d0] sm:$0xff] %v567_v58  ;;  %570 = vst [vmem:[%s5298_s8 + $0x5d8] sm:$0xff] %v569_v59  ;;  %v573_v61 = vld [vmem:[%s5293_s7 + $0xbc8] sm:$0xff] }
  0x78   : > { %572 = vst [vmem:[%s5298_s8 + $0x5e0] sm:$0xff] %v571_v60  ;;  %v575_v62 = vld [vmem:[%s5293_s7 + $0xbe0] sm:$0xff]  ;;  %v577_v63 = vld [vmem:[%s5293_s7 + $0xbe8] sm:$0xff]  ;;  %574 = vst [vmem:[%s5298_s8 + $0x5e8] sm:$0xff] %v573_v61 }
  0x79   : > { %576 = vst [vmem:[%s5298_s8 + $0x5f0] sm:$0xff] %v575_v62  ;;  %578 = vst [vmem:[%s5298_s8 + $0x5f8] sm:$0xff] %v577_v63  ;;  %v579_v0 = vld [vmem:[%s5293_s7 + $0xc00] sm:$0xff]  ;;  %v581_v1 = vld [vmem:[%s5293_s7 + $0xc08] sm:$0xff] }
  0x7a   : > { %v583_v2 = vld [vmem:[%s5293_s7 + $0xc20] sm:$0xff]  ;;  %580 = vst [vmem:[%s5298_s8 + $0x600] sm:$0xff] %v579_v0  ;;  %582 = vst [vmem:[%s5298_s8 + $0x608] sm:$0xff] %v581_v1  ;;  %v585_v3 = vld [vmem:[%s5293_s7 + $0xc28] sm:$0xff] }
  0x7b   : > { %584 = vst [vmem:[%s5298_s8 + $0x610] sm:$0xff] %v583_v2  ;;  %v587_v4 = vld [vmem:[%s5293_s7 + $0xc40] sm:$0xff]  ;;  %v589_v5 = vld [vmem:[%s5293_s7 + $0xc48] sm:$0xff]  ;;  %586 = vst [vmem:[%s5298_s8 + $0x618] sm:$0xff] %v585_v3 }
  0x7c   : > { %588 = vst [vmem:[%s5298_s8 + $0x620] sm:$0xff] %v587_v4  ;;  %590 = vst [vmem:[%s5298_s8 + $0x628] sm:$0xff] %v589_v5  ;;  %v591_v6 = vld [vmem:[%s5293_s7 + $0xc60] sm:$0xff]  ;;  %v593_v7 = vld [vmem:[%s5293_s7 + $0xc68] sm:$0xff] }
  0x7d   : > { %v595_v8 = vld [vmem:[%s5293_s7 + $0xc80] sm:$0xff]  ;;  %592 = vst [vmem:[%s5298_s8 + $0x630] sm:$0xff] %v591_v6  ;;  %594 = vst [vmem:[%s5298_s8 + $0x638] sm:$0xff] %v593_v7  ;;  %v597_v9 = vld [vmem:[%s5293_s7 + $0xc88] sm:$0xff] }
  0x7e   : > { %596 = vst [vmem:[%s5298_s8 + $0x640] sm:$0xff] %v595_v8  ;;  %v599_v10 = vld [vmem:[%s5293_s7 + $0xca0] sm:$0xff]  ;;  %v601_v11 = vld [vmem:[%s5293_s7 + $0xca8] sm:$0xff]  ;;  %598 = vst [vmem:[%s5298_s8 + $0x648] sm:$0xff] %v597_v9 }
  0x7f   : > { %600 = vst [vmem:[%s5298_s8 + $0x650] sm:$0xff] %v599_v10  ;;  %602 = vst [vmem:[%s5298_s8 + $0x658] sm:$0xff] %v601_v11  ;;  %v603_v12 = vld [vmem:[%s5293_s7 + $0xcc0] sm:$0xff]  ;;  %v605_v13 = vld [vmem:[%s5293_s7 + $0xcc8] sm:$0xff] }
  0x80   : > { %v607_v14 = vld [vmem:[%s5293_s7 + $0xce0] sm:$0xff]  ;;  %604 = vst [vmem:[%s5298_s8 + $0x660] sm:$0xff] %v603_v12  ;;  %606 = vst [vmem:[%s5298_s8 + $0x668] sm:$0xff] %v605_v13  ;;  %v609_v15 = vld [vmem:[%s5293_s7 + $0xce8] sm:$0xff] }
  0x81   : > { %608 = vst [vmem:[%s5298_s8 + $0x670] sm:$0xff] %v607_v14  ;;  %v611_v16 = vld [vmem:[%s5293_s7 + $0xd00] sm:$0xff]  ;;  %v613_v17 = vld [vmem:[%s5293_s7 + $0xd08] sm:$0xff]  ;;  %610 = vst [vmem:[%s5298_s8 + $0x678] sm:$0xff] %v609_v15 }
  0x82   : > { %612 = vst [vmem:[%s5298_s8 + $0x680] sm:$0xff] %v611_v16  ;;  %614 = vst [vmem:[%s5298_s8 + $0x688] sm:$0xff] %v613_v17  ;;  %v615_v18 = vld [vmem:[%s5293_s7 + $0xd20] sm:$0xff]  ;;  %v617_v19 = vld [vmem:[%s5293_s7 + $0xd28] sm:$0xff] }
  0x83   : > { %v619_v20 = vld [vmem:[%s5293_s7 + $0xd40] sm:$0xff]  ;;  %616 = vst [vmem:[%s5298_s8 + $0x690] sm:$0xff] %v615_v18  ;;  %618 = vst [vmem:[%s5298_s8 + $0x698] sm:$0xff] %v617_v19  ;;  %v621_v21 = vld [vmem:[%s5293_s7 + $0xd48] sm:$0xff] }
  0x84   : > { %620 = vst [vmem:[%s5298_s8 + $0x6a0] sm:$0xff] %v619_v20  ;;  %v623_v22 = vld [vmem:[%s5293_s7 + $0xd60] sm:$0xff]  ;;  %v625_v23 = vld [vmem:[%s5293_s7 + $0xd68] sm:$0xff]  ;;  %622 = vst [vmem:[%s5298_s8 + $0x6a8] sm:$0xff] %v621_v21 }
  0x85   : > { %624 = vst [vmem:[%s5298_s8 + $0x6b0] sm:$0xff] %v623_v22  ;;  %626 = vst [vmem:[%s5298_s8 + $0x6b8] sm:$0xff] %v625_v23  ;;  %v627_v24 = vld [vmem:[%s5293_s7 + $0xd80] sm:$0xff]  ;;  %v629_v25 = vld [vmem:[%s5293_s7 + $0xd88] sm:$0xff] }
  0x86   : > { %v631_v26 = vld [vmem:[%s5293_s7 + $0xda0] sm:$0xff]  ;;  %628 = vst [vmem:[%s5298_s8 + $0x6c0] sm:$0xff] %v627_v24  ;;  %630 = vst [vmem:[%s5298_s8 + $0x6c8] sm:$0xff] %v629_v25  ;;  %v633_v27 = vld [vmem:[%s5293_s7 + $0xda8] sm:$0xff] }
  0x87   : > { %632 = vst [vmem:[%s5298_s8 + $0x6d0] sm:$0xff] %v631_v26  ;;  %v635_v28 = vld [vmem:[%s5293_s7 + $0xdc0] sm:$0xff]  ;;  %v637_v29 = vld [vmem:[%s5293_s7 + $0xdc8] sm:$0xff]  ;;  %634 = vst [vmem:[%s5298_s8 + $0x6d8] sm:$0xff] %v633_v27 }
  0x88   : > { %636 = vst [vmem:[%s5298_s8 + $0x6e0] sm:$0xff] %v635_v28  ;;  %638 = vst [vmem:[%s5298_s8 + $0x6e8] sm:$0xff] %v637_v29  ;;  %v639_v30 = vld [vmem:[%s5293_s7 + $0xde0] sm:$0xff]  ;;  %v641_v31 = vld [vmem:[%s5293_s7 + $0xde8] sm:$0xff] }
  0x89   : > { %v643_v32 = vld [vmem:[%s5293_s7 + $0xe00] sm:$0xff]  ;;  %640 = vst [vmem:[%s5298_s8 + $0x6f0] sm:$0xff] %v639_v30  ;;  %642 = vst [vmem:[%s5298_s8 + $0x6f8] sm:$0xff] %v641_v31  ;;  %v645_v33 = vld [vmem:[%s5293_s7 + $0xe08] sm:$0xff] }
  0x8a   : > { %644 = vst [vmem:[%s5298_s8 + $0x700] sm:$0xff] %v643_v32  ;;  %v647_v34 = vld [vmem:[%s5293_s7 + $0xe20] sm:$0xff]  ;;  %v649_v35 = vld [vmem:[%s5293_s7 + $0xe28] sm:$0xff]  ;;  %646 = vst [vmem:[%s5298_s8 + $0x708] sm:$0xff] %v645_v33 }
  0x8b   : > { %648 = vst [vmem:[%s5298_s8 + $0x710] sm:$0xff] %v647_v34  ;;  %650 = vst [vmem:[%s5298_s8 + $0x718] sm:$0xff] %v649_v35  ;;  %v651_v36 = vld [vmem:[%s5293_s7 + $0xe40] sm:$0xff]  ;;  %v653_v37 = vld [vmem:[%s5293_s7 + $0xe48] sm:$0xff] }
  0x8c   : > { %v655_v38 = vld [vmem:[%s5293_s7 + $0xe60] sm:$0xff]  ;;  %652 = vst [vmem:[%s5298_s8 + $0x720] sm:$0xff] %v651_v36  ;;  %654 = vst [vmem:[%s5298_s8 + $0x728] sm:$0xff] %v653_v37  ;;  %v657_v39 = vld [vmem:[%s5293_s7 + $0xe68] sm:$0xff] }
  0x8d   : > { %656 = vst [vmem:[%s5298_s8 + $0x730] sm:$0xff] %v655_v38  ;;  %v659_v40 = vld [vmem:[%s5293_s7 + $0xe80] sm:$0xff]  ;;  %v661_v41 = vld [vmem:[%s5293_s7 + $0xe88] sm:$0xff]  ;;  %658 = vst [vmem:[%s5298_s8 + $0x738] sm:$0xff] %v657_v39 }
  0x8e   : > { %660 = vst [vmem:[%s5298_s8 + $0x740] sm:$0xff] %v659_v40  ;;  %662 = vst [vmem:[%s5298_s8 + $0x748] sm:$0xff] %v661_v41  ;;  %v663_v42 = vld [vmem:[%s5293_s7 + $0xea0] sm:$0xff]  ;;  %v665_v43 = vld [vmem:[%s5293_s7 + $0xea8] sm:$0xff] }
  0x8f   : > { %v667_v44 = vld [vmem:[%s5293_s7 + $0xec0] sm:$0xff]  ;;  %664 = vst [vmem:[%s5298_s8 + $0x750] sm:$0xff] %v663_v42  ;;  %666 = vst [vmem:[%s5298_s8 + $0x758] sm:$0xff] %v665_v43  ;;  %v669_v45 = vld [vmem:[%s5293_s7 + $0xec8] sm:$0xff] }
  0x90   : > { %668 = vst [vmem:[%s5298_s8 + $0x760] sm:$0xff] %v667_v44  ;;  %v671_v46 = vld [vmem:[%s5293_s7 + $0xee0] sm:$0xff]  ;;  %v673_v47 = vld [vmem:[%s5293_s7 + $0xee8] sm:$0xff]  ;;  %670 = vst [vmem:[%s5298_s8 + $0x768] sm:$0xff] %v669_v45 }
  0x91   : > { %672 = vst [vmem:[%s5298_s8 + $0x770] sm:$0xff] %v671_v46  ;;  %674 = vst [vmem:[%s5298_s8 + $0x778] sm:$0xff] %v673_v47  ;;  %v675_v48 = vld [vmem:[%s5293_s7 + $0xf00] sm:$0xff]  ;;  %v677_v49 = vld [vmem:[%s5293_s7 + $0xf08] sm:$0xff] }
  0x92   : > { %v679_v50 = vld [vmem:[%s5293_s7 + $0xf20] sm:$0xff]  ;;  %676 = vst [vmem:[%s5298_s8 + $0x780] sm:$0xff] %v675_v48  ;;  %678 = vst [vmem:[%s5298_s8 + $0x788] sm:$0xff] %v677_v49  ;;  %v681_v51 = vld [vmem:[%s5293_s7 + $0xf28] sm:$0xff] }
  0x93   : > { %680 = vst [vmem:[%s5298_s8 + $0x790] sm:$0xff] %v679_v50  ;;  %v683_v52 = vld [vmem:[%s5293_s7 + $0xf40] sm:$0xff]  ;;  %v685_v53 = vld [vmem:[%s5293_s7 + $0xf48] sm:$0xff]  ;;  %682 = vst [vmem:[%s5298_s8 + $0x798] sm:$0xff] %v681_v51 }
  0x94   : > { %684 = vst [vmem:[%s5298_s8 + $0x7a0] sm:$0xff] %v683_v52  ;;  %686 = vst [vmem:[%s5298_s8 + $0x7a8] sm:$0xff] %v685_v53  ;;  %v687_v54 = vld [vmem:[%s5293_s7 + $0xf60] sm:$0xff]  ;;  %v689_v55 = vld [vmem:[%s5293_s7 + $0xf68] sm:$0xff] }
  0x95   : > { %v691_v56 = vld [vmem:[%s5293_s7 + $0xf80] sm:$0xff]  ;;  %688 = vst [vmem:[%s5298_s8 + $0x7b0] sm:$0xff] %v687_v54  ;;  %690 = vst [vmem:[%s5298_s8 + $0x7b8] sm:$0xff] %v689_v55  ;;  %v693_v57 = vld [vmem:[%s5293_s7 + $0xf88] sm:$0xff] }
  0x96   : > { %692 = vst [vmem:[%s5298_s8 + $0x7c0] sm:$0xff] %v691_v56  ;;  %v695_v58 = vld [vmem:[%s5293_s7 + $0xfa0] sm:$0xff]  ;;  %v697_v59 = vld [vmem:[%s5293_s7 + $0xfa8] sm:$0xff]  ;;  %694 = vst [vmem:[%s5298_s8 + $0x7c8] sm:$0xff] %v693_v57 }
  0x97   : > { %696 = vst [vmem:[%s5298_s8 + $0x7d0] sm:$0xff] %v695_v58  ;;  %698 = vst [vmem:[%s5298_s8 + $0x7d8] sm:$0xff] %v697_v59  ;;  %v699_v60 = vld [vmem:[%s5293_s7 + $0xfc0] sm:$0xff]  ;;  %v701_v61 = vld [vmem:[%s5293_s7 + $0xfc8] sm:$0xff] }
  0x98   : > { %v703_v62 = vld [vmem:[%s5293_s7 + $0xfe0] sm:$0xff]  ;;  %700 = vst [vmem:[%s5298_s8 + $0x7e0] sm:$0xff] %v699_v60  ;;  %702 = vst [vmem:[%s5298_s8 + $0x7e8] sm:$0xff] %v701_v61  ;;  %v705_v63 = vld [vmem:[%s5293_s7 + $0xfe8] sm:$0xff] }
  0x99   : > { %704 = vst [vmem:[%s5298_s8 + $0x7f0] sm:$0xff] %v703_v62  ;;  %v707_v0 = vld [vmem:[%s5293_s7 + $0x1000] sm:$0xff]  ;;  %v709_v1 = vld [vmem:[%s5293_s7 + $0x1008] sm:$0xff]  ;;  %706 = vst [vmem:[%s5298_s8 + $0x7f8] sm:$0xff] %v705_v63 }
  0x9a   : > { %708 = vst [vmem:[%s5298_s8 + $0x800] sm:$0xff] %v707_v0  ;;  %710 = vst [vmem:[%s5298_s8 + $0x808] sm:$0xff] %v709_v1  ;;  %v711_v2 = vld [vmem:[%s5293_s7 + $0x1020] sm:$0xff]  ;;  %v713_v3 = vld [vmem:[%s5293_s7 + $0x1028] sm:$0xff] }
  0x9b   : > { %v715_v4 = vld [vmem:[%s5293_s7 + $0x1040] sm:$0xff]  ;;  %712 = vst [vmem:[%s5298_s8 + $0x810] sm:$0xff] %v711_v2  ;;  %714 = vst [vmem:[%s5298_s8 + $0x818] sm:$0xff] %v713_v3  ;;  %v717_v5 = vld [vmem:[%s5293_s7 + $0x1048] sm:$0xff] }
  0x9c   : > { %716 = vst [vmem:[%s5298_s8 + $0x820] sm:$0xff] %v715_v4  ;;  %v719_v6 = vld [vmem:[%s5293_s7 + $0x1060] sm:$0xff]  ;;  %v721_v7 = vld [vmem:[%s5293_s7 + $0x1068] sm:$0xff]  ;;  %718 = vst [vmem:[%s5298_s8 + $0x828] sm:$0xff] %v717_v5 }
  0x9d   : > { %720 = vst [vmem:[%s5298_s8 + $0x830] sm:$0xff] %v719_v6  ;;  %722 = vst [vmem:[%s5298_s8 + $0x838] sm:$0xff] %v721_v7  ;;  %v723_v8 = vld [vmem:[%s5293_s7 + $0x1080] sm:$0xff]  ;;  %v725_v9 = vld [vmem:[%s5293_s7 + $0x1088] sm:$0xff] }
  0x9e   : > { %v727_v10 = vld [vmem:[%s5293_s7 + $0x10a0] sm:$0xff]  ;;  %724 = vst [vmem:[%s5298_s8 + $0x840] sm:$0xff] %v723_v8  ;;  %726 = vst [vmem:[%s5298_s8 + $0x848] sm:$0xff] %v725_v9  ;;  %v729_v11 = vld [vmem:[%s5293_s7 + $0x10a8] sm:$0xff] }
  0x9f   : > { %728 = vst [vmem:[%s5298_s8 + $0x850] sm:$0xff] %v727_v10  ;;  %v731_v12 = vld [vmem:[%s5293_s7 + $0x10c0] sm:$0xff]  ;;  %v733_v13 = vld [vmem:[%s5293_s7 + $0x10c8] sm:$0xff]  ;;  %730 = vst [vmem:[%s5298_s8 + $0x858] sm:$0xff] %v729_v11 }
  0xa0   : > { %732 = vst [vmem:[%s5298_s8 + $0x860] sm:$0xff] %v731_v12  ;;  %734 = vst [vmem:[%s5298_s8 + $0x868] sm:$0xff] %v733_v13  ;;  %v735_v14 = vld [vmem:[%s5293_s7 + $0x10e0] sm:$0xff]  ;;  %v737_v15 = vld [vmem:[%s5293_s7 + $0x10e8] sm:$0xff] }
  0xa1   : > { %v739_v16 = vld [vmem:[%s5293_s7 + $0x1100] sm:$0xff]  ;;  %736 = vst [vmem:[%s5298_s8 + $0x870] sm:$0xff] %v735_v14  ;;  %738 = vst [vmem:[%s5298_s8 + $0x878] sm:$0xff] %v737_v15  ;;  %v741_v17 = vld [vmem:[%s5293_s7 + $0x1108] sm:$0xff] }
  0xa2   : > { %740 = vst [vmem:[%s5298_s8 + $0x880] sm:$0xff] %v739_v16  ;;  %v743_v18 = vld [vmem:[%s5293_s7 + $0x1120] sm:$0xff]  ;;  %v745_v19 = vld [vmem:[%s5293_s7 + $0x1128] sm:$0xff]  ;;  %742 = vst [vmem:[%s5298_s8 + $0x888] sm:$0xff] %v741_v17 }
  0xa3   : > { %744 = vst [vmem:[%s5298_s8 + $0x890] sm:$0xff] %v743_v18  ;;  %746 = vst [vmem:[%s5298_s8 + $0x898] sm:$0xff] %v745_v19  ;;  %v747_v20 = vld [vmem:[%s5293_s7 + $0x1140] sm:$0xff]  ;;  %v749_v21 = vld [vmem:[%s5293_s7 + $0x1148] sm:$0xff] }
  0xa4   : > { %v751_v22 = vld [vmem:[%s5293_s7 + $0x1160] sm:$0xff]  ;;  %748 = vst [vmem:[%s5298_s8 + $0x8a0] sm:$0xff] %v747_v20  ;;  %750 = vst [vmem:[%s5298_s8 + $0x8a8] sm:$0xff] %v749_v21  ;;  %v753_v23 = vld [vmem:[%s5293_s7 + $0x1168] sm:$0xff] }
  0xa5   : > { %752 = vst [vmem:[%s5298_s8 + $0x8b0] sm:$0xff] %v751_v22  ;;  %v755_v24 = vld [vmem:[%s5293_s7 + $0x1180] sm:$0xff]  ;;  %v757_v25 = vld [vmem:[%s5293_s7 + $0x1188] sm:$0xff]  ;;  %754 = vst [vmem:[%s5298_s8 + $0x8b8] sm:$0xff] %v753_v23 }
  0xa6   : > { %756 = vst [vmem:[%s5298_s8 + $0x8c0] sm:$0xff] %v755_v24  ;;  %758 = vst [vmem:[%s5298_s8 + $0x8c8] sm:$0xff] %v757_v25  ;;  %v759_v26 = vld [vmem:[%s5293_s7 + $0x11a0] sm:$0xff]  ;;  %v761_v27 = vld [vmem:[%s5293_s7 + $0x11a8] sm:$0xff] }
  0xa7   : > { %v763_v28 = vld [vmem:[%s5293_s7 + $0x11c0] sm:$0xff]  ;;  %760 = vst [vmem:[%s5298_s8 + $0x8d0] sm:$0xff] %v759_v26  ;;  %762 = vst [vmem:[%s5298_s8 + $0x8d8] sm:$0xff] %v761_v27  ;;  %v765_v29 = vld [vmem:[%s5293_s7 + $0x11c8] sm:$0xff] }
  0xa8   : > { %764 = vst [vmem:[%s5298_s8 + $0x8e0] sm:$0xff] %v763_v28  ;;  %v767_v30 = vld [vmem:[%s5293_s7 + $0x11e0] sm:$0xff]  ;;  %v769_v31 = vld [vmem:[%s5293_s7 + $0x11e8] sm:$0xff]  ;;  %766 = vst [vmem:[%s5298_s8 + $0x8e8] sm:$0xff] %v765_v29 }
  0xa9   : > { %768 = vst [vmem:[%s5298_s8 + $0x8f0] sm:$0xff] %v767_v30  ;;  %770 = vst [vmem:[%s5298_s8 + $0x8f8] sm:$0xff] %v769_v31  ;;  %v771_v32 = vld [vmem:[%s5293_s7 + $0x1200] sm:$0xff]  ;;  %v773_v33 = vld [vmem:[%s5293_s7 + $0x1208] sm:$0xff] }
  0xaa   : > { %v775_v34 = vld [vmem:[%s5293_s7 + $0x1220] sm:$0xff]  ;;  %772 = vst [vmem:[%s5298_s8 + $0x900] sm:$0xff] %v771_v32  ;;  %774 = vst [vmem:[%s5298_s8 + $0x908] sm:$0xff] %v773_v33  ;;  %v777_v35 = vld [vmem:[%s5293_s7 + $0x1228] sm:$0xff] }
  0xab   : > { %776 = vst [vmem:[%s5298_s8 + $0x910] sm:$0xff] %v775_v34  ;;  %v779_v36 = vld [vmem:[%s5293_s7 + $0x1240] sm:$0xff]  ;;  %v781_v37 = vld [vmem:[%s5293_s7 + $0x1248] sm:$0xff]  ;;  %778 = vst [vmem:[%s5298_s8 + $0x918] sm:$0xff] %v777_v35 }
  0xac   : > { %780 = vst [vmem:[%s5298_s8 + $0x920] sm:$0xff] %v779_v36  ;;  %782 = vst [vmem:[%s5298_s8 + $0x928] sm:$0xff] %v781_v37  ;;  %v783_v38 = vld [vmem:[%s5293_s7 + $0x1260] sm:$0xff]  ;;  %v785_v39 = vld [vmem:[%s5293_s7 + $0x1268] sm:$0xff] }
  0xad   : > { %v787_v40 = vld [vmem:[%s5293_s7 + $0x1280] sm:$0xff]  ;;  %784 = vst [vmem:[%s5298_s8 + $0x930] sm:$0xff] %v783_v38  ;;  %786 = vst [vmem:[%s5298_s8 + $0x938] sm:$0xff] %v785_v39  ;;  %v789_v41 = vld [vmem:[%s5293_s7 + $0x1288] sm:$0xff] }
  0xae   : > { %788 = vst [vmem:[%s5298_s8 + $0x940] sm:$0xff] %v787_v40  ;;  %v791_v42 = vld [vmem:[%s5293_s7 + $0x12a0] sm:$0xff]  ;;  %v793_v43 = vld [vmem:[%s5293_s7 + $0x12a8] sm:$0xff]  ;;  %790 = vst [vmem:[%s5298_s8 + $0x948] sm:$0xff] %v789_v41 }
  0xaf   : > { %792 = vst [vmem:[%s5298_s8 + $0x950] sm:$0xff] %v791_v42  ;;  %794 = vst [vmem:[%s5298_s8 + $0x958] sm:$0xff] %v793_v43  ;;  %v795_v44 = vld [vmem:[%s5293_s7 + $0x12c0] sm:$0xff]  ;;  %v797_v45 = vld [vmem:[%s5293_s7 + $0x12c8] sm:$0xff] }
  0xb0   : > { %v799_v46 = vld [vmem:[%s5293_s7 + $0x12e0] sm:$0xff]  ;;  %796 = vst [vmem:[%s5298_s8 + $0x960] sm:$0xff] %v795_v44  ;;  %798 = vst [vmem:[%s5298_s8 + $0x968] sm:$0xff] %v797_v45  ;;  %v801_v47 = vld [vmem:[%s5293_s7 + $0x12e8] sm:$0xff] }
  0xb1   : > { %800 = vst [vmem:[%s5298_s8 + $0x970] sm:$0xff] %v799_v46  ;;  %v803_v48 = vld [vmem:[%s5293_s7 + $0x1300] sm:$0xff]  ;;  %v805_v49 = vld [vmem:[%s5293_s7 + $0x1308] sm:$0xff]  ;;  %802 = vst [vmem:[%s5298_s8 + $0x978] sm:$0xff] %v801_v47 }
  0xb2   : > { %804 = vst [vmem:[%s5298_s8 + $0x980] sm:$0xff] %v803_v48  ;;  %806 = vst [vmem:[%s5298_s8 + $0x988] sm:$0xff] %v805_v49  ;;  %v807_v50 = vld [vmem:[%s5293_s7 + $0x1320] sm:$0xff]  ;;  %v809_v51 = vld [vmem:[%s5293_s7 + $0x1328] sm:$0xff] }
  0xb3   : > { %v811_v52 = vld [vmem:[%s5293_s7 + $0x1340] sm:$0xff]  ;;  %808 = vst [vmem:[%s5298_s8 + $0x990] sm:$0xff] %v807_v50  ;;  %810 = vst [vmem:[%s5298_s8 + $0x998] sm:$0xff] %v809_v51  ;;  %v813_v53 = vld [vmem:[%s5293_s7 + $0x1348] sm:$0xff] }
  0xb4   : > { %812 = vst [vmem:[%s5298_s8 + $0x9a0] sm:$0xff] %v811_v52  ;;  %v815_v54 = vld [vmem:[%s5293_s7 + $0x1360] sm:$0xff]  ;;  %v817_v55 = vld [vmem:[%s5293_s7 + $0x1368] sm:$0xff]  ;;  %814 = vst [vmem:[%s5298_s8 + $0x9a8] sm:$0xff] %v813_v53 }
  0xb5   : > { %816 = vst [vmem:[%s5298_s8 + $0x9b0] sm:$0xff] %v815_v54  ;;  %818 = vst [vmem:[%s5298_s8 + $0x9b8] sm:$0xff] %v817_v55  ;;  %v819_v56 = vld [vmem:[%s5293_s7 + $0x1380] sm:$0xff]  ;;  %v821_v57 = vld [vmem:[%s5293_s7 + $0x1388] sm:$0xff] }
  0xb6   : > { %v823_v58 = vld [vmem:[%s5293_s7 + $0x13a0] sm:$0xff]  ;;  %820 = vst [vmem:[%s5298_s8 + $0x9c0] sm:$0xff] %v819_v56  ;;  %822 = vst [vmem:[%s5298_s8 + $0x9c8] sm:$0xff] %v821_v57  ;;  %v825_v59 = vld [vmem:[%s5293_s7 + $0x13a8] sm:$0xff] }
  0xb7   : > { %824 = vst [vmem:[%s5298_s8 + $0x9d0] sm:$0xff] %v823_v58  ;;  %v827_v60 = vld [vmem:[%s5293_s7 + $0x13c0] sm:$0xff]  ;;  %v829_v61 = vld [vmem:[%s5293_s7 + $0x13c8] sm:$0xff]  ;;  %826 = vst [vmem:[%s5298_s8 + $0x9d8] sm:$0xff] %v825_v59 }
  0xb8   : > { %828 = vst [vmem:[%s5298_s8 + $0x9e0] sm:$0xff] %v827_v60  ;;  %830 = vst [vmem:[%s5298_s8 + $0x9e8] sm:$0xff] %v829_v61  ;;  %v831_v62 = vld [vmem:[%s5293_s7 + $0x13e0] sm:$0xff]  ;;  %v833_v63 = vld [vmem:[%s5293_s7 + $0x13e8] sm:$0xff] }
  0xb9   : > { %v835_v0 = vld [vmem:[%s5293_s7 + $0x1400] sm:$0xff]  ;;  %832 = vst [vmem:[%s5298_s8 + $0x9f0] sm:$0xff] %v831_v62  ;;  %834 = vst [vmem:[%s5298_s8 + $0x9f8] sm:$0xff] %v833_v63  ;;  %v837_v1 = vld [vmem:[%s5293_s7 + $0x1408] sm:$0xff] }
  0xba   : > { %836 = vst [vmem:[%s5298_s8 + $0xa00] sm:$0xff] %v835_v0  ;;  %v839_v2 = vld [vmem:[%s5293_s7 + $0x1420] sm:$0xff]  ;;  %v841_v3 = vld [vmem:[%s5293_s7 + $0x1428] sm:$0xff]  ;;  %838 = vst [vmem:[%s5298_s8 + $0xa08] sm:$0xff] %v837_v1 }
  0xbb   : > { %840 = vst [vmem:[%s5298_s8 + $0xa10] sm:$0xff] %v839_v2  ;;  %842 = vst [vmem:[%s5298_s8 + $0xa18] sm:$0xff] %v841_v3  ;;  %v843_v4 = vld [vmem:[%s5293_s7 + $0x1440] sm:$0xff]  ;;  %v845_v5 = vld [vmem:[%s5293_s7 + $0x1448] sm:$0xff] }
  0xbc   : > { %v847_v6 = vld [vmem:[%s5293_s7 + $0x1460] sm:$0xff]  ;;  %844 = vst [vmem:[%s5298_s8 + $0xa20] sm:$0xff] %v843_v4  ;;  %846 = vst [vmem:[%s5298_s8 + $0xa28] sm:$0xff] %v845_v5  ;;  %v849_v7 = vld [vmem:[%s5293_s7 + $0x1468] sm:$0xff] }
  0xbd   : > { %848 = vst [vmem:[%s5298_s8 + $0xa30] sm:$0xff] %v847_v6  ;;  %v851_v8 = vld [vmem:[%s5293_s7 + $0x1480] sm:$0xff]  ;;  %v853_v9 = vld [vmem:[%s5293_s7 + $0x1488] sm:$0xff]  ;;  %850 = vst [vmem:[%s5298_s8 + $0xa38] sm:$0xff] %v849_v7 }
  0xbe   : > { %852 = vst [vmem:[%s5298_s8 + $0xa40] sm:$0xff] %v851_v8  ;;  %854 = vst [vmem:[%s5298_s8 + $0xa48] sm:$0xff] %v853_v9  ;;  %v855_v10 = vld [vmem:[%s5293_s7 + $0x14a0] sm:$0xff]  ;;  %v857_v11 = vld [vmem:[%s5293_s7 + $0x14a8] sm:$0xff] }
  0xbf   : > { %v859_v12 = vld [vmem:[%s5293_s7 + $0x14c0] sm:$0xff]  ;;  %856 = vst [vmem:[%s5298_s8 + $0xa50] sm:$0xff] %v855_v10  ;;  %858 = vst [vmem:[%s5298_s8 + $0xa58] sm:$0xff] %v857_v11  ;;  %v861_v13 = vld [vmem:[%s5293_s7 + $0x14c8] sm:$0xff] }
  0xc0   : > { %860 = vst [vmem:[%s5298_s8 + $0xa60] sm:$0xff] %v859_v12  ;;  %v863_v14 = vld [vmem:[%s5293_s7 + $0x14e0] sm:$0xff]  ;;  %v865_v15 = vld [vmem:[%s5293_s7 + $0x14e8] sm:$0xff]  ;;  %862 = vst [vmem:[%s5298_s8 + $0xa68] sm:$0xff] %v861_v13 }
  0xc1   : > { %864 = vst [vmem:[%s5298_s8 + $0xa70] sm:$0xff] %v863_v14  ;;  %866 = vst [vmem:[%s5298_s8 + $0xa78] sm:$0xff] %v865_v15  ;;  %v867_v16 = vld [vmem:[%s5293_s7 + $0x1500] sm:$0xff]  ;;  %v869_v17 = vld [vmem:[%s5293_s7 + $0x1508] sm:$0xff] }
  0xc2   : > { %v871_v18 = vld [vmem:[%s5293_s7 + $0x1520] sm:$0xff]  ;;  %868 = vst [vmem:[%s5298_s8 + $0xa80] sm:$0xff] %v867_v16  ;;  %870 = vst [vmem:[%s5298_s8 + $0xa88] sm:$0xff] %v869_v17  ;;  %v873_v19 = vld [vmem:[%s5293_s7 + $0x1528] sm:$0xff] }
  0xc3   : > { %872 = vst [vmem:[%s5298_s8 + $0xa90] sm:$0xff] %v871_v18  ;;  %v875_v20 = vld [vmem:[%s5293_s7 + $0x1540] sm:$0xff]  ;;  %v877_v21 = vld [vmem:[%s5293_s7 + $0x1548] sm:$0xff]  ;;  %874 = vst [vmem:[%s5298_s8 + $0xa98] sm:$0xff] %v873_v19 }
  0xc4   : > { %876 = vst [vmem:[%s5298_s8 + $0xaa0] sm:$0xff] %v875_v20  ;;  %878 = vst [vmem:[%s5298_s8 + $0xaa8] sm:$0xff] %v877_v21  ;;  %v879_v22 = vld [vmem:[%s5293_s7 + $0x1560] sm:$0xff]  ;;  %v881_v23 = vld [vmem:[%s5293_s7 + $0x1568] sm:$0xff] }
  0xc5   : > { %v883_v24 = vld [vmem:[%s5293_s7 + $0x1580] sm:$0xff]  ;;  %880 = vst [vmem:[%s5298_s8 + $0xab0] sm:$0xff] %v879_v22  ;;  %882 = vst [vmem:[%s5298_s8 + $0xab8] sm:$0xff] %v881_v23  ;;  %v885_v25 = vld [vmem:[%s5293_s7 + $0x1588] sm:$0xff] }
  0xc6   : > { %884 = vst [vmem:[%s5298_s8 + $0xac0] sm:$0xff] %v883_v24  ;;  %v887_v26 = vld [vmem:[%s5293_s7 + $0x15a0] sm:$0xff]  ;;  %v889_v27 = vld [vmem:[%s5293_s7 + $0x15a8] sm:$0xff]  ;;  %886 = vst [vmem:[%s5298_s8 + $0xac8] sm:$0xff] %v885_v25 }
  0xc7   : > { %888 = vst [vmem:[%s5298_s8 + $0xad0] sm:$0xff] %v887_v26  ;;  %890 = vst [vmem:[%s5298_s8 + $0xad8] sm:$0xff] %v889_v27  ;;  %v891_v28 = vld [vmem:[%s5293_s7 + $0x15c0] sm:$0xff]  ;;  %v893_v29 = vld [vmem:[%s5293_s7 + $0x15c8] sm:$0xff] }
  0xc8   : > { %v895_v30 = vld [vmem:[%s5293_s7 + $0x15e0] sm:$0xff]  ;;  %892 = vst [vmem:[%s5298_s8 + $0xae0] sm:$0xff] %v891_v28  ;;  %894 = vst [vmem:[%s5298_s8 + $0xae8] sm:$0xff] %v893_v29  ;;  %v897_v31 = vld [vmem:[%s5293_s7 + $0x15e8] sm:$0xff] }
  0xc9   : > { %896 = vst [vmem:[%s5298_s8 + $0xaf0] sm:$0xff] %v895_v30  ;;  %v899_v32 = vld [vmem:[%s5293_s7 + $0x1600] sm:$0xff]  ;;  %v901_v33 = vld [vmem:[%s5293_s7 + $0x1608] sm:$0xff]  ;;  %898 = vst [vmem:[%s5298_s8 + $0xaf8] sm:$0xff] %v897_v31 }
  0xca   : > { %900 = vst [vmem:[%s5298_s8 + $0xb00] sm:$0xff] %v899_v32  ;;  %902 = vst [vmem:[%s5298_s8 + $0xb08] sm:$0xff] %v901_v33  ;;  %v903_v34 = vld [vmem:[%s5293_s7 + $0x1620] sm:$0xff]  ;;  %v905_v35 = vld [vmem:[%s5293_s7 + $0x1628] sm:$0xff] }
  0xcb   : > { %v907_v36 = vld [vmem:[%s5293_s7 + $0x1640] sm:$0xff]  ;;  %904 = vst [vmem:[%s5298_s8 + $0xb10] sm:$0xff] %v903_v34  ;;  %906 = vst [vmem:[%s5298_s8 + $0xb18] sm:$0xff] %v905_v35  ;;  %v909_v37 = vld [vmem:[%s5293_s7 + $0x1648] sm:$0xff] }
  0xcc   : > { %908 = vst [vmem:[%s5298_s8 + $0xb20] sm:$0xff] %v907_v36  ;;  %v911_v38 = vld [vmem:[%s5293_s7 + $0x1660] sm:$0xff]  ;;  %v913_v39 = vld [vmem:[%s5293_s7 + $0x1668] sm:$0xff]  ;;  %910 = vst [vmem:[%s5298_s8 + $0xb28] sm:$0xff] %v909_v37 }
  0xcd   : > { %912 = vst [vmem:[%s5298_s8 + $0xb30] sm:$0xff] %v911_v38  ;;  %914 = vst [vmem:[%s5298_s8 + $0xb38] sm:$0xff] %v913_v39  ;;  %v915_v40 = vld [vmem:[%s5293_s7 + $0x1680] sm:$0xff]  ;;  %v917_v41 = vld [vmem:[%s5293_s7 + $0x1688] sm:$0xff] }
  0xce   : > { %v919_v42 = vld [vmem:[%s5293_s7 + $0x16a0] sm:$0xff]  ;;  %916 = vst [vmem:[%s5298_s8 + $0xb40] sm:$0xff] %v915_v40  ;;  %918 = vst [vmem:[%s5298_s8 + $0xb48] sm:$0xff] %v917_v41  ;;  %v921_v43 = vld [vmem:[%s5293_s7 + $0x16a8] sm:$0xff] }
  0xcf   : > { %920 = vst [vmem:[%s5298_s8 + $0xb50] sm:$0xff] %v919_v42  ;;  %v923_v44 = vld [vmem:[%s5293_s7 + $0x16c0] sm:$0xff]  ;;  %v925_v45 = vld [vmem:[%s5293_s7 + $0x16c8] sm:$0xff]  ;;  %922 = vst [vmem:[%s5298_s8 + $0xb58] sm:$0xff] %v921_v43 }
  0xd0   : > { %924 = vst [vmem:[%s5298_s8 + $0xb60] sm:$0xff] %v923_v44  ;;  %926 = vst [vmem:[%s5298_s8 + $0xb68] sm:$0xff] %v925_v45  ;;  %v927_v46 = vld [vmem:[%s5293_s7 + $0x16e0] sm:$0xff]  ;;  %v929_v47 = vld [vmem:[%s5293_s7 + $0x16e8] sm:$0xff] }
  0xd1   : > { %v931_v48 = vld [vmem:[%s5293_s7 + $0x1700] sm:$0xff]  ;;  %928 = vst [vmem:[%s5298_s8 + $0xb70] sm:$0xff] %v927_v46  ;;  %930 = vst [vmem:[%s5298_s8 + $0xb78] sm:$0xff] %v929_v47  ;;  %v933_v49 = vld [vmem:[%s5293_s7 + $0x1708] sm:$0xff] }
  0xd2   : > { %932 = vst [vmem:[%s5298_s8 + $0xb80] sm:$0xff] %v931_v48  ;;  %v935_v50 = vld [vmem:[%s5293_s7 + $0x1720] sm:$0xff]  ;;  %v937_v51 = vld [vmem:[%s5293_s7 + $0x1728] sm:$0xff]  ;;  %934 = vst [vmem:[%s5298_s8 + $0xb88] sm:$0xff] %v933_v49 }
  0xd3   : > { %936 = vst [vmem:[%s5298_s8 + $0xb90] sm:$0xff] %v935_v50  ;;  %938 = vst [vmem:[%s5298_s8 + $0xb98] sm:$0xff] %v937_v51  ;;  %v939_v52 = vld [vmem:[%s5293_s7 + $0x1740] sm:$0xff]  ;;  %v941_v53 = vld [vmem:[%s5293_s7 + $0x1748] sm:$0xff] }
  0xd4   : > { %v943_v54 = vld [vmem:[%s5293_s7 + $0x1760] sm:$0xff]  ;;  %940 = vst [vmem:[%s5298_s8 + $0xba0] sm:$0xff] %v939_v52  ;;  %942 = vst [vmem:[%s5298_s8 + $0xba8] sm:$0xff] %v941_v53  ;;  %v945_v55 = vld [vmem:[%s5293_s7 + $0x1768] sm:$0xff] }
  0xd5   : > { %944 = vst [vmem:[%s5298_s8 + $0xbb0] sm:$0xff] %v943_v54  ;;  %v947_v56 = vld [vmem:[%s5293_s7 + $0x1780] sm:$0xff]  ;;  %v949_v57 = vld [vmem:[%s5293_s7 + $0x1788] sm:$0xff]  ;;  %946 = vst [vmem:[%s5298_s8 + $0xbb8] sm:$0xff] %v945_v55 }
  0xd6   : > { %948 = vst [vmem:[%s5298_s8 + $0xbc0] sm:$0xff] %v947_v56  ;;  %950 = vst [vmem:[%s5298_s8 + $0xbc8] sm:$0xff] %v949_v57  ;;  %v951_v58 = vld [vmem:[%s5293_s7 + $0x17a0] sm:$0xff]  ;;  %v953_v59 = vld [vmem:[%s5293_s7 + $0x17a8] sm:$0xff] }
  0xd7   : > { %v955_v60 = vld [vmem:[%s5293_s7 + $0x17c0] sm:$0xff]  ;;  %952 = vst [vmem:[%s5298_s8 + $0xbd0] sm:$0xff] %v951_v58  ;;  %954 = vst [vmem:[%s5298_s8 + $0xbd8] sm:$0xff] %v953_v59  ;;  %v957_v61 = vld [vmem:[%s5293_s7 + $0x17c8] sm:$0xff] }
  0xd8   : > { %956 = vst [vmem:[%s5298_s8 + $0xbe0] sm:$0xff] %v955_v60  ;;  %v959_v62 = vld [vmem:[%s5293_s7 + $0x17e0] sm:$0xff]  ;;  %v961_v63 = vld [vmem:[%s5293_s7 + $0x17e8] sm:$0xff]  ;;  %958 = vst [vmem:[%s5298_s8 + $0xbe8] sm:$0xff] %v957_v61 }
  0xd9   : > { %960 = vst [vmem:[%s5298_s8 + $0xbf0] sm:$0xff] %v959_v62  ;;  %962 = vst [vmem:[%s5298_s8 + $0xbf8] sm:$0xff] %v961_v63 }
  0xda PF: > { %p4099_p7 = scmp.ge.s32.totalorder %s5210_s18, 1  ;;  %p975_p8 = scmp.lt.s32.totalorder %s5210_s18, 19 }
  0xdc   : > { %p976_p9 = pnand %p4099_p7, %p975_p8 }
  0xdd   : > { %s982_s9 = sand.u32 (!%p976_p9), 1, %s5186_s12   ;;  %s1022_s10 = smul.u32 (!%p976_p9), 12, %s5194_s14 }
  0xde   : > { %979 = sbr.rel (%p976_p9) target bundleno = 858 (0x35a), region = 51  ;;  %s4101_s21 = sshll.u32 (!%p976_p9), %s5198_s15, 2 }
  0xdf   : > { %s4510_s11 = smul.u32 (!%p976_p9), 3072, %s982_s9  ;;  %p1025_p10 = scmp.lt.s32.totalorder (!%p976_p9), %s1022_s10, 107 }
  0xe0   : > { %p1035_p11 = scmp.lt.s32.totalorder (!%p976_p9), %s4101_s21, 7  ;;  %p4104_p12 = scmp.ne.s32.totalorder (!%p976_p9), %s5194_s14, 0 }
  0xe1   : > { %s6087_s5 = scalar_lea.vmem (!%p976_p9), [#allocation3], %s4510_s11 }
  0xe5   : > { %s6610_s10 = smov (!%p1025_p10, %s1022_s10), 107  ;;  %s6612_s21 = smov (!%p1035_p11, %s4101_s21), 7 }
  0xe6   : > { %s4100_s22 = sshll.u32 %s6610_s10, 2  ;;  %s1037_s12 = scalar_lea.vmem %s6595_s2, %s6612_s21  ;;  %v5212_v0 = vmov (!%p4104_p12), 0.0  }
  0xe7   : > { %s6075_s26 = scalar_lea.vmem %s6593_s0, %s4100_s22  ;;  %s4103_s29 = sshll.u32 %s6612_s21, 2  ;;  %1053 = vst [vmem:[#allocation2] sm:$0xff] (!%p4104_p12), %v5212_v0  ;;  %1054 = vst [vmem:[#allocation2 + $0x8] sm:$0xff] (!%p4104_p12), %v5212_v0 }
  0xe8   : > { %s6085_s4 = scalar_lea.vmem %s6596_s3, %s4103_s29  ;;  %1052 = sbr.rel (%p4104_p12) target bundleno = 239 (0xef), region = 59  ;;  %1055 = vst [vmem:[#allocation2 + $0x10] sm:$0xff] (!%p4104_p12), %v5212_v0  ;;  %1056 = vst [vmem:[#allocation2 + $0x18] sm:$0xff] (!%p4104_p12), %v5212_v0 }
  0xef PF: > { %v4568_v1 = vld [vmem:[%s6087_s5 + $0x4] ss:$16 sps:$4 sm:$0xff]   ;;  %v4572_v3 = vld [vmem:[%s6087_s5] ss:$16 sps:$4 sm:$0xff]   ;;  %v1062_v49 = vld [vmem:[%s6075_s26 + $0x8] sm:$0xff]  ;;  %p4501_p13 = scmp.ne.s32.totalorder %s5194_s14, 8 }
  0xf0   : > { %v4570_v2 = vld [vmem:[%s6087_s5 + $0x204] ss:$16 sps:$4 sm:$0xff]   ;;  %3413 = vmatprep.subr.bf16.mxu0 %v4568_v1  ;;  %v4573_v4 = vld [vmem:[%s6087_s5 + $0x200] ss:$16 sps:$4 sm:$0xff]   ;;  %v6142_v52 = vcombine.high %v1062_v49, %v1062_v49 }
  0xf1   : > { %3454 = vmatprep.subr.bf16.mxu1 %v4570_v2  ;;  %v4574_v5 = vld [vmem:[%s6087_s5 + $0x24] ss:$16 sps:$4 sm:$0xff]   ;;  %3414 = vmatpush1.bf16.msra.mxu0 %v4572_v3  ;;  %v4578_v7 = vld [vmem:[%s6087_s5 + $0x20] ss:$16 sps:$4 sm:$0xff]  }
  0xf2   : > { %3455 = vmatpush1.bf16.msra.mxu1 %v4573_v4  ;;  %v4576_v6 = vld [vmem:[%s6087_s5 + $0x224] ss:$16 sps:$4 sm:$0xff]   ;;  %3415 = vmatprep.subr.bf16.mxu0 %v4574_v5  ;;  %v4579_v8 = vld [vmem:[%s6087_s5 + $0x220] ss:$16 sps:$4 sm:$0xff]  }
  0xf3   : > { %3456 = vmatprep.subr.bf16.mxu1 %v4576_v6  ;;  %v4580_v9 = vld [vmem:[%s6087_s5 + $0x44] ss:$16 sps:$4 sm:$0xff]   ;;  %v4584_v11 = vld [vmem:[%s6087_s5 + $0x40] ss:$16 sps:$4 sm:$0xff]   ;;  %3486 = vmatprep.mubr.bf16.mxu1 %v6142_v52 }
  0xf4   : > { %v4582_v10 = vld [vmem:[%s6087_s5 + $0x244] ss:$16 sps:$4 sm:$0xff]   ;;  %v4585_v12 = vld [vmem:[%s6087_s5 + $0x240] ss:$16 sps:$4 sm:$0xff]  }
  0xf5   : > { %3416 = vmatpush1.bf16.msra.mxu0 %v4578_v7  ;;  %v4586_v13 = vld [vmem:[%s6087_s5 + $0x64] ss:$16 sps:$4 sm:$0xff]   ;;  %v4590_v15 = vld [vmem:[%s6087_s5 + $0x60] ss:$16 sps:$4 sm:$0xff]  }
  0xf6   : > { %3457 = vmatpush1.bf16.msra.mxu1 %v4579_v8  ;;  %3417 = vmatprep.subr.bf16.mxu0 %v4580_v9  ;;  %v4588_v14 = vld [vmem:[%s6087_s5 + $0x264] ss:$16 sps:$4 sm:$0xff]   ;;  %v4591_v16 = vld [vmem:[%s6087_s5 + $0x260] ss:$16 sps:$4 sm:$0xff]   ;;  %v6166_v8 = vcombine.low %v1062_v49, %v1062_v49 }
  0xf7   : > { %3458 = vmatprep.subr.bf16.mxu1 %v4582_v10  ;;  %v4592_v17 = vld [vmem:[%s6087_s5 + $0x84] ss:$16 sps:$4 sm:$0xff]   ;;  %v4596_v19 = vld [vmem:[%s6087_s5 + $0x80] ss:$16 sps:$4 sm:$0xff]  }
  0xf8   : > { %v4594_v18 = vld [vmem:[%s6087_s5 + $0x284] ss:$16 sps:$4 sm:$0xff]   ;;  %v4597_v20 = vld [vmem:[%s6087_s5 + $0x280] ss:$16 sps:$4 sm:$0xff]  }
  0xf9   : > { %3418 = vmatpush1.bf16.msra.mxu0 %v4584_v11  ;;  %v4598_v21 = vld [vmem:[%s6087_s5 + $0xa4] ss:$16 sps:$4 sm:$0xff]   ;;  %v4602_v23 = vld [vmem:[%s6087_s5 + $0xa0] ss:$16 sps:$4 sm:$0xff]  }
  0xfa   : > { %3459 = vmatpush1.bf16.msra.mxu1 %v4585_v12  ;;  %3419 = vmatprep.subr.bf16.mxu0 %v4586_v13  ;;  %v4600_v22 = vld [vmem:[%s6087_s5 + $0x2a4] ss:$16 sps:$4 sm:$0xff]   ;;  %v4603_v24 = vld [vmem:[%s6087_s5 + $0x2a0] ss:$16 sps:$4 sm:$0xff]  }
  0xfb   : > { %3460 = vmatprep.subr.bf16.mxu1 %v4588_v14  ;;  %v4604_v25 = vld [vmem:[%s6087_s5 + $0xc4] ss:$16 sps:$4 sm:$0xff]   ;;  %v4608_v27 = vld [vmem:[%s6087_s5 + $0xc0] ss:$16 sps:$4 sm:$0xff]  }
  0xfc   : > { %v4606_v26 = vld [vmem:[%s6087_s5 + $0x2c4] ss:$16 sps:$4 sm:$0xff]   ;;  %v4609_v28 = vld [vmem:[%s6087_s5 + $0x2c0] ss:$16 sps:$4 sm:$0xff]  }
  0xfd   : > { %3420 = vmatpush1.bf16.msra.mxu0 %v4590_v15  ;;  %v4610_v29 = vld [vmem:[%s6087_s5 + $0xe4] ss:$16 sps:$4 sm:$0xff]   ;;  %v4614_v31 = vld [vmem:[%s6087_s5 + $0xe0] ss:$16 sps:$4 sm:$0xff]  }
  0xfe   : > { %3461 = vmatpush1.bf16.msra.mxu1 %v4591_v16  ;;  %3421 = vmatprep.subr.bf16.mxu0 %v4592_v17  ;;  %v4612_v30 = vld [vmem:[%s6087_s5 + $0x2e4] ss:$16 sps:$4 sm:$0xff]   ;;  %v4615_v32 = vld [vmem:[%s6087_s5 + $0x2e0] ss:$16 sps:$4 sm:$0xff]  }
  0xff   : > { %3462 = vmatprep.subr.bf16.mxu1 %v4594_v18  ;;  %v4616_v33 = vld [vmem:[%s6087_s5 + $0x104] ss:$16 sps:$4 sm:$0xff]   ;;  %v4620_v35 = vld [vmem:[%s6087_s5 + $0x100] ss:$16 sps:$4 sm:$0xff]  }
 0x100   : > { %v4618_v34 = vld [vmem:[%s6087_s5 + $0x304] ss:$16 sps:$4 sm:$0xff]   ;;  %v4621_v36 = vld [vmem:[%s6087_s5 + $0x300] ss:$16 sps:$4 sm:$0xff]  }
 0x101   : > { %3422 = vmatpush1.bf16.msra.mxu0 %v4596_v19  ;;  %v4622_v37 = vld [vmem:[%s6087_s5 + $0x124] ss:$16 sps:$4 sm:$0xff]   ;;  %v4626_v39 = vld [vmem:[%s6087_s5 + $0x120] ss:$16 sps:$4 sm:$0xff]  }
 0x102   : > { %3463 = vmatpush1.bf16.msra.mxu1 %v4597_v20  ;;  %3423 = vmatprep.subr.bf16.mxu0 %v4598_v21  ;;  %v4624_v38 = vld [vmem:[%s6087_s5 + $0x324] ss:$16 sps:$4 sm:$0xff]   ;;  %v4627_v40 = vld [vmem:[%s6087_s5 + $0x320] ss:$16 sps:$4 sm:$0xff]  }
 0x103   : > { %3464 = vmatprep.subr.bf16.mxu1 %v4600_v22  ;;  %v4628_v41 = vld [vmem:[%s6087_s5 + $0x144] ss:$16 sps:$4 sm:$0xff]   ;;  %v4632_v43 = vld [vmem:[%s6087_s5 + $0x140] ss:$16 sps:$4 sm:$0xff]  }
 0x104   : > { %v4630_v42 = vld [vmem:[%s6087_s5 + $0x344] ss:$16 sps:$4 sm:$0xff]   ;;  %v4633_v44 = vld [vmem:[%s6087_s5 + $0x340] ss:$16 sps:$4 sm:$0xff]  }
 0x105   : > { %3424 = vmatpush1.bf16.msra.mxu0 %v4602_v23  ;;  %v4634_v45 = vld [vmem:[%s6087_s5 + $0x164] ss:$16 sps:$4 sm:$0xff]   ;;  %v4638_v50 = vld [vmem:[%s6087_s5 + $0x160] ss:$16 sps:$4 sm:$0xff]  }
 0x106   : > { %3465 = vmatpush1.bf16.msra.mxu1 %v4603_v24  ;;  %3425 = vmatprep.subr.bf16.mxu0 %v4604_v25  ;;  %v4636_v46 = vld [vmem:[%s6087_s5 + $0x364] ss:$16 sps:$4 sm:$0xff]   ;;  %v4639_v51 = vld [vmem:[%s6087_s5 + $0x360] ss:$16 sps:$4 sm:$0xff]  }
 0x107   : > { %3466 = vmatprep.subr.bf16.mxu1 %v4606_v26  ;;  %v1061_v47 = vld [vmem:[%s6075_s26] sm:$0xff] }
 0x108   : > { %v6137_v48 = vcombine.high %v1061_v47, %v1061_v47  ;;  %v4640_v53 = vld [vmem:[%s6087_s5 + $0x184] ss:$16 sps:$4 sm:$0xff]   ;;  %v4644_v55 = vld [vmem:[%s6087_s5 + $0x180] ss:$16 sps:$4 sm:$0xff]   ;;  %v6164_v7 = vcombine.low %v1061_v47, %v1061_v47 }
 0x109   : > { %3426 = vmatpush1.bf16.msra.mxu0 %v4608_v27  ;;  %v4642_v54 = vld [vmem:[%s6087_s5 + $0x384] ss:$16 sps:$4 sm:$0xff]   ;;  %v4645_v56 = vld [vmem:[%s6087_s5 + $0x380] ss:$16 sps:$4 sm:$0xff]  }
 0x10a   : > { %3467 = vmatpush1.bf16.msra.mxu1 %v4609_v28  ;;  %3427 = vmatprep.subr.bf16.mxu0 %v4610_v29  ;;  %v4646_v57 = vld [vmem:[%s6087_s5 + $0x1a4] ss:$16 sps:$4 sm:$0xff]   ;;  %v4650_v59 = vld [vmem:[%s6087_s5 + $0x1a0] ss:$16 sps:$4 sm:$0xff]  }
 0x10b   : > { %3468 = vmatprep.subr.bf16.mxu1 %v4612_v30  ;;  %3445 = vmatprep.mubr.bf16.mxu0 %v6137_v48  ;;  %v4648_v58 = vld [vmem:[%s6087_s5 + $0x3a4] ss:$16 sps:$4 sm:$0xff]   ;;  %v4651_v60 = vld [vmem:[%s6087_s5 + $0x3a0] ss:$16 sps:$4 sm:$0xff]  }
 0x10c   : > { %v4652_v61 = vld [vmem:[%s6087_s5 + $0x1c4] ss:$16 sps:$4 sm:$0xff]   ;;  %v4656_v63 = vld [vmem:[%s6087_s5 + $0x1c0] ss:$16 sps:$4 sm:$0xff]  }
 0x10d   : > { %3428 = vmatpush1.bf16.msra.mxu0 %v4614_v31  ;;  %v4654_v62 = vld [vmem:[%s6087_s5 + $0x3c4] ss:$16 sps:$4 sm:$0xff]   ;;  %v4657_v0 = vld [vmem:[%s6087_s5 + $0x3c0] ss:$16 sps:$4 sm:$0xff]  }
 0x10e   : > { %3469 = vmatpush1.bf16.msra.mxu1 %v4615_v32  ;;  %3429 = vmatprep.subr.bf16.mxu0 %v4616_v33  ;;  %v4658_v1 = vld [vmem:[%s6087_s5 + $0x1e4] ss:$16 sps:$4 sm:$0xff]   ;;  %v4662_v3 = vld [vmem:[%s6087_s5 + $0x1e0] ss:$16 sps:$4 sm:$0xff]  }
 0x10f   : > { %3470 = vmatprep.subr.bf16.mxu1 %v4618_v34  ;;  %v4660_v2 = vld [vmem:[%s6087_s5 + $0x3e4] ss:$16 sps:$4 sm:$0xff]   ;;  %v4663_v4 = vld [vmem:[%s6087_s5 + $0x3e0] ss:$16 sps:$4 sm:$0xff]   ;;  %v6198_v34 = vld [vmem:[%s6075_s26 + $0x18] sm:$0xff] }
 0x110   : > { %v4670_v5 = vld [vmem:[%s6087_s5 + $0x404] ss:$16 sps:$4 sm:$0xff]   ;;  %v4668_v9 = vld [vmem:[%s6087_s5 + $0x400] ss:$16 sps:$4 sm:$0xff]  }
 0x111   : > { %3430 = vmatpush1.bf16.msra.mxu0 %v4620_v35  ;;  %v4673_v6 = vld [vmem:[%s6087_s5 + $0x604] ss:$16 sps:$4 sm:$0xff]   ;;  %v4671_v10 = vld [vmem:[%s6087_s5 + $0x600] ss:$16 sps:$4 sm:$0xff]  }
 0x112   : > { %3471 = vmatpush1.bf16.msra.mxu1 %v4621_v36  ;;  %3431 = vmatprep.subr.bf16.mxu0 %v4622_v37  ;;  %v4676_v11 = vld [vmem:[%s6087_s5 + $0x424] ss:$16 sps:$4 sm:$0xff]   ;;  %v4674_v13 = vld [vmem:[%s6087_s5 + $0x420] ss:$16 sps:$4 sm:$0xff]  }
 0x113   : > { %3472 = vmatprep.subr.bf16.mxu1 %v4624_v38  ;;  %v4679_v12 = vld [vmem:[%s6087_s5 + $0x624] ss:$16 sps:$4 sm:$0xff]   ;;  %v4677_v14 = vld [vmem:[%s6087_s5 + $0x620] ss:$16 sps:$4 sm:$0xff]   ;;  %v6208_v38 = vcombine.high %v6198_v34, %v6198_v34 }
 0x114   : > { %v4682_v15 = vld [vmem:[%s6087_s5 + $0x444] ss:$16 sps:$4 sm:$0xff]   ;;  %v4680_v17 = vld [vmem:[%s6087_s5 + $0x440] ss:$16 sps:$4 sm:$0xff]  }
 0x115   : > { %3432 = vmatpush1.bf16.msra.mxu0 %v4626_v39  ;;  %v4685_v16 = vld [vmem:[%s6087_s5 + $0x644] ss:$16 sps:$4 sm:$0xff]   ;;  %v4683_v18 = vld [vmem:[%s6087_s5 + $0x640] ss:$16 sps:$4 sm:$0xff]  }
 0x116   : > { %3473 = vmatpush1.bf16.msra.mxu1 %v4627_v40  ;;  %3433 = vmatprep.subr.bf16.mxu0 %v4628_v41  ;;  %v4688_v19 = vld [vmem:[%s6087_s5 + $0x464] ss:$16 sps:$4 sm:$0xff]   ;;  %v4686_v21 = vld [vmem:[%s6087_s5 + $0x460] ss:$16 sps:$4 sm:$0xff]  }
 0x117   : > { %3474 = vmatprep.subr.bf16.mxu1 %v4630_v42  ;;  %v4691_v20 = vld [vmem:[%s6087_s5 + $0x664] ss:$16 sps:$4 sm:$0xff]   ;;  %v4689_v22 = vld [vmem:[%s6087_s5 + $0x660] ss:$16 sps:$4 sm:$0xff]  }
 0x118   : > { %v4694_v23 = vld [vmem:[%s6087_s5 + $0x484] ss:$16 sps:$4 sm:$0xff]   ;;  %v4692_v25 = vld [vmem:[%s6087_s5 + $0x480] ss:$16 sps:$4 sm:$0xff]  }
 0x119   : > { %3434 = vmatpush1.bf16.msra.mxu0 %v4632_v43  ;;  %v4697_v24 = vld [vmem:[%s6087_s5 + $0x684] ss:$16 sps:$4 sm:$0xff]   ;;  %v4695_v26 = vld [vmem:[%s6087_s5 + $0x680] ss:$16 sps:$4 sm:$0xff]  }
 0x11a   : > { %3475 = vmatpush1.bf16.msra.mxu1 %v4633_v44  ;;  %3435 = vmatprep.subr.bf16.mxu0 %v4634_v45  ;;  %v4700_v27 = vld [vmem:[%s6087_s5 + $0x4a4] ss:$16 sps:$4 sm:$0xff]   ;;  %v4698_v29 = vld [vmem:[%s6087_s5 + $0x4a0] ss:$16 sps:$4 sm:$0xff]  }
 0x11b   : > { %3476 = vmatprep.subr.bf16.mxu1 %v4636_v46  ;;  %v4703_v28 = vld [vmem:[%s6087_s5 + $0x6a4] ss:$16 sps:$4 sm:$0xff]   ;;  %v4701_v30 = vld [vmem:[%s6087_s5 + $0x6a0] ss:$16 sps:$4 sm:$0xff]  }
 0x11c   : > { %v4706_v31 = vld [vmem:[%s6087_s5 + $0x4c4] ss:$16 sps:$4 sm:$0xff]   ;;  %v4704_v35 = vld [vmem:[%s6087_s5 + $0x4c0] ss:$16 sps:$4 sm:$0xff]  }
 0x11d   : > { %3436 = vmatpush1.bf16.msra.mxu0 %v4638_v50  ;;  %v4709_v32 = vld [vmem:[%s6087_s5 + $0x6c4] ss:$16 sps:$4 sm:$0xff]   ;;  %v4707_v36 = vld [vmem:[%s6087_s5 + $0x6c0] ss:$16 sps:$4 sm:$0xff]  }
 0x11e   : > { %3477 = vmatpush1.bf16.msra.mxu1 %v4639_v51  ;;  %3437 = vmatprep.subr.bf16.mxu0 %v4640_v53  ;;  %v6195_v33 = vld [vmem:[%s6075_s26 + $0x10] sm:$0xff] }
 0x11f   : > { %3478 = vmatprep.subr.bf16.mxu1 %v4642_v54  ;;  %v6204_v37 = vcombine.high %v6195_v33, %v6195_v33  ;;  %v4712_v39 = vld [vmem:[%s6087_s5 + $0x4e4] ss:$16 sps:$4 sm:$0xff]   ;;  %v4710_v41 = vld [vmem:[%s6087_s5 + $0x4e0] ss:$16 sps:$4 sm:$0xff]  }
 0x120   : > { %v4715_v40 = vld [vmem:[%s6087_s5 + $0x6e4] ss:$16 sps:$4 sm:$0xff]   ;;  %v4713_v42 = vld [vmem:[%s6087_s5 + $0x6e0] ss:$16 sps:$4 sm:$0xff]  }
 0x121   : > { %3438 = vmatpush1.bf16.msra.mxu0 %v4644_v55  ;;  %v4718_v43 = vld [vmem:[%s6087_s5 + $0x504] ss:$16 sps:$4 sm:$0xff]   ;;  %v4716_v45 = vld [vmem:[%s6087_s5 + $0x500] ss:$16 sps:$4 sm:$0xff]  }
 0x122   : > { %3479 = vmatpush1.bf16.msra.mxu1 %v4645_v56  ;;  %3439 = vmatprep.subr.bf16.mxu0 %v4646_v57  ;;  %v4721_v44 = vld [vmem:[%s6087_s5 + $0x704] ss:$16 sps:$4 sm:$0xff]   ;;  %v4719_v46 = vld [vmem:[%s6087_s5 + $0x700] ss:$16 sps:$4 sm:$0xff]  }
 0x123   : > { %3480 = vmatprep.subr.bf16.mxu1 %v4648_v58  ;;  %v4724_v47 = vld [vmem:[%s6087_s5 + $0x524] ss:$16 sps:$4 sm:$0xff]   ;;  %v4722_v50 = vld [vmem:[%s6087_s5 + $0x520] ss:$16 sps:$4 sm:$0xff]  }
 0x124   : > { %v4727_v49 = vld [vmem:[%s6087_s5 + $0x724] ss:$16 sps:$4 sm:$0xff]   ;;  %v4725_v51 = vld [vmem:[%s6087_s5 + $0x720] ss:$16 sps:$4 sm:$0xff]  }
 0x125   : > { %3440 = vmatpush1.bf16.msra.mxu0 %v4650_v59  ;;  %v4730_v53 = vld [vmem:[%s6087_s5 + $0x544] ss:$16 sps:$4 sm:$0xff]   ;;  %v4728_v55 = vld [vmem:[%s6087_s5 + $0x540] ss:$16 sps:$4 sm:$0xff]  }
 0x126   : > { %3481 = vmatpush1.bf16.msra.mxu1 %v4651_v60  ;;  %3441 = vmatprep.subr.bf16.mxu0 %v4652_v61  ;;  %v4733_v54 = vld [vmem:[%s6087_s5 + $0x744] ss:$16 sps:$4 sm:$0xff]   ;;  %v4731_v56 = vld [vmem:[%s6087_s5 + $0x740] ss:$16 sps:$4 sm:$0xff]  }
 0x127   : > { %3482 = vmatprep.subr.bf16.mxu1 %v4654_v62  ;;  %v4736_v57 = vld [vmem:[%s6087_s5 + $0x564] ss:$16 sps:$4 sm:$0xff]   ;;  %v4734_v59 = vld [vmem:[%s6087_s5 + $0x560] ss:$16 sps:$4 sm:$0xff]  }
 0x128   : > { %v4739_v58 = vld [vmem:[%s6087_s5 + $0x764] ss:$16 sps:$4 sm:$0xff]   ;;  %v4737_v60 = vld [vmem:[%s6087_s5 + $0x760] ss:$16 sps:$4 sm:$0xff]  }
 0x129   : > { %3442 = vmatpush1.bf16.msra.mxu0 %v4656_v63  ;;  %v4742_v61 = vld [vmem:[%s6087_s5 + $0x584] ss:$16 sps:$4 sm:$0xff]   ;;  %v4740_v63 = vld [vmem:[%s6087_s5 + $0x580] ss:$16 sps:$4 sm:$0xff]  }
 0x12a   : > { %3483 = vmatpush1.bf16.msra.mxu1 %v4657_v0  ;;  %3443 = vmatprep.subr.bf16.mxu0 %v4658_v1  ;;  %v4745_v62 = vld [vmem:[%s6087_s5 + $0x784] ss:$16 sps:$4 sm:$0xff]   ;;  %v4743_v0 = vld [vmem:[%s6087_s5 + $0x780] ss:$16 sps:$4 sm:$0xff]  }
 0x12b   : > { %3484 = vmatprep.subr.bf16.mxu1 %v4660_v2  ;;  %v4748_v1 = vld [vmem:[%s6087_s5 + $0x5a4] ss:$16 sps:$4 sm:$0xff]  }
 0x12c   : > { %v4751_v2 = vld [vmem:[%s6087_s5 + $0x7a4] ss:$16 sps:$4 sm:$0xff]  }
 0x12d   : > { %3444 = vmatpush1.bf16.msra.mxu0 %v4662_v3  ;;  %v4746_v3 = vld [vmem:[%s6087_s5 + $0x5a0] ss:$16 sps:$4 sm:$0xff]  }
 0x12e   : > { %3485 = vmatpush1.bf16.msra.mxu1 %v4663_v4  ;;  %3495 = vmatprep.subr.bf16.mxu0 %v4670_v5  ;;  %v4749_v4 = vld [vmem:[%s6087_s5 + $0x7a0] ss:$16 sps:$4 sm:$0xff]   ;;  %v4754_v5 = vld [vmem:[%s6087_s5 + $0x5c4] ss:$16 sps:$4 sm:$0xff]  }
 0x12f   : > { %3536 = vmatprep.subr.bf16.mxu1 %v4673_v6  ;;  %v4757_v6 = vld [vmem:[%s6087_s5 + $0x7c4] ss:$16 sps:$4 sm:$0xff]  }
 0x130   : > { %3446 = vmatmul.mubr.bf16.vlgmr.msra.gmra.mrb[0].mxu0 %v6164_v7 }
 0x131   : > { %3487 = vmatmul.mubr.bf16.vlgmr.msra.gmra.mrb[0].mxu1 %v6166_v8  ;;  %3496 = vmatpush1.bf16.msra.mxu0 %v4668_v9  ;;  %v4752_v9 = vld [vmem:[%s6087_s5 + $0x5c0] ss:$16 sps:$4 sm:$0xff]  }
 0x132   : > { %3537 = vmatpush1.bf16.msra.mxu1 %v4671_v10  ;;  %3497 = vmatprep.subr.bf16.mxu0 %v4676_v11  ;;  %v4755_v10 = vld [vmem:[%s6087_s5 + $0x7c0] ss:$16 sps:$4 sm:$0xff]   ;;  %v4760_v11 = vld [vmem:[%s6087_s5 + $0x5e4] ss:$16 sps:$4 sm:$0xff]  }
 0x133   : > { %3538 = vmatprep.subr.bf16.mxu1 %v4679_v12  ;;  %3527 = vmatprep.mubr.bf16.mxu0 %v6204_v37  ;;  %v4763_v12 = vld [vmem:[%s6087_s5 + $0x7e4] ss:$16 sps:$4 sm:$0xff]  }
 0x134   : > { %3568 = vmatprep.mubr.bf16.mxu1 %v6208_v38 }
 0x135   : > { %3498 = vmatpush1.bf16.msra.mxu0 %v4674_v13  ;;  %v4758_v13 = vld [vmem:[%s6087_s5 + $0x5e0] ss:$16 sps:$4 sm:$0xff]  }
 0x136   : > { %3539 = vmatpush1.bf16.msra.mxu1 %v4677_v14  ;;  %3499 = vmatprep.subr.bf16.mxu0 %v4682_v15  ;;  %v4761_v14 = vld [vmem:[%s6087_s5 + $0x7e0] ss:$16 sps:$4 sm:$0xff]   ;;  %v4770_v15 = vld [vmem:[%s6087_s5 + $0x804] ss:$16 sps:$4 sm:$0xff]  }
 0x137   : > { %3540 = vmatprep.subr.bf16.mxu1 %v4685_v16  ;;  %v4773_v16 = vld [vmem:[%s6087_s5 + $0xa04] ss:$16 sps:$4 sm:$0xff]  }
 0x139   : > { %3500 = vmatpush1.bf16.msra.mxu0 %v4680_v17  ;;  %v6252_v17 = vcombine.low %v6195_v33, %v6195_v33  ;;  %v4788_v33 = vld [vmem:[%s6087_s5 + $0x864] ss:$16 sps:$4 sm:$0xff]  }
 0x13a   : > { %3541 = vmatpush1.bf16.msra.mxu1 %v4683_v18  ;;  %3501 = vmatprep.subr.bf16.mxu0 %v4688_v19  ;;  %v6256_v18 = vcombine.low %v6198_v34, %v6198_v34  ;;  %v4768_v19 = vld [vmem:[%s6087_s5 + $0x800] ss:$16 sps:$4 sm:$0xff]   ;;  %v4791_v34 = vld [vmem:[%s6087_s5 + $0xa64] ss:$16 sps:$4 sm:$0xff]  }
 0x13b   : > { %3542 = vmatprep.subr.bf16.mxu1 %v4691_v20  ;;  %v4771_v20 = vld [vmem:[%s6087_s5 + $0xa00] ss:$16 sps:$4 sm:$0xff]  }
 0x13d   : > { %3502 = vmatpush1.bf16.msra.mxu0 %v4686_v21  ;;  %v4776_v21 = vld [vmem:[%s6087_s5 + $0x824] ss:$16 sps:$4 sm:$0xff]  }
 0x13e   : > { %3543 = vmatpush1.bf16.msra.mxu1 %v4689_v22  ;;  %3503 = vmatprep.subr.bf16.mxu0 %v4694_v23  ;;  %v4779_v22 = vld [vmem:[%s6087_s5 + $0xa24] ss:$16 sps:$4 sm:$0xff]  }
 0x13f   : > { %3544 = vmatprep.subr.bf16.mxu1 %v4697_v24  ;;  %v6263_v23 = vld [vmem:[%s6075_s26 + $0x20] sm:$0xff]  ;;  %v6266_v24 = vld [vmem:[%s6075_s26 + $0x28] sm:$0xff] }
 0x141   : > { %3504 = vmatpush1.bf16.msra.mxu0 %v4692_v25  ;;  %v6270_v25 = vcombine.high %v6263_v23, %v6263_v23 }
 0x142   : > { %3545 = vmatpush1.bf16.msra.mxu1 %v4695_v26  ;;  %3505 = vmatprep.subr.bf16.mxu0 %v4700_v27  ;;  %v6274_v26 = vcombine.high %v6266_v24, %v6266_v24  ;;  %v4774_v27 = vld [vmem:[%s6087_s5 + $0x820] ss:$16 sps:$4 sm:$0xff]  }
 0x143   : > { %3546 = vmatprep.subr.bf16.mxu1 %v4703_v28  ;;  %v4777_v28 = vld [vmem:[%s6087_s5 + $0xa20] ss:$16 sps:$4 sm:$0xff]  }
 0x145   : > { %3506 = vmatpush1.bf16.msra.mxu0 %v4698_v29  ;;  %v4782_v29 = vld [vmem:[%s6087_s5 + $0x844] ss:$16 sps:$4 sm:$0xff]  }
 0x146   : > { %3547 = vmatpush1.bf16.msra.mxu1 %v4701_v30  ;;  %3507 = vmatprep.subr.bf16.mxu0 %v4706_v31  ;;  %v4785_v30 = vld [vmem:[%s6087_s5 + $0xa44] ss:$16 sps:$4 sm:$0xff]   ;;  %v4780_v31 = vld [vmem:[%s6087_s5 + $0x840] ss:$16 sps:$4 sm:$0xff]  }
 0x147   : > { %3548 = vmatprep.subr.bf16.mxu1 %v4709_v32  ;;  %v4783_v32 = vld [vmem:[%s6087_s5 + $0xa40] ss:$16 sps:$4 sm:$0xff]  }
 0x149   : > { %3508 = vmatpush1.bf16.msra.mxu0 %v4704_v35  ;;  %v4786_v35 = vld [vmem:[%s6087_s5 + $0x860] ss:$16 sps:$4 sm:$0xff]  }
 0x14a   : > { %3549 = vmatpush1.bf16.msra.mxu1 %v4707_v36  ;;  %3509 = vmatprep.subr.bf16.mxu0 %v4712_v39  ;;  %v4789_v36 = vld [vmem:[%s6087_s5 + $0xa60] ss:$16 sps:$4 sm:$0xff]   ;;  %v4794_v39 = vld [vmem:[%s6087_s5 + $0x884] ss:$16 sps:$4 sm:$0xff]  }
 0x14b   : > { %3550 = vmatprep.subr.bf16.mxu1 %v4715_v40  ;;  %v4797_v40 = vld [vmem:[%s6087_s5 + $0xa84] ss:$16 sps:$4 sm:$0xff]  }
 0x14d   : > { %3510 = vmatpush1.bf16.msra.mxu0 %v4710_v41  ;;  %v4792_v41 = vld [vmem:[%s6087_s5 + $0x880] ss:$16 sps:$4 sm:$0xff]  }
 0x14e   : > { %3551 = vmatpush1.bf16.msra.mxu1 %v4713_v42  ;;  %3511 = vmatprep.subr.bf16.mxu0 %v4718_v43  ;;  %v4795_v42 = vld [vmem:[%s6087_s5 + $0xa80] ss:$16 sps:$4 sm:$0xff]   ;;  %v4800_v43 = vld [vmem:[%s6087_s5 + $0x8a4] ss:$16 sps:$4 sm:$0xff]  }
 0x14f   : > { %3552 = vmatprep.subr.bf16.mxu1 %v4721_v44  ;;  %v4803_v44 = vld [vmem:[%s6087_s5 + $0xaa4] ss:$16 sps:$4 sm:$0xff]  }
 0x151   : > { %3512 = vmatpush1.bf16.msra.mxu0 %v4716_v45  ;;  %v4798_v45 = vld [vmem:[%s6087_s5 + $0x8a0] ss:$16 sps:$4 sm:$0xff]  }
 0x152   : > { %3553 = vmatpush1.bf16.msra.mxu1 %v4719_v46  ;;  %3513 = vmatprep.subr.bf16.mxu0 %v4724_v47  ;;  %v4801_v46 = vld [vmem:[%s6087_s5 + $0xaa0] ss:$16 sps:$4 sm:$0xff]   ;;  %v4806_v47 = vld [vmem:[%s6087_s5 + $0x8c4] ss:$16 sps:$4 sm:$0xff]  }
 0x153   : > { %3554 = vmatprep.subr.bf16.mxu1 %v4727_v49  ;;  %v4809_v49 = vld [vmem:[%s6087_s5 + $0xac4] ss:$16 sps:$4 sm:$0xff]  }
 0x155   : > { %3514 = vmatpush1.bf16.msra.mxu0 %v4722_v50  ;;  %v4804_v50 = vld [vmem:[%s6087_s5 + $0x8c0] ss:$16 sps:$4 sm:$0xff]  }
 0x156   : > { %3555 = vmatpush1.bf16.msra.mxu1 %v4725_v51  ;;  %3515 = vmatprep.subr.bf16.mxu0 %v4730_v53  ;;  %v4807_v51 = vld [vmem:[%s6087_s5 + $0xac0] ss:$16 sps:$4 sm:$0xff]   ;;  %v4812_v53 = vld [vmem:[%s6087_s5 + $0x8e4] ss:$16 sps:$4 sm:$0xff]  }
 0x157   : > { %3556 = vmatprep.subr.bf16.mxu1 %v4733_v54  ;;  %v4815_v54 = vld [vmem:[%s6087_s5 + $0xae4] ss:$16 sps:$4 sm:$0xff]  }
 0x159   : > { %3516 = vmatpush1.bf16.msra.mxu0 %v4728_v55  ;;  %v4810_v55 = vld [vmem:[%s6087_s5 + $0x8e0] ss:$16 sps:$4 sm:$0xff]  }
 0x15a   : > { %3557 = vmatpush1.bf16.msra.mxu1 %v4731_v56  ;;  %3517 = vmatprep.subr.bf16.mxu0 %v4736_v57  ;;  %v4813_v56 = vld [vmem:[%s6087_s5 + $0xae0] ss:$16 sps:$4 sm:$0xff]   ;;  %v4818_v57 = vld [vmem:[%s6087_s5 + $0x904] ss:$16 sps:$4 sm:$0xff]  }
 0x15b   : > { %3558 = vmatprep.subr.bf16.mxu1 %v4739_v58  ;;  %v4821_v58 = vld [vmem:[%s6087_s5 + $0xb04] ss:$16 sps:$4 sm:$0xff]  }
 0x15d   : > { %3518 = vmatpush1.bf16.msra.mxu0 %v4734_v59  ;;  %v4816_v59 = vld [vmem:[%s6087_s5 + $0x900] ss:$16 sps:$4 sm:$0xff]  }
 0x15e   : > { %3559 = vmatpush1.bf16.msra.mxu1 %v4737_v60  ;;  %3519 = vmatprep.subr.bf16.mxu0 %v4742_v61  ;;  %v4819_v60 = vld [vmem:[%s6087_s5 + $0xb00] ss:$16 sps:$4 sm:$0xff]   ;;  %v4824_v61 = vld [vmem:[%s6087_s5 + $0x924] ss:$16 sps:$4 sm:$0xff]  }
 0x15f   : > { %3560 = vmatprep.subr.bf16.mxu1 %v4745_v62  ;;  %v4827_v62 = vld [vmem:[%s6087_s5 + $0xb24] ss:$16 sps:$4 sm:$0xff]  }
 0x161   : > { %3520 = vmatpush1.bf16.msra.mxu0 %v4740_v63  ;;  %v4822_v63 = vld [vmem:[%s6087_s5 + $0x920] ss:$16 sps:$4 sm:$0xff]  }
 0x162   : > { %3561 = vmatpush1.bf16.msra.mxu1 %v4743_v0  ;;  %3521 = vmatprep.subr.bf16.mxu0 %v4748_v1  ;;  %v4825_v0 = vld [vmem:[%s6087_s5 + $0xb20] ss:$16 sps:$4 sm:$0xff]   ;;  %v4830_v1 = vld [vmem:[%s6087_s5 + $0x944] ss:$16 sps:$4 sm:$0xff]  }
 0x163   : > { %3562 = vmatprep.subr.bf16.mxu1 %v4751_v2  ;;  %v4833_v2 = vld [vmem:[%s6087_s5 + $0xb44] ss:$16 sps:$4 sm:$0xff]  }
 0x165   : > { %3522 = vmatpush1.bf16.msra.mxu0 %v4746_v3  ;;  %v4828_v3 = vld [vmem:[%s6087_s5 + $0x940] ss:$16 sps:$4 sm:$0xff]  }
 0x166   : > { %3563 = vmatpush1.bf16.msra.mxu1 %v4749_v4  ;;  %3523 = vmatprep.subr.bf16.mxu0 %v4754_v5  ;;  %v4831_v4 = vld [vmem:[%s6087_s5 + $0xb40] ss:$16 sps:$4 sm:$0xff]   ;;  %v4836_v5 = vld [vmem:[%s6087_s5 + $0x964] ss:$16 sps:$4 sm:$0xff]  }
 0x167   : > { %3564 = vmatprep.subr.bf16.mxu1 %v4757_v6  ;;  %v4839_v6 = vld [vmem:[%s6087_s5 + $0xb64] ss:$16 sps:$4 sm:$0xff]  }
 0x169   : > { %3524 = vmatpush1.bf16.msra.mxu0 %v4752_v9  ;;  %v4834_v9 = vld [vmem:[%s6087_s5 + $0x960] ss:$16 sps:$4 sm:$0xff]  }
 0x16a   : > { %3565 = vmatpush1.bf16.msra.mxu1 %v4755_v10  ;;  %3525 = vmatprep.subr.bf16.mxu0 %v4760_v11  ;;  %v4837_v10 = vld [vmem:[%s6087_s5 + $0xb60] ss:$16 sps:$4 sm:$0xff]   ;;  %v4842_v11 = vld [vmem:[%s6087_s5 + $0x984] ss:$16 sps:$4 sm:$0xff]  }
 0x16b   : > { %3566 = vmatprep.subr.bf16.mxu1 %v4763_v12  ;;  %v4845_v12 = vld [vmem:[%s6087_s5 + $0xb84] ss:$16 sps:$4 sm:$0xff]  }
 0x16d   : > { %3526 = vmatpush1.bf16.msra.mxu0 %v4758_v13  ;;  %v4840_v13 = vld [vmem:[%s6087_s5 + $0x980] ss:$16 sps:$4 sm:$0xff]  }
 0x16e   : > { %3567 = vmatpush1.bf16.msra.mxu1 %v4761_v14  ;;  %3577 = vmatprep.subr.bf16.mxu0 %v4770_v15  ;;  %v4843_v14 = vld [vmem:[%s6087_s5 + $0xb80] ss:$16 sps:$4 sm:$0xff]   ;;  %v4848_v15 = vld [vmem:[%s6087_s5 + $0x9a4] ss:$16 sps:$4 sm:$0xff]  }
 0x16f   : > { %3618 = vmatprep.subr.bf16.mxu1 %v4773_v16  ;;  %v4851_v16 = vld [vmem:[%s6087_s5 + $0xba4] ss:$16 sps:$4 sm:$0xff]  }
 0x170   : > { %3528 = vmatmul.mubr.bf16.vlgmr.msra.gmra.mrb[4].mxu0 %v6252_v17 }
 0x171   : > { %3569 = vmatmul.mubr.bf16.vlgmr.msra.gmra.mrb[4].mxu1 %v6256_v18  ;;  %3578 = vmatpush1.bf16.msra.mxu0 %v4768_v19  ;;  %v4846_v19 = vld [vmem:[%s6087_s5 + $0x9a0] ss:$16 sps:$4 sm:$0xff]  }
 0x172   : > { %3619 = vmatpush1.bf16.msra.mxu1 %v4771_v20  ;;  %3579 = vmatprep.subr.bf16.mxu0 %v4776_v21  ;;  %v4849_v20 = vld [vmem:[%s6087_s5 + $0xba0] ss:$16 sps:$4 sm:$0xff]   ;;  %v4854_v21 = vld [vmem:[%s6087_s5 + $0x9c4] ss:$16 sps:$4 sm:$0xff]  }
 0x173   : > { %3620 = vmatprep.subr.bf16.mxu1 %v4779_v22  ;;  %3609 = vmatprep.mubr.bf16.mxu0 %v6270_v25  ;;  %v4857_v22 = vld [vmem:[%s6087_s5 + $0xbc4] ss:$16 sps:$4 sm:$0xff]  }
 0x174   : > { %3650 = vmatprep.mubr.bf16.mxu1 %v6274_v26 }
 0x175   : > { %3580 = vmatpush1.bf16.msra.mxu0 %v4774_v27  ;;  %v4852_v27 = vld [vmem:[%s6087_s5 + $0x9c0] ss:$16 sps:$4 sm:$0xff]  }
 0x176   : > { %3621 = vmatpush1.bf16.msra.mxu1 %v4777_v28  ;;  %3581 = vmatprep.subr.bf16.mxu0 %v4782_v29  ;;  %v4855_v28 = vld [vmem:[%s6087_s5 + $0xbc0] ss:$16 sps:$4 sm:$0xff]   ;;  %v4860_v29 = vld [vmem:[%s6087_s5 + $0x9e4] ss:$16 sps:$4 sm:$0xff]  }
 0x177   : > { %3622 = vmatprep.subr.bf16.mxu1 %v4785_v30  ;;  %v4863_v30 = vld [vmem:[%s6087_s5 + $0xbe4] ss:$16 sps:$4 sm:$0xff]  }
 0x179   : > { %3582 = vmatpush1.bf16.msra.mxu0 %v4780_v31  ;;  %v4858_v31 = vld [vmem:[%s6087_s5 + $0x9e0] ss:$16 sps:$4 sm:$0xff]  }
 0x17a   : > { %3623 = vmatpush1.bf16.msra.mxu1 %v4783_v32  ;;  %3583 = vmatprep.subr.bf16.mxu0 %v4788_v33  ;;  %v4861_v32 = vld [vmem:[%s6087_s5 + $0xbe0] ss:$16 sps:$4 sm:$0xff]   ;;  %v4870_v33 = vld [vmem:[%s6087_s5 + $0xc] ss:$16 sps:$4 sm:$0xff]  }
 0x17b   : > { %3624 = vmatprep.subr.bf16.mxu1 %v4791_v34  ;;  %v4873_v34 = vld [vmem:[%s6087_s5 + $0x20c] ss:$16 sps:$4 sm:$0xff]  }
 0x17d   : > { %3584 = vmatpush1.bf16.msra.mxu0 %v4786_v35  ;;  %v6342_v35 = vcombine.low %v6263_v23, %v6263_v23  ;;  %v4874_v23 = vld [vmem:[%s6087_s5 + $0x28] ss:$16 sps:$4 sm:$0xff]  }
 0x17e   : > { %3625 = vmatpush1.bf16.msra.mxu1 %v4789_v36  ;;  %3585 = vmatprep.subr.bf16.mxu0 %v4794_v39  ;;  %v6346_v36 = vcombine.low %v6266_v24, %v6266_v24  ;;  %v4868_v39 = vld [vmem:[%s6087_s5 + $0x8] ss:$16 sps:$4 sm:$0xff]  }
 0x17f   : > { %3626 = vmatprep.subr.bf16.mxu1 %v4797_v40  ;;  %v4871_v40 = vld [vmem:[%s6087_s5 + $0x208] ss:$16 sps:$4 sm:$0xff]  }
 0x180   : > { %v4877_v24 = vld [vmem:[%s6087_s5 + $0x228] ss:$16 sps:$4 sm:$0xff]  }
 0x181   : > { %3586 = vmatpush1.bf16.msra.mxu0 %v4792_v41  ;;  %v4876_v41 = vld [vmem:[%s6087_s5 + $0x2c] ss:$16 sps:$4 sm:$0xff]  }
 0x182   : > { %3627 = vmatpush1.bf16.msra.mxu1 %v4795_v42  ;;  %3587 = vmatprep.subr.bf16.mxu0 %v4800_v43  ;;  %v4879_v42 = vld [vmem:[%s6087_s5 + $0x22c] ss:$16 sps:$4 sm:$0xff]  }
 0x183   : > { %3628 = vmatprep.subr.bf16.mxu1 %v4803_v44  ;;  %v4882_v43 = vld [vmem:[%s6087_s5 + $0x4c] ss:$16 sps:$4 sm:$0xff]  }
 0x184   : > { %v4885_v44 = vld [vmem:[%s6087_s5 + $0x24c] ss:$16 sps:$4 sm:$0xff]  }
 0x185   : > { %3588 = vmatpush1.bf16.msra.mxu0 %v4798_v45  ;;  %v4880_v45 = vld [vmem:[%s6087_s5 + $0x48] ss:$16 sps:$4 sm:$0xff]  }
 0x186   : > { %3629 = vmatpush1.bf16.msra.mxu1 %v4801_v46  ;;  %3589 = vmatprep.subr.bf16.mxu0 %v4806_v47  ;;  %v4883_v46 = vld [vmem:[%s6087_s5 + $0x248] ss:$16 sps:$4 sm:$0xff]   ;;  %v4888_v47 = vld [vmem:[%s6087_s5 + $0x6c] ss:$16 sps:$4 sm:$0xff]  }
 0x187   : > { %3630 = vmatprep.subr.bf16.mxu1 %v4809_v49  ;;  %v4891_v49 = vld [vmem:[%s6087_s5 + $0x26c] ss:$16 sps:$4 sm:$0xff]  }
 0x189   : > { %3590 = vmatpush1.bf16.msra.mxu0 %v4804_v50  ;;  %v4886_v50 = vld [vmem:[%s6087_s5 + $0x68] ss:$16 sps:$4 sm:$0xff]  }
 0x18a   : > { %3631 = vmatpush1.bf16.msra.mxu1 %v4807_v51  ;;  %3591 = vmatprep.subr.bf16.mxu0 %v4812_v53  ;;  %v4897_v51 = vld [vmem:[%s6087_s5 + $0x28c] ss:$16 sps:$4 sm:$0xff]   ;;  %v4892_v53 = vld [vmem:[%s6087_s5 + $0x88] ss:$16 sps:$4 sm:$0xff]  }
 0x18b   : > { %3632 = vmatprep.subr.bf16.mxu1 %v4815_v54  ;;  %v4895_v54 = vld [vmem:[%s6087_s5 + $0x288] ss:$16 sps:$4 sm:$0xff]  }
 0x18d   : > { %3592 = vmatpush1.bf16.msra.mxu0 %v4810_v55  ;;  %v4900_v55 = vld [vmem:[%s6087_s5 + $0xac] ss:$16 sps:$4 sm:$0xff]  }
 0x18e   : > { %3633 = vmatpush1.bf16.msra.mxu1 %v4813_v56  ;;  %3593 = vmatprep.subr.bf16.mxu0 %v4818_v57  ;;  %v4903_v56 = vld [vmem:[%s6087_s5 + $0x2ac] ss:$16 sps:$4 sm:$0xff]   ;;  %v4898_v57 = vld [vmem:[%s6087_s5 + $0xa8] ss:$16 sps:$4 sm:$0xff]  }
 0x18f   : > { %3634 = vmatprep.subr.bf16.mxu1 %v4821_v58  ;;  %v4901_v58 = vld [vmem:[%s6087_s5 + $0x2a8] ss:$16 sps:$4 sm:$0xff]  }
 0x191   : > { %3594 = vmatpush1.bf16.msra.mxu0 %v4816_v59  ;;  %v4906_v59 = vld [vmem:[%s6087_s5 + $0xcc] ss:$16 sps:$4 sm:$0xff]  }
 0x192   : > { %3635 = vmatpush1.bf16.msra.mxu1 %v4819_v60  ;;  %3595 = vmatprep.subr.bf16.mxu0 %v4824_v61  ;;  %v4909_v60 = vld [vmem:[%s6087_s5 + $0x2cc] ss:$16 sps:$4 sm:$0xff]   ;;  %v4904_v61 = vld [vmem:[%s6087_s5 + $0xc8] ss:$16 sps:$4 sm:$0xff]  }
 0x193   : > { %3636 = vmatprep.subr.bf16.mxu1 %v4827_v62  ;;  %v4907_v62 = vld [vmem:[%s6087_s5 + $0x2c8] ss:$16 sps:$4 sm:$0xff]  }
 0x195   : > { %3596 = vmatpush1.bf16.msra.mxu0 %v4822_v63  ;;  %v4912_v63 = vld [vmem:[%s6087_s5 + $0xec] ss:$16 sps:$4 sm:$0xff]  }
 0x196   : > { %3637 = vmatpush1.bf16.msra.mxu1 %v4825_v0  ;;  %3597 = vmatprep.subr.bf16.mxu0 %v4830_v1  ;;  %v4915_v0 = vld [vmem:[%s6087_s5 + $0x2ec] ss:$16 sps:$4 sm:$0xff]   ;;  %v4910_v1 = vld [vmem:[%s6087_s5 + $0xe8] ss:$16 sps:$4 sm:$0xff]  }
 0x197   : > { %3638 = vmatprep.subr.bf16.mxu1 %v4833_v2  ;;  %v4913_v2 = vld [vmem:[%s6087_s5 + $0x2e8] ss:$16 sps:$4 sm:$0xff]  }
 0x199   : > { %3598 = vmatpush1.bf16.msra.mxu0 %v4828_v3  ;;  %v4918_v3 = vld [vmem:[%s6087_s5 + $0x10c] ss:$16 sps:$4 sm:$0xff]  }
 0x19a   : > { %3639 = vmatpush1.bf16.msra.mxu1 %v4831_v4  ;;  %3599 = vmatprep.subr.bf16.mxu0 %v4836_v5  ;;  %v4921_v4 = vld [vmem:[%s6087_s5 + $0x30c] ss:$16 sps:$4 sm:$0xff]   ;;  %v4916_v5 = vld [vmem:[%s6087_s5 + $0x108] ss:$16 sps:$4 sm:$0xff]  }
 0x19b   : > { %3640 = vmatprep.subr.bf16.mxu1 %v4839_v6  ;;  %v4919_v6 = vld [vmem:[%s6087_s5 + $0x308] ss:$16 sps:$4 sm:$0xff]  }
 0x19d   : > { %3600 = vmatpush1.bf16.msra.mxu0 %v4834_v9  ;;  %v4924_v9 = vld [vmem:[%s6087_s5 + $0x12c] ss:$16 sps:$4 sm:$0xff]  }
 0x19e   : > { %3641 = vmatpush1.bf16.msra.mxu1 %v4837_v10  ;;  %3601 = vmatprep.subr.bf16.mxu0 %v4842_v11  ;;  %v4927_v10 = vld [vmem:[%s6087_s5 + $0x32c] ss:$16 sps:$4 sm:$0xff]   ;;  %v4922_v11 = vld [vmem:[%s6087_s5 + $0x128] ss:$16 sps:$4 sm:$0xff]  }
 0x19f   : > { %3642 = vmatprep.subr.bf16.mxu1 %v4845_v12  ;;  %v4925_v12 = vld [vmem:[%s6087_s5 + $0x328] ss:$16 sps:$4 sm:$0xff]  }
 0x1a1   : > { %3602 = vmatpush1.bf16.msra.mxu0 %v4840_v13  ;;  %v4930_v13 = vld [vmem:[%s6087_s5 + $0x14c] ss:$16 sps:$4 sm:$0xff]  }
 0x1a2   : > { %3643 = vmatpush1.bf16.msra.mxu1 %v4843_v14  ;;  %3603 = vmatprep.subr.bf16.mxu0 %v4848_v15  ;;  %v4933_v14 = vld [vmem:[%s6087_s5 + $0x34c] ss:$16 sps:$4 sm:$0xff]   ;;  %v4928_v15 = vld [vmem:[%s6087_s5 + $0x148] ss:$16 sps:$4 sm:$0xff]  }
 0x1a3   : > { %3644 = vmatprep.subr.bf16.mxu1 %v4851_v16  ;;  %v4931_v16 = vld [vmem:[%s6087_s5 + $0x348] ss:$16 sps:$4 sm:$0xff]  }
 0x1a5   : > { %3604 = vmatpush1.bf16.msra.mxu0 %v4846_v19  ;;  %v4936_v19 = vld [vmem:[%s6087_s5 + $0x16c] ss:$16 sps:$4 sm:$0xff]  }
 0x1a6   : > { %3645 = vmatpush1.bf16.msra.mxu1 %v4849_v20  ;;  %3605 = vmatprep.subr.bf16.mxu0 %v4854_v21  ;;  %v4939_v20 = vld [vmem:[%s6087_s5 + $0x36c] ss:$16 sps:$4 sm:$0xff]   ;;  %v4934_v21 = vld [vmem:[%s6087_s5 + $0x168] ss:$16 sps:$4 sm:$0xff]  }
 0x1a7   : > { %3646 = vmatprep.subr.bf16.mxu1 %v4857_v22  ;;  %v4937_v22 = vld [vmem:[%s6087_s5 + $0x368] ss:$16 sps:$4 sm:$0xff]  }
 0x1a9   : > { %3606 = vmatpush1.bf16.msra.mxu0 %v4852_v27  ;;  %v4942_v27 = vld [vmem:[%s6087_s5 + $0x18c] ss:$16 sps:$4 sm:$0xff]  }
 0x1aa   : > { %3647 = vmatpush1.bf16.msra.mxu1 %v4855_v28  ;;  %3607 = vmatprep.subr.bf16.mxu0 %v4860_v29  ;;  %v4945_v28 = vld [vmem:[%s6087_s5 + $0x38c] ss:$16 sps:$4 sm:$0xff]   ;;  %v4940_v29 = vld [vmem:[%s6087_s5 + $0x188] ss:$16 sps:$4 sm:$0xff]  }
 0x1ab   : > { %3648 = vmatprep.subr.bf16.mxu1 %v4863_v30  ;;  %v4943_v30 = vld [vmem:[%s6087_s5 + $0x388] ss:$16 sps:$4 sm:$0xff]  }
 0x1ad   : > { %3608 = vmatpush1.bf16.msra.mxu0 %v4858_v31  ;;  %v4948_v31 = vld [vmem:[%s6087_s5 + $0x1ac] ss:$16 sps:$4 sm:$0xff]  }
 0x1ae   : > { %3649 = vmatpush1.bf16.msra.mxu1 %v4861_v32  ;;  %3659 = vmatprep.subr.bf16.mxu0 %v4870_v33  ;;  %v4951_v32 = vld [vmem:[%s6087_s5 + $0x3ac] ss:$16 sps:$4 sm:$0xff]   ;;  %v4946_v33 = vld [vmem:[%s6087_s5 + $0x1a8] ss:$16 sps:$4 sm:$0xff]  }
 0x1af   : > { %3700 = vmatprep.subr.bf16.mxu1 %v4873_v34  ;;  %v4949_v34 = vld [vmem:[%s6087_s5 + $0x3a8] ss:$16 sps:$4 sm:$0xff]  }
 0x1b0   : > { %3610 = vmatmul.mubr.bf16.vlgmr.msra.gmra.mrb[8].mxu0 %v6342_v35 }
 0x1b1   : > { %3651 = vmatmul.mubr.bf16.vlgmr.msra.gmra.mrb[8].mxu1 %v6346_v36  ;;  %3660 = vmatpush1.bf16.msra.mxu0 %v4868_v39  ;;  %v4954_v39 = vld [vmem:[%s6087_s5 + $0x1cc] ss:$16 sps:$4 sm:$0xff]  }
 0x1b2   : > { %3701 = vmatpush1.bf16.msra.mxu1 %v4871_v40  ;;  %3661 = vmatprep.subr.bf16.mxu0 %v4876_v41  ;;  %v4957_v40 = vld [vmem:[%s6087_s5 + $0x3cc] ss:$16 sps:$4 sm:$0xff]   ;;  %v4952_v41 = vld [vmem:[%s6087_s5 + $0x1c8] ss:$16 sps:$4 sm:$0xff]  }
 0x1b3   : > { %3702 = vmatprep.subr.bf16.mxu1 %v4879_v42  ;;  %3691 = vmatprep.mubr.bf16.mxu0 %v6137_v48  ;;  %v4889_v48 = vld [vmem:[%s6087_s5 + $0x268] ss:$16 sps:$4 sm:$0xff]  }
 0x1b4   : > { %3732 = vmatprep.mubr.bf16.mxu1 %v6142_v52  ;;  %v4894_v52 = vld [vmem:[%s6087_s5 + $0x8c] ss:$16 sps:$4 sm:$0xff]   ;;  %v4955_v42 = vld [vmem:[%s6087_s5 + $0x3c8] ss:$16 sps:$4 sm:$0xff]  }
 0x1b5   : > { %3662 = vmatpush1.bf16.msra.mxu0 %v4874_v23  ;;  %v4960_v23 = vld [vmem:[%s6087_s5 + $0x1ec] ss:$16 sps:$4 sm:$0xff]  }
 0x1b6   : > { %3703 = vmatpush1.bf16.msra.mxu1 %v4877_v24  ;;  %3663 = vmatprep.subr.bf16.mxu0 %v4882_v43  ;;  %v4963_v24 = vld [vmem:[%s6087_s5 + $0x3ec] ss:$16 sps:$4 sm:$0xff]   ;;  %v4958_v43 = vld [vmem:[%s6087_s5 + $0x1e8] ss:$16 sps:$4 sm:$0xff]  }
 0x1b7   : > { %3704 = vmatprep.subr.bf16.mxu1 %v4885_v44  ;;  %v4961_v44 = vld [vmem:[%s6087_s5 + $0x3e8] ss:$16 sps:$4 sm:$0xff]  }
 0x1b9   : > { %3664 = vmatpush1.bf16.msra.mxu0 %v4880_v45  ;;  %v4966_v45 = vld [vmem:[%s6087_s5 + $0x40c] ss:$16 sps:$4 sm:$0xff]  }
 0x1ba   : > { %3705 = vmatpush1.bf16.msra.mxu1 %v4883_v46  ;;  %3665 = vmatprep.subr.bf16.mxu0 %v4888_v47  ;;  %v4969_v46 = vld [vmem:[%s6087_s5 + $0x60c] ss:$16 sps:$4 sm:$0xff]   ;;  %v4964_v47 = vld [vmem:[%s6087_s5 + $0x408] ss:$16 sps:$4 sm:$0xff]  }
 0x1bb   : > { %3706 = vmatprep.subr.bf16.mxu1 %v4891_v49  ;;  %v4967_v49 = vld [vmem:[%s6087_s5 + $0x608] ss:$16 sps:$4 sm:$0xff]  }
 0x1bd   : > { %3666 = vmatpush1.bf16.msra.mxu0 %v4886_v50  ;;  %v4972_v50 = vld [vmem:[%s6087_s5 + $0x42c] ss:$16 sps:$4 sm:$0xff]  }
 0x1be   : > { %3707 = vmatpush1.bf16.msra.mxu1 %v4889_v48  ;;  %3667 = vmatprep.subr.bf16.mxu0 %v4894_v52  ;;  %v4975_v48 = vld [vmem:[%s6087_s5 + $0x62c] ss:$16 sps:$4 sm:$0xff]   ;;  %v4970_v52 = vld [vmem:[%s6087_s5 + $0x428] ss:$16 sps:$4 sm:$0xff]  }
 0x1bf   : > { %3708 = vmatprep.subr.bf16.mxu1 %v4897_v51  ;;  %v4973_v51 = vld [vmem:[%s6087_s5 + $0x628] ss:$16 sps:$4 sm:$0xff]  }
 0x1c1   : > { %3668 = vmatpush1.bf16.msra.mxu0 %v4892_v53  ;;  %v4978_v53 = vld [vmem:[%s6087_s5 + $0x44c] ss:$16 sps:$4 sm:$0xff]  }
 0x1c2   : > { %3709 = vmatpush1.bf16.msra.mxu1 %v4895_v54  ;;  %3669 = vmatprep.subr.bf16.mxu0 %v4900_v55  ;;  %v4981_v54 = vld [vmem:[%s6087_s5 + $0x64c] ss:$16 sps:$4 sm:$0xff]  }
 0x1c3   : > { %3710 = vmatprep.subr.bf16.mxu1 %v4903_v56  ;;  %v4984_v55 = vld [vmem:[%s6087_s5 + $0x46c] ss:$16 sps:$4 sm:$0xff]  }
 0x1c4   : > { %v4987_v56 = vld [vmem:[%s6087_s5 + $0x66c] ss:$16 sps:$4 sm:$0xff]  }
 0x1c5   : > { %3670 = vmatpush1.bf16.msra.mxu0 %v4898_v57  ;;  %v4982_v57 = vld [vmem:[%s6087_s5 + $0x468] ss:$16 sps:$4 sm:$0xff]  }
 0x1c6   : > { %3711 = vmatpush1.bf16.msra.mxu1 %v4901_v58  ;;  %3671 = vmatprep.subr.bf16.mxu0 %v4906_v59  ;;  %v4993_v58 = vld [vmem:[%s6087_s5 + $0x68c] ss:$16 sps:$4 sm:$0xff]   ;;  %v4988_v59 = vld [vmem:[%s6087_s5 + $0x488] ss:$16 sps:$4 sm:$0xff]  }
 0x1c7   : > { %3712 = vmatprep.subr.bf16.mxu1 %v4909_v60  ;;  %v4991_v60 = vld [vmem:[%s6087_s5 + $0x688] ss:$16 sps:$4 sm:$0xff]  }
 0x1c9   : > { %3672 = vmatpush1.bf16.msra.mxu0 %v4904_v61  ;;  %v4996_v61 = vld [vmem:[%s6087_s5 + $0x4ac] ss:$16 sps:$4 sm:$0xff]  }
 0x1ca   : > { %3713 = vmatpush1.bf16.msra.mxu1 %v4907_v62  ;;  %3673 = vmatprep.subr.bf16.mxu0 %v4912_v63  ;;  %v4999_v62 = vld [vmem:[%s6087_s5 + $0x6ac] ss:$16 sps:$4 sm:$0xff]   ;;  %v4994_v63 = vld [vmem:[%s6087_s5 + $0x4a8] ss:$16 sps:$4 sm:$0xff]  }
 0x1cb   : > { %3714 = vmatprep.subr.bf16.mxu1 %v4915_v0  ;;  %v4997_v0 = vld [vmem:[%s6087_s5 + $0x6a8] ss:$16 sps:$4 sm:$0xff]  }
 0x1cd   : > { %3674 = vmatpush1.bf16.msra.mxu0 %v4910_v1  ;;  %v5002_v1 = vld [vmem:[%s6087_s5 + $0x4cc] ss:$16 sps:$4 sm:$0xff]  }
 0x1ce   : > { %3715 = vmatpush1.bf16.msra.mxu1 %v4913_v2  ;;  %3675 = vmatprep.subr.bf16.mxu0 %v4918_v3  ;;  %v5005_v2 = vld [vmem:[%s6087_s5 + $0x6cc] ss:$16 sps:$4 sm:$0xff]  }
 0x1cf   : > { %3716 = vmatprep.subr.bf16.mxu1 %v4921_v4 }
 0x1d1   : > { %3676 = vmatpush1.bf16.msra.mxu0 %v4916_v5 }
 0x1d2   : > { %3717 = vmatpush1.bf16.msra.mxu1 %v4919_v6  ;;  %3677 = vmatprep.subr.bf16.mxu0 %v4924_v9 }
 0x1d3   : > { %3718 = vmatprep.subr.bf16.mxu1 %v4927_v10 }
 0x1d5   : > { %3678 = vmatpush1.bf16.msra.mxu0 %v4922_v11 }
 0x1d6   : > { %3719 = vmatpush1.bf16.msra.mxu1 %v4925_v12  ;;  %3679 = vmatprep.subr.bf16.mxu0 %v4930_v13  ;;  %v5000_v13 = vld [vmem:[%s6087_s5 + $0x4c8] ss:$16 sps:$4 sm:$0xff]  }
 0x1d7   : > { %3720 = vmatprep.subr.bf16.mxu1 %v4933_v14  ;;  %v5003_v14 = vld [vmem:[%s6087_s5 + $0x6c8] ss:$16 sps:$4 sm:$0xff]  }
 0x1d9   : > { %3680 = vmatpush1.bf16.msra.mxu0 %v4928_v15 }
 0x1da   : > { %3721 = vmatpush1.bf16.msra.mxu1 %v4931_v16  ;;  %3681 = vmatprep.subr.bf16.mxu0 %v4936_v19  ;;  %v5008_v19 = vld [vmem:[%s6087_s5 + $0x4ec] ss:$16 sps:$4 sm:$0xff]  }
 0x1db   : > { %3722 = vmatprep.subr.bf16.mxu1 %v4939_v20  ;;  %v5011_v20 = vld [vmem:[%s6087_s5 + $0x6ec] ss:$16 sps:$4 sm:$0xff]  }
 0x1dd   : > { %3682 = vmatpush1.bf16.msra.mxu0 %v4934_v21  ;;  %v5006_v21 = vld [vmem:[%s6087_s5 + $0x4e8] ss:$16 sps:$4 sm:$0xff]  }
 0x1de   : > { %3723 = vmatpush1.bf16.msra.mxu1 %v4937_v22  ;;  %3683 = vmatprep.subr.bf16.mxu0 %v4942_v27  ;;  %v5009_v22 = vld [vmem:[%s6087_s5 + $0x6e8] ss:$16 sps:$4 sm:$0xff]   ;;  %v5014_v27 = vld [vmem:[%s6087_s5 + $0x50c] ss:$16 sps:$4 sm:$0xff]  }
 0x1df   : > { %3724 = vmatprep.subr.bf16.mxu1 %v4945_v28  ;;  %v5017_v28 = vld [vmem:[%s6087_s5 + $0x70c] ss:$16 sps:$4 sm:$0xff]  }
 0x1e1   : > { %3684 = vmatpush1.bf16.msra.mxu0 %v4940_v29  ;;  %v5012_v29 = vld [vmem:[%s6087_s5 + $0x508] ss:$16 sps:$4 sm:$0xff]  }
 0x1e2   : > { %3725 = vmatpush1.bf16.msra.mxu1 %v4943_v30  ;;  %3685 = vmatprep.subr.bf16.mxu0 %v4948_v31  ;;  %v5015_v30 = vld [vmem:[%s6087_s5 + $0x708] ss:$16 sps:$4 sm:$0xff]   ;;  %v5020_v31 = vld [vmem:[%s6087_s5 + $0x52c] ss:$16 sps:$4 sm:$0xff]  }
 0x1e3   : > { %3726 = vmatprep.subr.bf16.mxu1 %v4951_v32  ;;  %v5023_v32 = vld [vmem:[%s6087_s5 + $0x72c] ss:$16 sps:$4 sm:$0xff]  }
 0x1e5   : > { %3686 = vmatpush1.bf16.msra.mxu0 %v4946_v33  ;;  %v5018_v33 = vld [vmem:[%s6087_s5 + $0x528] ss:$16 sps:$4 sm:$0xff]  }
 0x1e6   : > { %3727 = vmatpush1.bf16.msra.mxu1 %v4949_v34  ;;  %3687 = vmatprep.subr.bf16.mxu0 %v4954_v39  ;;  %v5021_v34 = vld [vmem:[%s6087_s5 + $0x728] ss:$16 sps:$4 sm:$0xff]   ;;  %v5026_v39 = vld [vmem:[%s6087_s5 + $0x54c] ss:$16 sps:$4 sm:$0xff]  }
 0x1e7   : > { %3728 = vmatprep.subr.bf16.mxu1 %v4957_v40  ;;  %v5029_v40 = vld [vmem:[%s6087_s5 + $0x74c] ss:$16 sps:$4 sm:$0xff]  }
 0x1e9   : > { %3688 = vmatpush1.bf16.msra.mxu0 %v4952_v41  ;;  %v5024_v41 = vld [vmem:[%s6087_s5 + $0x548] ss:$16 sps:$4 sm:$0xff]  }
 0x1ea   : > { %3729 = vmatpush1.bf16.msra.mxu1 %v4955_v42  ;;  %3689 = vmatprep.subr.bf16.mxu0 %v4960_v23  ;;  %v5027_v42 = vld [vmem:[%s6087_s5 + $0x748] ss:$16 sps:$4 sm:$0xff]   ;;  %v5032_v23 = vld [vmem:[%s6087_s5 + $0x56c] ss:$16 sps:$4 sm:$0xff]  }
 0x1eb   : > { %3730 = vmatprep.subr.bf16.mxu1 %v4963_v24  ;;  %v5035_v24 = vld [vmem:[%s6087_s5 + $0x76c] ss:$16 sps:$4 sm:$0xff]  }
 0x1ed   : > { %3690 = vmatpush1.bf16.msra.mxu0 %v4958_v43  ;;  %v5030_v43 = vld [vmem:[%s6087_s5 + $0x568] ss:$16 sps:$4 sm:$0xff]  }
 0x1ee   : > { %3731 = vmatpush1.bf16.msra.mxu1 %v4961_v44  ;;  %3741 = vmatprep.subr.bf16.mxu0 %v4966_v45  ;;  %v5033_v44 = vld [vmem:[%s6087_s5 + $0x768] ss:$16 sps:$4 sm:$0xff]   ;;  %v5038_v45 = vld [vmem:[%s6087_s5 + $0x58c] ss:$16 sps:$4 sm:$0xff]  }
 0x1ef   : > { %3782 = vmatprep.subr.bf16.mxu1 %v4969_v46  ;;  %v5041_v46 = vld [vmem:[%s6087_s5 + $0x78c] ss:$16 sps:$4 sm:$0xff]  }
 0x1f0   : > { %3692 = vmatmul.mubr.bf16.vlgmr.msra.gmra.mrb[12].mxu0 %v6164_v7  ;;  %v4976_v7 = vld [vmem:[%s6087_s5 + $0x448] ss:$16 sps:$4 sm:$0xff]  }
 0x1f1   : > { %3733 = vmatmul.mubr.bf16.vlgmr.msra.gmra.mrb[12].mxu1 %v6166_v8  ;;  %3742 = vmatpush1.bf16.msra.mxu0 %v4964_v47  ;;  %v4979_v8 = vld [vmem:[%s6087_s5 + $0x648] ss:$16 sps:$4 sm:$0xff]  }
 0x1f2   : > { %3783 = vmatpush1.bf16.msra.mxu1 %v4967_v49  ;;  %3743 = vmatprep.subr.bf16.mxu0 %v4972_v50  ;;  %v5036_v47 = vld [vmem:[%s6087_s5 + $0x588] ss:$16 sps:$4 sm:$0xff]   ;;  %v5044_v50 = vld [vmem:[%s6087_s5 + $0x5ac] ss:$16 sps:$4 sm:$0xff]  }
 0x1f3   : > { %3784 = vmatprep.subr.bf16.mxu1 %v4975_v48  ;;  %3773 = vmatprep.mubr.bf16.mxu0 %v6204_v37  ;;  %v4985_v37 = vld [vmem:[%s6087_s5 + $0x668] ss:$16 sps:$4 sm:$0xff]   ;;  %v5047_v48 = vld [vmem:[%s6087_s5 + $0x7ac] ss:$16 sps:$4 sm:$0xff]  }
 0x1f4   : > { %3814 = vmatprep.mubr.bf16.mxu1 %v6208_v38  ;;  %v4990_v38 = vld [vmem:[%s6087_s5 + $0x48c] ss:$16 sps:$4 sm:$0xff]   ;;  %v5039_v49 = vld [vmem:[%s6087_s5 + $0x788] ss:$16 sps:$4 sm:$0xff]  }
 0x1f5   : > { %3744 = vmatpush1.bf16.msra.mxu0 %v4970_v52  ;;  %v5042_v52 = vld [vmem:[%s6087_s5 + $0x5a8] ss:$16 sps:$4 sm:$0xff]  }
 0x1f6   : > { %3785 = vmatpush1.bf16.msra.mxu1 %v4973_v51  ;;  %3745 = vmatprep.subr.bf16.mxu0 %v4978_v53  ;;  %v5045_v51 = vld [vmem:[%s6087_s5 + $0x7a8] ss:$16 sps:$4 sm:$0xff]   ;;  %v5050_v53 = vld [vmem:[%s6087_s5 + $0x5cc] ss:$16 sps:$4 sm:$0xff]  }
 0x1f7   : > { %3786 = vmatprep.subr.bf16.mxu1 %v4981_v54  ;;  %v5053_v54 = vld [vmem:[%s6087_s5 + $0x7cc] ss:$16 sps:$4 sm:$0xff]  }
 0x1f9   : > { %3746 = vmatpush1.bf16.msra.mxu0 %v4976_v7  ;;  %v5048_v7 = vld [vmem:[%s6087_s5 + $0x5c8] ss:$16 sps:$4 sm:$0xff]  }
 0x1fa   : > { %3787 = vmatpush1.bf16.msra.mxu1 %v4979_v8  ;;  %3747 = vmatprep.subr.bf16.mxu0 %v4984_v55  ;;  %v5051_v8 = vld [vmem:[%s6087_s5 + $0x7c8] ss:$16 sps:$4 sm:$0xff]   ;;  %v5056_v55 = vld [vmem:[%s6087_s5 + $0x5ec] ss:$16 sps:$4 sm:$0xff]  }
 0x1fb   : > { %3788 = vmatprep.subr.bf16.mxu1 %v4987_v56  ;;  %v5059_v56 = vld [vmem:[%s6087_s5 + $0x7ec] ss:$16 sps:$4 sm:$0xff]  }
 0x1fd   : > { %3748 = vmatpush1.bf16.msra.mxu0 %v4982_v57  ;;  %v5054_v57 = vld [vmem:[%s6087_s5 + $0x5e8] ss:$16 sps:$4 sm:$0xff]  }
 0x1fe   : > { %3789 = vmatpush1.bf16.msra.mxu1 %v4985_v37  ;;  %3749 = vmatprep.subr.bf16.mxu0 %v4990_v38  ;;  %v5057_v37 = vld [vmem:[%s6087_s5 + $0x7e8] ss:$16 sps:$4 sm:$0xff]   ;;  %v5062_v38 = vld [vmem:[%s6087_s5 + $0x80c] ss:$16 sps:$4 sm:$0xff]  }
 0x1ff   : > { %3790 = vmatprep.subr.bf16.mxu1 %v4993_v58  ;;  %v5065_v58 = vld [vmem:[%s6087_s5 + $0xa0c] ss:$16 sps:$4 sm:$0xff]  }
 0x201   : > { %3750 = vmatpush1.bf16.msra.mxu0 %v4988_v59  ;;  %v5060_v59 = vld [vmem:[%s6087_s5 + $0x808] ss:$16 sps:$4 sm:$0xff]  }
 0x202   : > { %3791 = vmatpush1.bf16.msra.mxu1 %v4991_v60  ;;  %3751 = vmatprep.subr.bf16.mxu0 %v4996_v61  ;;  %v5063_v60 = vld [vmem:[%s6087_s5 + $0xa08] ss:$16 sps:$4 sm:$0xff]   ;;  %v5068_v61 = vld [vmem:[%s6087_s5 + $0x82c] ss:$16 sps:$4 sm:$0xff]  }
 0x203   : > { %3792 = vmatprep.subr.bf16.mxu1 %v4999_v62  ;;  %v3447_v3 = vpop.f32.mrb[0].mxu0  ;;  %v5071_v62 = vld [vmem:[%s6087_s5 + $0xa2c] ss:$16 sps:$4 sm:$0xff]  }
 0x204   : > { %v3488_v4 = vpop.f32.mrb[0].mxu1  ;;  %v3449_v6 = vpop.f32.mrb[1].mxu0 }
 0x205   : > { %v6444_v5 = vadd.f32 %v3488_v4, %v3447_v3  ;;  %v3490_v9 = vpop.f32.mrb[1].mxu1  ;;  %v3451_v11 = vpop.f32.mrb[2].mxu0  ;;  %3752 = vmatpush1.bf16.msra.mxu0 %v4994_v63  ;;  %v5066_v63 = vld [vmem:[%s6087_s5 + $0x828] ss:$16 sps:$4 sm:$0xff]   ;;  %v5080_v3 = vld [vmem:[%s6087_s5 + $0x86c] ss:$16 sps:$4 sm:$0xff]  }
 0x206   : > { %v6446_v10 = vadd.f32 %v3490_v9, %v3449_v6  ;;  %v3492_v12 = vpop.f32.mrb[2].mxu1  ;;  %3793 = vmatpush1.bf16.msra.mxu1 %v4997_v0  ;;  %v3452_v15 = vpop.f32.mrb[3].mxu0  ;;  %3753 = vmatprep.subr.bf16.mxu0 %v5002_v1  ;;  %v5069_v0 = vld [vmem:[%s6087_s5 + $0xa28] ss:$16 sps:$4 sm:$0xff]   ;;  %v5074_v1 = vld [vmem:[%s6087_s5 + $0x84c] ss:$16 sps:$4 sm:$0xff]  }
 0x207   : > { %v3493_v16 = vpop.f32.mrb[3].mxu1  ;;  %3794 = vmatprep.subr.bf16.mxu1 %v5005_v2  ;;  %v5077_v2 = vld [vmem:[%s6087_s5 + $0xa4c] ss:$16 sps:$4 sm:$0xff]   ;;  %v5078_v6 = vld [vmem:[%s6087_s5 + $0x868] ss:$16 sps:$4 sm:$0xff]  }
 0x208   : > { %v5083_v4 = vld [vmem:[%s6087_s5 + $0xa6c] ss:$16 sps:$4 sm:$0xff]   ;;  %v5084_v11 = vld [vmem:[%s6087_s5 + $0x888] ss:$16 sps:$4 sm:$0xff]  }
 0x209   : > { %3754 = vmatpush1.bf16.msra.mxu0 %v5000_v13  ;;  %v5089_v9 = vld [vmem:[%s6087_s5 + $0xa8c] ss:$16 sps:$4 sm:$0xff]   ;;  %v5087_v12 = vld [vmem:[%s6087_s5 + $0xa88] ss:$16 sps:$4 sm:$0xff]  }
 0x20a   : > { %3795 = vmatpush1.bf16.msra.mxu1 %v5003_v14  ;;  %3755 = vmatprep.subr.bf16.mxu0 %v5008_v19  ;;  %v5092_v13 = vld [vmem:[%s6087_s5 + $0x8ac] ss:$16 sps:$4 sm:$0xff]   ;;  %v5090_v15 = vld [vmem:[%s6087_s5 + $0x8a8] ss:$16 sps:$4 sm:$0xff]  }
 0x20b   : > { %3796 = vmatprep.subr.bf16.mxu1 %v5011_v20  ;;  %v5095_v14 = vld [vmem:[%s6087_s5 + $0xaac] ss:$16 sps:$4 sm:$0xff]   ;;  %v5093_v16 = vld [vmem:[%s6087_s5 + $0xaa8] ss:$16 sps:$4 sm:$0xff]  }
 0x20c   : > { %v5098_v19 = vld [vmem:[%s6087_s5 + $0x8cc] ss:$16 sps:$4 sm:$0xff]  }
 0x20d   : > { %3756 = vmatpush1.bf16.msra.mxu0 %v5006_v21  ;;  %v5101_v20 = vld [vmem:[%s6087_s5 + $0xacc] ss:$16 sps:$4 sm:$0xff]  }
 0x20e   : > { %3797 = vmatpush1.bf16.msra.mxu1 %v5009_v22  ;;  %3757 = vmatprep.subr.bf16.mxu0 %v5014_v27 }
 0x20f   : > { %3798 = vmatprep.subr.bf16.mxu1 %v5017_v28 }
 0x211   : > { %3758 = vmatpush1.bf16.msra.mxu0 %v5012_v29 }
 0x212   : > { %3799 = vmatpush1.bf16.msra.mxu1 %v5015_v30  ;;  %3759 = vmatprep.subr.bf16.mxu0 %v5020_v31 }
 0x213   : > { %3800 = vmatprep.subr.bf16.mxu1 %v5023_v32 }
 0x215   : > { %3760 = vmatpush1.bf16.msra.mxu0 %v5018_v33  ;;  %v5096_v33 = vld [vmem:[%s6087_s5 + $0x8c8] ss:$16 sps:$4 sm:$0xff]  }
 0x216   : > { %3801 = vmatpush1.bf16.msra.mxu1 %v5021_v34  ;;  %3761 = vmatprep.subr.bf16.mxu0 %v5026_v39  ;;  %v5099_v34 = vld [vmem:[%s6087_s5 + $0xac8] ss:$16 sps:$4 sm:$0xff]  }
 0x217   : > { %3802 = vmatprep.subr.bf16.mxu1 %v5029_v40 }
 0x219   : > { %3762 = vmatpush1.bf16.msra.mxu0 %v5024_v41 }
 0x21a   : > { %3803 = vmatpush1.bf16.msra.mxu1 %v5027_v42  ;;  %3763 = vmatprep.subr.bf16.mxu0 %v5032_v23  ;;  %v5102_v23 = vld [vmem:[%s6087_s5 + $0x8e8] ss:$16 sps:$4 sm:$0xff]  }
 0x21b   : > { %3804 = vmatprep.subr.bf16.mxu1 %v5035_v24  ;;  %v5105_v24 = vld [vmem:[%s6087_s5 + $0xae8] ss:$16 sps:$4 sm:$0xff]  }
 0x21d   : > { %3764 = vmatpush1.bf16.msra.mxu0 %v5030_v43  ;;  %v5110_v43 = vld [vmem:[%s6087_s5 + $0x90c] ss:$16 sps:$4 sm:$0xff]  }
 0x21e   : > { %3805 = vmatpush1.bf16.msra.mxu1 %v5033_v44  ;;  %3765 = vmatprep.subr.bf16.mxu0 %v5038_v45  ;;  %v5113_v44 = vld [vmem:[%s6087_s5 + $0xb0c] ss:$16 sps:$4 sm:$0xff]   ;;  %v5108_v45 = vld [vmem:[%s6087_s5 + $0x908] ss:$16 sps:$4 sm:$0xff]  }
 0x21f   : > { %3806 = vmatprep.subr.bf16.mxu1 %v5041_v46  ;;  %v5111_v46 = vld [vmem:[%s6087_s5 + $0xb08] ss:$16 sps:$4 sm:$0xff]  }
 0x221   : > { %3766 = vmatpush1.bf16.msra.mxu0 %v5036_v47  ;;  %v5116_v47 = vld [vmem:[%s6087_s5 + $0x92c] ss:$16 sps:$4 sm:$0xff]  }
 0x222   : > { %3807 = vmatpush1.bf16.msra.mxu1 %v5039_v49  ;;  %3767 = vmatprep.subr.bf16.mxu0 %v5044_v50  ;;  %v5119_v49 = vld [vmem:[%s6087_s5 + $0xb2c] ss:$16 sps:$4 sm:$0xff]   ;;  %v5114_v50 = vld [vmem:[%s6087_s5 + $0x928] ss:$16 sps:$4 sm:$0xff]  }
 0x223   : > { %3808 = vmatprep.subr.bf16.mxu1 %v5047_v48  ;;  %v5117_v48 = vld [vmem:[%s6087_s5 + $0xb28] ss:$16 sps:$4 sm:$0xff]  }
 0x225   : > { %3768 = vmatpush1.bf16.msra.mxu0 %v5042_v52  ;;  %v5122_v52 = vld [vmem:[%s6087_s5 + $0x94c] ss:$16 sps:$4 sm:$0xff]  }
 0x226   : > { %3809 = vmatpush1.bf16.msra.mxu1 %v5045_v51  ;;  %3769 = vmatprep.subr.bf16.mxu0 %v5050_v53  ;;  %v5125_v51 = vld [vmem:[%s6087_s5 + $0xb4c] ss:$16 sps:$4 sm:$0xff]   ;;  %v5120_v53 = vld [vmem:[%s6087_s5 + $0x948] ss:$16 sps:$4 sm:$0xff]  }
 0x227   : > { %3810 = vmatprep.subr.bf16.mxu1 %v5053_v54  ;;  %v5123_v54 = vld [vmem:[%s6087_s5 + $0xb48] ss:$16 sps:$4 sm:$0xff]  }
 0x229   : > { %3770 = vmatpush1.bf16.msra.mxu0 %v5048_v7  ;;  %v5128_v7 = vld [vmem:[%s6087_s5 + $0x96c] ss:$16 sps:$4 sm:$0xff]  }
 0x22a   : > { %3811 = vmatpush1.bf16.msra.mxu1 %v5051_v8  ;;  %3771 = vmatprep.subr.bf16.mxu0 %v5056_v55  ;;  %v5131_v8 = vld [vmem:[%s6087_s5 + $0xb6c] ss:$16 sps:$4 sm:$0xff]   ;;  %v5126_v55 = vld [vmem:[%s6087_s5 + $0x968] ss:$16 sps:$4 sm:$0xff]  }
 0x22b   : > { %3812 = vmatprep.subr.bf16.mxu1 %v5059_v56  ;;  %v5129_v56 = vld [vmem:[%s6087_s5 + $0xb68] ss:$16 sps:$4 sm:$0xff]  }
 0x22d   : > { %3772 = vmatpush1.bf16.msra.mxu0 %v5054_v57  ;;  %v5134_v57 = vld [vmem:[%s6087_s5 + $0x98c] ss:$16 sps:$4 sm:$0xff]  }
 0x22e   : > { %3813 = vmatpush1.bf16.msra.mxu1 %v5057_v37  ;;  %3823 = vmatprep.subr.bf16.mxu0 %v5062_v38  ;;  %v5137_v37 = vld [vmem:[%s6087_s5 + $0xb8c] ss:$16 sps:$4 sm:$0xff]   ;;  %v5132_v38 = vld [vmem:[%s6087_s5 + $0x988] ss:$16 sps:$4 sm:$0xff]  }
 0x22f   : > { %3864 = vmatprep.subr.bf16.mxu1 %v5065_v58  ;;  %v5135_v58 = vld [vmem:[%s6087_s5 + $0xb88] ss:$16 sps:$4 sm:$0xff]  }
 0x230   : > { %3774 = vmatmul.mubr.bf16.vlgmr.msra.gmra.mrb[16].mxu0 %v6252_v17  ;;  %v5072_v17 = vld [vmem:[%s6087_s5 + $0x848] ss:$16 sps:$4 sm:$0xff]  }
 0x231   : > { %3815 = vmatmul.mubr.bf16.vlgmr.msra.gmra.mrb[16].mxu1 %v6256_v18  ;;  %3824 = vmatpush1.bf16.msra.mxu0 %v5060_v59  ;;  %v5075_v18 = vld [vmem:[%s6087_s5 + $0xa48] ss:$16 sps:$4 sm:$0xff]   ;;  %v5140_v59 = vld [vmem:[%s6087_s5 + $0x9ac] ss:$16 sps:$4 sm:$0xff]  }
 0x232   : > { %3865 = vmatpush1.bf16.msra.mxu1 %v5063_v60  ;;  %3825 = vmatprep.subr.bf16.mxu0 %v5068_v61  ;;  %v5143_v60 = vld [vmem:[%s6087_s5 + $0xbac] ss:$16 sps:$4 sm:$0xff]   ;;  %v5138_v61 = vld [vmem:[%s6087_s5 + $0x9a8] ss:$16 sps:$4 sm:$0xff]  }
 0x233   : > { %3866 = vmatprep.subr.bf16.mxu1 %v5071_v62  ;;  %3855 = vmatprep.mubr.bf16.mxu0 %v6270_v25  ;;  %v5081_v25 = vld [vmem:[%s6087_s5 + $0xa68] ss:$16 sps:$4 sm:$0xff]  }
 0x234   : > { %3896 = vmatprep.mubr.bf16.mxu1 %v6274_v26  ;;  %v5086_v26 = vld [vmem:[%s6087_s5 + $0x88c] ss:$16 sps:$4 sm:$0xff]   ;;  %v5141_v62 = vld [vmem:[%s6087_s5 + $0xba8] ss:$16 sps:$4 sm:$0xff]  }
 0x235   : > { %3826 = vmatpush1.bf16.msra.mxu0 %v5066_v63  ;;  %v5146_v63 = vld [vmem:[%s6087_s5 + $0x9cc] ss:$16 sps:$4 sm:$0xff]  }
 0x236   : > { %3867 = vmatpush1.bf16.msra.mxu1 %v5069_v0  ;;  %3827 = vmatprep.subr.bf16.mxu0 %v5074_v1  ;;  %v5149_v0 = vld [vmem:[%s6087_s5 + $0xbcc] ss:$16 sps:$4 sm:$0xff]   ;;  %v5144_v1 = vld [vmem:[%s6087_s5 + $0x9c8] ss:$16 sps:$4 sm:$0xff]  }
 0x237   : > { %3868 = vmatprep.subr.bf16.mxu1 %v5077_v2  ;;  %v5147_v2 = vld [vmem:[%s6087_s5 + $0xbc8] ss:$16 sps:$4 sm:$0xff]  }
 0x239   : > { %3828 = vmatpush1.bf16.msra.mxu0 %v5072_v17  ;;  %v5152_v17 = vld [vmem:[%s6087_s5 + $0x9ec] ss:$16 sps:$4 sm:$0xff]  }
 0x23a   : > { %3869 = vmatpush1.bf16.msra.mxu1 %v5075_v18  ;;  %3829 = vmatprep.subr.bf16.mxu0 %v5080_v3  ;;  %v5155_v18 = vld [vmem:[%s6087_s5 + $0xbec] ss:$16 sps:$4 sm:$0xff]   ;;  %v5150_v3 = vld [vmem:[%s6087_s5 + $0x9e8] ss:$16 sps:$4 sm:$0xff]  }
 0x23b   : > { %3870 = vmatprep.subr.bf16.mxu1 %v5083_v4  ;;  %v5153_v4 = vld [vmem:[%s6087_s5 + $0xbe8] ss:$16 sps:$4 sm:$0xff]  }
 0x23d   : > { %3830 = vmatpush1.bf16.msra.mxu0 %v5078_v6 }
 0x23e   : > { %3871 = vmatpush1.bf16.msra.mxu1 %v5081_v25  ;;  %3831 = vmatprep.subr.bf16.mxu0 %v5086_v26 }
 0x23f   : > { %3872 = vmatprep.subr.bf16.mxu1 %v5089_v9 }
 0x241   : > { %3832 = vmatpush1.bf16.msra.mxu0 %v5084_v11 }
 0x242   : > { %3873 = vmatpush1.bf16.msra.mxu1 %v5087_v12  ;;  %3833 = vmatprep.subr.bf16.mxu0 %v5092_v13  ;;  %v1057_v12 = vld [vmem:[#allocation2] sm:$0xff] }
 0x243   : > { %3874 = vmatprep.subr.bf16.mxu1 %v5095_v14  ;;  %v3529_v21 = vpop.f32.mrb[4].mxu0 }
 0x244   : > { %v3570_v22 = vpop.f32.mrb[4].mxu1  ;;  %v3530_v27 = vadd.f32 %v3529_v21, %v6444_v5  ;;  %v3531_v28 = vpop.f32.mrb[5].mxu0  ;;  %v5104_v5 = vld [vmem:[%s6087_s5 + $0x8ec] ss:$16 sps:$4 sm:$0xff]  }
 0x245   : > { %v3572_v29 = vpop.f32.mrb[5].mxu1  ;;  %v3532_v30 = vadd.f32 %v3531_v28, %v6446_v10  ;;  %v3533_v31 = vpop.f32.mrb[6].mxu0  ;;  %3834 = vmatpush1.bf16.msra.mxu0 %v5090_v15  ;;  %v5107_v10 = vld [vmem:[%s6087_s5 + $0xaec] ss:$16 sps:$4 sm:$0xff]  }
 0x246   : > { %v3574_v32 = vpop.f32.mrb[6].mxu1  ;;  %3875 = vmatpush1.bf16.msra.mxu1 %v5093_v16  ;;  %v6520_v39 = vadd.f32 %v3570_v22, %v3530_v27  ;;  %v3534_v40 = vpop.f32.mrb[7].mxu0  ;;  %3835 = vmatprep.subr.bf16.mxu0 %v5098_v19  ;;  %v1058_v19 = vld [vmem:[#allocation2 + $0x8] sm:$0xff] }
 0x247   : > { %v3575_v41 = vpop.f32.mrb[7].mxu1  ;;  %3876 = vmatprep.subr.bf16.mxu1 %v5101_v20  ;;  %v6524_v42 = vadd.f32 %v3572_v29, %v3532_v30 }
 0x249   : > { %3836 = vmatpush1.bf16.msra.mxu0 %v5096_v33 }
 0x24a   : > { %3877 = vmatpush1.bf16.msra.mxu1 %v5099_v34  ;;  %3837 = vmatprep.subr.bf16.mxu0 %v5104_v5 }
 0x24b   : > { %3878 = vmatprep.subr.bf16.mxu1 %v5107_v10 }
 0x24d   : > { %3838 = vmatpush1.bf16.msra.mxu0 %v5102_v23 }
 0x24e   : > { %3879 = vmatpush1.bf16.msra.mxu1 %v5105_v24  ;;  %3839 = vmatprep.subr.bf16.mxu0 %v5110_v43 }
 0x24f   : > { %3880 = vmatprep.subr.bf16.mxu1 %v5113_v44 }
 0x251   : > { %3840 = vmatpush1.bf16.msra.mxu0 %v5108_v45 }
 0x252   : > { %3881 = vmatpush1.bf16.msra.mxu1 %v5111_v46  ;;  %3841 = vmatprep.subr.bf16.mxu0 %v5116_v47 }
 0x253   : > { %3882 = vmatprep.subr.bf16.mxu1 %v5119_v49 }
 0x255   : > { %3842 = vmatpush1.bf16.msra.mxu0 %v5114_v50 }
 0x256   : > { %3883 = vmatpush1.bf16.msra.mxu1 %v5117_v48  ;;  %3843 = vmatprep.subr.bf16.mxu0 %v5122_v52 }
 0x257   : > { %3884 = vmatprep.subr.bf16.mxu1 %v5125_v51 }
 0x259   : > { %3844 = vmatpush1.bf16.msra.mxu0 %v5120_v53 }
 0x25a   : > { %3885 = vmatpush1.bf16.msra.mxu1 %v5123_v54  ;;  %3845 = vmatprep.subr.bf16.mxu0 %v5128_v7  ;;  %v1059_v54 = vld [vmem:[#allocation2 + $0x10] sm:$0xff] }
 0x25b   : > { %3886 = vmatprep.subr.bf16.mxu1 %v5131_v8 }
 0x25d   : > { %3846 = vmatpush1.bf16.msra.mxu0 %v5126_v55 }
 0x25e   : > { %3887 = vmatpush1.bf16.msra.mxu1 %v5129_v56  ;;  %3847 = vmatprep.subr.bf16.mxu0 %v5134_v57  ;;  %v1060_v57 = vld [vmem:[#allocation2 + $0x18] sm:$0xff] }
 0x25f   : > { %3888 = vmatprep.subr.bf16.mxu1 %v5137_v37 }
 0x261   : > { %3848 = vmatpush1.bf16.msra.mxu0 %v5132_v38 }
 0x262   : > { %3889 = vmatpush1.bf16.msra.mxu1 %v5135_v58  ;;  %3849 = vmatprep.subr.bf16.mxu0 %v5140_v59 }
 0x263   : > { %3890 = vmatprep.subr.bf16.mxu1 %v5143_v60 }
 0x265   : > { %3850 = vmatpush1.bf16.msra.mxu0 %v5138_v61  ;;  %v3923_v61 = vlaneseq (!%p4501_p13) }
 0x266   : > { %3891 = vmatpush1.bf16.msra.mxu1 %v5141_v62  ;;  %3851 = vmatprep.subr.bf16.mxu0 %v5146_v63  ;;  %v3921_v63 = vld [vmem:[%s1037_s12] sm:$0xf] (!%p4501_p13) }
 0x267   : > { %3892 = vmatprep.subr.bf16.mxu1 %v5149_v0  ;;  %v3924_v62 = vshrl.u32 (!%p4501_p13), %v3923_v61, 7 }
 0x269   : > { %3852 = vmatpush1.bf16.msra.mxu0 %v5144_v1  ;;  %v3925_v1 = vsub.s32 (!%p4501_p13), 0, %v3924_v62 }
 0x26a   : > { %3893 = vmatpush1.bf16.msra.mxu1 %v5147_v2  ;;  %3853 = vmatprep.subr.bf16.mxu0 %v5152_v17  ;;  %v3929_v2 = vsub.s32 (!%p4501_p13), 1, %v3924_v62  ;;  %v3933_v17 = vsub.s32 (!%p4501_p13), 2, %v3924_v62 }
 0x26b   : > { %3894 = vmatprep.subr.bf16.mxu1 %v5155_v18  ;;  %v3937_v18 = vsub.s32 (!%p4501_p13), 3, %v3924_v62 }
 0x26d   : > { %3854 = vmatpush1.bf16.msra.mxu0 %v5150_v3 }
 0x26e   : > { %3895 = vmatpush1.bf16.msra.mxu1 %v5153_v4 }
 0x270   : > { %3856 = vmatmul.mubr.bf16.vlgmr.msra.gmra.mrb[20].mxu0 %v6342_v35 }
 0x271   : > { %3897 = vmatmul.mubr.bf16.vlgmr.msra.gmra.mrb[20].mxu1 %v6346_v36 }
 0x283   : > { %v3611_v6 = vpop.f32.mrb[8].mxu0 }
 0x284   : > { %v3652_v25 = vpop.f32.mrb[8].mxu1  ;;  %v3612_v26 = vadd.f32 %v3611_v6, %v6520_v39  ;;  %v3613_v9 = vpop.f32.mrb[9].mxu0 }
 0x285   : > { %v3654_v11 = vpop.f32.mrb[9].mxu1  ;;  %v3614_v13 = vadd.f32 %v3613_v9, %v6524_v42  ;;  %v3615_v14 = vpop.f32.mrb[10].mxu0  ;;  %v3934_v9 = vrot.slane (!%p4501_p13), %v3921_v63, %v3933_v17 }
 0x286   : > { %v3656_v15 = vpop.f32.mrb[10].mxu1  ;;  %v3653_v16 = vadd.f32 %v3652_v25, %v3612_v26  ;;  %v3616_v20 = vpop.f32.mrb[11].mxu0  ;;  %v3926_v25 = vrot.slane (!%p4501_p13), %v3921_v63, %v3925_v1  ;;  %v3930_v26 = vrot.slane (!%p4501_p13), %v3921_v63, %v3929_v2 }
 0x287   : > { %v3657_v21 = vpop.f32.mrb[11].mxu1  ;;  %v3655_v22 = vadd.f32 %v3654_v11, %v3614_v13  ;;  %v3938_v11 = vrot.slane (!%p4501_p13), %v3921_v63, %v3937_v18 }
 0x288   : > { %v3905_v27 = vadd.f32 %v3653_v16, %v1057_v12 }
 0x289   : > { %v3906_v35 = vadd.f32 %v3655_v22, %v1058_v19 }
 0x28a   : > { %3909 = vst [vmem:[#allocation2] sm:$0xff] %v3905_v27 }
 0x28b   : > { %3910 = vst [vmem:[#allocation2 + $0x8] sm:$0xff] %v3906_v35 }
 0x291   : > { %v3917_v0 = vld [vmem:[#allocation2] sm:$0xff] (!%p4501_p13) }
 0x292   : > { %v3918_v3 = vld [vmem:[#allocation2 + $0x8] sm:$0xff] (!%p4501_p13)  ;;  %v3943_v12 = vadd.f32 (!%p4501_p13), %v3926_v25, %v3917_v0 }
 0x293   : > { %v3944_v13 = vadd.f32 (!%p4501_p13), %v3930_v26, %v3918_v3 }
 0x294   : > { %v3947_v16 = vmax.f32 (!%p4501_p13), %v3943_v12, 0.0 }
 0x295   : > { %v3948_v19 = vmax.f32 (!%p4501_p13), %v3944_v13, 0.0 }
 0x297   : > { %v4507_v22 = vpack.c.bf16 (!%p4501_p13), %v3948_v19, %v3947_v16 }
 0x299   : > { %3967 = vst [vmem:[%s6085_s4] sm:$0xff] (!%p4501_p13), %v4507_v22 }
 0x2c3   : > { %v3693_v36 = vpop.f32.mrb[12].mxu0 }
 0x2c4   : > { %v3734_v28 = vpop.f32.mrb[12].mxu1  ;;  %v3695_v30 = vpop.f32.mrb[13].mxu0 }
 0x2c5   : > { %v3735_v29 = vadd.f32 %v3734_v28, %v3693_v36  ;;  %v3736_v31 = vpop.f32.mrb[13].mxu1  ;;  %v3697_v33 = vpop.f32.mrb[14].mxu0 }
 0x2c6   : > { %v3737_v32 = vadd.f32 %v3736_v31, %v3695_v30  ;;  %v3738_v34 = vpop.f32.mrb[14].mxu1  ;;  %v3698_v39 = vpop.f32.mrb[15].mxu0 }
 0x2c7   : > { %v3739_v40 = vpop.f32.mrb[15].mxu1 }
 0x303   : > { %v3775_v41 = vpop.f32.mrb[16].mxu0 }
 0x304   : > { %v3816_v5 = vpop.f32.mrb[16].mxu1  ;;  %v3776_v10 = vadd.f32 %v3775_v41, %v3735_v29  ;;  %v3777_v42 = vpop.f32.mrb[17].mxu0 }
 0x305   : > { %v3818_v23 = vpop.f32.mrb[17].mxu1  ;;  %v3778_v24 = vadd.f32 %v3777_v42, %v3737_v32  ;;  %v3779_v43 = vpop.f32.mrb[18].mxu0 }
 0x306   : > { %v3820_v44 = vpop.f32.mrb[18].mxu1  ;;  %v3817_v45 = vadd.f32 %v3816_v5, %v3776_v10  ;;  %v3780_v46 = vpop.f32.mrb[19].mxu0 }
 0x307   : > { %v3821_v47 = vpop.f32.mrb[19].mxu1  ;;  %v3819_v49 = vadd.f32 %v3818_v23, %v3778_v24 }
 0x343   : > { %v3857_v50 = vpop.f32.mrb[20].mxu0 }
 0x344   : > { %v3898_v48 = vpop.f32.mrb[20].mxu1  ;;  %v3858_v52 = vadd.f32 %v3857_v50, %v3817_v45  ;;  %v3859_v51 = vpop.f32.mrb[21].mxu0 }
 0x345   : > { %v3900_v53 = vpop.f32.mrb[21].mxu1  ;;  %v3860_v7 = vadd.f32 %v3859_v51, %v3819_v49  ;;  %v3861_v8 = vpop.f32.mrb[22].mxu0  ;;  %3916 = sbr.rel (%p4501_p13) target bundleno = 858 (0x35a), region = 63 }
 0x346   : > { %v3902_v55 = vpop.f32.mrb[22].mxu1  ;;  %v3899_v56 = vadd.f32 %v3898_v48, %v3858_v52  ;;  %v3862_v37 = vpop.f32.mrb[23].mxu0 }
 0x347   : > { %v3903_v38 = vpop.f32.mrb[23].mxu1  ;;  %v3901_v58 = vadd.f32 %v3900_v53, %v3860_v7 }
 0x348   : > { %v3907_v59 = vadd.f32 %v3899_v56, %v1059_v54 }
 0x349   : > { %v3908_v60 = vadd.f32 %v3901_v58, %v1060_v57 }
 0x34a   : > { %3911 = vst [vmem:[#allocation2 + $0x10] sm:$0xff] %v3907_v59 }
 0x34b   : > { %3912 = vst [vmem:[#allocation2 + $0x18] sm:$0xff] %v3908_v60 }
 0x351   : > { %v3919_v4 = vld [vmem:[#allocation2 + $0x10] sm:$0xff] }
 0x352   : > { %v3920_v6 = vld [vmem:[#allocation2 + $0x18] sm:$0xff]  ;;  %v3945_v14 = vadd.f32 %v3934_v9, %v3919_v4 }
 0x353   : > { %v3946_v15 = vadd.f32 %v3938_v11, %v3920_v6 }
 0x354   : > { %v3949_v20 = vmax.f32 %v3945_v14, 0.0 }
 0x355   : > { %v3950_v21 = vmax.f32 %v3946_v15, 0.0 }
 0x357   : > { %v4508_v27 = vpack.c.bf16 %v3950_v21, %v3949_v20 }
 0x359   : > { %3968 = vst [vmem:[%s6085_s4 + $0x8] sm:$0xff] %v4508_v27 }
 0x35a PF: > { %s13_s18 = sadd.s32 1, %s5210_s18   ;;  %s6597_s12 = smov %s5190_s13 }
 0x35b   : > { %p10_p0 = scmp.ge.s32.totalorder %s13_s18, 20   ;;  %s6598_s13 = smov %s5284_s25 }
 0x35c   : > { %s6599_s14 = smov %s5202_s16  ;;  %s6600_s15 = smov %s5206_s17 }
 0x35d   : > { %s6601_s16 = smov %s6604_s19  ;;  %s6602_s17 = smov %s6608_s20 }
 0x35e   :  { %12 = sbr.rel (!%p10_p0) target bundleno = 4 (0x4), region = 104 }

</bundles_post_ra>
